<compile_context>
chip_gen: v6e
topology: v6e:2x2x1
jax: 0.10.0
libtpu: 0.0.40
codegen_flags: <defaults>
</compile_context>

<pallas_src>
import jax
import jax.numpy as jnp
from jax import lax
from jax.experimental import pallas as pl
from jax.experimental.pallas import tpu as pltpu

# ----------------------------- MANO-sized constants -----------------------------
N_VERTS = 778
V_PAD = 896            # 778 padded up to a multiple of 128 (lane width)
N_JOINTS = 16
N_COMPS = 24           # use_pca=True, ncomps=24
N_SHAPE = 10
N_POSE_FEAT = 15 * 9   # 135
N_FACES = 1538
N_CLOSED_FACES = 1554
N_ANCHORS = 32
MANO_PARENTS = (-1, 0, 1, 2, 0, 4, 5, 0, 7, 8, 0, 10, 11, 0, 13, 14)
CMAP_ALPHA = 100.0     # contact_map_of_m_to_n sharpness (distances in meters)
PAD_SENTINEL = 1.0e6   # padded hand vertices are pushed far away so they never win the NN
TM_OBJ = 256           # max object-point tile (lane axis); multiple of 128, VMEM-safe


# =============================== Pallas kernels ===============================

def _lbs_anchor_kernel(vp_ref, a_ref, tr_ref, wT_ref, wa_ref, verts_ref, anchors_ref):
    """Per-batch LBS skinning + global translation + anchor layer, lane-dense over V."""
    vp = vp_ref[0]              # (3, V_PAD)  pose/shape-blended rest vertices, transposed
    a_t = a_ref[0]              # (12, 16)    per-joint relative transforms, transposed
    tr = tr_ref[0]              # (3, 1)      global translation
    wT = wT_ref[...]            # (16, V_PAD) skinning weights, transposed
    wa = wa_ref[...]            # (32, V_PAD) barycentric anchor matrix

    # Per-vertex affine transform, transposed: T^T = A^T @ W^T -> (12, V_PAD) on the MXU.
    Tt = jnp.dot(a_t, wT, preferred_element_type=jnp.float32)

    vx = vp[0:1, :]
    vy = vp[1:2, :]
    vz = vp[2:3, :]

    ox = Tt[0:1] * vx + Tt[1:2] * vy + Tt[2:3] * vz + Tt[3:4] + tr[0:1]
    oy = Tt[4:5] * vx + Tt[5:6] * vy + Tt[6:7] * vz + Tt[7:8] + tr[1:2]
    oz = Tt[8:9] * vx + Tt[9:10] * vy + Tt[10:11] * vz + Tt[11:12] + tr[2:3]
    out3 = jnp.concatenate([ox, oy, oz], axis=0)                     # (3, V_PAD)

    # AnchorLayer: anchors^T (3, 32) = verts (3, V_PAD) . wa (32, V_PAD) contracted over V.
    # Computed from the pre-sentinel values (padded lanes have zero anchor weight anyway).
    anchors_ref[0] = lax.dot_general(
        out3, wa, (((1,), (1,)), ((), ())), preferred_element_type=jnp.float32)

    # Push padded lanes far away so they can never be a nearest neighbor downstream.
    lane = lax.broadcasted_iota(jnp.int32, (1, V_PAD), 1)
    valid = lane < N_VERTS
    verts_ref[0] = jnp.where(valid, out3, PAD_SENTINEL)


def _nn_contact_kernel(lhs_ref, obj_ref, cmap_ref, pen_ref):
    """One object-point tile: fused d2 / normal-dot matmul, NN over sublanes, lane-dense out."""
    lhs = lhs_ref[0]            # (2*V_PAD, 8)  rows 0..V-1: [-2v, |v|^2, 1, 0..]
                                #               rows V..2V-1: [n, -n.v, 0, 0..]
    rhs = obj_ref[0]            # (8, TM)       rows: [o_x, o_y, o_z, 1, |o|^2, 0, 0, 0]

    prod = jnp.dot(lhs, rhs, preferred_element_type=jnp.float32)   # (2*V_PAD, TM)
    d2 = prod[:V_PAD, :]        # |o - v|^2        (verts on sublanes, obj points on lanes)
    dotmat = prod[V_PAD:, :]    # n . (o - v)

    # Nearest hand vertex per object point (reduce over the sublane / V axis).
    nn_d2_raw = jnp.min(d2, axis=0, keepdims=True)                 # (1, TM)
    is_min = d2 <= nn_d2_raw
    row = lax.broadcasted_iota(jnp.int32, d2.shape, 0).astype(jnp.float32)
    nn_row = jnp.min(jnp.where(is_min, row, float(V_PAD)), axis=0, keepdims=True)
    sel_dot = jnp.sum(jnp.where(row == nn_row, dotmat, 0.0), axis=0, keepdims=True)

    nn_d2 = jnp.maximum(nn_d2_raw, 0.0)
    dist = jnp.sqrt(nn_d2)

    # contact_map_of_m_to_n: 1 - 2*(sigmoid(alpha*d) - 0.5) == 2*sigmoid(-alpha*d)
    e = jnp.exp(-CMAP_ALPHA * dist)                                # EUP, no overflow (d >= 0)
    cmap_ref[0] = (2.0 * e) * pl.reciprocal(1.0 + e, approx=True)  # EUP rcp, free slot

    # Interior test (get_interior): (obj - v_nn) . n_nn < 0  ->  accumulate squared NN dist.
    pen_ref[0] = jnp.where(sel_dot < 0.0, nn_d2, 0.0)


# =============================== Pallas wrappers ===============================

def lbs_anchor_pallas(vp_t, a_t, trans, lbs_weights_t, w_anchor):
    B = vp_t.shape[0]
    trans3 = trans.reshape(B, 3, 1)
    verts_t, anchors_t = pl.pallas_call(
        _lbs_anchor_kernel,
        out_shape=(jax.ShapeDtypeStruct((B, 3, V_PAD), jnp.float32),
                   jax.ShapeDtypeStruct((B, 3, N_ANCHORS), jnp.float32)),
        grid=(B,),
        in_specs=[
            pl.BlockSpec((1, 3, V_PAD), lambda b: (b, 0, 0)),
            pl.BlockSpec((1, 12, N_JOINTS), lambda b: (b, 0, 0)),
            pl.BlockSpec((1, 3, 1), lambda b: (b, 0, 0)),
            pl.BlockSpec((N_JOINTS, V_PAD), lambda b: (0, 0)),
            pl.BlockSpec((N_ANCHORS, V_PAD), lambda b: (0, 0)),
        ],
        out_specs=(pl.BlockSpec((1, 3, V_PAD), lambda b: (b, 0, 0)),
                   pl.BlockSpec((1, 3, N_ANCHORS), lambda b: (b, 0, 0))),
        compiler_params=pltpu.CompilerParams(dimension_semantics=("parallel",)),
    )(vp_t, a_t, trans3, lbs_weights_t, w_anchor)
    return verts_t, anchors_t


def nn_contact_pallas(lhs_aug, obj_aug, tm):
    B, _, m_pad = obj_aug.shape
    spec_out = pl.BlockSpec((1, 1, tm), lambda b, m: (b, 0, m))
    cmap_p, pen_p = pl.pallas_call(
        _nn_contact_kernel,
        out_shape=(jax.ShapeDtypeStruct((B, 1, m_pad), jnp.float32),
                   jax.ShapeDtypeStruct((B, 1, m_pad), jnp.float32)),
        grid=(B, m_pad // tm),
        in_specs=[
            pl.BlockSpec((1, 2 * V_PAD, 8), lambda b, m: (b, 0, 0)),
            pl.BlockSpec((1, 8, tm), lambda b, m: (b, 0, m)),
        ],
        out_specs=(spec_out, spec_out),
        compiler_params=pltpu.CompilerParams(
            dimension_semantics=("parallel", "parallel"),
            vmem_limit_bytes=32 * 1024 * 1024),
    )(lhs_aug, obj_aug)
    return cmap_p, pen_p


# =============================== JAX glue (MANO) ===============================

def rodrigues(rvec):
    """Axis-angle (..., 3) -> rotation matrices (..., 3, 3)."""
    angle = jnp.sqrt(jnp.sum(rvec * rvec, axis=-1, keepdims=True) + 1e-16)
    axis = rvec / angle
    x, y, z = axis[..., 0], axis[..., 1], axis[..., 2]
    c = jnp.cos(angle[..., 0])
    s = jnp.sin(angle[..., 0])
    C = 1.0 - c
    row0 = jnp.stack([c + x * x * C, x * y * C - z * s, x * z * C + y * s], axis=-1)
    row1 = jnp.stack([y * x * C + z * s, c + y * y * C, y * z * C - x * s], axis=-1)
    row2 = jnp.stack([z * x * C - y * s, z * y * C + x * s, c + z * z * C], axis=-1)
    return jnp.stack([row0, row1, row2], axis=-2)


def mano_pose_glue(params, pose_coeffs, beta):
    """ManoLayer glue: PCA pose -> blendshapes + kinematic chain (tiny, stays in XLA)."""
    B = pose_coeffs.shape[0]
    global_rot = pose_coeffs[:, :3]
    pca = pose_coeffs[:, 3:]
    hand_pose = params["hands_mean"][None] + pca @ params["comps"]        # (B, 45)
    full_pose = jnp.concatenate([global_rot, hand_pose], axis=1)          # (B, 48)

    rot = rodrigues(full_pose.reshape(B, N_JOINTS, 3))                    # (B,16,3,3)
    eye = jnp.eye(3, dtype=jnp.float32)
    pose_feat = (rot[:, 1:] - eye).reshape(B, N_POSE_FEAT)                # (B,135)

    v_shaped = params["v_template"][None] + jnp.einsum(
        "vcs,bs->bvc", params["shapedirs"], beta)                         # (B,V,3)
    joints = jnp.einsum("jv,bvc->bjc", params["J_regressor"], v_shaped)   # (B,16,3)
    v_posed = v_shaped + jnp.einsum("vcp,bp->bvc", params["posedirs"], pose_feat)

    def make_T(R, t):
        top = jnp.concatenate([R, t[..., None]], axis=-1)                 # (B,3,4)
        bot = jnp.broadcast_to(jnp.array([0., 0., 0., 1.], jnp.float32), (B, 1, 4))
        return jnp.concatenate([top, bot], axis=-2)                       # (B,4,4)

    G = [make_T(rot[:, 0], joints[:, 0])]
    for k in range(1, N_JOINTS):
        p = MANO_PARENTS[k]
        T_local = make_T(rot[:, k], joints[:, k] - joints[:, p])
        G.append(jnp.einsum("bij,bjk->bik", G[p], T_local))
    G = jnp.stack(G, axis=1)                                              # (B,16,4,4)

    R_glob = G[:, :, :3, :3]
    t_glob = G[:, :, :3, 3]
    rel_t = t_glob - jnp.einsum("bkij,bkj->bki", R_glob, joints)          # remove rest pose
    a_flat = jnp.concatenate([R_glob, rel_t[..., None]], axis=-1).reshape(B, N_JOINTS, 12)
    return v_posed.astype(jnp.float32), a_flat.astype(jnp.float32)


def vertex_normals(verts, faces):
    """Area-weighted vertex normals (pytorch3d Meshes.verts_normals semantics)."""
    # TODO(synk): face-based scatter-add has no clean Pallas equivalent; kept as XLA scatter.
    v0 = verts[:, faces[:, 0], :]
    v1 = verts[:, faces[:, 1], :]
    v2 = verts[:, faces[:, 2], :]
    fn = jnp.cross(v1 - v0, v2 - v0)                                      # (B,F,3)
    vn = jnp.zeros_like(verts)
    vn = vn.at[:, faces[:, 0], :].add(fn)
    vn = vn.at[:, faces[:, 1], :].add(fn)
    vn = vn.at[:, faces[:, 2], :].add(fn)
    vn = vn / (jnp.linalg.norm(vn, axis=-1, keepdims=True) + 1e-12)
    return vn


# ============================ HandModel forward ============================

def hand_model_forward(params, hand_pose, obj_points, hand_beta=None,
                       with_penetration=True, with_meshes=False,
                       with_surface_points=True, with_contact_candidates=True,
                       with_penetration_keypoints=True):
    B = hand_pose.shape[0]
    M = obj_points.shape[1]
    if hand_beta is None:
        hand_beta = jnp.zeros((B, N_SHAPE), jnp.float32)

    global_translation = hand_pose[:, 0:3]
    v_posed, a_flat = mano_pose_glue(params, hand_pose[:, 3:], hand_beta)

    # Lane-dense layouts for the LBS kernel: V on lanes, padded to V_PAD.
    vp_t = jnp.zeros((B, 3, V_PAD), jnp.float32).at[:, :, :N_VERTS].set(
        jnp.transpose(v_posed, (0, 2, 1)))
    a_t = jnp.transpose(a_flat, (0, 2, 1))                                # (B, 12, 16)

    # Pallas: LBS skinning + translation + anchor layer.  verts_t stays (B, 3, V_PAD).
    verts_t, anchors_t = lbs_anchor_pallas(
        vp_t, a_t, global_translation, params["lbs_weights_t"], params["w_anchor"])

    hand_verts = jnp.transpose(verts_t, (0, 2, 1))[:, :N_VERTS, :]        # (B, V, 3)
    anchors = jnp.transpose(anchors_t, (0, 2, 1))                         # (B, 32, 3)

    # TODO(synk): real MANO (closed) face topology is not loaded; synthetic faces used for normals.
    normals = vertex_normals(hand_verts, params["closed_faces"])          # (B, V, 3)
    normals_t = jnp.zeros((B, 3, V_PAD), jnp.float32).at[:, :, :N_VERTS].set(
        jnp.transpose(normals, (0, 2, 1)))

    # Build the fused augmented operands (tiny XLA prep, once per forward):
    #   lhs rows 0..V-1  = [-2*v, |v|^2, 1, 0, 0, 0]   -> contracted with rhs gives |o - v|^2
    #   lhs rows V..2V-1 = [ n,  -n.v,  0, 0, 0, 0]    -> contracted with rhs gives n.(o - v)
    #   rhs rows         = [ o_x, o_y, o_z, 1, |o|^2, 0, 0, 0]
    vx, vy, vz = verts_t[:, 0], verts_t[:, 1], verts_t[:, 2]              # (B, V_PAD)
    nx, ny, nz = normals_t[:, 0], normals_t[:, 1], normals_t[:, 2]
    vsq = vx * vx + vy * vy + vz * vz
    nv = nx * vx + ny * vy + nz * vz
    ones_v = jnp.ones_like(vx)
    zeros_v = jnp.zeros_like(vx)
    lhs_v = jnp.stack([-2.0 * vx, -2.0 * vy, -2.0 * vz, vsq, ones_v,
                       zeros_v, zeros_v, zeros_v], axis=-1)               # (B, V_PAD, 8)
    lhs_n = jnp.stack([nx, ny, nz, -nv, zeros_v,
                       zeros_v, zeros_v, zeros_v], axis=-1)               # (B, V_PAD, 8)
    lhs_aug = jnp.concatenate([lhs_v, lhs_n], axis=1)                     # (B, 2*V_PAD, 8)

    # Object-point tile: clamp to the 128-padded point count so small clouds get one tile.
    m_pad128 = pl.cdiv(M, 128) * 128
    tm = min(TM_OBJ, m_pad128)
    m_pad = pl.cdiv(M, tm) * tm
    obj_t = jnp.transpose(obj_points, (0, 2, 1))                          # (B, 3, M)
    osq = jnp.sum(obj_points * obj_points, axis=-1)                       # (B, M)
    ones_m = jnp.ones((B, M), jnp.float32)
    zeros_m = jnp.zeros((B, M), jnp.float32)
    obj_core = jnp.stack([obj_t[:, 0], obj_t[:, 1], obj_t[:, 2], ones_m, osq,
                          zeros_m, zeros_m, zeros_m], axis=1)             # (B, 8, M)
    obj_aug = jnp.zeros((B, 8, m_pad), jnp.float32).at[:, :, :M].set(obj_core)

    # Pallas: fused NN distance + contact map + interior/penetration contributions.
    cmap_p, pen_p = nn_contact_pallas(lhs_aug, obj_aug, tm)
    cmap = cmap_p[:, 0, :M]                                               # (B, M)
    pen_contrib = pen_p[:, 0, :M]                                         # (B, M)

    hand = {}
    hand["cmap"] = cmap
    if with_penetration:
        # inter_penetr_loss: nn_dist[interior].sum() / B  (squared NN distances, as before)
        hand["penetration"] = jnp.sum(pen_contrib) / B
    if with_meshes:
        hand["vertices"] = hand_verts
        hand["faces"] = jnp.broadcast_to(params["faces"][None], (B, N_FACES, 3))
    if with_surface_points:
        hand["surface_points"] = hand_verts
    if with_contact_candidates:
        hand["contact_candidates"] = anchors
    if with_penetration_keypoints:
        hand["penetration_keypoints"] = hand_verts
    return hand


# ============================ deterministic parameters ============================

def make_params(key):
    ks = jax.random.split(key, 12)
    v_template = 0.03 * jax.random.normal(ks[0], (N_VERTS, 3), jnp.float32)
    shapedirs = 0.001 * jax.random.normal(ks[1], (N_VERTS, 3, N_SHAPE), jnp.float32)
    posedirs = 0.0005 * jax.random.normal(ks[2], (N_VERTS, 3, N_POSE_FEAT), jnp.float32)
    J_regressor = jax.nn.softmax(jax.random.normal(ks[3], (N_JOINTS, N_VERTS)), axis=-1)
    lbs_weights = jax.nn.softmax(2.0 * jax.random.normal(ks[4], (N_VERTS, N_JOINTS)), axis=-1)
    comps = 0.1 * jax.random.normal(ks[5], (N_COMPS, 45), jnp.float32)
    hands_mean = jnp.zeros((45,), jnp.float32)  # flat_hand_mean=True
    faces = jax.random.randint(ks[6], (N_FACES, 3), 0, N_VERTS, jnp.int32)
    closed_faces = jax.random.randint(ks[7], (N_CLOSED_FACES, 3), 0, N_VERTS, jnp.int32)
    # AnchorLayer: 32 anchors, each a barycentric combination of 3 vertices (lane-padded).
    anchor_vert_idx = jax.random.randint(ks[8], (N_ANCHORS, 3), 0, N_VERTS, jnp.int32)
    bary = jax.nn.softmax(jax.random.normal(ks[9], (N_ANCHORS, 3)), axis=-1)
    w_anchor = jnp.zeros((N_ANCHORS, V_PAD), jnp.float32)
    w_anchor = w_anchor.at[jnp.arange(N_ANCHORS)[:, None], anchor_vert_idx].add(bary)
    # Skinning weights transposed + lane-padded for the LBS kernel.
    lbs_weights_t = jnp.zeros((N_JOINTS, V_PAD), jnp.float32).at[:, :N_VERTS].set(
        lbs_weights.T.astype(jnp.float32))
    return {
        "v_template": v_template,
        "shapedirs": shapedirs,
        "posedirs": posedirs,
        "J_regressor": J_regressor.astype(jnp.float32),
        "lbs_weights_t": lbs_weights_t,
        "comps": comps,
        "hands_mean": hands_mean,
        "faces": faces,
        "closed_faces": closed_faces,
        "w_anchor": w_anchor,
    }


if __name__ == "__main__":
    B = 2
    N_OBJ = 256  # small stand-in for n_surface_points=3000 object point cloud

    key = jax.random.PRNGKey(0)
    k_param, k_pose, k_obj = jax.random.split(key, 3)
    params = make_params(k_param)

    # hand_pose = [trans(3) | global_rot(3) | 24 PCA coeffs] -> (B, 30)
    hand_pose = jnp.concatenate([
        0.05 * jax.random.normal(k_pose, (B, 3), jnp.float32),
        0.3 * jax.random.normal(jax.random.fold_in(k_pose, 1), (B, 3), jnp.float32),
        0.5 * jax.random.normal(jax.random.fold_in(k_pose, 2), (B, N_COMPS), jnp.float32),
    ], axis=1)
    obj_points = 0.05 * jax.random.normal(k_obj, (B, N_OBJ, 3), jnp.float32)

    hand = jax.jit(hand_model_forward)(params, hand_pose, obj_points)
    jax.block_until_ready(hand)

    assert hand["cmap"].shape == (B, N_OBJ)
    assert hand["penetration"].shape == ()
    assert hand["surface_points"].shape == (B, N_VERTS, 3)
    assert hand["contact_candidates"].shape == (B, N_ANCHORS, 3)
    assert hand["penetration_keypoints"].shape == (B, N_VERTS, 3)
    assert bool(jnp.all(jnp.isfinite(hand["cmap"])))
    assert bool(jnp.isfinite(hand["penetration"]))
    print("KERNEL_OK")
</pallas_src>

<mosaic_0001>
module attributes {stable_mosaic.version = 11 : i64} {
  func.func @_lbs_anchor_kernel(%arg0: i32, %arg1: memref<1x3x896xf32, #tpu.memory_space<vmem>>, %arg2: memref<1x12x16xf32, #tpu.memory_space<vmem>>, %arg3: memref<1x3x1xf32, #tpu.memory_space<vmem>>, %arg4: memref<16x896xf32, #tpu.memory_space<vmem>>, %arg5: memref<32x896xf32, #tpu.memory_space<vmem>>, %arg6: memref<1x3x896xf32, #tpu.memory_space<vmem>>, %arg7: memref<1x3x32xf32, #tpu.memory_space<vmem>>) attributes {dimension_semantics = [#tpu.dimension_semantics<parallel>], iteration_bounds = array<i64: 2>, scalar_prefetch = 0 : i64, scratch_operands = 0 : i64, tpu.core_type = #tpu.core_type<tc>, window_params = [{transform_indices = @transform_0, window_bounds = array<i64: 1, 3, 896>}, {transform_indices = @transform_1, window_bounds = array<i64: 1, 12, 16>}, {transform_indices = @transform_2, window_bounds = array<i64: 1, 3, 1>}, {pipeline_mode = #tpu.pipeline_mode<synchronous>, transform_indices = @transform_3, window_bounds = array<i64: 16, 896>}, {pipeline_mode = #tpu.pipeline_mode<synchronous>, transform_indices = @transform_4, window_bounds = array<i64: 32, 896>}, {transform_indices = @transform_5, window_bounds = array<i64: 1, 3, 896>}, {transform_indices = @transform_6, window_bounds = array<i64: 1, 3, 32>}]} {
    %c0 = arith.constant 0 : index
    %c0_0 = arith.constant 0 : index
    %c0_1 = arith.constant 0 : index
    %0 = vector.load %arg1[%c0, %c0_0, %c0_1] : memref<1x3x896xf32, #tpu.memory_space<vmem>>, vector<1x3x896xf32>
    %1 = vector.shape_cast %0 : vector<1x3x896xf32> to vector<3x896xf32>
    %c0_2 = arith.constant 0 : index
    %c0_3 = arith.constant 0 : index
    %c0_4 = arith.constant 0 : index
    %2 = vector.load %arg2[%c0_2, %c0_3, %c0_4] : memref<1x12x16xf32, #tpu.memory_space<vmem>>, vector<1x12x16xf32>
    %3 = vector.shape_cast %2 : vector<1x12x16xf32> to vector<12x16xf32>
    %c0_5 = arith.constant 0 : index
    %c0_6 = arith.constant 0 : index
    %c0_7 = arith.constant 0 : index
    %4 = vector.load %arg3[%c0_5, %c0_6, %c0_7] : memref<1x3x1xf32, #tpu.memory_space<vmem>>, vector<1x3x1xf32>
    %5 = vector.shape_cast %4 : vector<1x3x1xf32> to vector<3x1xf32>
    %c0_8 = arith.constant 0 : index
    %c0_9 = arith.constant 0 : index
    %6 = vector.load %arg4[%c0_8, %c0_9] : memref<16x896xf32, #tpu.memory_space<vmem>>, vector<16x896xf32>
    %c0_10 = arith.constant 0 : index
    %c0_11 = arith.constant 0 : index
    %7 = vector.load %arg5[%c0_10, %c0_11] : memref<32x896xf32, #tpu.memory_space<vmem>>, vector<32x896xf32>
    %cst = arith.constant dense<0.000000e+00> : vector<12x896xf32>
    %8 = tpu.matmul %3, %6, %cst {dimension_numbers = #tpu.dot_dimension_numbers<[1], [0], [0], [1], [0, 0, 1, 1], [], []>} : vector<12x16xf32>, vector<16x896xf32>, vector<12x896xf32> -> vector<12x896xf32>
    %9 = vector.extract_strided_slice %1 {offsets = [0, 0], sizes = [1, 896], strides = [1, 1]} : vector<3x896xf32> to vector<1x896xf32>
    %10 = vector.extract_strided_slice %1 {offsets = [1, 0], sizes = [1, 896], strides = [1, 1]} : vector<3x896xf32> to vector<1x896xf32>
    %11 = vector.extract_strided_slice %1 {offsets = [2, 0], sizes = [1, 896], strides = [1, 1]} : vector<3x896xf32> to vector<1x896xf32>
    %12 = vector.extract_strided_slice %8 {offsets = [0, 0], sizes = [1, 896], strides = [1, 1]} : vector<12x896xf32> to vector<1x896xf32>
    %13 = arith.mulf %12, %9 : vector<1x896xf32>
    %14 = vector.extract_strided_slice %8 {offsets = [1, 0], sizes = [1, 896], strides = [1, 1]} : vector<12x896xf32> to vector<1x896xf32>
    %15 = arith.mulf %14, %10 : vector<1x896xf32>
    %16 = arith.addf %13, %15 : vector<1x896xf32>
    %17 = vector.extract_strided_slice %8 {offsets = [2, 0], sizes = [1, 896], strides = [1, 1]} : vector<12x896xf32> to vector<1x896xf32>
    %18 = arith.mulf %17, %11 : vector<1x896xf32>
    %19 = arith.addf %16, %18 : vector<1x896xf32>
    %20 = vector.extract_strided_slice %8 {offsets = [3, 0], sizes = [1, 896], strides = [1, 1]} : vector<12x896xf32> to vector<1x896xf32>
    %21 = arith.addf %19, %20 : vector<1x896xf32>
    %22 = vector.extract_strided_slice %5 {offsets = [0, 0], sizes = [1, 1], strides = [1, 1]} : vector<3x1xf32> to vector<1x1xf32>
    %23 = vector.broadcast %22 : vector<1x1xf32> to vector<1x896xf32>
    %24 = arith.addf %21, %23 : vector<1x896xf32>
    %25 = vector.extract_strided_slice %8 {offsets = [4, 0], sizes = [1, 896], strides = [1, 1]} : vector<12x896xf32> to vector<1x896xf32>
    %26 = arith.mulf %25, %9 : vector<1x896xf32>
    %27 = vector.extract_strided_slice %8 {offsets = [5, 0], sizes = [1, 896], strides = [1, 1]} : vector<12x896xf32> to vector<1x896xf32>
    %28 = arith.mulf %27, %10 : vector<1x896xf32>
    %29 = arith.addf %26, %28 : vector<1x896xf32>
    %30 = vector.extract_strided_slice %8 {offsets = [6, 0], sizes = [1, 896], strides = [1, 1]} : vector<12x896xf32> to vector<1x896xf32>
    %31 = arith.mulf %30, %11 : vector<1x896xf32>
    %32 = arith.addf %29, %31 : vector<1x896xf32>
    %33 = vector.extract_strided_slice %8 {offsets = [7, 0], sizes = [1, 896], strides = [1, 1]} : vector<12x896xf32> to vector<1x896xf32>
    %34 = arith.addf %32, %33 : vector<1x896xf32>
    %35 = vector.extract_strided_slice %5 {offsets = [1, 0], sizes = [1, 1], strides = [1, 1]} : vector<3x1xf32> to vector<1x1xf32>
    %36 = vector.broadcast %35 : vector<1x1xf32> to vector<1x896xf32>
    %37 = arith.addf %34, %36 : vector<1x896xf32>
    %38 = vector.extract_strided_slice %8 {offsets = [8, 0], sizes = [1, 896], strides = [1, 1]} : vector<12x896xf32> to vector<1x896xf32>
    %39 = arith.mulf %38, %9 : vector<1x896xf32>
    %40 = vector.extract_strided_slice %8 {offsets = [9, 0], sizes = [1, 896], strides = [1, 1]} : vector<12x896xf32> to vector<1x896xf32>
    %41 = arith.mulf %40, %10 : vector<1x896xf32>
    %42 = arith.addf %39, %41 : vector<1x896xf32>
    %43 = vector.extract_strided_slice %8 {offsets = [10, 0], sizes = [1, 896], strides = [1, 1]} : vector<12x896xf32> to vector<1x896xf32>
    %44 = arith.mulf %43, %11 : vector<1x896xf32>
    %45 = arith.addf %42, %44 : vector<1x896xf32>
    %46 = vector.extract_strided_slice %8 {offsets = [11, 0], sizes = [1, 896], strides = [1, 1]} : vector<12x896xf32> to vector<1x896xf32>
    %47 = arith.addf %45, %46 : vector<1x896xf32>
    %48 = vector.extract_strided_slice %5 {offsets = [2, 0], sizes = [1, 1], strides = [1, 1]} : vector<3x1xf32> to vector<1x1xf32>
    %49 = vector.broadcast %48 : vector<1x1xf32> to vector<1x896xf32>
    %50 = arith.addf %47, %49 : vector<1x896xf32>
    %51 = tpu.concatenate %24, %37, %50 in 0 : vector<1x896xf32>, vector<1x896xf32>, vector<1x896xf32> -> vector<3x896xf32>
    %cst_12 = arith.constant dense<0.000000e+00> : vector<3x32xf32>
    %52 = tpu.matmul %51, %7, %cst_12 {dimension_numbers = #tpu.dot_dimension_numbers<[1], [1], [0], [0], [0, 0, 1, 0], [], []>} : vector<3x896xf32>, vector<32x896xf32>, vector<3x32xf32> -> vector<3x32xf32>
    %c0_13 = arith.constant 0 : index
    %c0_14 = arith.constant 0 : index
    %c0_15 = arith.constant 0 : index
    %53 = vector.load %arg7[%c0_13, %c0_14, %c0_15] : memref<1x3x32xf32, #tpu.memory_space<vmem>>, vector<1x3x32xf32>
    %54 = vector.shape_cast %53 : vector<1x3x32xf32> to vector<3x32xf32>
    %55 = vector.shape_cast %52 : vector<3x32xf32> to vector<1x3x32xf32>
    tpu.vector_store %arg7[%c0_13, %c0_14, %c0_15], %55 {strides = array<i32>} : memref<1x3x32xf32, #tpu.memory_space<vmem>>, vector<1x3x32xf32>,
    %56 = tpu.iota {dimensions = array<i32: 1>} : vector<1x896xi32>
    %c778_i32 = arith.constant 778 : i32
    %57 = vector.broadcast %c778_i32 : i32 to vector<1x896xi32>
    %58 = arith.cmpi slt, %56, %57 : vector<1x896xi32>
    %cst_16 = arith.constant 1.000000e+06 : f32
    %59 = vector.shape_cast %58 : vector<1x896xi1> to vector<1x896xi1>
    %60 = vector.broadcast %59 : vector<1x896xi1> to vector<3x896xi1>
    %61 = vector.broadcast %cst_16 : f32 to vector<3x896xf32>
    %62 = arith.select %60, %51, %61 : vector<3x896xi1>, vector<3x896xf32>
    %c0_17 = arith.constant 0 : index
    %c0_18 = arith.constant 0 : index
    %c0_19 = arith.constant 0 : index
    %63 = vector.load %arg6[%c0_17, %c0_18, %c0_19] : memref<1x3x896xf32, #tpu.memory_space<vmem>>, vector<1x3x896xf32>
    %64 = vector.shape_cast %63 : vector<1x3x896xf32> to vector<3x896xf32>
    %65 = vector.shape_cast %62 : vector<3x896xf32> to vector<1x3x896xf32>
    tpu.vector_store %arg6[%c0_17, %c0_18, %c0_19], %65 {strides = array<i32>} : memref<1x3x896xf32, #tpu.memory_space<vmem>>, vector<1x3x896xf32>,
    return
  }
  func.func @transform_0(%arg0: i32) -> (i32, i32, i32) {
    %c0_i32 = arith.constant 0 : i32
    %c0_i32_0 = arith.constant 0 : i32
    %c0_i32_1 = arith.constant 0 : i32
    return %arg0, %c0_i32, %c0_i32_0 : i32, i32, i32
  }
  func.func @transform_1(%arg0: i32) -> (i32, i32, i32) {
    %c0_i32 = arith.constant 0 : i32
    %c0_i32_0 = arith.constant 0 : i32
    %c0_i32_1 = arith.constant 0 : i32
    return %arg0, %c0_i32, %c0_i32_0 : i32, i32, i32
  }
  func.func @transform_2(%arg0: i32) -> (i32, i32, i32) {
    %c0_i32 = arith.constant 0 : i32
    %c0_i32_0 = arith.constant 0 : i32
    %c0_i32_1 = arith.constant 0 : i32
    return %arg0, %c0_i32, %c0_i32_0 : i32, i32, i32
  }
  func.func @transform_3(%arg0: i32) -> (i32, i32) {
    %c0_i32 = arith.constant 0 : i32
    %c0_i32_0 = arith.constant 0 : i32
    %c0_i32_1 = arith.constant 0 : i32
    return %c0_i32, %c0_i32_0 : i32, i32
  }
  func.func @transform_4(%arg0: i32) -> (i32, i32) {
    %c0_i32 = arith.constant 0 : i32
    %c0_i32_0 = arith.constant 0 : i32
    %c0_i32_1 = arith.constant 0 : i32
    return %c0_i32, %c0_i32_0 : i32, i32
  }
  func.func @transform_5(%arg0: i32) -> (i32, i32, i32) {
    %c0_i32 = arith.constant 0 : i32
    %c0_i32_0 = arith.constant 0 : i32
    %c0_i32_1 = arith.constant 0 : i32
    return %arg0, %c0_i32, %c0_i32_0 : i32, i32, i32
  }
  func.func @transform_6(%arg0: i32) -> (i32, i32, i32) {
    %c0_i32 = arith.constant 0 : i32
    %c0_i32_0 = arith.constant 0 : i32
    %c0_i32_1 = arith.constant 0 : i32
    return %arg0, %c0_i32, %c0_i32_0 : i32, i32, i32
  }
}

module attributes {stable_mosaic.version = 11 : i64} {
  func.func @_nn_contact_kernel(%arg0: i32, %arg1: i32, %arg2: memref<1x1792x8xf32, #tpu.memory_space<vmem>>, %arg3: memref<1x8x256xf32, #tpu.memory_space<vmem>>, %arg4: memref<1x1x256xf32, #tpu.memory_space<vmem>>, %arg5: memref<1x1x256xf32, #tpu.memory_space<vmem>>) attributes {dimension_semantics = [#tpu.dimension_semantics<parallel>, #tpu.dimension_semantics<parallel>], iteration_bounds = array<i64: 2, 1>, scalar_prefetch = 0 : i64, scratch_operands = 0 : i64, tpu.core_type = #tpu.core_type<tc>, window_params = [{transform_indices = @transform_0, window_bounds = array<i64: 1, 1792, 8>}, {transform_indices = @transform_1, window_bounds = array<i64: 1, 8, 256>}, {transform_indices = @transform_2, window_bounds = array<i64: 1, 1, 256>}, {transform_indices = @transform_3, window_bounds = array<i64: 1, 1, 256>}]} {
    %c0 = arith.constant 0 : index
    %c0_0 = arith.constant 0 : index
    %c0_1 = arith.constant 0 : index
    %0 = vector.load %arg2[%c0, %c0_0, %c0_1] : memref<1x1792x8xf32, #tpu.memory_space<vmem>>, vector<1x1792x8xf32>
    %1 = vector.shape_cast %0 : vector<1x1792x8xf32> to vector<1792x8xf32>
    %c0_2 = arith.constant 0 : index
    %c0_3 = arith.constant 0 : index
    %c0_4 = arith.constant 0 : index
    %2 = vector.load %arg3[%c0_2, %c0_3, %c0_4] : memref<1x8x256xf32, #tpu.memory_space<vmem>>, vector<1x8x256xf32>
    %3 = vector.shape_cast %2 : vector<1x8x256xf32> to vector<8x256xf32>
    %cst = arith.constant dense<0.000000e+00> : vector<1792x256xf32>
    %4 = tpu.matmul %1, %3, %cst {dimension_numbers = #tpu.dot_dimension_numbers<[1], [0], [0], [1], [0, 0, 1, 1], [], []>} : vector<1792x8xf32>, vector<8x256xf32>, vector<1792x256xf32> -> vector<1792x256xf32>
    %5 = vector.extract_strided_slice %4 {offsets = [0, 0], sizes = [896, 256], strides = [1, 1]} : vector<1792x256xf32> to vector<896x256xf32>
    %6 = vector.extract_strided_slice %4 {offsets = [896, 0], sizes = [896, 256], strides = [1, 1]} : vector<1792x256xf32> to vector<896x256xf32>
    %cst_5 = arith.constant dense<0x7F800000> : vector<256xf32>
    %7 = vector.multi_reduction <minimumf>, %5, %cst_5 [0] : vector<896x256xf32> to vector<256xf32>
    %8 = vector.shape_cast %7 : vector<256xf32> to vector<1x256xf32>
    %9 = vector.broadcast %8 : vector<1x256xf32> to vector<896x256xf32>
    %10 = arith.cmpf ole, %5, %9 : vector<896x256xf32>
    %11 = tpu.iota {dimensions = array<i32: 0>} : vector<896x256xi32>
    %12 = arith.sitofp %11 : vector<896x256xi32> to vector<896x256xf32>
    %cst_6 = arith.constant 8.960000e+02 : f32
    %13 = vector.broadcast %cst_6 : f32 to vector<896x256xf32>
    %14 = arith.select %10, %12, %13 : vector<896x256xi1>, vector<896x256xf32>
    %cst_7 = arith.constant dense<0x7F800000> : vector<256xf32>
    %15 = vector.multi_reduction <minimumf>, %14, %cst_7 [0] : vector<896x256xf32> to vector<256xf32>
    %16 = vector.shape_cast %15 : vector<256xf32> to vector<1x256xf32>
    %17 = vector.broadcast %16 : vector<1x256xf32> to vector<896x256xf32>
    %18 = arith.cmpf oeq, %12, %17 : vector<896x256xf32>
    %cst_8 = arith.constant 0.000000e+00 : f32
    %19 = vector.broadcast %cst_8 : f32 to vector<896x256xf32>
    %20 = arith.select %18, %6, %19 : vector<896x256xi1>, vector<896x256xf32>
    %cst_9 = arith.constant dense<0.000000e+00> : vector<256xf32>
    %21 = vector.multi_reduction <add>, %20, %cst_9 [0] : vector<896x256xf32> to vector<256xf32>
    %22 = vector.shape_cast %21 : vector<256xf32> to vector<1x256xf32>
    %cst_10 = arith.constant 0.000000e+00 : f32
    %23 = vector.broadcast %cst_10 : f32 to vector<1x256xf32>
    %24 = arith.maximumf %8, %23 : vector<1x256xf32>
    %25 = math.sqrt %24 : vector<1x256xf32>
    %cst_11 = arith.constant -1.000000e+02 : f32
    %26 = vector.broadcast %cst_11 : f32 to vector<1x256xf32>
    %27 = arith.mulf %26, %25 : vector<1x256xf32>
    %28 = math.exp %27 : vector<1x256xf32>
    %cst_12 = arith.constant 2.000000e+00 : f32
    %29 = vector.broadcast %cst_12 : f32 to vector<1x256xf32>
    %30 = arith.mulf %29, %28 : vector<1x256xf32>
    %cst_13 = arith.constant 1.000000e+00 : f32
    %31 = vector.broadcast %cst_13 : f32 to vector<1x256xf32>
    %32 = arith.addf %31, %28 : vector<1x256xf32>
    %33 = tpu.reciprocal %32 {approx = true} : vector<1x256xf32> -> vector<1x256xf32>
    %34 = arith.mulf %30, %33 : vector<1x256xf32>
    %c0_14 = arith.constant 0 : index
    %c0_15 = arith.constant 0 : index
    %c0_16 = arith.constant 0 : index
    %35 = vector.load %arg4[%c0_14, %c0_15, %c0_16] : memref<1x1x256xf32, #tpu.memory_space<vmem>>, vector<1x1x256xf32>
    %36 = vector.shape_cast %35 : vector<1x1x256xf32> to vector<1x256xf32>
    %37 = vector.shape_cast %34 : vector<1x256xf32> to vector<1x1x256xf32>
    tpu.vector_store %arg4[%c0_14, %c0_15, %c0_16], %37 {strides = array<i32>} : memref<1x1x256xf32, #tpu.memory_space<vmem>>, vector<1x1x256xf32>,
    %cst_17 = arith.constant 0.000000e+00 : f32
    %38 = vector.broadcast %cst_17 : f32 to vector<1x256xf32>
    %39 = arith.cmpf olt, %22, %38 : vector<1x256xf32>
    %cst_18 = arith.constant 0.000000e+00 : f32
    %40 = vector.broadcast %cst_18 : f32 to vector<1x256xf32>
    %41 = arith.select %39, %24, %40 : vector<1x256xi1>, vector<1x256xf32>
    %c0_19 = arith.constant 0 : index
    %c0_20 = arith.constant 0 : index
    %c0_21 = arith.constant 0 : index
    %42 = vector.load %arg5[%c0_19, %c0_20, %c0_21] : memref<1x1x256xf32, #tpu.memory_space<vmem>>, vector<1x1x256xf32>
    %43 = vector.shape_cast %42 : vector<1x1x256xf32> to vector<1x256xf32>
    %44 = vector.shape_cast %41 : vector<1x256xf32> to vector<1x1x256xf32>
    tpu.vector_store %arg5[%c0_19, %c0_20, %c0_21], %44 {strides = array<i32>} : memref<1x1x256xf32, #tpu.memory_space<vmem>>, vector<1x1x256xf32>,
    return
  }
  func.func @transform_0(%arg0: i32, %arg1: i32) -> (i32, i32, i32) {
    %c0_i32 = arith.constant 0 : i32
    %c0_i32_0 = arith.constant 0 : i32
    %c0_i32_1 = arith.constant 0 : i32
    return %arg0, %c0_i32, %c0_i32_0 : i32, i32, i32
  }
  func.func @transform_1(%arg0: i32, %arg1: i32) -> (i32, i32, i32) {
    %c0_i32 = arith.constant 0 : i32
    %c0_i32_0 = arith.constant 0 : i32
    return %arg0, %c0_i32, %arg1 : i32, i32, i32
  }
  func.func @transform_2(%arg0: i32, %arg1: i32) -> (i32, i32, i32) {
    %c0_i32 = arith.constant 0 : i32
    %c0_i32_0 = arith.constant 0 : i32
    return %arg0, %c0_i32, %arg1 : i32, i32, i32
  }
  func.func @transform_3(%arg0: i32, %arg1: i32) -> (i32, i32, i32) {
    %c0_i32 = arith.constant 0 : i32
    %c0_i32_0 = arith.constant 0 : i32
    return %arg0, %c0_i32, %arg1 : i32, i32, i32
  }
}

</mosaic_0001>

<bundles_post_ra>
// kernel: hand_model_forward.2
= control target key start
LH: loop header
LB: loop body
LE: loop exit
PB: predicated region body
PF: predicated region fallthrough
CT: control target
= control target key end

     0   :  { %s1621_s21 = smov 0   ;;  %s1977_s0 = inlined_call_operand.vmem [shape: f32[2,3,896], index: 0, kind: input, shape index: {}]   ;;  %s1978_s1 = inlined_call_operand.vmem [shape: f32[2,12,16], index: 1, kind: input, shape index: {}]   ;;  %s1979_s2 = inlined_call_operand.vmem [shape: f32[2,3,1], index: 2, kind: input, shape index: {}]   ;;  %s1980_s3 = inlined_call_operand.vmem [shape: f32[16,896], index: 3, kind: input, shape index: {}]   ;;  %s1981_s4 = inlined_call_operand.vmem [shape: f32[32,896], index: 4, kind: input, shape index: {}]   ;;  %s1982_s5 = inlined_call_operand.vmem [shape: f32[2,3,896], index: 5, kind: output, shape index: {0}]   ;;  %s1983_s6 = inlined_call_operand.vmem [shape: f32[2,3,32], index: 6, kind: output, shape index: {1}]  }
   0x1 LB: > { %s1513_s22 = sadd.s32 4294967295, %s1581_s21   ;;  %p1517_p0 = scmp.ge.s32.totalorder %s1581_s21, 1  ;;  %s1581_s21 = sphi %s1621_s21, %s17_s21  }
   0x2   : > { %p234_p1 = scmp.lt.s32.totalorder %s1581_s21, 3 }
   0x4   : > { %p235_p2 = pnand %p1517_p0, %p234_p1 }
   0x5   : > { %p277_p3 = scmp.lt.s32.totalorder (!%p235_p2), %s1513_s22, 1 }
   0x6   : > { %238 = sbr.rel (%p235_p2) target bundleno = 466 (0x1d2), region = 40 }
   0xb   : > { %v315_v0 = vld [vmem:[%s1980_s3 + $0x40] sm:$0xff]  ;;  %v317_v1 = vld [vmem:[%s1980_s3 + $0x50] sm:$0xff]  ;;  %v314_v2 = vld [vmem:[%s1980_s3 + $0x38] sm:$0xff]  ;;  %s1985_s22 = smov (!%p277_p3, %s1513_s22), 1  ;;  %v1583_v10 = vmov 0.0   ;;  %vm349_vm0 = vcmask 130048   ;;  %v666_v36 = vlaneseq }
   0xc   : > { %384 = vmatprep.subr.mxu0 %v315_v0  ;;  %461 = vmatprep.subr.mxu1 %v317_v1  ;;  %v316_v3 = vld [vmem:[%s1980_s3 + $0x48] sm:$0xff]  ;;  %v310_v5 = vld [vmem:[%s1980_s3 + $0x18] sm:$0xff]  ;;  %v307_v6 = vld [vmem:[%s1980_s3] sm:$0xff]  ;;  %s1534_s19 = sshll.u32 %s1985_s22, 4  ;;  %s1521_s7 = sshll.u32 %s1985_s22, 2  ;;  %v1584_v18 = vmov 0  }
   0xd   : > { %v308_v4 = vld [vmem:[%s1980_s3 + $0x8] sm:$0xff]  ;;  %385 = vmatpush1.msra.mxu0 %v314_v2  ;;  %462 = vmatpush1.msra.mxu1 %v316_v3  ;;  %v309_v7 = vld [vmem:[%s1980_s3 + $0x10] sm:$0xff]  ;;  %v319_v8 = vld [vmem:[%s1980_s3 + $0x60] sm:$0xff]  ;;  %s286_s24 = scalar_lea.vmem %s1978_s1, %s1534_s19  ;;  %s290_s12 = scalar_lea.vmem %s1979_s2, %s1521_s7  ;;  %v667_v37 = vshrl.u32 %v666_v36, 7  ;;  %v1352_v54 = vand.u32 127, %v666_v36  ;;  %vm1053_vm1 = vcmask 1040384  }
   0xe   : > { %386 = vmatprep.subr.mxu0 %v308_v4  ;;  %463 = vmatprep.subr.mxu1 %v310_v5  ;;  %v320_v9 = vld [vmem:[%s1980_s3 + $0x68] sm:$0xff]  ;;  %v304_v11 = vld [vmem:[%s286_s24] sm:$0xff]  ;;  %v318_v12 = vld [vmem:[%s1980_s3 + $0x58] sm:$0xff]  ;;  %s1562_s28 = smul.u32 28, %s1985_s22  ;;  %vm1061_vm2 = vcmask 1041408   ;;  %vm1585_vm4 = vmmov 0   ;;  %s299_s15 = scalar_lea.vmem %s1983_s6, %s1521_s7 }
   0xf   : > { %387 = vmatpush1.msra.mxu0 %v307_v6  ;;  %420 = vmatprep.mubr.f32.mxu0 %v1583_v10  ;;  %v312_v13 = vld [vmem:[%s1980_s3 + $0x28] sm:$0xff]  ;;  %v313_v14 = vld [vmem:[%s1980_s3 + $0x30] sm:$0xff]  ;;  %v311_v16 = vld [vmem:[%s1980_s3 + $0x20] sm:$0xff]  ;;  %v668_v38 = vsub.s32 0, %v667_v37  ;;  %v710_v39 = vsub.s32 1, %v667_v37  ;;  %v780_v40 = vsub.s32 2, %v667_v37 }
  0x10   : > { %464 = vmatpush1.msra.mxu1 %v309_v7  ;;  %497 = vmatprep.mubr.f32.mxu1 %v1583_v10  ;;  %v305_v15 = vld [vmem:[%s286_s24 + $0x8] sm:$0xf]  ;;  %v306_v17 = vld [vmem:[%s290_s12] sm:$0x7]  ;;  %v343_v19 = vld [vmem:[%s1981_s4 + $0xb0] sm:$0xff]  ;;  %s281_s8 = scalar_lea.vmem %s1977_s0, %s1562_s28  ;;  %v672_v43 = vsub.s32 4, %v667_v37  ;;  %s1897_s11 = scalar_lea.vmem %s1982_s5, %s1562_s28 }
  0x11   : > { %538 = vmatprep.subr.mxu0 %v319_v8  ;;  %1544 = vmatprep.subr.mxu1 %v320_v9  ;;  %v345_v20 = vld [vmem:[%s1981_s4 + $0xc0] sm:$0xff]  ;;  %v342_v21 = vld [vmem:[%s1981_s4 + $0xa8] sm:$0xff]  ;;  %v344_v22 = vld [vmem:[%s1981_s4 + $0xb8] sm:$0xff]  ;;  %v714_v44 = vsub.s32 5, %v667_v37  ;;  %v784_v45 = vsub.s32 6, %v667_v37  ;;  %vm1349_vm5 = vcmask 256000  }
  0x12   : > { %1524 = vmatmul.mubr.msk.f32.vlgmr.msra.gmra.mxu0 %vm349_vm0, %v304_v11  ;;  %1526 = vmatmul.mubr.msk.f32.vlgmr.msra.gmra.mxu1 %vm349_vm0, %v304_v11  ;;  %v336_v23 = vld [vmem:[%s1981_s4 + $0x78] sm:$0xff]  ;;  %v338_v24 = vld [vmem:[%s1981_s4 + $0x88] sm:$0xff]  ;;  %v335_v25 = vld [vmem:[%s1981_s4 + $0x70] sm:$0xff] }
  0x13   : > { %426 = vmatprep.mubr.f32.mxu0 %v1583_v10  ;;  %503 = vmatprep.mubr.f32.mxu1 %v1583_v10  ;;  %v337_v26 = vld [vmem:[%s1981_s4 + $0x80] sm:$0xff]  ;;  %v331_v28 = vld [vmem:[%s1981_s4 + $0x50] sm:$0xff]  ;;  %v328_v29 = vld [vmem:[%s1981_s4 + $0x38] sm:$0xff] }
  0x14   : > { %539 = vmatpush1.msra.mxu0 %v318_v12  ;;  %1545 = vmatpush3.msra.mxu1 %v320_v9  ;;  %v329_v27 = vld [vmem:[%s1981_s4 + $0x40] sm:$0xff]  ;;  %v330_v30 = vld [vmem:[%s1981_s4 + $0x48] sm:$0xff]  ;;  %v324_v32 = vld [vmem:[%s1981_s4 + $0x18] sm:$0xff]  ;;  %v1795_v9 = vadd.s32 768, %v1352_v54 }
  0x15   : > { %540 = vmatprep.subr.mxu0 %v312_v13  ;;  %1546 = vmatprep.subr.mxu1 %v313_v14  ;;  %v322_v31 = vld [vmem:[%s1981_s4 + $0x8] sm:$0xff]  ;;  %v321_v33 = vld [vmem:[%s1981_s4] sm:$0xff]  ;;  %v323_v34 = vld [vmem:[%s1981_s4 + $0x10] sm:$0xff] }
  0x16   : > { %1525 = vmatmul.mubr.msk.f32.gmra.mxu0 %vm349_vm0, %v305_v15  ;;  %1527 = vmatmul.mubr.msk.f32.gmra.mxu1 %vm349_vm0, %v305_v15  ;;  %v347_v35 = vld [vmem:[%s1981_s4 + $0xd0] sm:$0xff]  ;;  %v300_v41 = vld [vmem:[%s281_s8] sm:$0x77]  ;;  %v301_v42 = vld [vmem:[%s281_s8 + $0x8] sm:$0x77]  ;;  %vm1365_vm3 = vcmp.lt.s32.totalorder %v1795_v9, 778 }
  0x17   : > { %541 = vmatpush1.msra.mxu0 %v311_v16  ;;  %574 = vmatprep.mubr.f32.mxu0 %v1583_v10  ;;  %v1755_v46 = vrot.slane %v300_v41, %v668_v38  ;;  %v711_v47 = vrot.slane %v300_v41, %v710_v39  ;;  %v781_v48 = vrot.slane %v300_v41, %v780_v40  ;;  %v302_v49 = vld [vmem:[%s281_s8 + $0x10] sm:$0x77]  ;;  %v303_v50 = vld [vmem:[%s281_s8 + $0x18] sm:$0x7] }
  0x18   : > { %1547 = vmatpush3.msra.mxu1 %v313_v14  ;;  %1548 = vmatprep.mubr.msk.f32.mxu1 %vm349_vm0, %v304_v11  ;;  %v1757_v51 = vrot.slane %v301_v42, %v668_v38  ;;  %v1759_v52 = vrot.slane %v301_v42, %v710_v39  ;;  %v1761_v53 = vrot.slane %v301_v42, %v780_v40  ;;  %v327_v9 = vld [vmem:[%s1981_s4 + $0x30] sm:$0xff] }
  0x19   : > { %1574 = vset.pattern.permute.xlu0 %v1584_v18  ;;  %1093 = vmatprep.subr.mxu0 %v343_v19  ;;  %v1763_v55 = vrot.slane %v300_v41, %v672_v43  ;;  %v1765_v56 = vrot.slane %v300_v41, %v714_v44  ;;  %v1767_v57 = vrot.slane %v300_v41, %v784_v45 }
  0x1a   : > { %1528 = vmatmul.mubr.msk.f32.vlgmr.msra.gmra.mxu0 %vm349_vm0, %v304_v11  ;;  %1549 = vmatmul.mubr.msk.f32.vlgmr.msra.gmra.mxu1 %vm349_vm0, %v305_v15  ;;  %v1769_v58 = vrot.slane %v301_v42, %v672_v43  ;;  %v1771_v59 = vrot.slane %v301_v42, %v714_v44  ;;  %v1773_v60 = vrot.slane %v301_v42, %v784_v45 }
  0x1b   : > { %580 = vmatprep.mubr.f32.mxu0 %v1583_v10  ;;  %878 = vperm.xlu0 %1574, %v306_v17   ;;  %v1777_v62 = vrot.slane %v302_v49, %v710_v39  ;;  %v1779_v63 = vrot.slane %v303_v50, %v710_v39  ;;  %v1781_v0 = vrot.slane %v302_v49, %v668_v38 }
  0x1c   : > { %1163 = vmatprep.subr.mxu1 %v345_v20  ;;  %1094 = vmatpush1.xpose.msra.mxu0 %v342_v21  ;;  %v1783_v1 = vrot.slane %v302_v49, %v780_v40  ;;  %v1785_v2 = vrot.slane %v303_v50, %v668_v38  ;;  %v1787_v3 = vrot.slane %v303_v50, %v780_v40 }
  0x1d   : > { %1164 = vmatpush1.xpose.msra.mxu1 %v344_v22  ;;  %1095 = vmatprep.subr.mxu0 %v336_v23  ;;  %v1789_v6 = vrot.slane %v302_v49, %v672_v43  ;;  %v1791_v7 = vrot.slane %v302_v49, %v714_v44  ;;  %v1793_v8 = vrot.slane %v302_v49, %v784_v45 }
  0x1e   : > { %1529 = vmatmul.mubr.msk.f32.gmra.mxu0 %vm349_vm0, %v305_v15  ;;  %1165 = vmatprep.subr.mxu1 %v338_v24 }
  0x20   : > { %1096 = vmatpush1.xpose.msra.mxu0 %v335_v25 }
  0x21   : > { %1166 = vmatpush1.xpose.msra.mxu1 %v337_v26  ;;  %1097 = vmatprep.subr.mxu0 %v329_v27 }
  0x22   : > { %1167 = vmatprep.subr.mxu1 %v331_v28 }
  0x24   : > { %1098 = vmatpush1.xpose.msra.mxu0 %v328_v29 }
  0x25   : > { %1168 = vmatpush1.xpose.msra.mxu1 %v330_v30  ;;  %1099 = vmatprep.subr.mxu0 %v322_v31 }
  0x26   : > { %1169 = vmatprep.subr.mxu1 %v324_v32 }
  0x28   : > { %1100 = vmatpush1.xpose.msra.mxu0 %v321_v33 }
  0x29   : > { %1170 = vmatpush1.xpose.msra.mxu1 %v323_v34  ;;  %1233 = vmatprep.subr.mxu0 %v347_v35 }
  0x2a   : > { %1551 = vmatprep.subr.mxu1 %v1583_v10 }
  0x96   : > { %v1775_v61 = vpop.permute.xlu0 %878 }
  0x97   : > { %v1798_v13 = vrot.slane %v1775_v61, 5  ;;  %v1801_v14 = vrot.slane %v1775_v61, 2 }
  0xd2   : > { %v422_v4 = vpop.f32.mrf.mxu0  ;;  %v499_v5 = vpop.f32.mrf.mxu1 }
  0xd3   : > { %v743_v11 = vmul.f32 %v711_v47, %v422_v4  ;;  %v813_v12 = vmul.f32 %v781_v48, %v422_v4  ;;  %v701_v15 = vmul.f32 %v1755_v46, %v422_v4  ;;  %v703_v16 = vmul.f32 %v1757_v51, %v499_v5 }
  0xd4   : > { %v745_v17 = vmul.f32 %v1759_v52, %v499_v5  ;;  %v815_v18 = vmul.f32 %v1761_v53, %v499_v5  ;;  %v424_v19 = vpop.f32.mrf.mxu0  ;;  %v501_v20 = vpop.f32.mrf.mxu1  ;;  %v855_v22 = vrot.slane %v422_v4, 3  ;;  %v857_v23 = vrot.slane %v499_v5, 3 }
  0xd5   : > { %v757_v21 = vrot.slane %v743_v11, 1  ;;  %v744_v24 = vmul.f32 %v1765_v56, %v424_v19  ;;  %v827_v25 = vrot.slane %v813_v12, 2  ;;  %v814_v28 = vmul.f32 %v1767_v57, %v424_v19 }
  0xd6   : > { %v759_v26 = vrot.slane %v745_v17, 1  ;;  %v829_v27 = vrot.slane %v815_v18, 2  ;;  %v702_v30 = vmul.f32 %v1763_v55, %v424_v19  ;;  %v746_v32 = vmul.f32 %v1771_v59, %v501_v20  ;;  %v428_v33 = vpop.f32.mrf.mxu0  ;;  %v505_v49 = vpop.f32.mrf.mxu1 }
  0xd7   : > { %v771_v29 = vadd.f32 %v757_v21, %v701_v15  ;;  %v758_v31 = vrot.slane %v744_v24, 1  ;;  %v856_v35 = vrot.slane %v424_v19, 3  ;;  %v704_v36 = vmul.f32 %v1769_v58, %v501_v20 }
  0xd8   : > { %v773_v34 = vadd.f32 %v759_v26, %v703_v16  ;;  %v816_v37 = vmul.f32 %v1773_v60, %v501_v20  ;;  %v828_v40 = vrot.slane %v814_v28, 2  ;;  %v760_v41 = vrot.slane %v746_v32, 1  ;;  %v430_v11 = vpop.f32.mrf.mxu0 }
  0xd9   : > { %v841_v38 = vadd.f32 %v827_v25, %v771_v29  ;;  %v772_v39 = vadd.f32 %v758_v31, %v702_v30  ;;  %v858_v43 = vrot.slane %v501_v20, 3  ;;  %v904_v44 = vmul.f32 %v711_v47, %v428_v33  ;;  %v1824_v25 = vpop.f32.mrf.mxu1 }
  0xda   : > { %v843_v42 = vadd.f32 %v829_v27, %v773_v34  ;;  %v939_v45 = vmul.f32 %v781_v48, %v428_v33  ;;  %v774_v54 = vadd.f32 %v760_v41, %v704_v36  ;;  %v830_v4 = vrot.slane %v816_v37, 2 }
  0xdb   : > { %v842_v50 = vadd.f32 %v828_v40, %v772_v39  ;;  %v897_v5 = vmul.f32 %v1755_v46, %v428_v33  ;;  %v1814_v12 = vadd.f32 %v855_v22, %v841_v38  ;;  %v918_v16 = vrot.slane %v904_v44, 1  ;;  %v1550_v36 = vpop.f32.mrf.mxu1 }
  0xdc   : > { %v1816_v15 = vadd.f32 %v857_v23, %v843_v42  ;;  %v981_v17 = vrot.slane %v428_v33, 3  ;;  %v844_v18 = vadd.f32 %v830_v4, %v774_v54  ;;  %v899_v19 = vmul.f32 %v1757_v51, %v505_v49 }
  0xdd   : > { %v906_v20 = vmul.f32 %v1759_v52, %v505_v49  ;;  %v941_v47 = vmul.f32 %v1761_v53, %v505_v49  ;;  %v1821_v48 = vadd.f32 %v856_v35, %v842_v50  ;;  %v932_v21 = vadd.f32 %v918_v16, %v897_v5  ;;  %v576_v53 = vpop.f32.mrf.mxu0 }
  0xde   : > { %v953_v24 = vrot.slane %v939_v45, 2  ;;  %v905_v46 = vmul.f32 %v1765_v56, %v430_v11  ;;  %v983_v26 = vrot.slane %v505_v49, 3  ;;  %v940_v27 = vmul.f32 %v1767_v57, %v430_v11 }
  0xdf   : > { %v920_v22 = vrot.slane %v906_v20, 1  ;;  %v955_v23 = vrot.slane %v941_v47, 2  ;;  %v1827_v28 = vadd.f32 %v858_v43, %v844_v18  ;;  %v898_v52 = vmul.f32 %v1763_v55, %v430_v11  ;;  %v578_v42 = vpop.f32.mrf.mxu0  ;;  %v653_v18 = vpop.f32.mrf.mxu1 }
  0xe0   : > { %v967_v51 = vadd.f32 %v953_v24, %v932_v21  ;;  %v919_v29 = vrot.slane %v905_v46, 1  ;;  %v982_v31 = vrot.slane %v430_v11, 3  ;;  %v907_v32 = vmul.f32 %v1771_v59, %v1824_v25 }
  0xe1   : > { %v934_v30 = vadd.f32 %v920_v22, %v899_v19  ;;  %v942_v56 = vmul.f32 %v1773_v60, %v1824_v25  ;;  %v954_v35 = vrot.slane %v940_v27, 2  ;;  %v900_v57 = vmul.f32 %v1769_v58, %v1824_v25  ;;  %v582_v24 = vpop.f32.mrf.mxu0 }
  0xe2   : > { %v1834_v33 = vadd.f32 %v981_v17, %v967_v51  ;;  %v933_v34 = vadd.f32 %v919_v29, %v898_v52  ;;  %v921_v55 = vrot.slane %v907_v32, 1  ;;  %v705_v38 = vmul.f32 %v1781_v0, %v576_v53 }
  0xe3   : > { %v969_v37 = vadd.f32 %v955_v23, %v934_v30  ;;  %v747_v39 = vmul.f32 %v1777_v62, %v576_v53  ;;  %v956_v41 = vrot.slane %v942_v56, 2  ;;  %v984_v59 = vrot.slane %v1824_v25, 3 }
  0xe4   : > { %v968_v40 = vadd.f32 %v954_v35, %v933_v34  ;;  %v817_v60 = vmul.f32 %v1783_v1, %v576_v53  ;;  %v935_v43 = vadd.f32 %v921_v55, %v900_v57  ;;  %v903_v45 = vmul.f32 %v1550_v36, %v1785_v2  ;;  %v584_v57 = vpop.f32.mrf.mxu0 }
  0xe5   : > { %v761_v44 = vrot.slane %v747_v39, 1  ;;  %v910_v58 = vmul.f32 %v1550_v36, %v1779_v63  ;;  %v1844_v49 = vadd.f32 %v983_v26, %v969_v37  ;;  %v859_v54 = vrot.slane %v576_v53, 3 }
  0xe6   : > { %v831_v50 = vrot.slane %v817_v60, 2  ;;  %v945_v4 = vmul.f32 %v1550_v36, %v1787_v3  ;;  %v996_v5 = vadd.f32 %v982_v31, %v968_v40  ;;  %v987_v17 = vrot.slane %v1550_v36, 3 }
  0xe7   : > { %v775_v11 = vadd.f32 %v761_v44, %v705_v38  ;;  %v924_v16 = vrot.slane %v910_v58, 1  ;;  %v706_v20 = vmul.f32 %v1789_v6, %v578_v42  ;;  %v748_v47 = vmul.f32 %v1791_v7, %v578_v42 }
  0xe8   : > { %v959_v19 = vrot.slane %v945_v4, 2  ;;  %v818_v21 = vmul.f32 %v1793_v8, %v578_v42  ;;  %v970_v46 = vadd.f32 %v956_v41, %v935_v43  ;;  %v707_v23 = vmul.f32 %v1785_v2, %v653_v18 }
  0xe9   : > { %v845_v25 = vadd.f32 %v831_v50, %v775_v11  ;;  %v938_v22 = vadd.f32 %v924_v16, %v903_v45  ;;  %v762_v26 = vrot.slane %v748_v47, 1  ;;  %v749_v51 = vmul.f32 %v1779_v63, %v653_v18 }
  0xea   : > { %v832_v27 = vrot.slane %v818_v21, 2  ;;  %v819_v52 = vmul.f32 %v1787_v3, %v653_v18  ;;  %v860_v30 = vrot.slane %v578_v42, 3  ;;  %v901_v31 = vmul.f32 %v1781_v0, %v582_v24 }
  0xeb   : > { %v873_v29 = vadd.f32 %v859_v54, %v845_v25  ;;  %v973_v53 = vadd.f32 %v959_v19, %v938_v22  ;;  %v776_v32 = vadd.f32 %v762_v26, %v706_v20  ;;  %v763_v56 = vrot.slane %v749_v51, 1 }
  0xec   : > { %v833_v34 = vrot.slane %v819_v52, 2  ;;  %v908_v35 = vmul.f32 %v1777_v62, %v582_v24  ;;  %v998_v2 = vadd.f32 %v984_v59, %v970_v46  ;;  %v861_v63 = vrot.slane %v653_v18, 3 }
  0xed   : > { %v1856_v36 = vadd.f32 %v1798_v13, %v873_v29  ;;  %v943_v3 = vmul.f32 %v1783_v1, %v582_v24  ;;  %v1860_v37 = vadd.f32 %v1775_v61, %v873_v29  ;;  %v846_v55 = vadd.f32 %v832_v27, %v776_v32  ;;  %v346_v29 = vld [vmem:[%s1981_s4 + $0xc8] sm:$0xff]  ;;  %v340_v32 = vld [vmem:[%s1981_s4 + $0x98] sm:$0xff] }
  0xee   : > { %v777_v0 = vadd.f32 %v763_v56, %v707_v23  ;;  %v922_v38 = vrot.slane %v908_v35, 1  ;;  %v1862_v39 = vadd.f32 %v987_v17, %v973_v53  ;;  %v902_v62 = vmul.f32 %v1789_v6, %v584_v57 }
  0xef   : > { %v957_v40 = vrot.slane %v943_v3, 2  ;;  %v909_v41 = vmul.f32 %v1791_v7, %v584_v57  ;;  %v985_v42 = vrot.slane %v582_v24, 3  ;;  %v944_v43 = vmul.f32 %v1793_v8, %v584_v57 }
  0xf0   : > { %v847_v59 = vadd.f32 %v833_v34, %v777_v0  ;;  %v936_v60 = vadd.f32 %v922_v38, %v901_v31  ;;  %v1022_v1 = vrot.slane %v1856_v36, 3  ;;  %v874_v44 = vadd.f32 %v860_v30, %v846_v55  ;;  %v348_v0 = vld [vmem:[%s1981_s4 + $0xd8] sm:$0xff]  ;;  %v339_v38 = vld [vmem:[%s1981_s4 + $0x90] sm:$0xff]  ;;  %v341_v36 = vld [vmem:[%s1981_s4 + $0xa0] sm:$0xff] }
  0xf1   : > { %v923_v45 = vrot.slane %v909_v41, 1  ;;  %v986_v58 = vrot.slane %v584_v57, 3  ;;  %v958_v4 = vrot.slane %v944_v43, 2  ;;  %v890_v11 = vadd.f32 %v1798_v13, %v1814_v12 }
  0xf2   : > { %v875_v50 = vadd.f32 %v861_v63, %v847_v59  ;;  %v971_v54 = vadd.f32 %v957_v40, %v936_v60  ;;  %v891_v6 = vadd.f32 %v1798_v13, %v1821_v48  ;;  %v1004_v7 = vadd.f32 %v1801_v14, %v1834_v33  ;;  %v333_v60 = vld [vmem:[%s1981_s4 + $0x60] sm:$0xff] }
  0xf3   : > { %v937_v16 = vadd.f32 %v923_v45, %v902_v62  ;;  %v1005_v8 = vadd.f32 %v1801_v14, %v996_v5  ;;  %v881_v18 = vadd.f32 %v1775_v61, %v1814_v12  ;;  %v882_v19 = vadd.f32 %v1775_v61, %v1821_v48 }
  0xf4   : > { %v1876_v17 = vadd.f32 %v1798_v13, %v875_v50  ;;  %v1018_v20 = vrot.slane %v890_v11, 3  ;;  %v1019_v21 = vrot.slane %v891_v6, 3  ;;  %v1039_v24 = vrot.slane %v1004_v7, 6  ;;  %v334_v11 = vld [vmem:[%s1981_s4 + $0x68] sm:$0xff] }
  0xf5   : > { %v972_v47 = vadd.f32 %v958_v4, %v937_v16  ;;  %v1040_v46 = vrot.slane %v1005_v8, 6  ;;  %v999_v25 = vadd.f32 %v985_v42, %v971_v54  ;;  %v883_v5 = vadd.f32 %v1775_v61, %v1816_v15  ;;  %v326_v54 = vld [vmem:[%s1981_s4 + $0x28] sm:$0xff]  ;;  %v325_v16 = vld [vmem:[%s1981_s4 + $0x20] sm:$0xff] }
  0xf6   : > { %v1054_v33 = vsel %vm1053_vm1, %v881_v18, %v1018_v20  ;;  %v892_v22 = vadd.f32 %v1798_v13, %v1816_v15  ;;  %v1055_v23 = vsel %vm1053_vm1, %v882_v19, %v1019_v21  ;;  %v893_v26 = vadd.f32 %v1798_v13, %v1827_v28 }
  0xf7   : > { %v1000_v12 = vadd.f32 %v986_v58, %v972_v47  ;;  %v1062_v48 = vsel %vm1061_vm2, %v1054_v33, %v1039_v24  ;;  %v1063_v27 = vsel %vm1061_vm2, %v1055_v23, %v1040_v46  ;;  %v1006_v15 = vadd.f32 %v1801_v14, %v1844_v49 }
  0xf8   : > { %v1007_v51 = vadd.f32 %v1801_v14, %v998_v2  ;;  %v1020_v52 = vrot.slane %v892_v22, 3  ;;  %1133 = vmatprep.mubr.f32.mxu0 %v1063_v27  ;;  %v1393_v53 = vcombine.low %v1062_v48, %v1063_v27  ;;  %v884_v30 = vadd.f32 %v1775_v61, %v1827_v28 }
  0xf9   : > { %v1021_v31 = vrot.slane %v893_v26, 3  ;;  %v895_v56 = vadd.f32 %v1798_v13, %v874_v44  ;;  %v1041_v49 = vrot.slane %v1006_v15, 6  ;;  %1134 = vmatmul.mubr.f32.vlgmr.msra.gmra.mxu0 %v1062_v48  ;;  %v886_v35 = vadd.f32 %v1775_v61, %v874_v44 }
  0xfa   : > { %v1042_v34 = vrot.slane %v1007_v51, 6  ;;  %v1008_v57 = vadd.f32 %v1801_v14, %v999_v25  ;;  %1399 = vst [vmem:[%s1897_s11] sm:$0x77] %v1393_v53  ;;  %v1056_v2 = vsel %vm1053_vm1, %v883_v5, %v1020_v52  ;;  %1234 = vmatpush1.xpose.msra.mxu0 %v346_v29  ;;  %v1009_v28 = vadd.f32 %v1801_v14, %v1000_v12 }
  0xfb   : > { %v1057_v63 = vsel %vm1053_vm1, %v884_v30, %v1021_v31  ;;  %v1023_v3 = vrot.slane %v895_v56, 3  ;;  %v1064_v55 = vsel %vm1061_vm2, %v1056_v2, %v1041_v49  ;;  %1235 = vmatprep.subr.mxu0 %v340_v32  ;;  %v1010_v62 = vadd.f32 %v1801_v14, %v1862_v39 }
  0xfc   : > { %v1065_v13 = vsel %vm1061_vm2, %v1057_v63, %v1042_v34  ;;  %v1043_v40 = vrot.slane %v1008_v57, 6  ;;  %v887_v41 = vadd.f32 %v1775_v61, %v875_v50  ;;  %v1044_v42 = vrot.slane %v1009_v28, 6 }
  0xfd   : > { %1203 = vmatprep.mubr.f32.mxu1 %v1065_v13  ;;  %v1394_v59 = vcombine.low %v1064_v55, %v1065_v13  ;;  %v1024_v43 = vrot.slane %v1876_v17, 3  ;;  %v1058_v44 = vsel %vm1053_vm1, %v1860_v37, %v1022_v1  ;;  %v1059_v45 = vsel %vm1053_vm1, %v886_v35, %v1023_v3  ;;  %v332_v1 = vld [vmem:[%s1981_s4 + $0x58] sm:$0xff] }
  0xfe   : > { %1204 = vmatmul.mubr.f32.vlgmr.msra.gmra.mxu1 %v1064_v55  ;;  %v1045_v14 = vrot.slane %v1010_v62, 6  ;;  %1236 = vmatpush1.xpose.msra.mxu0 %v339_v38  ;;  %v1066_v61 = vsel %vm1061_vm2, %v1058_v44, %v1043_v40  ;;  %v1067_v39 = vsel %vm1061_vm2, %v1059_v45, %v1044_v42 }
  0xff   : > { %1400 = vst [vmem:[%s1897_s11 + $0x8] sm:$0x77] %v1394_v59  ;;  %1552 = vmatpush3.xpose.msra.mxu1 %v348_v0  ;;  %v1060_v58 = vsel %vm1053_vm1, %v887_v41, %v1024_v43  ;;  %1237 = vmatprep.subr.mxu0 %v333_v60  ;;  %v1395_v37 = vcombine.low %v1066_v61, %v1067_v39 }
 0x100   : > { %1553 = vmatprep.subr.mxu1 %v1583_v10  ;;  %v1068_v50 = vsel %vm1061_vm2, %v1060_v58, %v1045_v14  ;;  %1273 = vmatprep.mubr.f32.mxu0 %v1067_v39 }
 0x101   : > { %1559 = vmatprep.mubr.msk.f32.mxu1 %vm1585_vm4, %v1583_v10  ;;  %v1386_v4 = vsel %vm1365_vm3, %v1068_v50, 1000000.0  ;;  %1401 = vst [vmem:[%s1897_s11 + $0x10] sm:$0x77] %v1395_v37 }
 0x102   : > { %1402 = vst [vmem:[%s1897_s11 + $0x18] sm:$0x7] %v1386_v4  ;;  %1238 = vmatpush1.xpose.msra.mxu0 %v332_v1 }
 0x103   : > { %1554 = vmatpush3.xpose.msra.mxu1 %v341_v36  ;;  %1239 = vmatprep.subr.mxu0 %v326_v54 }
 0x104   : > { %1555 = vmatprep.subr.mxu1 %v1583_v10 }
 0x106   : > { %1240 = vmatpush1.xpose.msra.mxu0 %v325_v16 }
 0x107   : > { %1556 = vmatpush3.xpose.msra.mxu1 %v334_v11 }
 0x108   : > { %1557 = vmatprep.subr.mxu1 %v1583_v10 }
 0x109   : > { %1274 = vmatmul.mubr.f32.vlgmr.msra.gmra.mxu0 %v1066_v61 }
 0x10b   : > { %1558 = vmatpush3.xpose.msra.mxu1 %v327_v9 }
 0x10e   : > { %1560 = vmatmul.mubr.f32.vlgmr.msra.gmra.mxu1 %v1068_v50 }
 0x1b9   : > { %v1135_v6 = vpop.f32.mrf.mxu0 }
 0x1bb   : > { %v1137_v7 = vpop.f32.mrf.mxu0 }
 0x1be   : > { %v1205_v8 = vpop.f32.mrf.mxu1 }
 0x1bf   : > { %v1206_v18 = vadd.f32 %v1205_v8, %v1135_v6 }
 0x1c0   : > { %v1207_v17 = vpop.f32.mrf.mxu1 }
 0x1c9   : > { %v1275_v19 = vpop.f32.mrf.mxu0 }
 0x1ca   : > { %v1276_v20 = vadd.f32 %v1275_v19, %v1206_v18 }
 0x1cb   : > { %v1277_v47 = vpop.f32.mrf.mxu0 }
 0x1ce   : > { %v1345_v10 = vpop.f32.mrf.mxu1 }
 0x1cf   : > { %v1346_v21 = vadd.f32 %v1345_v10, %v1276_v20 }
 0x1d0   : > { %v1561_v24 = vpop.f32.mrf.mxu1 }
 0x1d1   : > { %1350 = vst.msk [vmem:[%s299_s15] sm:$0x7] %vm1349_vm5, %v1346_v21 }
 0x1d2 PF: > { %s17_s21 = sadd.s32 1, %s1581_s21  }
 0x1d3   : > { %p14_p4 = scmp.ge.s32.totalorder %s17_s21, 4  }
 0x1d5   :  { %16 = sbr.rel (!%p14_p4) target bundleno = 1 (0x1), region = 88 }

// kernel: hand_model_forward.3
= control target key start
LH: loop header
LB: loop body
LE: loop exit
PB: predicated region body
PF: predicated region fallthrough
CT: control target
= control target key end

     0   :  { %s4918_s12 = smov 0   ;;  %s4920_s13 = smov 0   ;;  %s8759_s0 = inlined_call_operand.vmem [shape: f32[2,1792,8], index: 0, kind: input, shape index: {}]   ;;  %s8760_s1 = inlined_call_operand.vmem [shape: f32[2,8,256], index: 1, kind: input, shape index: {}]   ;;  %s8761_s2 = inlined_call_operand.vmem [shape: f32[2,1,256], index: 2, kind: output, shape index: {0}]   ;;  %s8762_s3 = inlined_call_operand.vmem [shape: f32[2,1,256], index: 3, kind: output, shape index: {1}]  }
   0x1   :  { %s4922_s14 = smov 0  }
   0x2 LB: > { %s26_s15 = sadd.s32 1, %s4890_s13  ;;  %p4598_p0 = scmp.ge.s32.totalorder %s4894_s14, 1  ;;  %s4894_s14 = sphi %s4922_s14, %s14_s14   ;;  %s4890_s13 = sphi %s4920_s13, %s10387_s13   ;;  %s4886_s12 = sphi %s4918_s12, %s10386_s12  }
   0x3   : > { %p28_p1 = scmp.ge.s32.totalorder %s26_s15, 2  ;;  %p173_p2 = scmp.lt.s32.totalorder %s4894_s14, 3 }
   0x5   : > { %s10389_s15 = smov (%p28_p1, %s26_s15), 0  ;;  %p174_p3 = pnand %p4598_p0, %p173_p2 }
   0x7   : > { %177 = sbr.rel (%p174_p3) target bundleno = 1266 (0x4f2), region = 28 }
   0xc   : > { %p217_p4 = scmp.lt.s32.totalorder %s4886_s12, 1  ;;  %v4896_v0 = vmov 0.0   ;;  %vm476_vm0 = vcmask 64512  }
   0xd   : > { %1213 = vmatprep.mubr.f32.mxu0 %v4896_v0  ;;  %1885 = vmatprep.mubr.f32.mxu1 %v4896_v0 }
   0xe   : > { %s10391_s12 = smov (!%p217_p4, %s4886_s12), 1 }
   0xf   : > { %s4833_s16 = smul.u32 1792, %s10391_s12  ;;  %s4830_s17 = sshll.u32 %s10391_s12, 4 }
  0x10   : > { %s230_s20 = scalar_lea.vmem %s8760_s1, %s4830_s17  ;;  %s4602_s24 = sshll.u32 %s10391_s12, 1 }
  0x11   : > { %s4948_s23 = scalar_lea.vmem %s8759_s0, %s4833_s16  ;;  %v475_v1 = vld [vmem:[%s230_s20 + $0x8] sm:$0xff]  ;;  %v474_v2 = vld [vmem:[%s230_s20] sm:$0xff]  ;;  %s239_s27 = scalar_lea.vmem %s8761_s2, %s4602_s24 }
  0x12   : > { %1179 = vmatprep.subr.mxu0 %v475_v1  ;;  %v250_v3 = vld [vmem:[%s4948_s23] sm:$0xff]  ;;  %4831 = vmatprep.subr.mxu1 %v475_v1  ;;  %v251_v4 = vld [vmem:[%s4948_s23 + $0x8] sm:$0xff]  ;;  %v252_v5 = vld [vmem:[%s4948_s23 + $0x10] sm:$0xff]  ;;  %s248_s30 = scalar_lea.vmem %s8762_s3, %s4602_s24 }
  0x13   : > { %1180 = vmatpush1.msra.mxu0 %v474_v2  ;;  %4832 = vmatpush1.msra.mxu1 %v474_v2  ;;  %v253_v6 = vld [vmem:[%s4948_s23 + $0x18] sm:$0xff]  ;;  %v254_v7 = vld [vmem:[%s4948_s23 + $0x20] sm:$0xff]  ;;  %v255_v9 = vld [vmem:[%s4948_s23 + $0x28] sm:$0xff] }
  0x14   : > { %4604 = vmatmul.mubr.msk.f32.vlgmr.msra.gmra.mxu0 %vm476_vm0, %v250_v3  ;;  %v362_v8 = vld [vmem:[%s4948_s23 + $0x380] sm:$0xff]  ;;  %v363_v10 = vld [vmem:[%s4948_s23 + $0x388] sm:$0xff]  ;;  %v256_v11 = vld [vmem:[%s4948_s23 + $0x30] sm:$0xff] }
  0x15   : > { %1219 = vmatprep.mubr.f32.mxu0 %v4896_v0  ;;  %4716 = vmatmul.mubr.msk.f32.vlgmr.msra.gmra.mxu1 %vm476_vm0, %v362_v8  ;;  %v364_v12 = vld [vmem:[%s4948_s23 + $0x390] sm:$0xff]  ;;  %v257_v13 = vld [vmem:[%s4948_s23 + $0x38] sm:$0xff]  ;;  %v258_v15 = vld [vmem:[%s4948_s23 + $0x40] sm:$0xff] }
  0x16   : > { %1891 = vmatprep.mubr.f32.mxu1 %v4896_v0  ;;  %v365_v14 = vld [vmem:[%s4948_s23 + $0x398] sm:$0xff]  ;;  %v366_v16 = vld [vmem:[%s4948_s23 + $0x3a0] sm:$0xff]  ;;  %v259_v17 = vld [vmem:[%s4948_s23 + $0x48] sm:$0xff] }
  0x17   : > { %v367_v18 = vld [vmem:[%s4948_s23 + $0x3a8] sm:$0xff]  ;;  %v260_v19 = vld [vmem:[%s4948_s23 + $0x50] sm:$0xff]  ;;  %v261_v21 = vld [vmem:[%s4948_s23 + $0x58] sm:$0xff] }
  0x18   : > { %4605 = vmatmul.mubr.msk.f32.gmra.mxu0 %vm476_vm0, %v251_v4  ;;  %v368_v20 = vld [vmem:[%s4948_s23 + $0x3b0] sm:$0xff]  ;;  %v369_v22 = vld [vmem:[%s4948_s23 + $0x3b8] sm:$0xff]  ;;  %v262_v23 = vld [vmem:[%s4948_s23 + $0x60] sm:$0xff] }
  0x19   : > { %1225 = vmatprep.mubr.f32.mxu0 %v4896_v0  ;;  %4717 = vmatmul.mubr.msk.f32.gmra.mxu1 %vm476_vm0, %v363_v10  ;;  %v370_v24 = vld [vmem:[%s4948_s23 + $0x3c0] sm:$0xff]  ;;  %v263_v25 = vld [vmem:[%s4948_s23 + $0x68] sm:$0xff]  ;;  %v264_v27 = vld [vmem:[%s4948_s23 + $0x70] sm:$0xff] }
  0x1a   : > { %1897 = vmatprep.mubr.f32.mxu1 %v4896_v0  ;;  %v371_v26 = vld [vmem:[%s4948_s23 + $0x3c8] sm:$0xff]  ;;  %v372_v28 = vld [vmem:[%s4948_s23 + $0x3d0] sm:$0xff]  ;;  %v265_v29 = vld [vmem:[%s4948_s23 + $0x78] sm:$0xff] }
  0x1b   : > { %v373_v30 = vld [vmem:[%s4948_s23 + $0x3d8] sm:$0xff]  ;;  %v266_v31 = vld [vmem:[%s4948_s23 + $0x80] sm:$0xff]  ;;  %v267_v33 = vld [vmem:[%s4948_s23 + $0x88] sm:$0xff] }
  0x1c   : > { %4606 = vmatmul.mubr.msk.f32.gmra.mxu0 %vm476_vm0, %v252_v5  ;;  %v374_v32 = vld [vmem:[%s4948_s23 + $0x3e0] sm:$0xff]  ;;  %v375_v34 = vld [vmem:[%s4948_s23 + $0x3e8] sm:$0xff]  ;;  %v268_v35 = vld [vmem:[%s4948_s23 + $0x90] sm:$0xff] }
  0x1d   : > { %1231 = vmatprep.mubr.f32.mxu0 %v4896_v0  ;;  %4718 = vmatmul.mubr.msk.f32.gmra.mxu1 %vm476_vm0, %v364_v12  ;;  %v376_v36 = vld [vmem:[%s4948_s23 + $0x3f0] sm:$0xff]  ;;  %v269_v37 = vld [vmem:[%s4948_s23 + $0x98] sm:$0xff]  ;;  %v270_v39 = vld [vmem:[%s4948_s23 + $0xa0] sm:$0xff] }
  0x1e   : > { %1903 = vmatprep.mubr.f32.mxu1 %v4896_v0  ;;  %v377_v38 = vld [vmem:[%s4948_s23 + $0x3f8] sm:$0xff]  ;;  %v378_v40 = vld [vmem:[%s4948_s23 + $0x400] sm:$0xff]  ;;  %v271_v41 = vld [vmem:[%s4948_s23 + $0xa8] sm:$0xff] }
  0x1f   : > { %v379_v42 = vld [vmem:[%s4948_s23 + $0x408] sm:$0xff]  ;;  %v272_v43 = vld [vmem:[%s4948_s23 + $0xb0] sm:$0xff]  ;;  %v273_v45 = vld [vmem:[%s4948_s23 + $0xb8] sm:$0xff] }
  0x20   : > { %4607 = vmatmul.mubr.msk.f32.gmra.mxu0 %vm476_vm0, %v253_v6  ;;  %v380_v44 = vld [vmem:[%s4948_s23 + $0x410] sm:$0xff]  ;;  %v381_v46 = vld [vmem:[%s4948_s23 + $0x418] sm:$0xff]  ;;  %v274_v47 = vld [vmem:[%s4948_s23 + $0xc0] sm:$0xff] }
  0x21   : > { %1237 = vmatprep.mubr.f32.mxu0 %v4896_v0  ;;  %4719 = vmatmul.mubr.msk.f32.gmra.mxu1 %vm476_vm0, %v365_v14  ;;  %v382_v48 = vld [vmem:[%s4948_s23 + $0x420] sm:$0xff]  ;;  %v275_v49 = vld [vmem:[%s4948_s23 + $0xc8] sm:$0xff]  ;;  %v276_v51 = vld [vmem:[%s4948_s23 + $0xd0] sm:$0xff] }
  0x22   : > { %1909 = vmatprep.mubr.f32.mxu1 %v4896_v0  ;;  %v383_v50 = vld [vmem:[%s4948_s23 + $0x428] sm:$0xff]  ;;  %v384_v52 = vld [vmem:[%s4948_s23 + $0x430] sm:$0xff]  ;;  %v277_v53 = vld [vmem:[%s4948_s23 + $0xd8] sm:$0xff] }
  0x23   : > { %v385_v54 = vld [vmem:[%s4948_s23 + $0x438] sm:$0xff]  ;;  %v278_v55 = vld [vmem:[%s4948_s23 + $0xe0] sm:$0xff]  ;;  %v279_v57 = vld [vmem:[%s4948_s23 + $0xe8] sm:$0xff] }
  0x24   : > { %4608 = vmatmul.mubr.msk.f32.gmra.mxu0 %vm476_vm0, %v254_v7  ;;  %v386_v56 = vld [vmem:[%s4948_s23 + $0x440] sm:$0xff]  ;;  %v387_v58 = vld [vmem:[%s4948_s23 + $0x448] sm:$0xff]  ;;  %v280_v59 = vld [vmem:[%s4948_s23 + $0xf0] sm:$0xff] }
  0x25   : > { %1243 = vmatprep.mubr.f32.mxu0 %v4896_v0  ;;  %4720 = vmatmul.mubr.msk.f32.gmra.mxu1 %vm476_vm0, %v366_v16  ;;  %v388_v60 = vld [vmem:[%s4948_s23 + $0x450] sm:$0xff]  ;;  %v281_v61 = vld [vmem:[%s4948_s23 + $0xf8] sm:$0xff]  ;;  %v282_v63 = vld [vmem:[%s4948_s23 + $0x100] sm:$0xff] }
  0x26   : > { %1915 = vmatprep.mubr.f32.mxu1 %v4896_v0  ;;  %v389_v62 = vld [vmem:[%s4948_s23 + $0x458] sm:$0xff]  ;;  %v390_v1 = vld [vmem:[%s4948_s23 + $0x460] sm:$0xff]  ;;  %v283_v2 = vld [vmem:[%s4948_s23 + $0x108] sm:$0xff] }
  0x27   : > { %v391_v3 = vld [vmem:[%s4948_s23 + $0x468] sm:$0xff]  ;;  %v284_v4 = vld [vmem:[%s4948_s23 + $0x110] sm:$0xff]  ;;  %v285_v6 = vld [vmem:[%s4948_s23 + $0x118] sm:$0xff] }
  0x28   : > { %4609 = vmatmul.mubr.msk.f32.gmra.mxu0 %vm476_vm0, %v255_v9  ;;  %v392_v5 = vld [vmem:[%s4948_s23 + $0x470] sm:$0xff]  ;;  %v393_v7 = vld [vmem:[%s4948_s23 + $0x478] sm:$0xff]  ;;  %v286_v8 = vld [vmem:[%s4948_s23 + $0x120] sm:$0xff] }
  0x29   : > { %1249 = vmatprep.mubr.f32.mxu0 %v4896_v0  ;;  %4721 = vmatmul.mubr.msk.f32.gmra.mxu1 %vm476_vm0, %v367_v18  ;;  %v394_v9 = vld [vmem:[%s4948_s23 + $0x480] sm:$0xff]  ;;  %v287_v10 = vld [vmem:[%s4948_s23 + $0x128] sm:$0xff]  ;;  %v288_v12 = vld [vmem:[%s4948_s23 + $0x130] sm:$0xff] }
  0x2a   : > { %1921 = vmatprep.mubr.f32.mxu1 %v4896_v0  ;;  %v289_v14 = vld [vmem:[%s4948_s23 + $0x138] sm:$0xff]  ;;  %v290_v16 = vld [vmem:[%s4948_s23 + $0x140] sm:$0xff]  ;;  %v291_v18 = vld [vmem:[%s4948_s23 + $0x148] sm:$0xff] }
  0x2c   : > { %4610 = vmatmul.mubr.msk.f32.gmra.mxu0 %vm476_vm0, %v256_v11  ;;  %v395_v11 = vld [vmem:[%s4948_s23 + $0x488] sm:$0xff] }
  0x2d   : > { %1255 = vmatprep.mubr.f32.mxu0 %v4896_v0  ;;  %4722 = vmatmul.mubr.msk.f32.gmra.mxu1 %vm476_vm0, %v368_v20  ;;  %v292_v20 = vld [vmem:[%s4948_s23 + $0x150] sm:$0xff] }
  0x2e   : > { %1927 = vmatprep.mubr.f32.mxu1 %v4896_v0 }
  0x30   : > { %4611 = vmatmul.mubr.msk.f32.gmra.mxu0 %vm476_vm0, %v257_v13  ;;  %v396_v13 = vld [vmem:[%s4948_s23 + $0x490] sm:$0xff] }
  0x31   : > { %1261 = vmatprep.mubr.f32.mxu0 %v4896_v0  ;;  %4723 = vmatmul.mubr.msk.f32.gmra.mxu1 %vm476_vm0, %v369_v22  ;;  %v293_v22 = vld [vmem:[%s4948_s23 + $0x158] sm:$0xff] }
  0x32   : > { %1933 = vmatprep.mubr.f32.mxu1 %v4896_v0 }
  0x34   : > { %4612 = vmatmul.mubr.msk.f32.gmra.mxu0 %vm476_vm0, %v258_v15  ;;  %v397_v15 = vld [vmem:[%s4948_s23 + $0x498] sm:$0xff] }
  0x35   : > { %1267 = vmatprep.mubr.f32.mxu0 %v4896_v0  ;;  %4724 = vmatmul.mubr.msk.f32.gmra.mxu1 %vm476_vm0, %v370_v24  ;;  %v294_v24 = vld [vmem:[%s4948_s23 + $0x160] sm:$0xff] }
  0x36   : > { %1939 = vmatprep.mubr.f32.mxu1 %v4896_v0 }
  0x38   : > { %4613 = vmatmul.mubr.msk.f32.gmra.mxu0 %vm476_vm0, %v259_v17  ;;  %v398_v17 = vld [vmem:[%s4948_s23 + $0x4a0] sm:$0xff] }
  0x39   : > { %1273 = vmatprep.mubr.f32.mxu0 %v4896_v0  ;;  %4725 = vmatmul.mubr.msk.f32.gmra.mxu1 %vm476_vm0, %v371_v26  ;;  %v295_v26 = vld [vmem:[%s4948_s23 + $0x168] sm:$0xff] }
  0x3a   : > { %1945 = vmatprep.mubr.f32.mxu1 %v4896_v0 }
  0x3c   : > { %4614 = vmatmul.mubr.msk.f32.gmra.mxu0 %vm476_vm0, %v260_v19  ;;  %v399_v19 = vld [vmem:[%s4948_s23 + $0x4a8] sm:$0xff] }
  0x3d   : > { %1279 = vmatprep.mubr.f32.mxu0 %v4896_v0  ;;  %4726 = vmatmul.mubr.msk.f32.gmra.mxu1 %vm476_vm0, %v372_v28  ;;  %v296_v28 = vld [vmem:[%s4948_s23 + $0x170] sm:$0xff] }
  0x3e   : > { %1951 = vmatprep.mubr.f32.mxu1 %v4896_v0 }
  0x40   : > { %4615 = vmatmul.mubr.msk.f32.gmra.mxu0 %vm476_vm0, %v261_v21  ;;  %v400_v21 = vld [vmem:[%s4948_s23 + $0x4b0] sm:$0xff] }
  0x41   : > { %1285 = vmatprep.mubr.f32.mxu0 %v4896_v0  ;;  %4727 = vmatmul.mubr.msk.f32.gmra.mxu1 %vm476_vm0, %v373_v30  ;;  %v297_v30 = vld [vmem:[%s4948_s23 + $0x178] sm:$0xff] }
  0x42   : > { %1957 = vmatprep.mubr.f32.mxu1 %v4896_v0 }
  0x44   : > { %4616 = vmatmul.mubr.msk.f32.gmra.mxu0 %vm476_vm0, %v262_v23  ;;  %v401_v23 = vld [vmem:[%s4948_s23 + $0x4b8] sm:$0xff] }
  0x45   : > { %1291 = vmatprep.mubr.f32.mxu0 %v4896_v0  ;;  %4728 = vmatmul.mubr.msk.f32.gmra.mxu1 %vm476_vm0, %v374_v32  ;;  %v298_v32 = vld [vmem:[%s4948_s23 + $0x180] sm:$0xff] }
  0x46   : > { %1963 = vmatprep.mubr.f32.mxu1 %v4896_v0 }
  0x48   : > { %4617 = vmatmul.mubr.msk.f32.gmra.mxu0 %vm476_vm0, %v263_v25  ;;  %v402_v25 = vld [vmem:[%s4948_s23 + $0x4c0] sm:$0xff] }
  0x49   : > { %1297 = vmatprep.mubr.f32.mxu0 %v4896_v0  ;;  %4729 = vmatmul.mubr.msk.f32.gmra.mxu1 %vm476_vm0, %v375_v34 }
  0x4a   : > { %1969 = vmatprep.mubr.f32.mxu1 %v4896_v0 }
  0x4c   : > { %4618 = vmatmul.mubr.msk.f32.gmra.mxu0 %vm476_vm0, %v264_v27  ;;  %v403_v27 = vld [vmem:[%s4948_s23 + $0x4c8] sm:$0xff] }
  0x4d   : > { %1303 = vmatprep.mubr.f32.mxu0 %v4896_v0  ;;  %4730 = vmatmul.mubr.msk.f32.gmra.mxu1 %vm476_vm0, %v376_v36 }
  0x4e   : > { %1975 = vmatprep.mubr.f32.mxu1 %v4896_v0 }
  0x50   : > { %4619 = vmatmul.mubr.msk.f32.gmra.mxu0 %vm476_vm0, %v265_v29  ;;  %v404_v29 = vld [vmem:[%s4948_s23 + $0x4d0] sm:$0xff] }
  0x51   : > { %1309 = vmatprep.mubr.f32.mxu0 %v4896_v0  ;;  %4731 = vmatmul.mubr.msk.f32.gmra.mxu1 %vm476_vm0, %v377_v38 }
  0x52   : > { %1981 = vmatprep.mubr.f32.mxu1 %v4896_v0 }
  0x54   : > { %4620 = vmatmul.mubr.msk.f32.gmra.mxu0 %vm476_vm0, %v266_v31  ;;  %v405_v31 = vld [vmem:[%s4948_s23 + $0x4d8] sm:$0xff] }
  0x55   : > { %1315 = vmatprep.mubr.f32.mxu0 %v4896_v0  ;;  %4732 = vmatmul.mubr.msk.f32.gmra.mxu1 %vm476_vm0, %v378_v40 }
  0x56   : > { %1987 = vmatprep.mubr.f32.mxu1 %v4896_v0 }
  0x58   : > { %4621 = vmatmul.mubr.msk.f32.gmra.mxu0 %vm476_vm0, %v267_v33  ;;  %v406_v33 = vld [vmem:[%s4948_s23 + $0x4e0] sm:$0xff] }
  0x59   : > { %1321 = vmatprep.mubr.f32.mxu0 %v4896_v0  ;;  %4733 = vmatmul.mubr.msk.f32.gmra.mxu1 %vm476_vm0, %v379_v42 }
  0x5a   : > { %1993 = vmatprep.mubr.f32.mxu1 %v4896_v0 }
  0x5c   : > { %4622 = vmatmul.mubr.msk.f32.gmra.mxu0 %vm476_vm0, %v268_v35  ;;  %v299_v35 = vld [vmem:[%s4948_s23 + $0x188] sm:$0xff] }
  0x5d   : > { %1327 = vmatprep.mubr.f32.mxu0 %v4896_v0  ;;  %4734 = vmatmul.mubr.msk.f32.gmra.mxu1 %vm476_vm0, %v380_v44 }
  0x5e   : > { %1999 = vmatprep.mubr.f32.mxu1 %v4896_v0 }
  0x60   : > { %4623 = vmatmul.mubr.msk.f32.gmra.mxu0 %vm476_vm0, %v269_v37  ;;  %v407_v37 = vld [vmem:[%s4948_s23 + $0x4e8] sm:$0xff] }
  0x61   : > { %1333 = vmatprep.mubr.f32.mxu0 %v4896_v0  ;;  %4735 = vmatmul.mubr.msk.f32.gmra.mxu1 %vm476_vm0, %v381_v46 }
  0x62   : > { %2005 = vmatprep.mubr.f32.mxu1 %v4896_v0 }
  0x64   : > { %4624 = vmatmul.mubr.msk.f32.gmra.mxu0 %vm476_vm0, %v270_v39  ;;  %v300_v39 = vld [vmem:[%s4948_s23 + $0x190] sm:$0xff] }
  0x65   : > { %1339 = vmatprep.mubr.f32.mxu0 %v4896_v0  ;;  %4736 = vmatmul.mubr.msk.f32.gmra.mxu1 %vm476_vm0, %v382_v48 }
  0x66   : > { %2011 = vmatprep.mubr.f32.mxu1 %v4896_v0 }
  0x68   : > { %4625 = vmatmul.mubr.msk.f32.gmra.mxu0 %vm476_vm0, %v271_v41  ;;  %v408_v41 = vld [vmem:[%s4948_s23 + $0x4f0] sm:$0xff] }
  0x69   : > { %1345 = vmatprep.mubr.f32.mxu0 %v4896_v0  ;;  %4737 = vmatmul.mubr.msk.f32.gmra.mxu1 %vm476_vm0, %v383_v50  ;;  %v410_v50 = vld [vmem:[%s4948_s23 + $0x500] sm:$0xff] }
  0x6a   : > { %2017 = vmatprep.mubr.f32.mxu1 %v4896_v0 }
  0x6c   : > { %4626 = vmatmul.mubr.msk.f32.gmra.mxu0 %vm476_vm0, %v272_v43  ;;  %v301_v43 = vld [vmem:[%s4948_s23 + $0x198] sm:$0xff] }
  0x6d   : > { %1351 = vmatprep.mubr.f32.mxu0 %v4896_v0  ;;  %4738 = vmatmul.mubr.msk.f32.gmra.mxu1 %vm476_vm0, %v384_v52  ;;  %v303_v52 = vld [vmem:[%s4948_s23 + $0x1a8] sm:$0xff] }
  0x6e   : > { %2023 = vmatprep.mubr.f32.mxu1 %v4896_v0 }
  0x70   : > { %4627 = vmatmul.mubr.msk.f32.gmra.mxu0 %vm476_vm0, %v273_v45  ;;  %v409_v45 = vld [vmem:[%s4948_s23 + $0x4f8] sm:$0xff] }
  0x71   : > { %1357 = vmatprep.mubr.f32.mxu0 %v4896_v0  ;;  %4739 = vmatmul.mubr.msk.f32.gmra.mxu1 %vm476_vm0, %v385_v54 }
  0x72   : > { %2029 = vmatprep.mubr.f32.mxu1 %v4896_v0 }
  0x74   : > { %4628 = vmatmul.mubr.msk.f32.gmra.mxu0 %vm476_vm0, %v274_v47  ;;  %v302_v47 = vld [vmem:[%s4948_s23 + $0x1a0] sm:$0xff] }
  0x75   : > { %1363 = vmatprep.mubr.f32.mxu0 %v4896_v0  ;;  %4740 = vmatmul.mubr.msk.f32.gmra.mxu1 %vm476_vm0, %v386_v56  ;;  %v411_v56 = vld [vmem:[%s4948_s23 + $0x508] sm:$0xff] }
  0x76   : > { %2035 = vmatprep.mubr.f32.mxu1 %v4896_v0 }
  0x78   : > { %4629 = vmatmul.mubr.msk.f32.gmra.mxu0 %vm476_vm0, %v275_v49 }
  0x79   : > { %1369 = vmatprep.mubr.f32.mxu0 %v4896_v0  ;;  %4741 = vmatmul.mubr.msk.f32.gmra.mxu1 %vm476_vm0, %v387_v58  ;;  %v304_v58 = vld [vmem:[%s4948_s23 + $0x1b0] sm:$0xff] }
  0x7a   : > { %2041 = vmatprep.mubr.f32.mxu1 %v4896_v0 }
  0x7c   : > { %4630 = vmatmul.mubr.msk.f32.gmra.mxu0 %vm476_vm0, %v276_v51 }
  0x7d   : > { %1375 = vmatprep.mubr.f32.mxu0 %v4896_v0  ;;  %4742 = vmatmul.mubr.msk.f32.gmra.mxu1 %vm476_vm0, %v388_v60 }
  0x7e   : > { %2047 = vmatprep.mubr.f32.mxu1 %v4896_v0 }
  0x80   : > { %4631 = vmatmul.mubr.msk.f32.gmra.mxu0 %vm476_vm0, %v277_v53 }
  0x81   : > { %1381 = vmatprep.mubr.f32.mxu0 %v4896_v0  ;;  %4743 = vmatmul.mubr.msk.f32.gmra.mxu1 %vm476_vm0, %v389_v62  ;;  %v412_v62 = vld [vmem:[%s4948_s23 + $0x510] sm:$0xff] }
  0x82   : > { %2053 = vmatprep.mubr.f32.mxu1 %v4896_v0 }
  0x84   : > { %4632 = vmatmul.mubr.msk.f32.gmra.mxu0 %vm476_vm0, %v278_v55 }
  0x85   : > { %1387 = vmatprep.mubr.f32.mxu0 %v4896_v0  ;;  %4744 = vmatmul.mubr.msk.f32.gmra.mxu1 %vm476_vm0, %v390_v1  ;;  %v305_v1 = vld [vmem:[%s4948_s23 + $0x1b8] sm:$0xff] }
  0x86   : > { %2059 = vmatprep.mubr.f32.mxu1 %v4896_v0 }
  0x88   : > { %4633 = vmatmul.mubr.msk.f32.gmra.mxu0 %vm476_vm0, %v279_v57 }
  0x89   : > { %1393 = vmatprep.mubr.f32.mxu0 %v4896_v0  ;;  %4745 = vmatmul.mubr.msk.f32.gmra.mxu1 %vm476_vm0, %v391_v3 }
  0x8a   : > { %2065 = vmatprep.mubr.f32.mxu1 %v4896_v0 }
  0x8c   : > { %4634 = vmatmul.mubr.msk.f32.gmra.mxu0 %vm476_vm0, %v280_v59 }
  0x8d   : > { %1399 = vmatprep.mubr.f32.mxu0 %v4896_v0  ;;  %4746 = vmatmul.mubr.msk.f32.gmra.mxu1 %vm476_vm0, %v392_v5  ;;  %v413_v5 = vld [vmem:[%s4948_s23 + $0x518] sm:$0xff] }
  0x8e   : > { %2071 = vmatprep.mubr.f32.mxu1 %v4896_v0 }
  0x90   : > { %4635 = vmatmul.mubr.msk.f32.gmra.mxu0 %vm476_vm0, %v281_v61 }
  0x91   : > { %1405 = vmatprep.mubr.f32.mxu0 %v4896_v0  ;;  %4747 = vmatmul.mubr.msk.f32.gmra.mxu1 %vm476_vm0, %v393_v7  ;;  %v306_v7 = vld [vmem:[%s4948_s23 + $0x1c0] sm:$0xff] }
  0x92   : > { %2077 = vmatprep.mubr.f32.mxu1 %v4896_v0 }
  0x94   : > { %4636 = vmatmul.mubr.msk.f32.gmra.mxu0 %vm476_vm0, %v282_v63 }
  0x95   : > { %1411 = vmatprep.mubr.f32.mxu0 %v4896_v0  ;;  %4748 = vmatmul.mubr.msk.f32.gmra.mxu1 %vm476_vm0, %v394_v9 }
  0x96   : > { %2083 = vmatprep.mubr.f32.mxu1 %v4896_v0 }
  0x98   : > { %4637 = vmatmul.mubr.msk.f32.gmra.mxu0 %vm476_vm0, %v283_v2 }
  0x99   : > { %1417 = vmatprep.mubr.f32.mxu0 %v4896_v0  ;;  %4749 = vmatmul.mubr.msk.f32.gmra.mxu1 %vm476_vm0, %v395_v11  ;;  %v414_v11 = vld [vmem:[%s4948_s23 + $0x520] sm:$0xff] }
  0x9a   : > { %2089 = vmatprep.mubr.f32.mxu1 %v4896_v0 }
  0x9c   : > { %4638 = vmatmul.mubr.msk.f32.gmra.mxu0 %vm476_vm0, %v284_v4 }
  0x9d   : > { %1423 = vmatprep.mubr.f32.mxu0 %v4896_v0  ;;  %4750 = vmatmul.mubr.msk.f32.gmra.mxu1 %vm476_vm0, %v396_v13  ;;  %v307_v13 = vld [vmem:[%s4948_s23 + $0x1c8] sm:$0xff] }
  0x9e   : > { %2095 = vmatprep.mubr.f32.mxu1 %v4896_v0 }
  0xa0   : > { %4639 = vmatmul.mubr.msk.f32.gmra.mxu0 %vm476_vm0, %v285_v6 }
  0xa1   : > { %1429 = vmatprep.mubr.f32.mxu0 %v4896_v0  ;;  %4751 = vmatmul.mubr.msk.f32.gmra.mxu1 %vm476_vm0, %v397_v15 }
  0xa2   : > { %2101 = vmatprep.mubr.f32.mxu1 %v4896_v0 }
  0xa4   : > { %4640 = vmatmul.mubr.msk.f32.gmra.mxu0 %vm476_vm0, %v286_v8 }
  0xa5   : > { %1435 = vmatprep.mubr.f32.mxu0 %v4896_v0  ;;  %4752 = vmatmul.mubr.msk.f32.gmra.mxu1 %vm476_vm0, %v398_v17  ;;  %v415_v17 = vld [vmem:[%s4948_s23 + $0x528] sm:$0xff] }
  0xa6   : > { %2107 = vmatprep.mubr.f32.mxu1 %v4896_v0 }
  0xa8   : > { %4641 = vmatmul.mubr.msk.f32.gmra.mxu0 %vm476_vm0, %v287_v10 }
  0xa9   : > { %1441 = vmatprep.mubr.f32.mxu0 %v4896_v0  ;;  %4753 = vmatmul.mubr.msk.f32.gmra.mxu1 %vm476_vm0, %v399_v19  ;;  %v308_v19 = vld [vmem:[%s4948_s23 + $0x1d0] sm:$0xff] }
  0xaa   : > { %2113 = vmatprep.mubr.f32.mxu1 %v4896_v0 }
  0xac   : > { %4642 = vmatmul.mubr.msk.f32.gmra.mxu0 %vm476_vm0, %v288_v12 }
  0xad   : > { %1447 = vmatprep.mubr.f32.mxu0 %v4896_v0  ;;  %4754 = vmatmul.mubr.msk.f32.gmra.mxu1 %vm476_vm0, %v400_v21 }
  0xae   : > { %2119 = vmatprep.mubr.f32.mxu1 %v4896_v0 }
  0xb0   : > { %4643 = vmatmul.mubr.msk.f32.gmra.mxu0 %vm476_vm0, %v289_v14 }
  0xb1   : > { %1453 = vmatprep.mubr.f32.mxu0 %v4896_v0  ;;  %4755 = vmatmul.mubr.msk.f32.gmra.mxu1 %vm476_vm0, %v401_v23  ;;  %v416_v23 = vld [vmem:[%s4948_s23 + $0x530] sm:$0xff] }
  0xb2   : > { %2125 = vmatprep.mubr.f32.mxu1 %v4896_v0 }
  0xb4   : > { %4644 = vmatmul.mubr.msk.f32.gmra.mxu0 %vm476_vm0, %v290_v16 }
  0xb5   : > { %1459 = vmatprep.mubr.f32.mxu0 %v4896_v0  ;;  %4756 = vmatmul.mubr.msk.f32.gmra.mxu1 %vm476_vm0, %v402_v25  ;;  %v309_v25 = vld [vmem:[%s4948_s23 + $0x1d8] sm:$0xff] }
  0xb6   : > { %2131 = vmatprep.mubr.f32.mxu1 %v4896_v0 }
  0xb8   : > { %4645 = vmatmul.mubr.msk.f32.gmra.mxu0 %vm476_vm0, %v291_v18 }
  0xb9   : > { %1465 = vmatprep.mubr.f32.mxu0 %v4896_v0  ;;  %4757 = vmatmul.mubr.msk.f32.gmra.mxu1 %vm476_vm0, %v403_v27 }
  0xba   : > { %2137 = vmatprep.mubr.f32.mxu1 %v4896_v0 }
  0xbc   : > { %4646 = vmatmul.mubr.msk.f32.gmra.mxu0 %vm476_vm0, %v292_v20 }
  0xbd   : > { %1471 = vmatprep.mubr.f32.mxu0 %v4896_v0  ;;  %4758 = vmatmul.mubr.msk.f32.gmra.mxu1 %vm476_vm0, %v404_v29  ;;  %v417_v29 = vld [vmem:[%s4948_s23 + $0x538] sm:$0xff] }
  0xbe   : > { %2143 = vmatprep.mubr.f32.mxu1 %v4896_v0 }
  0xc0   : > { %4647 = vmatmul.mubr.msk.f32.gmra.mxu0 %vm476_vm0, %v293_v22 }
  0xc1   : > { %1477 = vmatprep.mubr.f32.mxu0 %v4896_v0  ;;  %4759 = vmatmul.mubr.msk.f32.gmra.mxu1 %vm476_vm0, %v405_v31  ;;  %v310_v31 = vld [vmem:[%s4948_s23 + $0x1e0] sm:$0xff] }
  0xc2   : > { %2149 = vmatprep.mubr.f32.mxu1 %v4896_v0 }
  0xc4   : > { %4648 = vmatmul.mubr.msk.f32.gmra.mxu0 %vm476_vm0, %v294_v24 }
  0xc5   : > { %1483 = vmatprep.mubr.f32.mxu0 %v4896_v0  ;;  %4760 = vmatmul.mubr.msk.f32.gmra.mxu1 %vm476_vm0, %v406_v33 }
  0xc6   : > { %2155 = vmatprep.mubr.f32.mxu1 %v4896_v0 }
  0xc8   : > { %4649 = vmatmul.mubr.msk.f32.gmra.mxu0 %vm476_vm0, %v295_v26 }
  0xc9   : > { %1489 = vmatprep.mubr.f32.mxu0 %v4896_v0  ;;  %4761 = vmatmul.mubr.msk.f32.gmra.mxu1 %vm476_vm0, %v407_v37  ;;  %v418_v37 = vld [vmem:[%s4948_s23 + $0x540] sm:$0xff] }
  0xca   : > { %2161 = vmatprep.mubr.f32.mxu1 %v4896_v0 }
  0xcc   : > { %4650 = vmatmul.mubr.msk.f32.gmra.mxu0 %vm476_vm0, %v296_v28 }
  0xcd   : > { %1495 = vmatprep.mubr.f32.mxu0 %v4896_v0  ;;  %4762 = vmatmul.mubr.msk.f32.gmra.mxu1 %vm476_vm0, %v408_v41  ;;  %v311_v41 = vld [vmem:[%s4948_s23 + $0x1e8] sm:$0xff] }
  0xce   : > { %2167 = vmatprep.mubr.f32.mxu1 %v4896_v0 }
  0xd0   : > { %4651 = vmatmul.mubr.msk.f32.gmra.mxu0 %vm476_vm0, %v297_v30 }
  0xd1   : > { %1501 = vmatprep.mubr.f32.mxu0 %v4896_v0  ;;  %4763 = vmatmul.mubr.msk.f32.gmra.mxu1 %vm476_vm0, %v409_v45 }
  0xd2   : > { %2173 = vmatprep.mubr.f32.mxu1 %v4896_v0 }
  0xd4   : > { %v5228_v34 = vpop.f32.mrf.mxu0  ;;  %4652 = vmatmul.mubr.msk.f32.gmra.mxu0 %vm476_vm0, %v298_v32 }
  0xd5   : > { %9197 = vst [vmem:[#allocation2_spill] sm:$0xff] %v5228_v34  ;;  %1507 = vmatprep.mubr.f32.mxu0 %v4896_v0  ;;  %v5267_v49 = vpop.f32.mrf.mxu1  ;;  %4764 = vmatmul.mubr.msk.f32.gmra.mxu1 %vm476_vm0, %v410_v50  ;;  %v419_v50 = vld [vmem:[%s4948_s23 + $0x548] sm:$0xff] }
  0xd6   : > { %v5235_v36 = vpop.f32.mrf.mxu0  ;;  %9205 = vst [vmem:[#allocation10_spill] sm:$0xff] %v5267_v49  ;;  %2179 = vmatprep.mubr.f32.mxu1 %v4896_v0 }
  0xd7   : > { %9198 = vst [vmem:[#allocation3_spill] sm:$0xff] %v5235_v36  ;;  %v5276_v53 = vpop.f32.mrf.mxu1 }
  0xd8   : > { %v5238_v38 = vpop.f32.mrf.mxu0  ;;  %4653 = vmatmul.mubr.msk.f32.gmra.mxu0 %vm476_vm0, %v299_v35  ;;  %9206 = vst [vmem:[#allocation11_spill] sm:$0xff] %v5276_v53 }
  0xd9   : > { %9199 = vst [vmem:[#allocation4_spill] sm:$0xff] %v5238_v38  ;;  %1513 = vmatprep.mubr.f32.mxu0 %v4896_v0  ;;  %v5281_v55 = vpop.f32.mrf.mxu1  ;;  %4765 = vmatmul.mubr.msk.f32.gmra.mxu1 %vm476_vm0, %v411_v56  ;;  %v312_v56 = vld [vmem:[%s4948_s23 + $0x1f0] sm:$0xff] }
  0xda   : > { %v5245_v40 = vpop.f32.mrf.mxu0  ;;  %9208 = vst [vmem:[#allocation13_spill] sm:$0xff] %v5281_v55  ;;  %2185 = vmatprep.mubr.f32.mxu1 %v4896_v0 }
  0xdb   : > { %9200 = vst [vmem:[#allocation5_spill] sm:$0xff] %v5245_v40  ;;  %v5290_v59 = vpop.f32.mrf.mxu1 }
  0xdc   : > { %v5248_v42 = vpop.f32.mrf.mxu0  ;;  %4654 = vmatmul.mubr.msk.f32.gmra.mxu0 %vm476_vm0, %v300_v39  ;;  %9209 = vst [vmem:[#allocation14_spill] sm:$0xff] %v5290_v59 }
  0xdd   : > { %9201 = vst [vmem:[#allocation6_spill] sm:$0xff] %v5248_v42  ;;  %1519 = vmatprep.mubr.f32.mxu0 %v4896_v0  ;;  %v5295_v61 = vpop.f32.mrf.mxu1  ;;  %4766 = vmatmul.mubr.msk.f32.gmra.mxu1 %vm476_vm0, %v412_v62 }
  0xde   : > { %v5255_v44 = vpop.f32.mrf.mxu0  ;;  %9211 = vst [vmem:[#allocation16_spill] sm:$0xff] %v5295_v61  ;;  %2191 = vmatprep.mubr.f32.mxu1 %v4896_v0 }
  0xdf   : > { %9202 = vst [vmem:[#allocation7_spill] sm:$0xff] %v5255_v44  ;;  %v5304_v2 = vpop.f32.mrf.mxu1 }
  0xe0   : > { %v5258_v46 = vpop.f32.mrf.mxu0  ;;  %4655 = vmatmul.mubr.msk.f32.gmra.mxu0 %vm476_vm0, %v301_v43  ;;  %9212 = vst [vmem:[#allocation17_spill] sm:$0xff] %v5304_v2  ;;  %v426_v2 = vld [vmem:[%s4948_s23 + $0x580] sm:$0xff] }
  0xe1   : > { %9203 = vst [vmem:[#allocation8_spill] sm:$0xff] %v5258_v46  ;;  %1525 = vmatprep.mubr.f32.mxu0 %v4896_v0  ;;  %v5309_v4 = vpop.f32.mrf.mxu1  ;;  %4767 = vmatmul.mubr.msk.f32.gmra.mxu1 %vm476_vm0, %v413_v5  ;;  %v420_v5 = vld [vmem:[%s4948_s23 + $0x550] sm:$0xff] }
  0xe2   : > { %v5265_v48 = vpop.f32.mrf.mxu0  ;;  %9214 = vst [vmem:[#allocation19_spill] sm:$0xff] %v5309_v4  ;;  %2197 = vmatprep.mubr.f32.mxu1 %v4896_v0 }
  0xe3   : > { %9204 = vst [vmem:[#allocation9_spill] sm:$0xff] %v5265_v48  ;;  %v5318_v8 = vpop.f32.mrf.mxu1 }
  0xe4   : > { %v5270_v51 = vpop.f32.mrf.mxu0  ;;  %4656 = vmatmul.mubr.msk.f32.gmra.mxu0 %vm476_vm0, %v302_v47  ;;  %9216 = vst [vmem:[#allocation21_spill] sm:$0xff] %v5318_v8 }
  0xe5   : > { %1531 = vmatprep.mubr.f32.mxu0 %v4896_v0  ;;  %v5323_v10 = vpop.f32.mrf.mxu1  ;;  %4768 = vmatmul.mubr.msk.f32.gmra.mxu1 %vm476_vm0, %v414_v11  ;;  %v313_v11 = vld [vmem:[%s4948_s23 + $0x1f8] sm:$0xff] }
  0xe6   : > { %v5279_v54 = vpop.f32.mrf.mxu0  ;;  %9218 = vst [vmem:[#allocation23_spill] sm:$0xff] %v5323_v10  ;;  %2203 = vmatprep.mubr.f32.mxu1 %v4896_v0 }
  0xe7   : > { %9207 = vst [vmem:[#allocation12_spill] sm:$0xff] %v5279_v54  ;;  %v5332_v14 = vpop.f32.mrf.mxu1 }
  0xe8   : > { %v5284_v57 = vpop.f32.mrf.mxu0  ;;  %4657 = vmatmul.mubr.msk.f32.gmra.mxu0 %vm476_vm0, %v303_v52  ;;  %9219 = vst [vmem:[#allocation24_spill] sm:$0xff] %v5332_v14 }
  0xe9   : > { %1537 = vmatprep.mubr.f32.mxu0 %v4896_v0  ;;  %v5337_v16 = vpop.f32.mrf.mxu1  ;;  %4769 = vmatmul.mubr.msk.f32.gmra.mxu1 %vm476_vm0, %v415_v17 }
  0xea   : > { %v5293_v60 = vpop.f32.mrf.mxu0  ;;  %9221 = vst [vmem:[#allocation26_spill] sm:$0xff] %v5337_v16  ;;  %2209 = vmatprep.mubr.f32.mxu1 %v4896_v0 }
  0xeb   : > { %9210 = vst [vmem:[#allocation15_spill] sm:$0xff] %v5293_v60  ;;  %v5346_v20 = vpop.f32.mrf.mxu1 }
  0xec   : > { %v5298_v63 = vpop.f32.mrf.mxu0  ;;  %4658 = vmatmul.mubr.msk.f32.gmra.mxu0 %vm476_vm0, %v304_v58  ;;  %9222 = vst [vmem:[#allocation27_spill] sm:$0xff] %v5346_v20  ;;  %v425_v20 = vld [vmem:[%s4948_s23 + $0x578] sm:$0xff] }
  0xed   : > { %1543 = vmatprep.mubr.f32.mxu0 %v4896_v0  ;;  %v5351_v22 = vpop.f32.mrf.mxu1  ;;  %4770 = vmatmul.mubr.msk.f32.gmra.mxu1 %vm476_vm0, %v416_v23  ;;  %v421_v23 = vld [vmem:[%s4948_s23 + $0x558] sm:$0xff] }
  0xee   : > { %v5307_v3 = vpop.f32.mrf.mxu0  ;;  %9224 = vst [vmem:[#allocation29_spill] sm:$0xff] %v5351_v22  ;;  %2215 = vmatprep.mubr.f32.mxu1 %v4896_v0 }
  0xef   : > { %9213 = vst [vmem:[#allocation18_spill] sm:$0xff] %v5307_v3  ;;  %v5360_v26 = vpop.f32.mrf.mxu1 }
  0xf0   : > { %v5312_v6 = vpop.f32.mrf.mxu0  ;;  %4659 = vmatmul.mubr.msk.f32.gmra.mxu0 %vm476_vm0, %v305_v1  ;;  %9225 = vst [vmem:[#allocation30_spill] sm:$0xff] %v5360_v26 }
  0xf1   : > { %9215 = vst [vmem:[#allocation20_spill] sm:$0xff] %v5312_v6  ;;  %1549 = vmatprep.mubr.f32.mxu0 %v4896_v0  ;;  %v5365_v28 = vpop.f32.mrf.mxu1  ;;  %4771 = vmatmul.mubr.msk.f32.gmra.mxu1 %vm476_vm0, %v417_v29  ;;  %v314_v29 = vld [vmem:[%s4948_s23 + $0x200] sm:$0xff] }
  0xf2   : > { %v5321_v9 = vpop.f32.mrf.mxu0  ;;  %9227 = vst [vmem:[#allocation32_spill] sm:$0xff] %v5365_v28  ;;  %2221 = vmatprep.mubr.f32.mxu1 %v4896_v0 }
  0xf3   : > { %9217 = vst [vmem:[#allocation22_spill] sm:$0xff] %v5321_v9  ;;  %v5374_v32 = vpop.f32.mrf.mxu1 }
  0xf4   : > { %v5326_v12 = vpop.f32.mrf.mxu0  ;;  %4660 = vmatmul.mubr.msk.f32.gmra.mxu0 %vm476_vm0, %v306_v7  ;;  %9229 = vst [vmem:[#allocation34_spill] sm:$0xff] %v5374_v32  ;;  %v424_v32 = vld [vmem:[%s4948_s23 + $0x570] sm:$0xff] }
  0xf5   : > { %1555 = vmatprep.mubr.f32.mxu0 %v4896_v0  ;;  %v5379_v35 = vpop.f32.mrf.mxu1  ;;  %4772 = vmatmul.mubr.msk.f32.gmra.mxu1 %vm476_vm0, %v418_v37 }
  0xf6   : > { %v5335_v15 = vpop.f32.mrf.mxu0  ;;  %9231 = vst [vmem:[#allocation36_spill] sm:$0xff] %v5379_v35  ;;  %2227 = vmatprep.mubr.f32.mxu1 %v4896_v0 }
  0xf7   : > { %9220 = vst [vmem:[#allocation25_spill] sm:$0xff] %v5335_v15  ;;  %v5388_v43 = vpop.f32.mrf.mxu1 }
  0xf8   : > { %v5340_v18 = vpop.f32.mrf.mxu0  ;;  %4661 = vmatmul.mubr.msk.f32.gmra.mxu0 %vm476_vm0, %v307_v13  ;;  %9232 = vst [vmem:[#allocation37_spill] sm:$0xff] %v5388_v43 }
  0xf9   : > { %1561 = vmatprep.mubr.f32.mxu0 %v4896_v0  ;;  %v5393_v47 = vpop.f32.mrf.mxu1  ;;  %4773 = vmatmul.mubr.msk.f32.gmra.mxu1 %vm476_vm0, %v419_v50  ;;  %v422_v50 = vld [vmem:[%s4948_s23 + $0x560] sm:$0xff] }
  0xfa   : > { %v5349_v21 = vpop.f32.mrf.mxu0  ;;  %9234 = vst [vmem:[#allocation39_spill] sm:$0xff] %v5393_v47  ;;  %2233 = vmatprep.mubr.f32.mxu1 %v4896_v0 }
  0xfb   : > { %9223 = vst [vmem:[#allocation28_spill] sm:$0xff] %v5349_v21  ;;  %v5402_v58 = vpop.f32.mrf.mxu1 }
  0xfc   : > { %v5354_v24 = vpop.f32.mrf.mxu0  ;;  %4662 = vmatmul.mubr.msk.f32.gmra.mxu0 %vm476_vm0, %v308_v19  ;;  %9236 = vst [vmem:[#allocation41_spill] sm:$0xff] %v5402_v58 }
  0xfd   : > { %1567 = vmatprep.mubr.f32.mxu0 %v4896_v0  ;;  %v5407_v1 = vpop.f32.mrf.mxu1  ;;  %4774 = vmatmul.mubr.msk.f32.gmra.mxu1 %vm476_vm0, %v420_v5  ;;  %v315_v5 = vld [vmem:[%s4948_s23 + $0x208] sm:$0xff] }
  0xfe   : > { %v5363_v27 = vpop.f32.mrf.mxu0  ;;  %9238 = vst [vmem:[#allocation43_spill] sm:$0xff] %v5407_v1  ;;  %2239 = vmatprep.mubr.f32.mxu1 %v4896_v0 }
  0xff   : > { %9226 = vst [vmem:[#allocation31_spill] sm:$0xff] %v5363_v27  ;;  %v5416_v13 = vpop.f32.mrf.mxu1 }
 0x100   : > { %v5368_v30 = vpop.f32.mrf.mxu0  ;;  %4663 = vmatmul.mubr.msk.f32.gmra.mxu0 %vm476_vm0, %v309_v25  ;;  %9239 = vst [vmem:[#allocation44_spill] sm:$0xff] %v5416_v13  ;;  %v423_v13 = vld [vmem:[%s4948_s23 + $0x568] sm:$0xff] }
 0x101   : > { %9228 = vst [vmem:[#allocation33_spill] sm:$0xff] %v5368_v30  ;;  %1573 = vmatprep.mubr.f32.mxu0 %v4896_v0  ;;  %v5421_v19 = vpop.f32.mrf.mxu1  ;;  %4775 = vmatmul.mubr.msk.f32.gmra.mxu1 %vm476_vm0, %v421_v23 }
 0x102   : > { %v5377_v33 = vpop.f32.mrf.mxu0  ;;  %9241 = vst [vmem:[#allocation46_spill] sm:$0xff] %v5421_v19  ;;  %2245 = vmatprep.mubr.f32.mxu1 %v4896_v0 }
 0x103   : > { %9230 = vst [vmem:[#allocation35_spill] sm:$0xff] %v5377_v33 }
 0x104   : > { %v5382_v39 = vpop.f32.mrf.mxu0  ;;  %4664 = vmatmul.mubr.msk.f32.gmra.mxu0 %vm476_vm0, %v310_v31  ;;  %v5430_v31 = vpop.f32.mrf.mxu1 }
 0x105   : > { %1579 = vmatprep.mubr.f32.mxu0 %v4896_v0  ;;  %9243 = vst [vmem:[#allocation48_spill] sm:$0xff] %v5430_v31  ;;  %4776 = vmatmul.mubr.msk.f32.gmra.mxu1 %vm476_vm0, %v422_v50 }
 0x106   : > { %v5391_v45 = vpop.f32.mrf.mxu0  ;;  %2251 = vmatprep.mubr.f32.mxu1 %v4896_v0 }
 0x107   : > { %9233 = vst [vmem:[#allocation38_spill] sm:$0xff] %v5391_v45 }
 0x108   : > { %v5396_v52 = vpop.f32.mrf.mxu0  ;;  %4665 = vmatmul.mubr.msk.f32.gmra.mxu0 %vm476_vm0, %v311_v41  ;;  %v5435_v41 = vpop.f32.mrf.mxu1 }
 0x109   : > { %9235 = vst [vmem:[#allocation40_spill] sm:$0xff] %v5396_v52  ;;  %1585 = vmatprep.mubr.f32.mxu0 %v4896_v0  ;;  %9245 = vst [vmem:[#allocation50_spill] sm:$0xff] %v5435_v41  ;;  %4777 = vmatmul.mubr.msk.f32.gmra.mxu1 %vm476_vm0, %v423_v13  ;;  %v317_v13 = vld [vmem:[%s4948_s23 + $0x218] sm:$0xff] }
 0x10a   : > { %v5405_v62 = vpop.f32.mrf.mxu0  ;;  %2257 = vmatprep.mubr.f32.mxu1 %v4896_v0 }
 0x10b   : > { %9237 = vst [vmem:[#allocation42_spill] sm:$0xff] %v5405_v62 }
 0x10c   : > { %v5410_v7 = vpop.f32.mrf.mxu0  ;;  %4666 = vmatmul.mubr.msk.f32.gmra.mxu0 %vm476_vm0, %v312_v56 }
 0x10d   : > { %1591 = vmatprep.mubr.f32.mxu0 %v4896_v0  ;;  %4778 = vmatmul.mubr.msk.f32.gmra.mxu1 %vm476_vm0, %v424_v32  ;;  %v318_v32 = vld [vmem:[%s4948_s23 + $0x220] sm:$0xff] }
 0x10e   : > { %v5419_v17 = vpop.f32.mrf.mxu0  ;;  %2263 = vmatprep.mubr.f32.mxu1 %v4896_v0 }
 0x10f   : > { %9240 = vst [vmem:[#allocation45_spill] sm:$0xff] %v5419_v17 }
 0x110   : > { %v5424_v25 = vpop.f32.mrf.mxu0  ;;  %4667 = vmatmul.mubr.msk.f32.gmra.mxu0 %vm476_vm0, %v313_v11  ;;  %v5444_v11 = vpop.f32.mrf.mxu1 }
 0x111   : > { %9242 = vst [vmem:[#allocation47_spill] sm:$0xff] %v5424_v25  ;;  %1597 = vmatprep.mubr.f32.mxu0 %v4896_v0  ;;  %9246 = vst [vmem:[#allocation51_spill] sm:$0xff] %v5444_v11  ;;  %4779 = vmatmul.mubr.msk.f32.gmra.mxu1 %vm476_vm0, %v425_v20  ;;  %v319_v20 = vld [vmem:[%s4948_s23 + $0x228] sm:$0xff] }
 0x112   : > { %v5433_v37 = vpop.f32.mrf.mxu0  ;;  %v5449_v31 = vpop.f32.mrf.mxu1  ;;  %2269 = vmatprep.mubr.f32.mxu1 %v4896_v0 }
 0x113   : > { %9244 = vst [vmem:[#allocation49_spill] sm:$0xff] %v5433_v37  ;;  %9248 = vst [vmem:[#allocation53_spill] sm:$0xff] %v5449_v31 }
 0x114   : > { %v5438_v56 = vpop.f32.mrf.mxu0  ;;  %4668 = vmatmul.mubr.msk.f32.gmra.mxu0 %vm476_vm0, %v314_v29  ;;  %v316_v29 = vld [vmem:[%s4948_s23 + $0x210] sm:$0xff]  ;;  %v5458_v50 = vpop.f32.mrf.mxu1 }
 0x115   : > { %1603 = vmatprep.mubr.f32.mxu0 %v4896_v0  ;;  %9250 = vst [vmem:[#allocation55_spill] sm:$0xff] %v5458_v50  ;;  %4780 = vmatmul.mubr.msk.f32.gmra.mxu1 %vm476_vm0, %v426_v2  ;;  %v320_v2 = vld [vmem:[%s4948_s23 + $0x230] sm:$0xff] }
 0x116   : > { %v5447_v23 = vpop.f32.mrf.mxu0  ;;  %v5463_v43 = vpop.f32.mrf.mxu1  ;;  %2275 = vmatprep.mubr.f32.mxu1 %v4896_v0 }
 0x117   : > { %9247 = vst [vmem:[#allocation52_spill] sm:$0xff] %v5447_v23  ;;  %9252 = vst [vmem:[#allocation57_spill] sm:$0xff] %v5463_v43 }
 0x118   : > { %v5452_v58 = vpop.f32.mrf.mxu0  ;;  %4669 = vmatmul.mubr.msk.f32.gmra.mxu0 %vm476_vm0, %v315_v5  ;;  %v5472_v5 = vpop.f32.mrf.mxu1 }
 0x119   : > { %9249 = vst [vmem:[#allocation54_spill] sm:$0xff] %v5452_v58  ;;  %1609 = vmatprep.mubr.f32.mxu0 %v4896_v0  ;;  %9254 = vst [vmem:[#allocation59_spill] sm:$0xff] %v5472_v5 }
 0x11a   : > { %v5461_v11 = vpop.f32.mrf.mxu0  ;;  %v5481_v8 = vpop.f32.mrf.mxu1 }
 0x11b   : > { %9251 = vst [vmem:[#allocation56_spill] sm:$0xff] %v5461_v11  ;;  %9257 = vst [vmem:[#allocation62_spill] sm:$0xff] %v5481_v8 }
 0x11c   : > { %v5466_v26 = vpop.f32.mrf.mxu0  ;;  %4670 = vmatmul.mubr.msk.f32.gmra.mxu0 %vm476_vm0, %v316_v29  ;;  %v5489_v5 = vpop.f32.mrf.mxu1 }
 0x11d   : > { %9253 = vst [vmem:[#allocation58_spill] sm:$0xff] %v5466_v26  ;;  %1615 = vmatprep.mubr.f32.mxu0 %v4896_v0  ;;  %9259 = vst [vmem:[#allocation64_spill] sm:$0xff] %v5489_v5  ;;  %v427_v5 = vld [vmem:[%s4948_s23 + $0x588] sm:$0xff] }
 0x11e   : > { %v5475_v50 = vpop.f32.mrf.mxu0  ;;  %4781 = vmatmul.mubr.msk.f32.gmra.mxu1 %vm476_vm0, %v427_v5  ;;  %v321_v5 = vld [vmem:[%s4948_s23 + $0x238] sm:$0xff] }
 0x11f   : > { %9255 = vst [vmem:[#allocation60_spill] sm:$0xff] %v5475_v50  ;;  %2281 = vmatprep.mubr.f32.mxu1 %v4896_v0 }
 0x120   : > { %v5478_v14 = vpop.f32.mrf.mxu0  ;;  %4671 = vmatmul.mubr.msk.f32.gmra.mxu0 %vm476_vm0, %v317_v13  ;;  %v5495_v13 = vpop.f32.mrf.mxu1 }
 0x121   : > { %9256 = vst [vmem:[#allocation61_spill] sm:$0xff] %v5478_v14  ;;  %1621 = vmatprep.mubr.f32.mxu0 %v4896_v0  ;;  %9261 = vst [vmem:[#allocation66_spill] sm:$0xff] %v5495_v13 }
 0x122   : > { %v5487_v29 = vpop.f32.mrf.mxu0  ;;  %v5503_v8 = vpop.f32.mrf.mxu1 }
 0x123   : > { %9258 = vst [vmem:[#allocation63_spill] sm:$0xff] %v5487_v29  ;;  %9263 = vst [vmem:[#allocation68_spill] sm:$0xff] %v5503_v8  ;;  %v428_v8 = vld [vmem:[%s4948_s23 + $0x590] sm:$0xff] }
 0x124   : > { %v5492_v59 = vpop.f32.mrf.mxu0  ;;  %4672 = vmatmul.mubr.msk.f32.gmra.mxu0 %vm476_vm0, %v318_v32  ;;  %v5509_v32 = vpop.f32.mrf.mxu1  ;;  %4782 = vmatmul.mubr.msk.f32.gmra.mxu1 %vm476_vm0, %v428_v8  ;;  %v322_v8 = vld [vmem:[%s4948_s23 + $0x240] sm:$0xff] }
 0x125   : > { %9260 = vst [vmem:[#allocation65_spill] sm:$0xff] %v5492_v59  ;;  %1627 = vmatprep.mubr.f32.mxu0 %v4896_v0  ;;  %9265 = vst [vmem:[#allocation70_spill] sm:$0xff] %v5509_v32  ;;  %2287 = vmatprep.mubr.f32.mxu1 %v4896_v0 }
 0x126   : > { %v5501_v53 = vpop.f32.mrf.mxu0  ;;  %v5517_v31 = vpop.f32.mrf.mxu1 }
 0x127   : > { %9262 = vst [vmem:[#allocation67_spill] sm:$0xff] %v5501_v53  ;;  %9267 = vst [vmem:[#allocation72_spill] sm:$0xff] %v5517_v31  ;;  %v429_v31 = vld [vmem:[%s4948_s23 + $0x598] sm:$0xff] }
 0x128   : > { %v5506_v43 = vpop.f32.mrf.mxu0  ;;  %4673 = vmatmul.mubr.msk.f32.gmra.mxu0 %vm476_vm0, %v319_v20  ;;  %v5523_v20 = vpop.f32.mrf.mxu1  ;;  %4783 = vmatmul.mubr.msk.f32.gmra.mxu1 %vm476_vm0, %v429_v31  ;;  %v323_v31 = vld [vmem:[%s4948_s23 + $0x248] sm:$0xff] }
 0x129   : > { %9264 = vst [vmem:[#allocation69_spill] sm:$0xff] %v5506_v43  ;;  %1633 = vmatprep.mubr.f32.mxu0 %v4896_v0  ;;  %9269 = vst [vmem:[#allocation74_spill] sm:$0xff] %v5523_v20  ;;  %2293 = vmatprep.mubr.f32.mxu1 %v4896_v0 }
 0x12a   : > { %v5515_v13 = vpop.f32.mrf.mxu0  ;;  %v5531_v19 = vpop.f32.mrf.mxu1 }
 0x12b   : > { %9266 = vst [vmem:[#allocation71_spill] sm:$0xff] %v5515_v13  ;;  %9271 = vst [vmem:[#allocation76_spill] sm:$0xff] %v5531_v19  ;;  %v430_v19 = vld [vmem:[%s4948_s23 + $0x5a0] sm:$0xff] }
 0x12c   : > { %v5520_v41 = vpop.f32.mrf.mxu0  ;;  %4674 = vmatmul.mubr.msk.f32.gmra.mxu0 %vm476_vm0, %v320_v2  ;;  %v5537_v2 = vpop.f32.mrf.mxu1  ;;  %4784 = vmatmul.mubr.msk.f32.gmra.mxu1 %vm476_vm0, %v430_v19  ;;  %v324_v19 = vld [vmem:[%s4948_s23 + $0x250] sm:$0xff] }
 0x12d   : > { %9268 = vst [vmem:[#allocation73_spill] sm:$0xff] %v5520_v41  ;;  %1639 = vmatprep.mubr.f32.mxu0 %v4896_v0  ;;  %9273 = vst [vmem:[#allocation78_spill] sm:$0xff] %v5537_v2  ;;  %2299 = vmatprep.mubr.f32.mxu1 %v4896_v0 }
 0x12e   : > { %v5529_v32 = vpop.f32.mrf.mxu0  ;;  %v5545_v47 = vpop.f32.mrf.mxu1 }
 0x12f   : > { %9270 = vst [vmem:[#allocation75_spill] sm:$0xff] %v5529_v32  ;;  %9275 = vst [vmem:[#allocation80_spill] sm:$0xff] %v5545_v47  ;;  %v431_v47 = vld [vmem:[%s4948_s23 + $0x5a8] sm:$0xff] }
 0x130   : > { %v5534_v1 = vpop.f32.mrf.mxu0  ;;  %4675 = vmatmul.mubr.msk.f32.gmra.mxu0 %vm476_vm0, %v321_v5  ;;  %v5551_v5 = vpop.f32.mrf.mxu1  ;;  %4785 = vmatmul.mubr.msk.f32.gmra.mxu1 %vm476_vm0, %v431_v47  ;;  %v325_v47 = vld [vmem:[%s4948_s23 + $0x258] sm:$0xff] }
 0x131   : > { %9272 = vst [vmem:[#allocation77_spill] sm:$0xff] %v5534_v1  ;;  %1645 = vmatprep.mubr.f32.mxu0 %v4896_v0  ;;  %9277 = vst [vmem:[#allocation82_spill] sm:$0xff] %v5551_v5  ;;  %2305 = vmatprep.mubr.f32.mxu1 %v4896_v0 }
 0x132   : > { %v5543_v20 = vpop.f32.mrf.mxu0  ;;  %v5559_v28 = vpop.f32.mrf.mxu1 }
 0x133   : > { %9274 = vst [vmem:[#allocation79_spill] sm:$0xff] %v5543_v20  ;;  %9279 = vst [vmem:[#allocation84_spill] sm:$0xff] %v5559_v28  ;;  %v432_v28 = vld [vmem:[%s4948_s23 + $0x5b0] sm:$0xff] }
 0x134   : > { %v5548_v35 = vpop.f32.mrf.mxu0  ;;  %4676 = vmatmul.mubr.msk.f32.gmra.mxu0 %vm476_vm0, %v322_v8  ;;  %v5565_v8 = vpop.f32.mrf.mxu1  ;;  %4786 = vmatmul.mubr.msk.f32.gmra.mxu1 %vm476_vm0, %v432_v28  ;;  %v326_v28 = vld [vmem:[%s4948_s23 + $0x260] sm:$0xff] }
 0x135   : > { %9276 = vst [vmem:[#allocation81_spill] sm:$0xff] %v5548_v35  ;;  %1651 = vmatprep.mubr.f32.mxu0 %v4896_v0  ;;  %9281 = vst [vmem:[#allocation86_spill] sm:$0xff] %v5565_v8  ;;  %2311 = vmatprep.mubr.f32.mxu1 %v4896_v0 }
 0x136   : > { %v5557_v2 = vpop.f32.mrf.mxu0  ;;  %v5573_v16 = vpop.f32.mrf.mxu1 }
 0x137   : > { %9278 = vst [vmem:[#allocation83_spill] sm:$0xff] %v5557_v2  ;;  %9283 = vst [vmem:[#allocation88_spill] sm:$0xff] %v5573_v16  ;;  %v433_v16 = vld [vmem:[%s4948_s23 + $0x5b8] sm:$0xff] }
 0x138   : > { %v5562_v22 = vpop.f32.mrf.mxu0  ;;  %4677 = vmatmul.mubr.msk.f32.gmra.mxu0 %vm476_vm0, %v323_v31  ;;  %v5579_v31 = vpop.f32.mrf.mxu1  ;;  %4787 = vmatmul.mubr.msk.f32.gmra.mxu1 %vm476_vm0, %v433_v16  ;;  %v327_v16 = vld [vmem:[%s4948_s23 + $0x268] sm:$0xff] }
 0x139   : > { %9280 = vst [vmem:[#allocation85_spill] sm:$0xff] %v5562_v22  ;;  %1657 = vmatprep.mubr.f32.mxu0 %v4896_v0  ;;  %9285 = vst [vmem:[#allocation90_spill] sm:$0xff] %v5579_v31  ;;  %2317 = vmatprep.mubr.f32.mxu1 %v4896_v0 }
 0x13a   : > { %v5571_v5 = vpop.f32.mrf.mxu0  ;;  %v5587_v4 = vpop.f32.mrf.mxu1 }
 0x13b   : > { %9282 = vst [vmem:[#allocation87_spill] sm:$0xff] %v5571_v5  ;;  %9287 = vst [vmem:[#allocation92_spill] sm:$0xff] %v5587_v4  ;;  %v434_v4 = vld [vmem:[%s4948_s23 + $0x5c0] sm:$0xff] }
 0x13c   : > { %v5576_v10 = vpop.f32.mrf.mxu0  ;;  %4678 = vmatmul.mubr.msk.f32.gmra.mxu0 %vm476_vm0, %v324_v19  ;;  %v5593_v19 = vpop.f32.mrf.mxu1  ;;  %4788 = vmatmul.mubr.msk.f32.gmra.mxu1 %vm476_vm0, %v434_v4  ;;  %v328_v4 = vld [vmem:[%s4948_s23 + $0x270] sm:$0xff] }
 0x13d   : > { %9284 = vst [vmem:[#allocation89_spill] sm:$0xff] %v5576_v10  ;;  %1663 = vmatprep.mubr.f32.mxu0 %v4896_v0  ;;  %9289 = vst [vmem:[#allocation94_spill] sm:$0xff] %v5593_v19  ;;  %2323 = vmatprep.mubr.f32.mxu1 %v4896_v0 }
 0x13e   : > { %v5585_v8 = vpop.f32.mrf.mxu0  ;;  %v5601_v55 = vpop.f32.mrf.mxu1 }
 0x13f   : > { %9286 = vst [vmem:[#allocation91_spill] sm:$0xff] %v5585_v8  ;;  %9291 = vst [vmem:[#allocation96_spill] sm:$0xff] %v5601_v55  ;;  %v435_v55 = vld [vmem:[%s4948_s23 + $0x5c8] sm:$0xff] }
 0x140   : > { %v5590_v61 = vpop.f32.mrf.mxu0  ;;  %4679 = vmatmul.mubr.msk.f32.gmra.mxu0 %vm476_vm0, %v325_v47  ;;  %v5607_v47 = vpop.f32.mrf.mxu1  ;;  %4789 = vmatmul.mubr.msk.f32.gmra.mxu1 %vm476_vm0, %v435_v55  ;;  %v329_v55 = vld [vmem:[%s4948_s23 + $0x278] sm:$0xff] }
 0x141   : > { %9288 = vst [vmem:[#allocation93_spill] sm:$0xff] %v5590_v61  ;;  %1669 = vmatprep.mubr.f32.mxu0 %v4896_v0  ;;  %9293 = vst [vmem:[#allocation98_spill] sm:$0xff] %v5607_v47  ;;  %2329 = vmatprep.mubr.f32.mxu1 %v4896_v0 }
 0x142   : > { %v5599_v31 = vpop.f32.mrf.mxu0  ;;  %v5615_v8 = vpop.f32.mrf.mxu1 }
 0x143   : > { %9290 = vst [vmem:[#allocation95_spill] sm:$0xff] %v5599_v31  ;;  %9295 = vst [vmem:[#allocation100_spill] sm:$0xff] %v5615_v8  ;;  %v436_v8 = vld [vmem:[%s4948_s23 + $0x5d0] sm:$0xff] }
 0x144   : > { %v5604_v49 = vpop.f32.mrf.mxu0  ;;  %4680 = vmatmul.mubr.msk.f32.gmra.mxu0 %vm476_vm0, %v326_v28  ;;  %v5621_v28 = vpop.f32.mrf.mxu1  ;;  %4790 = vmatmul.mubr.msk.f32.gmra.mxu1 %vm476_vm0, %v436_v8  ;;  %v330_v8 = vld [vmem:[%s4948_s23 + $0x280] sm:$0xff] }
 0x145   : > { %9292 = vst [vmem:[#allocation97_spill] sm:$0xff] %v5604_v49  ;;  %1675 = vmatprep.mubr.f32.mxu0 %v4896_v0  ;;  %9297 = vst [vmem:[#allocation102_spill] sm:$0xff] %v5621_v28  ;;  %2335 = vmatprep.mubr.f32.mxu1 %v4896_v0 }
 0x146   : > { %v5613_v19 = vpop.f32.mrf.mxu0 }
 0x147   : > { %9294 = vst [vmem:[#allocation99_spill] sm:$0xff] %v5613_v19  ;;  %v5629_v19 = vpop.f32.mrf.mxu1 }
 0x148   : > { %v5618_v31 = vpop.f32.mrf.mxu0  ;;  %4681 = vmatmul.mubr.msk.f32.gmra.mxu0 %vm476_vm0, %v327_v16  ;;  %9299 = vst [vmem:[#allocation104_spill] sm:$0xff] %v5629_v19  ;;  %v437_v19 = vld [vmem:[%s4948_s23 + $0x5d8] sm:$0xff] }
 0x149   : > { %9296 = vst [vmem:[#allocation101_spill] sm:$0xff] %v5618_v31  ;;  %1681 = vmatprep.mubr.f32.mxu0 %v4896_v0  ;;  %v5635_v16 = vpop.f32.mrf.mxu1  ;;  %4791 = vmatmul.mubr.msk.f32.gmra.mxu1 %vm476_vm0, %v437_v19  ;;  %v331_v19 = vld [vmem:[%s4948_s23 + $0x288] sm:$0xff] }
 0x14a   : > { %v5627_v47 = vpop.f32.mrf.mxu0  ;;  %9301 = vst [vmem:[#allocation106_spill] sm:$0xff] %v5635_v16  ;;  %2341 = vmatprep.mubr.f32.mxu1 %v4896_v0 }
 0x14b   : > { %9298 = vst [vmem:[#allocation103_spill] sm:$0xff] %v5627_v47  ;;  %v5643_v47 = vpop.f32.mrf.mxu1 }
 0x14c   : > { %v5632_v2 = vpop.f32.mrf.mxu0  ;;  %4682 = vmatmul.mubr.msk.f32.gmra.mxu0 %vm476_vm0, %v328_v4  ;;  %9303 = vst [vmem:[#allocation108_spill] sm:$0xff] %v5643_v47  ;;  %v438_v47 = vld [vmem:[%s4948_s23 + $0x5e0] sm:$0xff] }
 0x14d   : > { %9300 = vst [vmem:[#allocation105_spill] sm:$0xff] %v5632_v2  ;;  %1687 = vmatprep.mubr.f32.mxu0 %v4896_v0  ;;  %v5649_v4 = vpop.f32.mrf.mxu1  ;;  %4792 = vmatmul.mubr.msk.f32.gmra.mxu1 %vm476_vm0, %v438_v47  ;;  %v332_v47 = vld [vmem:[%s4948_s23 + $0x290] sm:$0xff] }
 0x14e   : > { %v5641_v28 = vpop.f32.mrf.mxu0  ;;  %9305 = vst [vmem:[#allocation110_spill] sm:$0xff] %v5649_v4  ;;  %2347 = vmatprep.mubr.f32.mxu1 %v4896_v0 }
 0x14f   : > { %9302 = vst [vmem:[#allocation107_spill] sm:$0xff] %v5641_v28  ;;  %v5657_v28 = vpop.f32.mrf.mxu1 }
 0x150   : > { %v5646_v5 = vpop.f32.mrf.mxu0  ;;  %4683 = vmatmul.mubr.msk.f32.gmra.mxu0 %vm476_vm0, %v329_v55  ;;  %9307 = vst [vmem:[#allocation112_spill] sm:$0xff] %v5657_v28  ;;  %v439_v28 = vld [vmem:[%s4948_s23 + $0x5e8] sm:$0xff] }
 0x151   : > { %9304 = vst [vmem:[#allocation109_spill] sm:$0xff] %v5646_v5  ;;  %1693 = vmatprep.mubr.f32.mxu0 %v4896_v0  ;;  %v5663_v55 = vpop.f32.mrf.mxu1  ;;  %4793 = vmatmul.mubr.msk.f32.gmra.mxu1 %vm476_vm0, %v439_v28  ;;  %v333_v28 = vld [vmem:[%s4948_s23 + $0x298] sm:$0xff] }
 0x152   : > { %v5655_v16 = vpop.f32.mrf.mxu0  ;;  %9309 = vst [vmem:[#allocation114_spill] sm:$0xff] %v5663_v55  ;;  %2353 = vmatprep.mubr.f32.mxu1 %v4896_v0 }
 0x153   : > { %9306 = vst [vmem:[#allocation111_spill] sm:$0xff] %v5655_v16  ;;  %v5671_v16 = vpop.f32.mrf.mxu1 }
 0x154   : > { %v5660_v32 = vpop.f32.mrf.mxu0  ;;  %4684 = vmatmul.mubr.msk.f32.gmra.mxu0 %vm476_vm0, %v330_v8  ;;  %9311 = vst [vmem:[#allocation116_spill] sm:$0xff] %v5671_v16  ;;  %v440_v16 = vld [vmem:[%s4948_s23 + $0x5f0] sm:$0xff] }
 0x155   : > { %9308 = vst [vmem:[#allocation113_spill] sm:$0xff] %v5660_v32  ;;  %1699 = vmatprep.mubr.f32.mxu0 %v4896_v0  ;;  %v5677_v8 = vpop.f32.mrf.mxu1  ;;  %4794 = vmatmul.mubr.msk.f32.gmra.mxu1 %vm476_vm0, %v440_v16  ;;  %v334_v16 = vld [vmem:[%s4948_s23 + $0x2a0] sm:$0xff] }
 0x156   : > { %v5669_v4 = vpop.f32.mrf.mxu0  ;;  %9313 = vst [vmem:[#allocation118_spill] sm:$0xff] %v5677_v8  ;;  %2359 = vmatprep.mubr.f32.mxu1 %v4896_v0 }
 0x157   : > { %9310 = vst [vmem:[#allocation115_spill] sm:$0xff] %v5669_v4  ;;  %v5685_v4 = vpop.f32.mrf.mxu1 }
 0x158   : > { %v5674_v20 = vpop.f32.mrf.mxu0  ;;  %4685 = vmatmul.mubr.msk.f32.gmra.mxu0 %vm476_vm0, %v331_v19  ;;  %9315 = vst [vmem:[#allocation120_spill] sm:$0xff] %v5685_v4  ;;  %v441_v4 = vld [vmem:[%s4948_s23 + $0x5f8] sm:$0xff] }
 0x159   : > { %9312 = vst [vmem:[#allocation117_spill] sm:$0xff] %v5674_v20  ;;  %1705 = vmatprep.mubr.f32.mxu0 %v4896_v0  ;;  %v5691_v19 = vpop.f32.mrf.mxu1  ;;  %4795 = vmatmul.mubr.msk.f32.gmra.mxu1 %vm476_vm0, %v441_v4  ;;  %v335_v4 = vld [vmem:[%s4948_s23 + $0x2a8] sm:$0xff] }
 0x15a   : > { %v5683_v55 = vpop.f32.mrf.mxu0  ;;  %9317 = vst [vmem:[#allocation122_spill] sm:$0xff] %v5691_v19  ;;  %2365 = vmatprep.mubr.f32.mxu1 %v4896_v0 }
 0x15b   : > { %9314 = vst [vmem:[#allocation119_spill] sm:$0xff] %v5683_v55  ;;  %v5699_v55 = vpop.f32.mrf.mxu1 }
 0x15c   : > { %v5688_v53 = vpop.f32.mrf.mxu0  ;;  %4686 = vmatmul.mubr.msk.f32.gmra.mxu0 %vm476_vm0, %v332_v47  ;;  %9319 = vst [vmem:[#allocation124_spill] sm:$0xff] %v5699_v55  ;;  %v442_v55 = vld [vmem:[%s4948_s23 + $0x600] sm:$0xff] }
 0x15d   : > { %9316 = vst [vmem:[#allocation121_spill] sm:$0xff] %v5688_v53  ;;  %1711 = vmatprep.mubr.f32.mxu0 %v4896_v0  ;;  %v5705_v47 = vpop.f32.mrf.mxu1  ;;  %4796 = vmatmul.mubr.msk.f32.gmra.mxu1 %vm476_vm0, %v442_v55  ;;  %v336_v55 = vld [vmem:[%s4948_s23 + $0x2b0] sm:$0xff] }
 0x15e   : > { %v5697_v8 = vpop.f32.mrf.mxu0  ;;  %9321 = vst [vmem:[#allocation126_spill] sm:$0xff] %v5705_v47  ;;  %2371 = vmatprep.mubr.f32.mxu1 %v4896_v0 }
 0x15f   : > { %9318 = vst [vmem:[#allocation123_spill] sm:$0xff] %v5697_v8  ;;  %v5713_v8 = vpop.f32.mrf.mxu1 }
 0x160   : > { %v5702_v13 = vpop.f32.mrf.mxu0  ;;  %4687 = vmatmul.mubr.msk.f32.gmra.mxu0 %vm476_vm0, %v333_v28  ;;  %9323 = vst [vmem:[#allocation128_spill] sm:$0xff] %v5713_v8  ;;  %v443_v8 = vld [vmem:[%s4948_s23 + $0x608] sm:$0xff] }
 0x161   : > { %9320 = vst [vmem:[#allocation125_spill] sm:$0xff] %v5702_v13  ;;  %1717 = vmatprep.mubr.f32.mxu0 %v4896_v0  ;;  %v5719_v28 = vpop.f32.mrf.mxu1  ;;  %4797 = vmatmul.mubr.msk.f32.gmra.mxu1 %vm476_vm0, %v443_v8  ;;  %v337_v8 = vld [vmem:[%s4948_s23 + $0x2b8] sm:$0xff] }
 0x162   : > { %v5711_v19 = vpop.f32.mrf.mxu0  ;;  %9325 = vst [vmem:[#allocation130_spill] sm:$0xff] %v5719_v28  ;;  %2377 = vmatprep.mubr.f32.mxu1 %v4896_v0 }
 0x163   : > { %9322 = vst [vmem:[#allocation127_spill] sm:$0xff] %v5711_v19  ;;  %v5727_v19 = vpop.f32.mrf.mxu1 }
 0x164   : > { %v5716_v50 = vpop.f32.mrf.mxu0  ;;  %4688 = vmatmul.mubr.msk.f32.gmra.mxu0 %vm476_vm0, %v334_v16  ;;  %9327 = vst [vmem:[#allocation132_spill] sm:$0xff] %v5727_v19  ;;  %v444_v19 = vld [vmem:[%s4948_s23 + $0x610] sm:$0xff] }
 0x165   : > { %9324 = vst [vmem:[#allocation129_spill] sm:$0xff] %v5716_v50  ;;  %1723 = vmatprep.mubr.f32.mxu0 %v4896_v0  ;;  %v5733_v16 = vpop.f32.mrf.mxu1  ;;  %4798 = vmatmul.mubr.msk.f32.gmra.mxu1 %vm476_vm0, %v444_v19  ;;  %v338_v19 = vld [vmem:[%s4948_s23 + $0x2c0] sm:$0xff] }
 0x166   : > { %v5725_v47 = vpop.f32.mrf.mxu0  ;;  %9329 = vst [vmem:[#allocation134_spill] sm:$0xff] %v5733_v16  ;;  %2383 = vmatprep.mubr.f32.mxu1 %v4896_v0 }
 0x167   : > { %9326 = vst [vmem:[#allocation131_spill] sm:$0xff] %v5725_v47  ;;  %v5741_v47 = vpop.f32.mrf.mxu1 }
 0x168   : > { %v5730_v29 = vpop.f32.mrf.mxu0  ;;  %4689 = vmatmul.mubr.msk.f32.gmra.mxu0 %vm476_vm0, %v335_v4  ;;  %9331 = vst [vmem:[#allocation136_spill] sm:$0xff] %v5741_v47  ;;  %v445_v47 = vld [vmem:[%s4948_s23 + $0x618] sm:$0xff] }
 0x169   : > { %9328 = vst [vmem:[#allocation133_spill] sm:$0xff] %v5730_v29  ;;  %1729 = vmatprep.mubr.f32.mxu0 %v4896_v0  ;;  %v5747_v4 = vpop.f32.mrf.mxu1  ;;  %4799 = vmatmul.mubr.msk.f32.gmra.mxu1 %vm476_vm0, %v445_v47  ;;  %v339_v47 = vld [vmem:[%s4948_s23 + $0x2c8] sm:$0xff] }
 0x16a   : > { %v5739_v28 = vpop.f32.mrf.mxu0  ;;  %9333 = vst [vmem:[#allocation138_spill] sm:$0xff] %v5747_v4  ;;  %2389 = vmatprep.mubr.f32.mxu1 %v4896_v0 }
 0x16b   : > { %9330 = vst [vmem:[#allocation135_spill] sm:$0xff] %v5739_v28  ;;  %v5755_v28 = vpop.f32.mrf.mxu1 }
 0x16c   : > { %v5744_v23 = vpop.f32.mrf.mxu0  ;;  %4690 = vmatmul.mubr.msk.f32.gmra.mxu0 %vm476_vm0, %v336_v55  ;;  %9335 = vst [vmem:[#allocation140_spill] sm:$0xff] %v5755_v28  ;;  %v446_v28 = vld [vmem:[%s4948_s23 + $0x620] sm:$0xff] }
 0x16d   : > { %9332 = vst [vmem:[#allocation137_spill] sm:$0xff] %v5744_v23  ;;  %1735 = vmatprep.mubr.f32.mxu0 %v4896_v0  ;;  %v5761_v55 = vpop.f32.mrf.mxu1  ;;  %4800 = vmatmul.mubr.msk.f32.gmra.mxu1 %vm476_vm0, %v446_v28  ;;  %v340_v28 = vld [vmem:[%s4948_s23 + $0x2d0] sm:$0xff] }
 0x16e   : > { %v5753_v16 = vpop.f32.mrf.mxu0  ;;  %9337 = vst [vmem:[#allocation142_spill] sm:$0xff] %v5761_v55  ;;  %2395 = vmatprep.mubr.f32.mxu1 %v4896_v0 }
 0x16f   : > { %9334 = vst [vmem:[#allocation139_spill] sm:$0xff] %v5753_v16  ;;  %v5769_v16 = vpop.f32.mrf.mxu1 }
 0x170   : > { %v5758_v11 = vpop.f32.mrf.mxu0  ;;  %4691 = vmatmul.mubr.msk.f32.gmra.mxu0 %vm476_vm0, %v337_v8  ;;  %9339 = vst [vmem:[#allocation144_spill] sm:$0xff] %v5769_v16  ;;  %v447_v16 = vld [vmem:[%s4948_s23 + $0x628] sm:$0xff] }
 0x171   : > { %9336 = vst [vmem:[#allocation141_spill] sm:$0xff] %v5758_v11  ;;  %1741 = vmatprep.mubr.f32.mxu0 %v4896_v0  ;;  %v5775_v8 = vpop.f32.mrf.mxu1  ;;  %4801 = vmatmul.mubr.msk.f32.gmra.mxu1 %vm476_vm0, %v447_v16  ;;  %v341_v16 = vld [vmem:[%s4948_s23 + $0x2d8] sm:$0xff] }
 0x172   : > { %v5767_v4 = vpop.f32.mrf.mxu0  ;;  %9341 = vst [vmem:[#allocation146_spill] sm:$0xff] %v5775_v8  ;;  %2401 = vmatprep.mubr.f32.mxu1 %v4896_v0 }
 0x173   : > { %9338 = vst [vmem:[#allocation143_spill] sm:$0xff] %v5767_v4  ;;  %v5783_v4 = vpop.f32.mrf.mxu1 }
 0x174   : > { %v5772_v17 = vpop.f32.mrf.mxu0  ;;  %4692 = vmatmul.mubr.msk.f32.gmra.mxu0 %vm476_vm0, %v338_v19  ;;  %9343 = vst [vmem:[#allocation148_spill] sm:$0xff] %v5783_v4  ;;  %v448_v4 = vld [vmem:[%s4948_s23 + $0x630] sm:$0xff] }
 0x175   : > { %9340 = vst [vmem:[#allocation145_spill] sm:$0xff] %v5772_v17  ;;  %1747 = vmatprep.mubr.f32.mxu0 %v4896_v0  ;;  %v5789_v19 = vpop.f32.mrf.mxu1  ;;  %4802 = vmatmul.mubr.msk.f32.gmra.mxu1 %vm476_vm0, %v448_v4  ;;  %v342_v4 = vld [vmem:[%s4948_s23 + $0x2e0] sm:$0xff] }
 0x176   : > { %v5781_v55 = vpop.f32.mrf.mxu0  ;;  %9345 = vst [vmem:[#allocation150_spill] sm:$0xff] %v5789_v19  ;;  %2407 = vmatprep.mubr.f32.mxu1 %v4896_v0 }
 0x177   : > { %9342 = vst [vmem:[#allocation147_spill] sm:$0xff] %v5781_v55  ;;  %v5797_v55 = vpop.f32.mrf.mxu1 }
 0x178   : > { %v5786_v37 = vpop.f32.mrf.mxu0  ;;  %4693 = vmatmul.mubr.msk.f32.gmra.mxu0 %vm476_vm0, %v339_v47  ;;  %9347 = vst [vmem:[#allocation152_spill] sm:$0xff] %v5797_v55  ;;  %v449_v55 = vld [vmem:[%s4948_s23 + $0x638] sm:$0xff] }
 0x179   : > { %9344 = vst [vmem:[#allocation149_spill] sm:$0xff] %v5786_v37  ;;  %1753 = vmatprep.mubr.f32.mxu0 %v4896_v0  ;;  %v5803_v47 = vpop.f32.mrf.mxu1  ;;  %4803 = vmatmul.mubr.msk.f32.gmra.mxu1 %vm476_vm0, %v449_v55  ;;  %v343_v55 = vld [vmem:[%s4948_s23 + $0x2e8] sm:$0xff] }
 0x17a   : > { %v5795_v8 = vpop.f32.mrf.mxu0  ;;  %9349 = vst [vmem:[#allocation154_spill] sm:$0xff] %v5803_v47  ;;  %2413 = vmatprep.mubr.f32.mxu1 %v4896_v0 }
 0x17b   : > { %9346 = vst [vmem:[#allocation151_spill] sm:$0xff] %v5795_v8  ;;  %v5811_v8 = vpop.f32.mrf.mxu1 }
 0x17c   : > { %v5800_v45 = vpop.f32.mrf.mxu0  ;;  %4694 = vmatmul.mubr.msk.f32.gmra.mxu0 %vm476_vm0, %v340_v28  ;;  %9351 = vst [vmem:[#allocation156_spill] sm:$0xff] %v5811_v8  ;;  %v450_v8 = vld [vmem:[%s4948_s23 + $0x640] sm:$0xff] }
 0x17d   : > { %9348 = vst [vmem:[#allocation153_spill] sm:$0xff] %v5800_v45  ;;  %1759 = vmatprep.mubr.f32.mxu0 %v4896_v0  ;;  %v5817_v28 = vpop.f32.mrf.mxu1  ;;  %4804 = vmatmul.mubr.msk.f32.gmra.mxu1 %vm476_vm0, %v450_v8  ;;  %v344_v8 = vld [vmem:[%s4948_s23 + $0x2f0] sm:$0xff] }
 0x17e   : > { %v5809_v19 = vpop.f32.mrf.mxu0  ;;  %9353 = vst [vmem:[#allocation158_spill] sm:$0xff] %v5817_v28  ;;  %2419 = vmatprep.mubr.f32.mxu1 %v4896_v0 }
 0x17f   : > { %9350 = vst [vmem:[#allocation155_spill] sm:$0xff] %v5809_v19  ;;  %v5825_v19 = vpop.f32.mrf.mxu1 }
 0x180   : > { %v5814_v62 = vpop.f32.mrf.mxu0  ;;  %4695 = vmatmul.mubr.msk.f32.gmra.mxu0 %vm476_vm0, %v341_v16  ;;  %9355 = vst [vmem:[#allocation160_spill] sm:$0xff] %v5825_v19  ;;  %v451_v19 = vld [vmem:[%s4948_s23 + $0x648] sm:$0xff] }
 0x181   : > { %9352 = vst [vmem:[#allocation157_spill] sm:$0xff] %v5814_v62  ;;  %1765 = vmatprep.mubr.f32.mxu0 %v4896_v0  ;;  %v5831_v16 = vpop.f32.mrf.mxu1  ;;  %4805 = vmatmul.mubr.msk.f32.gmra.mxu1 %vm476_vm0, %v451_v19  ;;  %v345_v19 = vld [vmem:[%s4948_s23 + $0x2f8] sm:$0xff] }
 0x182   : > { %v5823_v47 = vpop.f32.mrf.mxu0  ;;  %9357 = vst [vmem:[#allocation162_spill] sm:$0xff] %v5831_v16  ;;  %2425 = vmatprep.mubr.f32.mxu1 %v4896_v0 }
 0x183   : > { %9354 = vst [vmem:[#allocation159_spill] sm:$0xff] %v5823_v47  ;;  %v5839_v47 = vpop.f32.mrf.mxu1 }
 0x184   : > { %v5828_v27 = vpop.f32.mrf.mxu0  ;;  %4696 = vmatmul.mubr.msk.f32.gmra.mxu0 %vm476_vm0, %v342_v4  ;;  %9359 = vst [vmem:[#allocation164_spill] sm:$0xff] %v5839_v47  ;;  %v452_v47 = vld [vmem:[%s4948_s23 + $0x650] sm:$0xff] }
 0x185   : > { %9356 = vst [vmem:[#allocation161_spill] sm:$0xff] %v5828_v27  ;;  %1771 = vmatprep.mubr.f32.mxu0 %v4896_v0  ;;  %v5845_v4 = vpop.f32.mrf.mxu1  ;;  %4806 = vmatmul.mubr.msk.f32.gmra.mxu1 %vm476_vm0, %v452_v47  ;;  %v346_v47 = vld [vmem:[%s4948_s23 + $0x300] sm:$0xff] }
 0x186   : > { %v5837_v28 = vpop.f32.mrf.mxu0  ;;  %9361 = vst [vmem:[#allocation166_spill] sm:$0xff] %v5845_v4  ;;  %2431 = vmatprep.mubr.f32.mxu1 %v4896_v0 }
 0x187   : > { %9358 = vst [vmem:[#allocation163_spill] sm:$0xff] %v5837_v28  ;;  %v5853_v28 = vpop.f32.mrf.mxu1 }
 0x188   : > { %v5842_v33 = vpop.f32.mrf.mxu0  ;;  %4697 = vmatmul.mubr.msk.f32.gmra.mxu0 %vm476_vm0, %v343_v55  ;;  %9363 = vst [vmem:[#allocation168_spill] sm:$0xff] %v5853_v28  ;;  %v453_v28 = vld [vmem:[%s4948_s23 + $0x658] sm:$0xff] }
 0x189   : > { %9360 = vst [vmem:[#allocation165_spill] sm:$0xff] %v5842_v33  ;;  %1777 = vmatprep.mubr.f32.mxu0 %v4896_v0  ;;  %v5859_v55 = vpop.f32.mrf.mxu1  ;;  %4807 = vmatmul.mubr.msk.f32.gmra.mxu1 %vm476_vm0, %v453_v28  ;;  %v347_v28 = vld [vmem:[%s4948_s23 + $0x308] sm:$0xff] }
 0x18a   : > { %v5851_v16 = vpop.f32.mrf.mxu0  ;;  %9365 = vst [vmem:[#allocation170_spill] sm:$0xff] %v5859_v55  ;;  %2437 = vmatprep.mubr.f32.mxu1 %v4896_v0 }
 0x18b   : > { %9362 = vst [vmem:[#allocation167_spill] sm:$0xff] %v5851_v16  ;;  %v5867_v16 = vpop.f32.mrf.mxu1 }
 0x18c   : > { %v5856_v15 = vpop.f32.mrf.mxu0  ;;  %4698 = vmatmul.mubr.msk.f32.gmra.mxu0 %vm476_vm0, %v344_v8  ;;  %9367 = vst [vmem:[#allocation172_spill] sm:$0xff] %v5867_v16  ;;  %v454_v16 = vld [vmem:[%s4948_s23 + $0x660] sm:$0xff] }
 0x18d   : > { %9364 = vst [vmem:[#allocation169_spill] sm:$0xff] %v5856_v15  ;;  %1783 = vmatprep.mubr.f32.mxu0 %v4896_v0  ;;  %v5873_v8 = vpop.f32.mrf.mxu1  ;;  %4808 = vmatmul.mubr.msk.f32.gmra.mxu1 %vm476_vm0, %v454_v16  ;;  %v348_v16 = vld [vmem:[%s4948_s23 + $0x310] sm:$0xff] }
 0x18e   : > { %v5865_v4 = vpop.f32.mrf.mxu0  ;;  %9369 = vst [vmem:[#allocation174_spill] sm:$0xff] %v5873_v8  ;;  %2443 = vmatprep.mubr.f32.mxu1 %v4896_v0 }
 0x18f   : > { %9366 = vst [vmem:[#allocation171_spill] sm:$0xff] %v5865_v4  ;;  %v5881_v4 = vpop.f32.mrf.mxu1 }
 0x190   : > { %v5870_v21 = vpop.f32.mrf.mxu0  ;;  %4699 = vmatmul.mubr.msk.f32.gmra.mxu0 %vm476_vm0, %v345_v19  ;;  %9371 = vst [vmem:[#allocation176_spill] sm:$0xff] %v5881_v4  ;;  %v455_v4 = vld [vmem:[%s4948_s23 + $0x668] sm:$0xff] }
 0x191   : > { %9368 = vst [vmem:[#allocation173_spill] sm:$0xff] %v5870_v21  ;;  %1789 = vmatprep.mubr.f32.mxu0 %v4896_v0  ;;  %v5887_v19 = vpop.f32.mrf.mxu1  ;;  %4809 = vmatmul.mubr.msk.f32.gmra.mxu1 %vm476_vm0, %v455_v4  ;;  %v349_v4 = vld [vmem:[%s4948_s23 + $0x318] sm:$0xff] }
 0x192   : > { %v5879_v55 = vpop.f32.mrf.mxu0  ;;  %9373 = vst [vmem:[#allocation178_spill] sm:$0xff] %v5887_v19  ;;  %2449 = vmatprep.mubr.f32.mxu1 %v4896_v0 }
 0x193   : > { %9370 = vst [vmem:[#allocation175_spill] sm:$0xff] %v5879_v55  ;;  %v5895_v55 = vpop.f32.mrf.mxu1 }
 0x194   : > { %v5884_v3 = vpop.f32.mrf.mxu0  ;;  %4700 = vmatmul.mubr.msk.f32.gmra.mxu0 %vm476_vm0, %v346_v47  ;;  %9375 = vst [vmem:[#allocation180_spill] sm:$0xff] %v5895_v55  ;;  %v456_v55 = vld [vmem:[%s4948_s23 + $0x670] sm:$0xff] }
 0x195   : > { %9372 = vst [vmem:[#allocation177_spill] sm:$0xff] %v5884_v3  ;;  %1795 = vmatprep.mubr.f32.mxu0 %v4896_v0  ;;  %v5901_v47 = vpop.f32.mrf.mxu1  ;;  %4810 = vmatmul.mubr.msk.f32.gmra.mxu1 %vm476_vm0, %v456_v55  ;;  %v350_v55 = vld [vmem:[%s4948_s23 + $0x320] sm:$0xff] }
 0x196   : > { %v5893_v8 = vpop.f32.mrf.mxu0  ;;  %9377 = vst [vmem:[#allocation182_spill] sm:$0xff] %v5901_v47  ;;  %2455 = vmatprep.mubr.f32.mxu1 %v4896_v0 }
 0x197   : > { %9374 = vst [vmem:[#allocation179_spill] sm:$0xff] %v5893_v8  ;;  %v5909_v8 = vpop.f32.mrf.mxu1 }
 0x198   : > { %v5898_v9 = vpop.f32.mrf.mxu0  ;;  %4701 = vmatmul.mubr.msk.f32.gmra.mxu0 %vm476_vm0, %v347_v28  ;;  %9379 = vst [vmem:[#allocation184_spill] sm:$0xff] %v5909_v8  ;;  %v457_v8 = vld [vmem:[%s4948_s23 + $0x678] sm:$0xff] }
 0x199   : > { %9376 = vst [vmem:[#allocation181_spill] sm:$0xff] %v5898_v9  ;;  %1801 = vmatprep.mubr.f32.mxu0 %v4896_v0  ;;  %v5915_v28 = vpop.f32.mrf.mxu1  ;;  %4811 = vmatmul.mubr.msk.f32.gmra.mxu1 %vm476_vm0, %v457_v8  ;;  %v351_v8 = vld [vmem:[%s4948_s23 + $0x328] sm:$0xff] }
 0x19a   : > { %v5907_v19 = vpop.f32.mrf.mxu0  ;;  %9381 = vst [vmem:[#allocation186_spill] sm:$0xff] %v5915_v28  ;;  %2461 = vmatprep.mubr.f32.mxu1 %v4896_v0 }
 0x19b   : > { %9378 = vst [vmem:[#allocation183_spill] sm:$0xff] %v5907_v19  ;;  %v5923_v19 = vpop.f32.mrf.mxu1 }
 0x19c   : > { %v5912_v54 = vpop.f32.mrf.mxu0  ;;  %4702 = vmatmul.mubr.msk.f32.gmra.mxu0 %vm476_vm0, %v348_v16  ;;  %9383 = vst [vmem:[#allocation188_spill] sm:$0xff] %v5923_v19  ;;  %v458_v19 = vld [vmem:[%s4948_s23 + $0x680] sm:$0xff] }
 0x19d   : > { %9380 = vst [vmem:[#allocation185_spill] sm:$0xff] %v5912_v54  ;;  %1807 = vmatprep.mubr.f32.mxu0 %v4896_v0  ;;  %v5929_v16 = vpop.f32.mrf.mxu1  ;;  %4812 = vmatmul.mubr.msk.f32.gmra.mxu1 %vm476_vm0, %v458_v19  ;;  %v352_v19 = vld [vmem:[%s4948_s23 + $0x330] sm:$0xff] }
 0x19e   : > { %v5921_v47 = vpop.f32.mrf.mxu0  ;;  %9385 = vst [vmem:[#allocation190_spill] sm:$0xff] %v5929_v16  ;;  %2467 = vmatprep.mubr.f32.mxu1 %v4896_v0 }
 0x19f   : > { %9382 = vst [vmem:[#allocation187_spill] sm:$0xff] %v5921_v47  ;;  %v5937_v47 = vpop.f32.mrf.mxu1 }
 0x1a0   : > { %v5926_v60 = vpop.f32.mrf.mxu0  ;;  %4703 = vmatmul.mubr.msk.f32.gmra.mxu0 %vm476_vm0, %v349_v4  ;;  %9387 = vst [vmem:[#allocation192_spill] sm:$0xff] %v5937_v47  ;;  %v459_v47 = vld [vmem:[%s4948_s23 + $0x688] sm:$0xff] }
 0x1a1   : > { %9384 = vst [vmem:[#allocation189_spill] sm:$0xff] %v5926_v60  ;;  %1813 = vmatprep.mubr.f32.mxu0 %v4896_v0  ;;  %v5943_v4 = vpop.f32.mrf.mxu1  ;;  %4813 = vmatmul.mubr.msk.f32.gmra.mxu1 %vm476_vm0, %v459_v47  ;;  %v353_v47 = vld [vmem:[%s4948_s23 + $0x338] sm:$0xff] }
 0x1a2   : > { %v5935_v28 = vpop.f32.mrf.mxu0  ;;  %9389 = vst [vmem:[#allocation194_spill] sm:$0xff] %v5943_v4  ;;  %2473 = vmatprep.mubr.f32.mxu1 %v4896_v0 }
 0x1a3   : > { %9386 = vst [vmem:[#allocation191_spill] sm:$0xff] %v5935_v28 }
 0x1a4   : > { %v5940_v36 = vpop.f32.mrf.mxu0  ;;  %4704 = vmatmul.mubr.msk.f32.gmra.mxu0 %vm476_vm0, %v350_v55  ;;  %v5955_v55 = vpop.f32.mrf.mxu1 }
 0x1a5   : > { %9388 = vst [vmem:[#allocation193_spill] sm:$0xff] %v5940_v36  ;;  %1819 = vmatprep.mubr.f32.mxu0 %v4896_v0  ;;  %9392 = vst [vmem:[#allocation197_spill] sm:$0xff] %v5955_v55 }
 0x1a6   : > { %v5949_v16 = vpop.f32.mrf.mxu0 }
 0x1a7   : > { %9390 = vst [vmem:[#allocation195_spill] sm:$0xff] %v5949_v16  ;;  %v460_v16 = vld [vmem:[%s4948_s23 + $0x690] sm:$0xff] }
 0x1a8   : > { %v5952_v28 = vpop.f32.mrf.mxu0  ;;  %4705 = vmatmul.mubr.msk.f32.gmra.mxu0 %vm476_vm0, %v351_v8  ;;  %v5967_v8 = vpop.f32.mrf.mxu1  ;;  %4814 = vmatmul.mubr.msk.f32.gmra.mxu1 %vm476_vm0, %v460_v16  ;;  %v354_v16 = vld [vmem:[%s4948_s23 + $0x340] sm:$0xff] }
 0x1a9   : > { %9391 = vst [vmem:[#allocation196_spill] sm:$0xff] %v5952_v28  ;;  %1825 = vmatprep.mubr.f32.mxu0 %v4896_v0  ;;  %9395 = vst [vmem:[#allocation200_spill] sm:$0xff] %v5967_v8  ;;  %2479 = vmatprep.mubr.f32.mxu1 %v4896_v0 }
 0x1aa   : > { %v5961_v4 = vpop.f32.mrf.mxu0 }
 0x1ab   : > { %9393 = vst [vmem:[#allocation198_spill] sm:$0xff] %v5961_v4  ;;  %v461_v4 = vld [vmem:[%s4948_s23 + $0x698] sm:$0xff] }
 0x1ac   : > { %v5964_v44 = vpop.f32.mrf.mxu0  ;;  %4706 = vmatmul.mubr.msk.f32.gmra.mxu0 %vm476_vm0, %v352_v19  ;;  %v5979_v19 = vpop.f32.mrf.mxu1  ;;  %4815 = vmatmul.mubr.msk.f32.gmra.mxu1 %vm476_vm0, %v461_v4  ;;  %v355_v4 = vld [vmem:[%s4948_s23 + $0x348] sm:$0xff] }
 0x1ad   : > { %9394 = vst [vmem:[#allocation199_spill] sm:$0xff] %v5964_v44  ;;  %1831 = vmatprep.mubr.f32.mxu0 %v4896_v0  ;;  %9398 = vst [vmem:[#allocation203_spill] sm:$0xff] %v5979_v19  ;;  %2485 = vmatprep.mubr.f32.mxu1 %v4896_v0 }
 0x1ae   : > { %v5973_v55 = vpop.f32.mrf.mxu0 }
 0x1af   : > { %9396 = vst [vmem:[#allocation201_spill] sm:$0xff] %v5973_v55  ;;  %v462_v55 = vld [vmem:[%s4948_s23 + $0x6a0] sm:$0xff] }
 0x1b0   : > { %v5976_v40 = vpop.f32.mrf.mxu0  ;;  %4707 = vmatmul.mubr.msk.f32.gmra.mxu0 %vm476_vm0, %v353_v47  ;;  %v5991_v47 = vpop.f32.mrf.mxu1  ;;  %4816 = vmatmul.mubr.msk.f32.gmra.mxu1 %vm476_vm0, %v462_v55  ;;  %v356_v55 = vld [vmem:[%s4948_s23 + $0x350] sm:$0xff] }
 0x1b1   : > { %9397 = vst [vmem:[#allocation202_spill] sm:$0xff] %v5976_v40  ;;  %1837 = vmatprep.mubr.f32.mxu0 %v4896_v0  ;;  %9401 = vst [vmem:[#allocation206_spill] sm:$0xff] %v5991_v47  ;;  %2491 = vmatprep.mubr.f32.mxu1 %v4896_v0 }
 0x1b2   : > { %v5985_v8 = vpop.f32.mrf.mxu0 }
 0x1b3   : > { %9399 = vst [vmem:[#allocation204_spill] sm:$0xff] %v5985_v8  ;;  %v463_v8 = vld [vmem:[%s4948_s23 + $0x6a8] sm:$0xff] }
 0x1b4   : > { %v5988_v48 = vpop.f32.mrf.mxu0  ;;  %4708 = vmatmul.mubr.msk.f32.gmra.mxu0 %vm476_vm0, %v354_v16  ;;  %v6003_v16 = vpop.f32.mrf.mxu1  ;;  %4817 = vmatmul.mubr.msk.f32.gmra.mxu1 %vm476_vm0, %v463_v8  ;;  %v357_v8 = vld [vmem:[%s4948_s23 + $0x358] sm:$0xff] }
 0x1b5   : > { %9400 = vst [vmem:[#allocation205_spill] sm:$0xff] %v5988_v48  ;;  %1843 = vmatprep.mubr.f32.mxu0 %v4896_v0  ;;  %9404 = vst [vmem:[#allocation209_spill] sm:$0xff] %v6003_v16  ;;  %2497 = vmatprep.mubr.f32.mxu1 %v4896_v0 }
 0x1b6   : > { %v5997_v19 = vpop.f32.mrf.mxu0 }
 0x1b7   : > { %9402 = vst [vmem:[#allocation207_spill] sm:$0xff] %v5997_v19  ;;  %v464_v19 = vld [vmem:[%s4948_s23 + $0x6b0] sm:$0xff] }
 0x1b8   : > { %v6000_v44 = vpop.f32.mrf.mxu0  ;;  %4709 = vmatmul.mubr.msk.f32.gmra.mxu0 %vm476_vm0, %v355_v4  ;;  %v6015_v4 = vpop.f32.mrf.mxu1  ;;  %4818 = vmatmul.mubr.msk.f32.gmra.mxu1 %vm476_vm0, %v464_v19  ;;  %v358_v19 = vld [vmem:[%s4948_s23 + $0x360] sm:$0xff] }
 0x1b9   : > { %9403 = vst [vmem:[#allocation208_spill] sm:$0xff] %v6000_v44  ;;  %1849 = vmatprep.mubr.f32.mxu0 %v4896_v0  ;;  %9407 = vst [vmem:[#allocation212_spill] sm:$0xff] %v6015_v4  ;;  %2503 = vmatprep.mubr.f32.mxu1 %v4896_v0 }
 0x1ba   : > { %v6009_v47 = vpop.f32.mrf.mxu0 }
 0x1bb   : > { %9405 = vst [vmem:[#allocation210_spill] sm:$0xff] %v6009_v47  ;;  %v465_v47 = vld [vmem:[%s4948_s23 + $0x6b8] sm:$0xff] }
 0x1bc   : > { %v6012_v48 = vpop.f32.mrf.mxu0  ;;  %4710 = vmatmul.mubr.msk.f32.gmra.mxu0 %vm476_vm0, %v356_v55  ;;  %v6027_v55 = vpop.f32.mrf.mxu1  ;;  %4819 = vmatmul.mubr.msk.f32.gmra.mxu1 %vm476_vm0, %v465_v47  ;;  %v359_v47 = vld [vmem:[%s4948_s23 + $0x368] sm:$0xff] }
 0x1bd   : > { %9406 = vst [vmem:[#allocation211_spill] sm:$0xff] %v6012_v48  ;;  %1855 = vmatprep.mubr.f32.mxu0 %v4896_v0  ;;  %9410 = vst [vmem:[#allocation215_spill] sm:$0xff] %v6027_v55  ;;  %2509 = vmatprep.mubr.f32.mxu1 %v4896_v0 }
 0x1be   : > { %v6021_v16 = vpop.f32.mrf.mxu0 }
 0x1bf   : > { %9408 = vst [vmem:[#allocation213_spill] sm:$0xff] %v6021_v16  ;;  %v466_v16 = vld [vmem:[%s4948_s23 + $0x6c0] sm:$0xff] }
 0x1c0   : > { %v6024_v44 = vpop.f32.mrf.mxu0  ;;  %4711 = vmatmul.mubr.msk.f32.gmra.mxu0 %vm476_vm0, %v357_v8  ;;  %v6039_v8 = vpop.f32.mrf.mxu1  ;;  %4820 = vmatmul.mubr.msk.f32.gmra.mxu1 %vm476_vm0, %v466_v16  ;;  %v360_v16 = vld [vmem:[%s4948_s23 + $0x370] sm:$0xff] }
 0x1c1   : > { %9409 = vst [vmem:[#allocation214_spill] sm:$0xff] %v6024_v44  ;;  %1861 = vmatprep.mubr.f32.mxu0 %v4896_v0  ;;  %9413 = vst [vmem:[#allocation218_spill] sm:$0xff] %v6039_v8  ;;  %2515 = vmatprep.mubr.f32.mxu1 %v4896_v0 }
 0x1c2   : > { %v6033_v4 = vpop.f32.mrf.mxu0 }
 0x1c3   : > { %9411 = vst [vmem:[#allocation216_spill] sm:$0xff] %v6033_v4  ;;  %v467_v4 = vld [vmem:[%s4948_s23 + $0x6c8] sm:$0xff] }
 0x1c4   : > { %v6036_v48 = vpop.f32.mrf.mxu0  ;;  %4712 = vmatmul.mubr.msk.f32.gmra.mxu0 %vm476_vm0, %v358_v19  ;;  %v6051_v19 = vpop.f32.mrf.mxu1  ;;  %4821 = vmatmul.mubr.msk.f32.gmra.mxu1 %vm476_vm0, %v467_v4  ;;  %v361_v4 = vld [vmem:[%s4948_s23 + $0x378] sm:$0xff] }
 0x1c5   : > { %9412 = vst [vmem:[#allocation217_spill] sm:$0xff] %v6036_v48  ;;  %1867 = vmatprep.mubr.f32.mxu0 %v4896_v0  ;;  %9416 = vst [vmem:[#allocation221_spill] sm:$0xff] %v6051_v19  ;;  %2521 = vmatprep.mubr.f32.mxu1 %v4896_v0  ;;  %v468_v48 = vld [vmem:[%s4948_s23 + $0x6d0] sm:$0xff]  ;;  %v469_v19 = vld [vmem:[%s4948_s23 + $0x6d8] sm:$0xff] }
 0x1c6   : > { %v6045_v55 = vpop.f32.mrf.mxu0 }
 0x1c7   : > { %9414 = vst [vmem:[#allocation219_spill] sm:$0xff] %v6045_v55 }
 0x1c8   : > { %v6048_v44 = vpop.f32.mrf.mxu0  ;;  %4713 = vmatmul.mubr.msk.f32.gmra.mxu0 %vm476_vm0, %v359_v47  ;;  %4822 = vmatmul.mubr.msk.f32.gmra.mxu1 %vm476_vm0, %v468_v48 }
 0x1c9   : > { %9415 = vst [vmem:[#allocation220_spill] sm:$0xff] %v6048_v44  ;;  %1873 = vmatprep.mubr.f32.mxu0 %v4896_v0  ;;  %v6063_v44 = vpop.f32.mrf.mxu1  ;;  %2527 = vmatprep.mubr.f32.mxu1 %v4896_v0 }
 0x1ca   : > { %v6057_v8 = vpop.f32.mrf.mxu0  ;;  %9419 = vst [vmem:[#allocation224_spill] sm:$0xff] %v6063_v44 }
 0x1cb   : > { %9417 = vst [vmem:[#allocation222_spill] sm:$0xff] %v6057_v8 }
 0x1cc   : > { %v6060_v55 = vpop.f32.mrf.mxu0  ;;  %4714 = vmatmul.mubr.msk.f32.gmra.mxu0 %vm476_vm0, %v360_v16  ;;  %4823 = vmatmul.mubr.msk.f32.gmra.mxu1 %vm476_vm0, %v469_v19  ;;  %v470_v16 = vld [vmem:[%s4948_s23 + $0x6e0] sm:$0xff] }
 0x1cd   : > { %9418 = vst [vmem:[#allocation223_spill] sm:$0xff] %v6060_v55  ;;  %1879 = vmatprep.mubr.f32.mxu0 %v4896_v0  ;;  %v6075_v55 = vpop.f32.mrf.mxu1  ;;  %2533 = vmatprep.mubr.f32.mxu1 %v4896_v0 }
 0x1ce   : > { %v6069_v47 = vpop.f32.mrf.mxu0  ;;  %9422 = vst [vmem:[#allocation227_spill] sm:$0xff] %v6075_v55  ;;  %v471_v55 = vld [vmem:[%s4948_s23 + $0x6e8] sm:$0xff] }
 0x1cf   : > { %9420 = vst [vmem:[#allocation225_spill] sm:$0xff] %v6069_v47  ;;  %v6084_v40 = vpop.f32.mrf.mxu1 }
 0x1d0   : > { %v6072_v8 = vpop.f32.mrf.mxu0  ;;  %4715 = vmatmul.mubr.msk.f32.gmra.mxu0 %vm476_vm0, %v361_v4  ;;  %9425 = vst [vmem:[#allocation230_spill] sm:$0xff] %v6084_v40  ;;  %4824 = vmatmul.mubr.msk.f32.gmra.mxu1 %vm476_vm0, %v470_v16 }
 0x1d1   : > { %9421 = vst [vmem:[#allocation226_spill] sm:$0xff] %v6072_v8  ;;  %2539 = vmatprep.mubr.f32.mxu1 %v4896_v0  ;;  %v6093_v19 = vpop.f32.mrf.mxu1 }
 0x1d2   : > { %v6079_v48 = vpop.f32.mrf.mxu0  ;;  %9428 = vst [vmem:[#allocation233_spill] sm:$0xff] %v6093_v19 }
 0x1d3   : > { %9423 = vst [vmem:[#allocation228_spill] sm:$0xff] %v6079_v48  ;;  %v6102_v8 = vpop.f32.mrf.mxu1 }
 0x1d4   : > { %v6082_v44 = vpop.f32.mrf.mxu0  ;;  %4825 = vmatmul.mubr.msk.f32.gmra.mxu1 %vm476_vm0, %v471_v55  ;;  %9431 = vst [vmem:[#allocation236_spill] sm:$0xff] %v6102_v8 }
 0x1d5   : > { %9424 = vst [vmem:[#allocation229_spill] sm:$0xff] %v6082_v44  ;;  %2545 = vmatprep.mubr.f32.mxu1 %v4896_v0  ;;  %v472_v44 = vld [vmem:[%s4948_s23 + $0x6f0] sm:$0xff]  ;;  %v6111_v19 = vpop.f32.mrf.mxu1 }
 0x1d6   : > { %v6088_v4 = vpop.f32.mrf.mxu0  ;;  %9434 = vst [vmem:[#allocation239_spill] sm:$0xff] %v6111_v19 }
 0x1d7   : > { %9426 = vst [vmem:[#allocation231_spill] sm:$0xff] %v6088_v4  ;;  %v473_v4 = vld [vmem:[%s4948_s23 + $0x6f8] sm:$0xff] }
 0x1d8   : > { %v6091_v47 = vpop.f32.mrf.mxu0  ;;  %4826 = vmatmul.mubr.msk.f32.gmra.mxu1 %vm476_vm0, %v472_v44 }
 0x1d9   : > { %9427 = vst [vmem:[#allocation232_spill] sm:$0xff] %v6091_v47  ;;  %2551 = vmatprep.mubr.f32.mxu1 %v4896_v0 }
 0x1da   : > { %v6097_v48 = vpop.f32.mrf.mxu0 }
 0x1db   : > { %9429 = vst [vmem:[#allocation234_spill] sm:$0xff] %v6097_v48 }
 0x1dc   : > { %v6100_v40 = vpop.f32.mrf.mxu0  ;;  %4827 = vmatmul.mubr.msk.f32.gmra.mxu1 %vm476_vm0, %v473_v4 }
 0x1dd   : > { %9430 = vst [vmem:[#allocation235_spill] sm:$0xff] %v6100_v40 }
 0x1de   : > { %v6106_v16 = vpop.f32.mrf.mxu0 }
 0x1df   : > { %9432 = vst [vmem:[#allocation237_spill] sm:$0xff] %v6106_v16 }
 0x1e0   : > { %v6109_v47 = vpop.f32.mrf.mxu0 }
 0x1e1   : > { %9433 = vst [vmem:[#allocation238_spill] sm:$0xff] %v6109_v47 }
 0x1e2   : > { %v6114_v55 = vpop.f32.mrf.mxu0 }
 0x1e3   : > { %9435 = vst [vmem:[#allocation240_spill] sm:$0xff] %v6114_v55 }
 0x1e4   : > { %v6116_v48 = vpop.f32.mrf.mxu0 }
 0x1e5   : > { %9436 = vst [vmem:[#allocation241_spill] sm:$0xff] %v6116_v48 }
 0x1e6   : > { %v6118_v40 = vpop.f32.mrf.mxu0 }
 0x1e7   : > { %9437 = vst [vmem:[#allocation242_spill] sm:$0xff] %v6118_v40 }
 0x1e8   : > { %v6120_v8 = vpop.f32.mrf.mxu0 }
 0x1e9   : > { %9438 = vst [vmem:[#allocation243_spill] sm:$0xff] %v6120_v8 }
 0x1ea   : > { %v6122_v44 = vpop.f32.mrf.mxu0 }
 0x1eb   : > { %9439 = vst [vmem:[#allocation244_spill] sm:$0xff] %v6122_v44 }
 0x1ec   : > { %v6124_v0 = vpop.f32.mrf.mxu0 }
 0x1ed   : > { %9440 = vst [vmem:[#allocation245_spill] sm:$0xff] %v6124_v0 }
 0x1ee   : > { %v6126_v16 = vpop.f32.mrf.mxu0 }
 0x1ef   : > { %9441 = vst [vmem:[#allocation246_spill] sm:$0xff] %v6126_v16 }
 0x1f0   : > { %v6128_v36 = vpop.f32.mrf.mxu0 }
 0x1f1   : > { %9442 = vst [vmem:[#allocation247_spill] sm:$0xff] %v6128_v36 }
 0x1f2   : > { %v6130_v47 = vpop.f32.mrf.mxu0 }
 0x1f3   : > { %9443 = vst [vmem:[#allocation248_spill] sm:$0xff] %v6130_v47 }
 0x1f4   : > { %v6132_v19 = vpop.f32.mrf.mxu0 }
 0x1f5   : > { %9444 = vst [vmem:[#allocation249_spill] sm:$0xff] %v6132_v19 }
 0x1f6   : > { %v6134_v4 = vpop.f32.mrf.mxu0 }
 0x1f7   : > { %9445 = vst [vmem:[#allocation250_spill] sm:$0xff] %v6134_v4 }
 0x1f8   : > { %v6136_v55 = vpop.f32.mrf.mxu0 }
 0x1f9   : > { %9446 = vst [vmem:[#allocation251_spill] sm:$0xff] %v6136_v55 }
 0x1fa   : > { %v6138_v48 = vpop.f32.mrf.mxu0 }
 0x1fb   : > { %9447 = vst [vmem:[#allocation252_spill] sm:$0xff] %v6138_v48 }
 0x1fc   : > { %v6140_v40 = vpop.f32.mrf.mxu0 }
 0x1fd   : > { %9448 = vst [vmem:[#allocation253_spill] sm:$0xff] %v6140_v40 }
 0x1fe   : > { %v6142_v8 = vpop.f32.mrf.mxu0 }
 0x1ff   : > { %9449 = vst [vmem:[#allocation254_spill] sm:$0xff] %v6142_v8 }
 0x200   : > { %v6144_v44 = vpop.f32.mrf.mxu0 }
 0x201   : > { %9450 = vst [vmem:[#allocation255_spill] sm:$0xff] %v6144_v44 }
 0x202   : > { %v6146_v0 = vpop.f32.mrf.mxu0 }
 0x203   : > { %9451 = vst [vmem:[#allocation256_spill] sm:$0xff] %v6146_v0 }
 0x204   : > { %v6148_v16 = vpop.f32.mrf.mxu0 }
 0x205   : > { %9452 = vst [vmem:[#allocation257_spill] sm:$0xff] %v6148_v16 }
 0x206   : > { %v6150_v36 = vpop.f32.mrf.mxu0 }
 0x207   : > { %9453 = vst [vmem:[#allocation258_spill] sm:$0xff] %v6150_v36 }
 0x208   : > { %v6152_v47 = vpop.f32.mrf.mxu0 }
 0x209   : > { %9454 = vst [vmem:[#allocation259_spill] sm:$0xff] %v6152_v47 }
 0x20a   : > { %v6154_v19 = vpop.f32.mrf.mxu0 }
 0x20b   : > { %9455 = vst [vmem:[#allocation260_spill] sm:$0xff] %v6154_v19 }
 0x20c   : > { %v6156_v4 = vpop.f32.mrf.mxu0 }
 0x20d   : > { %9456 = vst [vmem:[#allocation261_spill] sm:$0xff] %v6156_v4 }
 0x20e   : > { %v6158_v55 = vpop.f32.mrf.mxu0 }
 0x20f   : > { %9457 = vst [vmem:[#allocation262_spill] sm:$0xff] %v6158_v55 }
 0x210   : > { %v6160_v48 = vpop.f32.mrf.mxu0 }
 0x211   : > { %9458 = vst [vmem:[#allocation263_spill] sm:$0xff] %v6160_v48 }
 0x212   : > { %v6162_v40 = vpop.f32.mrf.mxu0 }
 0x213   : > { %9459 = vst [vmem:[#allocation264_spill] sm:$0xff] %v6162_v40 }
 0x214   : > { %v6164_v8 = vpop.f32.mrf.mxu0 }
 0x215   : > { %9460 = vst [vmem:[#allocation265_spill] sm:$0xff] %v6164_v8 }
 0x216   : > { %v6166_v44 = vpop.f32.mrf.mxu0 }
 0x217   : > { %9461 = vst [vmem:[#allocation266_spill] sm:$0xff] %v6166_v44 }
 0x218   : > { %v6168_v0 = vpop.f32.mrf.mxu0 }
 0x219   : > { %9462 = vst [vmem:[#allocation267_spill] sm:$0xff] %v6168_v0 }
 0x21a   : > { %v6170_v16 = vpop.f32.mrf.mxu0 }
 0x21b   : > { %9463 = vst [vmem:[#allocation268_spill] sm:$0xff] %v6170_v16  ;;  %v2559_v16 = vmin.f32 %v5238_v38, %v5258_v46 }
 0x21c   : > { %v6172_v36 = vpop.f32.mrf.mxu0 }
 0x21d   : > { %9464 = vst [vmem:[#allocation269_spill] sm:$0xff] %v6172_v36 }
 0x21e   : > { %v6174_v47 = vpop.f32.mrf.mxu0 }
 0x21f   : > { %9465 = vst [vmem:[#allocation270_spill] sm:$0xff] %v6174_v47 }
 0x220   : > { %v6176_v19 = vpop.f32.mrf.mxu0 }
 0x221   : > { %9466 = vst [vmem:[#allocation271_spill] sm:$0xff] %v6176_v19 }
 0x222   : > { %v6178_v4 = vpop.f32.mrf.mxu0 }
 0x223   : > { %9467 = vst [vmem:[#allocation272_spill] sm:$0xff] %v6178_v4  ;;  %v2558_v4 = vmin.f32 %v5228_v34, %v5248_v42 }
 0x224   : > { %v6180_v55 = vpop.f32.mrf.mxu0 }
 0x225   : > { %9468 = vst [vmem:[#allocation273_spill] sm:$0xff] %v6180_v55  ;;  %v2561_v55 = vmin.f32 %v2559_v16, %v5284_v57 }
 0x226   : > { %v6182_v48 = vpop.f32.mrf.mxu0 }
 0x227   : > { %9469 = vst [vmem:[#allocation274_spill] sm:$0xff] %v6182_v48  ;;  %v2560_v48 = vmin.f32 %v2558_v4, %v5270_v51 }
 0x228   : > { %v6184_v40 = vpop.f32.mrf.mxu0 }
 0x229   : > { %9470 = vst [vmem:[#allocation275_spill] sm:$0xff] %v6184_v40 }
 0x22a   : > { %v6186_v8 = vpop.f32.mrf.mxu0 }
 0x22b   : > { %9471 = vst [vmem:[#allocation276_spill] sm:$0xff] %v6186_v8  ;;  %v2563_v8 = vmin.f32 %v2561_v55, %v5312_v6 }
 0x22c   : > { %v6188_v44 = vpop.f32.mrf.mxu0 }
 0x22d   : > { %9472 = vst [vmem:[#allocation277_spill] sm:$0xff] %v6188_v44  ;;  %v2565_v44 = vmin.f32 %v2563_v8, %v5340_v18 }
 0x22e   : > { %v6190_v0 = vpop.f32.mrf.mxu0 }
 0x22f   : > { %9473 = vst [vmem:[#allocation278_spill] sm:$0xff] %v6190_v0  ;;  %v2562_v0 = vmin.f32 %v2560_v48, %v5298_v63  ;;  %v2567_v42 = vmin.f32 %v2565_v44, %v5368_v30 }
 0x230   : > { %v6194_v47 = vpop.f32.mrf.mxu0 }
 0x231   : > { %9474 = vst [vmem:[#allocation279_spill] sm:$0xff] %v6194_v47  ;;  %v2564_v38 = vmin.f32 %v2562_v0, %v5326_v12  ;;  %v2569_v4 = vmin.f32 %v2567_v42, %v5396_v52 }
 0x232   : > { %v6199_v36 = vpop.f32.mrf.mxu0 }
 0x233   : > { %9475 = vst [vmem:[#allocation280_spill] sm:$0xff] %v6199_v36  ;;  %v2566_v16 = vmin.f32 %v2564_v38, %v5354_v24  ;;  %v2571_v48 = vmin.f32 %v2569_v4, %v5424_v25 }
 0x234   : > { %v6203_v40 = vpop.f32.mrf.mxu0 }
 0x235   : > { %9476 = vst [vmem:[#allocation281_spill] sm:$0xff] %v6203_v40  ;;  %v2568_v55 = vmin.f32 %v2566_v16, %v5382_v39  ;;  %v2573_v0 = vmin.f32 %v2571_v48, %v5452_v58 }
 0x236   : > { %v6207_v46 = vpop.f32.mrf.mxu0 }
 0x237   : > { %9477 = vst [vmem:[#allocation282_spill] sm:$0xff] %v6207_v46  ;;  %v2570_v8 = vmin.f32 %v2568_v55, %v5410_v7  ;;  %v2575_v38 = vmin.f32 %v2573_v0, %v5478_v14 }
 0x238   : > { %v6211_v34 = vpop.f32.mrf.mxu0 }
 0x239   : > { %9478 = vst [vmem:[#allocation283_spill] sm:$0xff] %v6211_v34  ;;  %v2572_v44 = vmin.f32 %v2570_v8, %v5438_v56  ;;  %v2577_v16 = vmin.f32 %v2575_v38, %v5506_v43 }
 0x23a   : > { %v6215_v36 = vpop.f32.mrf.mxu0 }
 0x23b   : > { %9479 = vst [vmem:[#allocation284_spill] sm:$0xff] %v6215_v36  ;;  %v2574_v42 = vmin.f32 %v2572_v44, %v5466_v26  ;;  %v2579_v55 = vmin.f32 %v2577_v16, %v5534_v1  ;;  %v9539_v26 = vld [vmem:[#allocation25_spill] sm:$0xff] }
 0x23c   : > { %v6219_v6 = vpop.f32.mrf.mxu0 }
 0x23d   : > { %9480 = vst [vmem:[#allocation285_spill] sm:$0xff] %v6219_v6  ;;  %v2576_v4 = vmin.f32 %v2574_v42, %v5492_v59  ;;  %v2581_v8 = vmin.f32 %v2579_v55, %v5562_v22 }
 0x23e   : > { %v6223_v46 = vpop.f32.mrf.mxu0 }
 0x23f   : > { %9481 = vst [vmem:[#allocation286_spill] sm:$0xff] %v6223_v46  ;;  %v2578_v48 = vmin.f32 %v2576_v4, %v5520_v41  ;;  %v2583_v44 = vmin.f32 %v2581_v8, %v5590_v61 }
 0x240   : > { %v6227_v30 = vpop.f32.mrf.mxu0 }
 0x241   : > { %9482 = vst [vmem:[#allocation287_spill] sm:$0xff] %v6227_v30  ;;  %v2580_v0 = vmin.f32 %v2578_v48, %v5548_v35  ;;  %v2585_v42 = vmin.f32 %v2583_v44, %v5618_v31  ;;  %v9529_v35 = vld [vmem:[#allocation12_spill] sm:$0xff] }
 0x242   : > { %v6231_v52 = vpop.f32.mrf.mxu0 }
 0x243   : > { %9483 = vst [vmem:[#allocation288_spill] sm:$0xff] %v6231_v52  ;;  %v2582_v38 = vmin.f32 %v2580_v0, %v5576_v10  ;;  %v2587_v4 = vmin.f32 %v2585_v42, %v5646_v5  ;;  %v9526_v10 = vld [vmem:[#allocation235_spill] sm:$0xff] }
 0x244   : > { %v6235_v25 = vpop.f32.mrf.mxu0 }
 0x245   : > { %9484 = vst [vmem:[#allocation289_spill] sm:$0xff] %v6235_v25  ;;  %v2584_v16 = vmin.f32 %v2582_v38, %v5604_v49  ;;  %v2589_v48 = vmin.f32 %v2587_v4, %v5674_v20 }
 0x246   : > { %v6239_v58 = vpop.f32.mrf.mxu0 }
 0x247   : > { %9485 = vst [vmem:[#allocation290_spill] sm:$0xff] %v6239_v58  ;;  %v2586_v55 = vmin.f32 %v2584_v16, %v5632_v2  ;;  %v2591_v0 = vmin.f32 %v2589_v48, %v5702_v13 }
 0x248   : > { %v6243_v14 = vpop.f32.mrf.mxu0 }
 0x249   : > { %9486 = vst [vmem:[#allocation291_spill] sm:$0xff] %v6243_v14  ;;  %v2588_v8 = vmin.f32 %v2586_v55, %v5660_v32  ;;  %v2593_v38 = vmin.f32 %v2591_v0, %v5730_v29 }
 0x24a   : > { %v6247_v43 = vpop.f32.mrf.mxu0 }
 0x24b   : > { %9487 = vst [vmem:[#allocation292_spill] sm:$0xff] %v6247_v43  ;;  %v2590_v44 = vmin.f32 %v2588_v8, %v5688_v53  ;;  %v2595_v16 = vmin.f32 %v2593_v38, %v5758_v11  ;;  %v9516_v53 = vld [vmem:[#allocation232_spill] sm:$0xff] }
 0x24c   : > { %v6251_v1 = vpop.f32.mrf.mxu0 }
 0x24d   : > { %9488 = vst [vmem:[#allocation293_spill] sm:$0xff] %v6251_v1  ;;  %v2592_v42 = vmin.f32 %v2590_v44, %v5716_v50  ;;  %v2597_v55 = vmin.f32 %v2595_v16, %v5786_v37  ;;  %v9513_v50 = vld [vmem:[#allocation226_spill] sm:$0xff] }
 0x24e   : > { %v6255_v22 = vpop.f32.mrf.mxu0 }
 0x24f   : > { %9489 = vst [vmem:[#allocation294_spill] sm:$0xff] %v6255_v22  ;;  %v2594_v4 = vmin.f32 %v2592_v42, %v5744_v23  ;;  %v2599_v8 = vmin.f32 %v2597_v55, %v5814_v62  ;;  %v9510_v23 = vld [vmem:[#allocation220_spill] sm:$0xff] }
 0x250   : > { %v6259_v61 = vpop.f32.mrf.mxu0 }
 0x251   : > { %9490 = vst [vmem:[#allocation295_spill] sm:$0xff] %v6259_v61  ;;  %v2596_v48 = vmin.f32 %v2594_v4, %v5772_v17  ;;  %v2601_v44 = vmin.f32 %v2599_v8, %v5842_v33  ;;  %v9507_v17 = vld [vmem:[#allocation214_spill] sm:$0xff] }
 0x252   : > { %v6263_v31 = vpop.f32.mrf.mxu0 }
 0x253   : > { %9491 = vst [vmem:[#allocation296_spill] sm:$0xff] %v6263_v31  ;;  %v2598_v0 = vmin.f32 %v2596_v48, %v5800_v45  ;;  %v2603_v42 = vmin.f32 %v2601_v44, %v5870_v21  ;;  %v9500_v44 = vld [vmem:[#allocation193_spill] sm:$0xff]  ;;  %v9504_v45 = vld [vmem:[#allocation208_spill] sm:$0xff] }
 0x254   : > { %v6267_v5 = vpop.f32.mrf.mxu0 }
 0x255   : > { %9492 = vst [vmem:[#allocation297_spill] sm:$0xff] %v6267_v5  ;;  %v2600_v38 = vmin.f32 %v2598_v0, %v5828_v27  ;;  %v2605_v4 = vmin.f32 %v2603_v42, %v5898_v9  ;;  %v9501_v27 = vld [vmem:[#allocation202_spill] sm:$0xff]  ;;  %v9503_v42 = vld [vmem:[#allocation199_spill] sm:$0xff] }
 0x256   : > { %v6271_v20 = vpop.f32.mrf.mxu0 }
 0x257   : > { %9493 = vst [vmem:[#allocation298_spill] sm:$0xff] %v6271_v20  ;;  %v2602_v16 = vmin.f32 %v2600_v38, %v5856_v15  ;;  %v2607_v48 = vmin.f32 %v2605_v4, %v5926_v60  ;;  %v9506_v4 = vld [vmem:[#allocation205_spill] sm:$0xff] }
 0x258   : > { %v6275_v13 = vpop.f32.mrf.mxu0 }
 0x259   : > { %9494 = vst [vmem:[#allocation299_spill] sm:$0xff] %v6275_v13  ;;  %v2604_v55 = vmin.f32 %v2602_v16, %v5884_v3  ;;  %v2609_v0 = vmin.f32 %v2607_v48, %v5952_v28  ;;  %v9509_v48 = vld [vmem:[#allocation211_spill] sm:$0xff] }
 0x25a   : > { %v6279_v29 = vpop.f32.mrf.mxu0 }
 0x25b   : > { %9495 = vst [vmem:[#allocation300_spill] sm:$0xff] %v6279_v29  ;;  %v2606_v8 = vmin.f32 %v2604_v55, %v5912_v54  ;;  %v2611_v38 = vmin.f32 %v2609_v0, %v9501_v27  ;;  %v9512_v0 = vld [vmem:[#allocation217_spill] sm:$0xff] }
 0x25c   : > { %v6283_v11 = vpop.f32.mrf.mxu0 }
 0x25d   : > { %9496 = vst [vmem:[#allocation301_spill] sm:$0xff] %v6283_v11  ;;  %v2608_v21 = vmin.f32 %v2606_v8, %v9500_v44  ;;  %v2613_v16 = vmin.f32 %v2611_v38, %v9504_v45  ;;  %v9515_v38 = vld [vmem:[#allocation223_spill] sm:$0xff] }
 0x25e   : > { %v6287_v37 = vpop.f32.mrf.mxu0 }
 0x25f   : > { %9497 = vst [vmem:[#allocation302_spill] sm:$0xff] %v6287_v37  ;;  %v2610_v9 = vmin.f32 %v2608_v21, %v9503_v42  ;;  %v2615_v55 = vmin.f32 %v2613_v16, %v9507_v17  ;;  %v9518_v16 = vld [vmem:[#allocation9_spill] sm:$0xff] }
 0x260   : > { %v6291_v62 = vpop.f32.mrf.mxu0  ;;  %v9519_v17 = vld [vmem:[#allocation5_spill] sm:$0xff] }
 0x261   : > { %9498 = vst [vmem:[#allocation303_spill] sm:$0xff] %v6291_v62  ;;  %v2612_v60 = vmin.f32 %v2610_v9, %v9506_v4  ;;  %v2617_v8 = vmin.f32 %v2615_v55, %v9510_v23  ;;  %v2676_v32 = vmin.f32 %v9519_v17, %v9518_v16  ;;  %v9521_v55 = vld [vmem:[#allocation238_spill] sm:$0xff] }
 0x262   : > { %v6295_v33 = vpop.f32.mrf.mxu0  ;;  %v9530_v16 = vld [vmem:[#allocation22_spill] sm:$0xff] }
 0x263   : > { %9499 = vst [vmem:[#allocation304_spill] sm:$0xff] %v6295_v33  ;;  %v2614_v28 = vmin.f32 %v2612_v60, %v9509_v48  ;;  %v2619_v21 = vmin.f32 %v2617_v8, %v9513_v50  ;;  %v9520_v60 = vld [vmem:[#allocation229_spill] sm:$0xff]  ;;  %v9525_v50 = vld [vmem:[#allocation15_spill] sm:$0xff] }
 0x264   : > { %v6299_v15 = vpop.f32.mrf.mxu0  ;;  %v2678_v49 = vmin.f32 %v2676_v32, %v9525_v50  ;;  %v9536_v50 = vld [vmem:[#allocation245_spill] sm:$0xff] }
 0x265   : > { %9502 = vst [vmem:[#allocation305_spill] sm:$0xff] %v6299_v15  ;;  %v2616_v27 = vmin.f32 %v2614_v28, %v9512_v0  ;;  %v2621_v9 = vmin.f32 %v2619_v21, %v9516_v53  ;;  %v9523_v28 = vld [vmem:[#allocation7_spill] sm:$0xff] }
 0x266   : > { %v6303_v3 = vpop.f32.mrf.mxu0  ;;  %v9524_v0 = vld [vmem:[#allocation3_spill] sm:$0xff]  ;;  %v2680_v17 = vmin.f32 %v2678_v49, %v9530_v16  ;;  %v9541_v16 = vld [vmem:[#allocation249_spill] sm:$0xff] }
 0x267   : > { %9505 = vst [vmem:[#allocation306_spill] sm:$0xff] %v6303_v3  ;;  %v2618_v45 = vmin.f32 %v2616_v27, %v9515_v38  ;;  %v2623_v23 = vmin.f32 %v2621_v9, %v9521_v55  ;;  %v2675_v8 = vmin.f32 %v9524_v0, %v9523_v28  ;;  %v9527_v38 = vld [vmem:[#allocation243_spill] sm:$0xff]  ;;  %v9535_v0 = vld [vmem:[#allocation28_spill] sm:$0xff]  ;;  %v9554_v3 = vld [vmem:[#allocation45_spill] sm:$0xff] }
 0x268   : > { %v6307_v54 = vpop.f32.mrf.mxu0  ;;  %v9532_v9 = vld [vmem:[#allocation247_spill] sm:$0xff]  ;;  %v2682_v32 = vmin.f32 %v2680_v17, %v9535_v0  ;;  %v9546_v0 = vld [vmem:[#allocation253_spill] sm:$0xff] }
 0x269   : > { %9508 = vst [vmem:[#allocation307_spill] sm:$0xff] %v6307_v54  ;;  %v2620_v48 = vmin.f32 %v2618_v45, %v9520_v60  ;;  %v2625_v21 = vmin.f32 %v2623_v23, %v9527_v38  ;;  %v2677_v41 = vmin.f32 %v2675_v8, %v9529_v35  ;;  %v9531_v45 = vld [vmem:[#allocation241_spill] sm:$0xff]  ;;  %v9540_v35 = vld [vmem:[#allocation35_spill] sm:$0xff] }
 0x26a   : > { %v6311_v44 = vpop.f32.mrf.mxu0  ;;  %v2684_v49 = vmin.f32 %v2682_v32, %v9540_v35  ;;  %v9551_v35 = vld [vmem:[#allocation257_spill] sm:$0xff] }
 0x26b   : > { %9511 = vst [vmem:[#allocation308_spill] sm:$0xff] %v6311_v44  ;;  %v2622_v27 = vmin.f32 %v2620_v48, %v9526_v10  ;;  %v2627_v55 = vmin.f32 %v2625_v21, %v9532_v9  ;;  %v9537_v10 = vld [vmem:[#allocation251_spill] sm:$0xff] }
 0x26c   : > { %v6315_v42 = vpop.f32.mrf.mxu0 }
 0x26d   : > { %9514 = vst [vmem:[#allocation309_spill] sm:$0xff] %v6315_v42  ;;  %v2624_v60 = vmin.f32 %v2622_v27, %v9531_v45  ;;  %v2629_v23 = vmin.f32 %v2627_v55, %v9537_v10  ;;  %v9542_v45 = vld [vmem:[#allocation255_spill] sm:$0xff] }
 0x26e   : > { %v6319_v4 = vpop.f32.mrf.mxu0 }
 0x26f   : > { %9517 = vst [vmem:[#allocation310_spill] sm:$0xff] %v6319_v4  ;;  %v9534_v4 = vld [vmem:[#allocation18_spill] sm:$0xff]  ;;  %v2626_v48 = vmin.f32 %v2624_v60, %v9536_v50  ;;  %v2631_v21 = vmin.f32 %v2629_v23, %v9542_v45  ;;  %v9547_v50 = vld [vmem:[#allocation259_spill] sm:$0xff] }
 0x270   : > { %v6325_v2 = vpop.f32.mrf.mxu0  ;;  %v2679_v28 = vmin.f32 %v2677_v41, %v9534_v4  ;;  %v9545_v4 = vld [vmem:[#allocation42_spill] sm:$0xff] }
 0x271   : > { %9522 = vst [vmem:[#allocation311_spill] sm:$0xff] %v6325_v2  ;;  %v2628_v27 = vmin.f32 %v2626_v48, %v9541_v16  ;;  %v2686_v17 = vmin.f32 %v2684_v49, %v9545_v4  ;;  %v2633_v55 = vmin.f32 %v2631_v21, %v9547_v50  ;;  %v9552_v16 = vld [vmem:[#allocation263_spill] sm:$0xff]  ;;  %v9556_v4 = vld [vmem:[#allocation261_spill] sm:$0xff] }
 0x272   : > { %v6332_v53 = vpop.f32.mrf.mxu0  ;;  %v2681_v8 = vmin.f32 %v2679_v28, %v9539_v26  ;;  %v9550_v26 = vld [vmem:[#allocation49_spill] sm:$0xff] }
 0x273   : > { %9528 = vst [vmem:[#allocation312_spill] sm:$0xff] %v6332_v53  ;;  %v9544_v53 = vld [vmem:[#allocation31_spill] sm:$0xff]  ;;  %v2630_v60 = vmin.f32 %v2628_v27, %v9546_v0  ;;  %v2688_v32 = vmin.f32 %v2686_v17, %v9550_v26  ;;  %v2635_v23 = vmin.f32 %v2633_v55, %v9552_v16  ;;  %v9561_v26 = vld [vmem:[#allocation265_spill] sm:$0xff] }
 0x274   : > { %v6338_v59 = vpop.f32.mrf.mxu0  ;;  %v2683_v41 = vmin.f32 %v2681_v8, %v9544_v53  ;;  %v9555_v53 = vld [vmem:[#allocation56_spill] sm:$0xff]  ;;  %v9557_v0 = vld [vmem:[#allocation267_spill] sm:$0xff] }
 0x275   : > { %9533 = vst [vmem:[#allocation313_spill] sm:$0xff] %v6338_v59  ;;  %v2632_v48 = vmin.f32 %v2630_v60, %v9551_v35  ;;  %v2690_v49 = vmin.f32 %v2688_v32, %v9555_v53  ;;  %v2637_v21 = vmin.f32 %v2635_v23, %v9557_v0  ;;  %v9563_v35 = vld [vmem:[#allocation60_spill] sm:$0xff]  ;;  %v9565_v53 = vld [vmem:[#allocation269_spill] sm:$0xff] }
 0x276   : > { %v6344_v38 = vpop.f32.mrf.mxu0 }
 0x277   : > { %9538 = vst [vmem:[#allocation314_spill] sm:$0xff] %v6344_v38  ;;  %v9549_v38 = vld [vmem:[#allocation38_spill] sm:$0xff]  ;;  %v2634_v27 = vmin.f32 %v2632_v48, %v9556_v4  ;;  %v2639_v55 = vmin.f32 %v2637_v21, %v6176_v19  ;;  %v9566_v4 = vld [vmem:[#allocation275_spill] sm:$0xff] }
 0x278   : > { %v6350_v9 = vpop.f32.mrf.mxu0  ;;  %v2685_v28 = vmin.f32 %v2683_v41, %v9549_v38  ;;  %v9560_v38 = vld [vmem:[#allocation63_spill] sm:$0xff] }
 0x279   : > { %9543 = vst [vmem:[#allocation315_spill] sm:$0xff] %v6350_v9  ;;  %v2692_v17 = vmin.f32 %v2690_v49, %v9560_v38  ;;  %v2636_v60 = vmin.f32 %v2634_v27, %v9561_v26  ;;  %v2641_v23 = vmin.f32 %v2639_v55, %v9566_v4  ;;  %v9570_v38 = vld [vmem:[#allocation273_spill] sm:$0xff]  ;;  %v9572_v26 = vld [vmem:[#allocation75_spill] sm:$0xff] }
 0x27a   : > { %v6356_v10 = vpop.f32.mrf.mxu0  ;;  %v2687_v8 = vmin.f32 %v2685_v28, %v9554_v3  ;;  %v9564_v3 = vld [vmem:[#allocation71_spill] sm:$0xff] }
 0x27b   : > { %9548 = vst [vmem:[#allocation316_spill] sm:$0xff] %v6356_v10  ;;  %v9559_v10 = vld [vmem:[#allocation52_spill] sm:$0xff]  ;;  %v2694_v32 = vmin.f32 %v2692_v17, %v9564_v3  ;;  %v2638_v48 = vmin.f32 %v2636_v60, %v9565_v53  ;;  %v2643_v21 = vmin.f32 %v2641_v23, %v6194_v47  ;;  %v9574_v3 = vld [vmem:[#allocation277_spill] sm:$0xff]  ;;  %v9576_v53 = vld [vmem:[#allocation83_spill] sm:$0xff] }
 0x27c   : > { %v6362_v45 = vpop.f32.mrf.mxu0  ;;  %v2689_v41 = vmin.f32 %v2687_v8, %v9559_v10  ;;  %v9569_v10 = vld [vmem:[#allocation79_spill] sm:$0xff] }
 0x27d   : > { %9553 = vst [vmem:[#allocation317_spill] sm:$0xff] %v6362_v45  ;;  %v2696_v49 = vmin.f32 %v2694_v32, %v9569_v10  ;;  %v2640_v27 = vmin.f32 %v2638_v48, %v9570_v38  ;;  %v2645_v55 = vmin.f32 %v2643_v21, %v6211_v34  ;;  %v9579_v38 = vld [vmem:[#allocation91_spill] sm:$0xff] }
 0x27e   : > { %v6368_v50 = vpop.f32.mrf.mxu0  ;;  %v2691_v28 = vmin.f32 %v2689_v41, %v9563_v35  ;;  %v9573_v35 = vld [vmem:[#allocation87_spill] sm:$0xff] }
 0x27f   : > { %9558 = vst [vmem:[#allocation318_spill] sm:$0xff] %v6368_v50  ;;  %v9568_v50 = vld [vmem:[#allocation67_spill] sm:$0xff]  ;;  %v2698_v17 = vmin.f32 %v2696_v49, %v9573_v35  ;;  %v2642_v60 = vmin.f32 %v2640_v27, %v9574_v3  ;;  %v2647_v23 = vmin.f32 %v2645_v55, %v6227_v30 }
 0x280   : > { %v6374_v16 = vpop.f32.mrf.mxu0  ;;  %v2693_v8 = vmin.f32 %v2691_v28, %v9568_v50  ;;  %v9577_v50 = vld [vmem:[#allocation95_spill] sm:$0xff] }
 0x281   : > { %9562 = vst [vmem:[#allocation319_spill] sm:$0xff] %v6374_v16  ;;  %v2700_v32 = vmin.f32 %v2698_v17, %v9577_v50  ;;  %v2644_v48 = vmin.f32 %v2642_v60, %v6203_v40  ;;  %v9580_v10 = vld [vmem:[#allocation103_spill] sm:$0xff]  ;;  %v2649_v21 = vmin.f32 %v2647_v23, %v6243_v14 }
 0x282   : > { %v6380_v0 = vpop.f32.mrf.mxu0  ;;  %v2695_v41 = vmin.f32 %v2693_v8, %v9572_v26  ;;  %v9581_v34 = vld [vmem:[#allocation99_spill] sm:$0xff] }
 0x283   : > { %9567 = vst [vmem:[#allocation320_spill] sm:$0xff] %v6380_v0  ;;  %v2702_v49 = vmin.f32 %v2700_v32, %v9580_v10  ;;  %v2646_v27 = vmin.f32 %v2644_v48, %v6219_v6  ;;  %v9582_v35 = vld [vmem:[#allocation111_spill] sm:$0xff]  ;;  %v2651_v60 = vmin.f32 %v2649_v21, %v6259_v61 }
 0x284   : > { %v6386_v19 = vpop.f32.mrf.mxu0  ;;  %v2697_v28 = vmin.f32 %v2695_v41, %v9576_v53  ;;  %v9584_v55 = vld [vmem:[#allocation107_spill] sm:$0xff] }
 0x285   : > { %9571 = vst [vmem:[#allocation321_spill] sm:$0xff] %v6386_v19  ;;  %v2704_v41 = vmin.f32 %v2702_v49, %v9582_v35  ;;  %v2648_v17 = vmin.f32 %v2646_v27, %v6235_v25  ;;  %v9585_v50 = vld [vmem:[#allocation119_spill] sm:$0xff]  ;;  %v2653_v48 = vmin.f32 %v2651_v60, %v6275_v13 }
 0x286   : > { %v6392_v4 = vpop.f32.mrf.mxu0  ;;  %v2699_v8 = vmin.f32 %v2697_v28, %v9579_v38  ;;  %v9586_v6 = vld [vmem:[#allocation115_spill] sm:$0xff] }
 0x287   : > { %9575 = vst [vmem:[#allocation75_spill] sm:$0xff] %v6392_v4  ;;  %v2706_v28 = vmin.f32 %v2704_v41, %v9585_v50  ;;  %v2650_v32 = vmin.f32 %v2648_v17, %v6251_v1  ;;  %v9587_v14 = vld [vmem:[#allocation127_spill] sm:$0xff]  ;;  %v2655_v27 = vmin.f32 %v2653_v48, %v6291_v62 }
 0x288   : > { %v6398_v47 = vpop.f32.mrf.mxu0  ;;  %v2701_v3 = vmin.f32 %v2699_v8, %v9581_v34  ;;  %v9589_v21 = vld [vmem:[#allocation123_spill] sm:$0xff] }
 0x289   : > { %9578 = vst [vmem:[#allocation322_spill] sm:$0xff] %v6398_v47  ;;  %v2708_v8 = vmin.f32 %v2706_v28, %v9587_v14  ;;  %v2652_v49 = vmin.f32 %v2650_v32, %v6267_v5  ;;  %v9590_v35 = vld [vmem:[#allocation135_spill] sm:$0xff]  ;;  %v2657_v17 = vmin.f32 %v2655_v27, %v6307_v54 }
 0x28a   : > { %v6408_v40 = vpop.f32.mrf.mxu0  ;;  %v2703_v30 = vmin.f32 %v2701_v3, %v9584_v55  ;;  %v9591_v1 = vld [vmem:[#allocation131_spill] sm:$0xff]  ;;  %v9701_v55 = vld [vmem:[#allocation109_spill] sm:$0xff] }
 0x28b   : > { %9583 = vst [vmem:[#allocation323_spill] sm:$0xff] %v6408_v40  ;;  %v2710_v3 = vmin.f32 %v2708_v8, %v9590_v35  ;;  %v2654_v41 = vmin.f32 %v2652_v49, %v6283_v11  ;;  %v9592_v13 = vld [vmem:[#allocation143_spill] sm:$0xff]  ;;  %v2659_v32 = vmin.f32 %v2657_v17, %v6325_v2 }
 0x28c   : > { %v2705_v23 = vmin.f32 %v2703_v30, %v9586_v6  ;;  %v6418_v25 = vpop.f32.mrf.mxu0  ;;  %v9594_v48 = vld [vmem:[#allocation139_spill] sm:$0xff] }
 0x28d   : > { %9588 = vst [vmem:[#allocation324_spill] sm:$0xff] %v6418_v25  ;;  %v2712_v30 = vmin.f32 %v2710_v3, %v9592_v13  ;;  %v2656_v28 = vmin.f32 %v2654_v41, %v6299_v15  ;;  %v9595_v14 = vld [vmem:[#allocation151_spill] sm:$0xff]  ;;  %v2661_v49 = vmin.f32 %v2659_v32, %v6350_v9 }
 0x28e   : > { %v2707_v61 = vmin.f32 %v2705_v23, %v9589_v21  ;;  %v6428_v5 = vpop.f32.mrf.mxu0  ;;  %v9596_v11 = vld [vmem:[#allocation147_spill] sm:$0xff]  ;;  %v9614_v21 = vld [vmem:[#allocation216_spill] sm:$0xff] }
 0x28f   : > { %9593 = vst [vmem:[#allocation325_spill] sm:$0xff] %v6428_v5  ;;  %v2714_v23 = vmin.f32 %v2712_v30, %v9595_v14  ;;  %v2658_v8 = vmin.f32 %v2656_v28, %v6315_v42  ;;  %v9597_v54 = vld [vmem:[#allocation159_spill] sm:$0xff]  ;;  %v2663_v41 = vmin.f32 %v2661_v49, %v6374_v16 }
 0x290   : > { %v2709_v60 = vmin.f32 %v2707_v61, %v9591_v1  ;;  %v6438_v15 = vpop.f32.mrf.mxu0  ;;  %v9599_v17 = vld [vmem:[#allocation155_spill] sm:$0xff]  ;;  %v9611_v1 = vld [vmem:[#allocation201_spill] sm:$0xff] }
 0x291   : > { %v2716_v61 = vmin.f32 %v2714_v23, %v9597_v54  ;;  %v2660_v3 = vmin.f32 %v2658_v8, %v6338_v59  ;;  %9598 = vst [vmem:[#allocation326_spill] sm:$0xff] %v6438_v15  ;;  %v9600_v13 = vld [vmem:[#allocation167_spill] sm:$0xff]  ;;  %v2665_v28 = vmin.f32 %v2663_v41, %v6398_v47 }
 0x292   : > { %v2711_v62 = vmin.f32 %v2709_v60, %v9594_v48  ;;  %v9601_v42 = vld [vmem:[#allocation163_spill] sm:$0xff] }
 0x293   : > { %v2718_v60 = vmin.f32 %v2716_v61, %v9600_v13  ;;  %v2662_v30 = vmin.f32 %v2660_v3, %v6362_v45  ;;  %v9602_v9 = vld [vmem:[#allocation175_spill] sm:$0xff]  ;;  %v2667_v8 = vmin.f32 %v2665_v28, %v6438_v15 }
 0x294   : > { %v2713_v27 = vmin.f32 %v2711_v62, %v9596_v11  ;;  %v9603_v59 = vld [vmem:[#allocation171_spill] sm:$0xff] }
 0x295   : > { %v2720_v62 = vmin.f32 %v2718_v60, %v9602_v9  ;;  %v2664_v23 = vmin.f32 %v2662_v30, %v6386_v19  ;;  %v9604_v54 = vld [vmem:[#allocation183_spill] sm:$0xff]  ;;  %v9610_v30 = vld [vmem:[#allocation204_spill] sm:$0xff] }
 0x296   : > { %v2715_v2 = vmin.f32 %v2713_v27, %v9599_v17  ;;  %v9605_v17 = vld [vmem:[#allocation179_spill] sm:$0xff] }
 0x297   : > { %v2722_v14 = vmin.f32 %v2720_v62, %v9604_v54  ;;  %v2666_v27 = vmin.f32 %v2664_v23, %v6418_v25  ;;  %v9606_v13 = vld [vmem:[#allocation191_spill] sm:$0xff] }
 0x298   : > { %v2717_v32 = vmin.f32 %v2715_v2, %v9601_v42  ;;  %v9607_v41 = vld [vmem:[#allocation187_spill] sm:$0xff]  ;;  %v9608_v2 = vld [vmem:[#allocation198_spill] sm:$0xff] }
 0x299   : > { %v2724_v3 = vmin.f32 %v2722_v14, %v9606_v13  ;;  %v2668_v11 = vmin.f32 %v2666_v27, %v2667_v8  ;;  %v9609_v60 = vld [vmem:[#allocation195_spill] sm:$0xff]  ;;  %v9615_v14 = vld [vmem:[#allocation213_spill] sm:$0xff]  ;;  %v9616_v27 = vld [vmem:[#allocation222_spill] sm:$0xff] }
 0x29a   : > { %v2719_v49 = vmin.f32 %v2717_v32, %v9603_v59  ;;  %v9612_v59 = vld [vmem:[#allocation210_spill] sm:$0xff]  ;;  %v9613_v54 = vld [vmem:[#allocation207_spill] sm:$0xff] }
 0x29b   : > { %v2726_v42 = vmin.f32 %v2724_v3, %v9608_v2  ;;  %v2669_v28 = vrot.slane %v2668_v11, 4  ;;  %v9617_v13 = vld [vmem:[#allocation219_spill] sm:$0xff]  ;;  %v9618_v2 = vld [vmem:[#allocation228_spill] sm:$0xff] }
 0x29c   : > { %v2721_v61 = vmin.f32 %v2719_v49, %v9605_v17 }
 0x29d   : > { %v2728_v35 = vmin.f32 %v2726_v42, %v9610_v30  ;;  %v2670_v17 = vmin.f32 %v2668_v11, %v2669_v28  ;;  %v9619_v42 = vld [vmem:[#allocation225_spill] sm:$0xff] }
 0x29e   : > { %v2723_v48 = vmin.f32 %v2721_v61, %v9607_v41  ;;  %v9620_v41 = vld [vmem:[#allocation234_spill] sm:$0xff]  ;;  %v9623_v11 = vld [vmem:[#allocation237_spill] sm:$0xff] }
 0x29f   : > { %v2730_v62 = vmin.f32 %v2728_v35, %v9612_v59  ;;  %v9621_v35 = vld [vmem:[#allocation231_spill] sm:$0xff] }
 0x2a0   : > { %v2725_v9 = vmin.f32 %v2723_v48, %v9609_v60  ;;  %v2671_v60 = vrot.slane %v2670_v17, 2 }
 0x2a1   : > { %v2732_v49 = vmin.f32 %v2730_v62, %v9614_v21 }
 0x2a2   : > { %v2727_v32 = vmin.f32 %v2725_v9, %v9611_v1  ;;  %v8960_v1 = vlaneseq  ;;  %v2672_v62 = vmin.f32 %v2670_v17, %v2671_v60  ;;  %v9629_v60 = vld [vmem:[#allocation250_spill] sm:$0xff] }
 0x2a3   : > { %v2734_v61 = vmin.f32 %v2732_v49, %v9616_v27 }
 0x2a4   : > { %v2729_v23 = vmin.f32 %v2727_v32, %v9613_v54  ;;  %v9622_v32 = vld [vmem:[#allocation240_spill] sm:$0xff]  ;;  %v6472_v49 = vshrl.u32 %v8960_v1, 7 }
 0x2a5   : > { %v2736_v48 = vmin.f32 %v2734_v61, %v9618_v2  ;;  %v9626_v2 = vld [vmem:[#allocation248_spill] sm:$0xff] }
 0x2a6   : > { %v2731_v8 = vmin.f32 %v2729_v23, %v9615_v14  ;;  %v9624_v23 = vld [vmem:[#allocation244_spill] sm:$0xff]  ;;  %v3022_v17 = vadd.s32 40, %v6472_v49  ;;  %v6774_v10 = vadd.s32 440, %v6472_v49  ;;  %v6799_v38 = vadd.s32 480, %v6472_v49 }
 0x2a7   : > { %v2738_v9 = vmin.f32 %v2736_v48, %v9620_v41  ;;  %v9628_v41 = vld [vmem:[#allocation252_spill] sm:$0xff] }
 0x2a8   : > { %v2733_v3 = vmin.f32 %v2731_v8, %v9617_v13  ;;  %v9625_v8 = vld [vmem:[#allocation242_spill] sm:$0xff] }
 0x2a9   : > { %v2740_v54 = vmin.f32 %v2738_v9, %v9622_v32  ;;  %v9630_v9 = vld [vmem:[#allocation256_spill] sm:$0xff] }
 0x2aa   : > { %v2735_v30 = vmin.f32 %v2733_v3, %v9619_v42  ;;  %v2673_v3 = vrot.slane %v2672_v62, 1  ;;  %v9627_v42 = vld [vmem:[#allocation246_spill] sm:$0xff] }
 0x2ab   : > { %v2742_v21 = vmin.f32 %v2740_v54, %v9624_v23 }
 0x2ac   : > { %v2737_v59 = vmin.f32 %v2735_v30, %v9621_v35  ;;  %v3021_v30 = vadd.s32 32, %v6472_v49  ;;  %v6483_v23 = vmin.f32 %v2672_v62, %v2673_v3  ;;  %v3026_v62 = vadd.s32 72, %v6472_v49  ;;  %v9699_v35 = vld [vmem:[#allocation105_spill] sm:$0xff] }
 0x2ad   : > { %v2744_v27 = vmin.f32 %v2742_v21, %v9626_v2  ;;  %v9632_v21 = vld [vmem:[#allocation260_spill] sm:$0xff] }
 0x2ae   : > { %v2739_v28 = vmin.f32 %v2737_v59, %v9623_v11  ;;  %v3023_v59 = vadd.s32 48, %v6472_v49  ;;  %vm2800_vm1 = vcmp.le.f32.partialorder %v5270_v51, %v6483_v23  ;;  %vm2802_vm2 = vcmp.le.f32.partialorder %v5284_v57, %v6483_v23  ;;  %v9636_v51 = vld [vmem:[#allocation258_spill] sm:$0xff] }
 0x2af   : > { %v2746_v13 = vmin.f32 %v2744_v27, %v9628_v41  ;;  %v3025_v27 = vadd.s32 64, %v6472_v49  ;;  %v6489_v41 = vcvt.s32.f32 %v3021_v30  ;;  %vm3004_vm3 = vcmp.le.f32.partialorder %v6362_v45, %v6483_v23 }
 0x2b0   : > { %v2741_v61 = vmin.f32 %v2739_v28, %v9625_v8  ;;  %v9631_v28 = vld [vmem:[#allocation254_spill] sm:$0xff]  ;;  %v6493_v32 = vcvt.s32.f32 %v3023_v59  ;;  %vm3006_vm4 = vcmp.le.f32.partialorder %v6374_v16, %v6483_v23  ;;  %vm3008_vm5 = vcmp.le.f32.partialorder %v6386_v19, %v6483_v23 }
 0x2b1   : > { %v2748_v1 = vmin.f32 %v2746_v13, %v9630_v9  ;;  %9633 = vst [vmem:[#allocation327_spill] sm:$0xff] %v6489_v41  ;;  %vm3010_vm6 = vcmp.le.f32.partialorder %v6398_v47, %v6483_v23  ;;  %vm3012_vm7 = vcmp.le.f32.partialorder %v6418_v25, %v6483_v23  ;;  %vm3014_vm8 = vcmp.le.f32.partialorder %v6438_v15, %v6483_v23  ;;  %v9641_v15 = vld [vmem:[#allocation20_spill] sm:$0xff]  ;;  %v9695_v9 = vld [vmem:[#allocation97_spill] sm:$0xff] }
 0x2b2   : > { %v2743_v48 = vmin.f32 %v2741_v61, %v9627_v42  ;;  %v3024_v61 = vadd.s32 56, %v6472_v49  ;;  %v6491_v42 = vcvt.s32.f32 %v3022_v17  ;;  %9635 = vst [vmem:[#allocation329_spill] sm:$0xff] %v6493_v32  ;;  %vm2804_vm9 = vcmp.le.f32.partialorder %v5298_v63, %v6483_v23  ;;  %v9639_v17 = vld [vmem:[#allocation262_spill] sm:$0xff] }
 0x2b3   : > { %v2750_v2 = vmin.f32 %v2748_v1, %v9632_v21  ;;  %v9637_v1 = vld [vmem:[#allocation264_spill] sm:$0xff]  ;;  %vm2806_vm10 = vcmp.le.f32.partialorder %v9641_v15, %v6483_v23  ;;  %v3253_v63 = vsel %vm2804_vm9, %v6493_v32, 896.0  ;;  %vm2808_vm11 = vcmp.le.f32.partialorder %v5326_v12, %v6483_v23 }
 0x2b4   : > { %v2745_v54 = vmin.f32 %v2743_v48, %v9629_v60  ;;  %9634 = vst [vmem:[#allocation328_spill] sm:$0xff] %v6491_v42  ;;  %v6516_v3 = vcvt.s32.f32 %v3024_v61  ;;  %v3249_v48 = vsel %vm2800_vm1, %v6489_v41, 896.0  ;;  %v3251_v30 = vsel %vm2802_vm2, %v6491_v42, 896.0  ;;  %v9643_v61 = vld [vmem:[#allocation266_spill] sm:$0xff]  ;;  %v9644_v21 = vld [vmem:[#allocation272_spill] sm:$0xff]  ;;  %v9697_v60 = vld [vmem:[#allocation101_spill] sm:$0xff] }
 0x2b5   : > { %v2752_v13 = vmin.f32 %v2750_v2, %v9637_v1  ;;  %v3027_v2 = vadd.s32 80, %v6472_v49  ;;  %v6525_v1 = vcvt.s32.f32 %v3025_v27  ;;  %v9647_v27 = vld [vmem:[#allocation276_spill] sm:$0xff]  ;;  %vm2810_vm12 = vcmp.le.f32.partialorder %v5340_v18, %v6483_v23 }
 0x2b6   : > { %v2747_v8 = vmin.f32 %v2745_v54, %v9631_v28  ;;  %9638 = vst [vmem:[#allocation330_spill] sm:$0xff] %v6516_v3  ;;  %v9640_v54 = vld [vmem:[#allocation268_spill] sm:$0xff]  ;;  %v3255_v15 = vsel %vm2806_vm10, %v6516_v3, 896.0  ;;  %vm2812_vm13 = vcmp.le.f32.partialorder %v5354_v24, %v6483_v23  ;;  %vm2816_vm15 = vcmp.le.f32.partialorder %v5382_v39, %v6483_v23 }
 0x2b7   : > { %v2754_v25 = vmin.f32 %v2752_v13, %v9640_v54  ;;  %9642 = vst [vmem:[#allocation20_spill] sm:$0xff] %v6525_v1  ;;  %v3028_v13 = vadd.s32 88, %v6472_v49  ;;  %v6533_v54 = vcvt.s32.f32 %v3026_v62  ;;  %v3257_v12 = vsel %vm2808_vm11, %v6525_v1, 896.0  ;;  %v9650_v62 = vld [vmem:[#allocation280_spill] sm:$0xff] }
 0x2b8   : > { %v2749_v57 = vmin.f32 %v2747_v8, %v9636_v51  ;;  %v3467_v8 = vmin.f32 %v3251_v30, %v3249_v48  ;;  %v9646_v48 = vld [vmem:[#allocation270_spill] sm:$0xff]  ;;  %vm2820_vm1 = vcmp.le.f32.partialorder %v5410_v7, %v6483_v23  ;;  %vm2824_vm9 = vcmp.le.f32.partialorder %v5438_v56, %v6483_v23  ;;  %v9693_v51 = vld [vmem:[#allocation93_spill] sm:$0xff] }
 0x2b9   : > { %v2756_v19 = vmin.f32 %v2754_v25, %v9644_v21  ;;  %9645 = vst [vmem:[#allocation331_spill] sm:$0xff] %v6533_v54  ;;  %v3029_v25 = vadd.s32 96, %v6472_v49  ;;  %v6541_v21 = vcvt.s32.f32 %v3027_v2  ;;  %v3259_v18 = vsel %vm2810_vm12, %v6533_v54, 896.0 }
 0x2ba   : > { %v2751_v59 = vmin.f32 %v2749_v57, %v9639_v17  ;;  %v3468_v57 = vmin.f32 %v3253_v63, %v3467_v8  ;;  %v9649_v8 = vld [vmem:[#allocation274_spill] sm:$0xff]  ;;  %v6712_v16 = vadd.s32 328, %v6472_v49  ;;  %v6737_v11 = vadd.s32 368, %v6472_v49 }
 0x2bb   : > { %v2758_v17 = vmin.f32 %v2756_v19, %v9647_v27  ;;  %9648 = vst [vmem:[#allocation332_spill] sm:$0xff] %v6541_v21  ;;  %v3030_v19 = vadd.s32 104, %v6472_v49  ;;  %v6549_v27 = vcvt.s32.f32 %v3028_v13  ;;  %v3261_v24 = vsel %vm2812_vm13, %v6541_v21, 896.0 }
 0x2bc   : > { %v2753_v47 = vmin.f32 %v2751_v59, %v9643_v61  ;;  %v3469_v59 = vmin.f32 %v3255_v15, %v3468_v57  ;;  %v9652_v57 = vld [vmem:[#allocation278_spill] sm:$0xff] }
 0x2bd   : > { %v2760_v61 = vmin.f32 %v2758_v17, %v9650_v62  ;;  %9651 = vst [vmem:[#allocation333_spill] sm:$0xff] %v6549_v27  ;;  %v3031_v17 = vadd.s32 112, %v6472_v49  ;;  %v6557_v62 = vcvt.s32.f32 %v3029_v25 }
 0x2be   : > { %v2755_v30 = vmin.f32 %v2753_v47, %v9646_v48  ;;  %v3470_v47 = vmin.f32 %v3257_v12, %v3469_v59  ;;  %v9653_v48 = vld [vmem:[#allocation33_spill] sm:$0xff]  ;;  %v9655_v59 = vld [vmem:[#allocation282_spill] sm:$0xff] }
 0x2bf   : > { %v2762_v2 = vmin.f32 %v2760_v61, %v6215_v36  ;;  %vm2814_vm14 = vcmp.le.f32.partialorder %v9653_v48, %v6483_v23  ;;  %9654 = vst [vmem:[#allocation33_spill] sm:$0xff] %v6557_v62  ;;  %v3032_v61 = vadd.s32 120, %v6472_v49  ;;  %v6565_v36 = vcvt.s32.f32 %v3030_v19 }
 0x2c0   : > { %v2757_v63 = vmin.f32 %v2755_v30, %v9649_v8  ;;  %v3471_v30 = vmin.f32 %v3259_v18, %v3470_v47  ;;  %v3263_v48 = vsel %vm2814_vm14, %v6549_v27, 896.0  ;;  %v9657_v18 = vld [vmem:[#allocation40_spill] sm:$0xff]  ;;  %v3265_v39 = vsel %vm2816_vm15, %v6557_v62, 896.0 }
 0x2c1   : > { %v2764_v13 = vmin.f32 %v2762_v2, %v6231_v52  ;;  %9656 = vst [vmem:[#allocation334_spill] sm:$0xff] %v6565_v36  ;;  %vm2818_vm0 = vcmp.le.f32.partialorder %v9657_v18, %v6483_v23  ;;  %v3033_v2 = vadd.s32 128, %v6472_v49  ;;  %v6573_v52 = vcvt.s32.f32 %v3031_v17  ;;  %v9660_v18 = vld [vmem:[#allocation47_spill] sm:$0xff] }
 0x2c2   : > { %v2759_v15 = vmin.f32 %v2757_v63, %v9652_v57  ;;  %v3472_v63 = vmin.f32 %v3261_v24, %v3471_v30  ;;  %vm2822_vm2 = vcmp.le.f32.partialorder %v9660_v18, %v6483_v23  ;;  %v9663_v18 = vld [vmem:[#allocation54_spill] sm:$0xff]  ;;  %v6692_v8 = vadd.s32 288, %v6472_v49 }
 0x2c3   : > { %v2766_v25 = vmin.f32 %v2764_v13, %v6247_v43  ;;  %9658 = vst [vmem:[#allocation40_spill] sm:$0xff] %v6573_v52  ;;  %v6581_v13 = vcvt.s32.f32 %v3032_v61  ;;  %v3269_v7 = vsel %vm2820_vm1, %v6573_v52, 896.0  ;;  %vm2826_vm10 = vcmp.le.f32.partialorder %v9663_v18, %v6483_v23 }
 0x2c4   : > { %v2761_v12 = vmin.f32 %v2759_v15, %v9655_v59  ;;  %v3473_v15 = vmin.f32 %v3263_v48, %v3472_v63  ;;  %v3267_v63 = vsel %vm2818_vm0, %v6565_v36, 896.0  ;;  %v3047_v43 = vadd.s32 240, %v6472_v49 }
 0x2c5   : > { %v2768_v19 = vmin.f32 %v2766_v25, %v6263_v31  ;;  %9659 = vst [vmem:[#allocation335_spill] sm:$0xff] %v6581_v13  ;;  %v3035_v25 = vadd.s32 144, %v6472_v49  ;;  %v6589_v31 = vcvt.s32.f32 %v3033_v2  ;;  %v3050_v59 = vadd.s32 264, %v6472_v49 }
 0x2c6   : > { %v2763_v47 = vmin.f32 %v2761_v12, %v6223_v46  ;;  %v3474_v24 = vmin.f32 %v3265_v39, %v3473_v15  ;;  %v3034_v12 = vadd.s32 136, %v6472_v49  ;;  %v3049_v46 = vadd.s32 256, %v6472_v49 }
 0x2c7   : > { %v2770_v17 = vmin.f32 %v2768_v19, %v6279_v29  ;;  %9661 = vst [vmem:[#allocation47_spill] sm:$0xff] %v6589_v31  ;;  %v3273_v56 = vsel %vm2824_vm9, %v6589_v31, 896.0 }
 0x2c8   : > { %v2765_v30 = vmin.f32 %v2763_v47, %v6239_v58  ;;  %v3475_v47 = vmin.f32 %v3267_v63, %v3474_v24  ;;  %v6597_v19 = vcvt.s32.f32 %v3034_v12  ;;  %v3271_v24 = vsel %vm2822_vm2, %v6581_v13, 896.0  ;;  %v9666_v12 = vld [vmem:[#allocation312_spill] sm:$0xff] }
 0x2c9   : > { %v2772_v61 = vmin.f32 %v2770_v17, %v6295_v33  ;;  %v3037_v17 = vadd.s32 160, %v6472_v49  ;;  %v6605_v33 = vcvt.s32.f32 %v3035_v25  ;;  %v9670_v25 = vld [vmem:[#allocation316_spill] sm:$0xff]  ;;  %v3048_v58 = vadd.s32 248, %v6472_v49 }
 0x2ca   : > { %v2767_v48 = vmin.f32 %v2765_v30, %v6255_v22  ;;  %v3476_v39 = vmin.f32 %v3269_v7, %v3475_v47  ;;  %v3036_v30 = vadd.s32 152, %v6472_v49  ;;  %9662 = vst [vmem:[#allocation336_spill] sm:$0xff] %v6597_v19  ;;  %v9665_v47 = vld [vmem:[#allocation306_spill] sm:$0xff]  ;;  %v9671_v22 = vld [vmem:[#allocation61_spill] sm:$0xff] }
 0x2cb   : > { %v2774_v2 = vmin.f32 %v2772_v61, %v6311_v44  ;;  %9664 = vst [vmem:[#allocation54_spill] sm:$0xff] %v6605_v33  ;;  %v3038_v61 = vadd.s32 168, %v6472_v49  ;;  %vm2830_vm12 = vcmp.le.f32.partialorder %v9671_v22, %v6483_v23  ;;  %v6759_v6 = vcvt.s32.f32 %v3048_v58 }
 0x2cc   : > { %v2769_v15 = vmin.f32 %v2767_v48, %v6271_v20  ;;  %v3477_v48 = vmin.f32 %v3271_v24, %v3476_v39  ;;  %v9667_v20 = vld [vmem:[#allocation58_spill] sm:$0xff]  ;;  %v6613_v44 = vcvt.s32.f32 %v3036_v30  ;;  %v3275_v39 = vsel %vm2826_vm10, %v6597_v19, 896.0 }
 0x2cd   : > { %v2776_v29 = vmin.f32 %v2774_v2, %v9666_v12  ;;  %vm2828_vm11 = vcmp.le.f32.partialorder %v9667_v20, %v6483_v23  ;;  %v9669_v24 = vld [vmem:[#allocation310_spill] sm:$0xff]  ;;  %v3039_v2 = vadd.s32 176, %v6472_v49  ;;  %v6621_v12 = vcvt.s32.f32 %v3037_v17  ;;  %9700 = vst [vmem:[#allocation105_spill] sm:$0xff] %v6759_v6 }
 0x2ce   : > { %v2771_v63 = vmin.f32 %v2769_v15, %v6287_v37  ;;  %v3478_v15 = vmin.f32 %v3273_v56, %v3477_v48  ;;  %9668 = vst [vmem:[#allocation58_spill] sm:$0xff] %v6613_v44  ;;  %v3277_v20 = vsel %vm2828_vm11, %v6605_v33, 896.0  ;;  %v9673_v48 = vld [vmem:[#allocation314_spill] sm:$0xff]  ;;  %v3279_v22 = vsel %vm2830_vm12, %v6613_v44, 896.0 }
 0x2cf   : > { %v2778_v37 = vmin.f32 %v2776_v29, %v9670_v25  ;;  %9672 = vst [vmem:[#allocation61_spill] sm:$0xff] %v6621_v12  ;;  %v3040_v29 = vadd.s32 184, %v6472_v49  ;;  %v6629_v25 = vcvt.s32.f32 %v3038_v61  ;;  %v9677_v17 = vld [vmem:[#allocation318_spill] sm:$0xff]  ;;  %vm2846_vm10 = vcmp.le.f32.partialorder %v9693_v51, %v6483_v23 }
 0x2d0   : > { %v2773_v7 = vmin.f32 %v2771_v63, %v9665_v47  ;;  %v3479_v63 = vmin.f32 %v3275_v39, %v3478_v15  ;;  %v9674_v47 = vld [vmem:[#allocation65_spill] sm:$0xff]  ;;  %v6632_v15 = vpop.f32.mrf.mxu0  ;;  %vm2848_vm11 = vcmp.le.f32.partialorder %v9695_v9, %v6483_v23  ;;  %v6720_v51 = vadd.s32 336, %v6472_v49 }
 0x2d1   : > { %v2780_v30 = vmin.f32 %v2778_v37, %v6380_v0  ;;  %vm2832_vm13 = vcmp.le.f32.partialorder %v9674_v47, %v6483_v23  ;;  %9675 = vst [vmem:[#allocation65_spill] sm:$0xff] %v6629_v25  ;;  %9676 = vst [vmem:[#allocation337_spill] sm:$0xff] %v6632_v15  ;;  %v6639_v0 = vadd.s32 8, %v6472_v49  ;;  %v3041_v47 = vadd.s32 192, %v6472_v49 }
 0x2d2   : > { %v2775_v18 = vmin.f32 %v2773_v7, %v9669_v24  ;;  %v3480_v7 = vmin.f32 %v3277_v20, %v3479_v63  ;;  %v6642_v63 = vcvt.s32.f32 %v3039_v2  ;;  %v3281_v61 = vsel %vm2832_vm13, %v6621_v12, 896.0 }
 0x2d3   : > { %v2782_v24 = vmin.f32 %v2780_v30, %v6408_v40  ;;  %vm2850_vm12 = vcmp.le.f32.partialorder %v9697_v60, %v6483_v23  ;;  %v6734_v9 = vadd.s32 360, %v6472_v49  ;;  %vm2852_vm13 = vcmp.le.f32.partialorder %v9699_v35, %v6483_v23 }
 0x2d4   : > { %v2777_v56 = vmin.f32 %v2775_v18, %v9673_v48  ;;  %v9678_v18 = vld [vmem:[#allocation69_spill] sm:$0xff]  ;;  %v3481_v37 = vmin.f32 %v3279_v22, %v3480_v7  ;;  %9680 = vst [vmem:[#allocation338_spill] sm:$0xff] %v6642_v63  ;;  %v3042_v7 = vadd.s32 200, %v6472_v49  ;;  %v6653_v22 = vcvt.s32.f32 %v3040_v29 }
 0x2d5   : > { %vm2834_vm14 = vcmp.le.f32.partialorder %v9678_v18, %v6483_v23  ;;  %9679 = vst [vmem:[#allocation69_spill] sm:$0xff] %v6639_v0  ;;  %v9681_v48 = vld [vmem:[#allocation73_spill] sm:$0xff]  ;;  %v2784_v30 = vmin.f32 %v2782_v24, %v6632_v15  ;;  %v6650_v18 = vadd.s32 16, %v6472_v49  ;;  %v3043_v24 = vadd.s32 208, %v6472_v49 }
 0x2d6   : > { %v2779_v39 = vmin.f32 %v2777_v56, %v9677_v17  ;;  %vm2836_vm15 = vcmp.le.f32.partialorder %v9681_v48, %v6483_v23  ;;  %v3482_v56 = vmin.f32 %v3281_v61, %v3481_v37  ;;  %9683 = vst [vmem:[#allocation339_spill] sm:$0xff] %v6653_v22  ;;  %v3283_v2 = vsel %vm2834_vm14, %v6629_v25, 896.0  ;;  %v9684_v17 = vld [vmem:[#allocation77_spill] sm:$0xff] }
 0x2d7   : > { %9682 = vst [vmem:[#allocation73_spill] sm:$0xff] %v6650_v18  ;;  %vm2838_vm0 = vcmp.le.f32.partialorder %v9684_v17, %v6483_v23  ;;  %v3044_v37 = vadd.s32 216, %v6472_v49  ;;  %v6664_v61 = vcvt.s32.f32 %v3041_v47  ;;  %v3285_v29 = vsel %vm2836_vm15, %v6642_v63, 896.0  ;;  %v9687_v15 = vld [vmem:[#allocation81_spill] sm:$0xff] }
 0x2d8   : > { %v2781_v20 = vmin.f32 %v2779_v39, %v6392_v4  ;;  %v6660_v39 = vadd.s32 24, %v6472_v49  ;;  %v3483_v48 = vmin.f32 %v3283_v2, %v3482_v56  ;;  %vm2840_vm1 = vcmp.le.f32.partialorder %v9687_v15, %v6483_v23  ;;  %v9689_v47 = vld [vmem:[#allocation85_spill] sm:$0xff] }
 0x2d9   : > { %9686 = vst [vmem:[#allocation340_spill] sm:$0xff] %v6664_v61  ;;  %v3046_v17 = vadd.s32 232, %v6472_v49  ;;  %v6672_v56 = vcvt.s32.f32 %v3042_v7  ;;  %v3287_v2 = vsel %vm2838_vm0, %v6653_v22, 896.0  ;;  %vm2842_vm2 = vcmp.le.f32.partialorder %v9689_v47, %v6483_v23 }
 0x2da   : > { %v2783_v40 = vmin.f32 %v2781_v20, %v6428_v5  ;;  %9685 = vst [vmem:[#allocation77_spill] sm:$0xff] %v6660_v39  ;;  %v3045_v20 = vadd.s32 224, %v6472_v49  ;;  %v3484_v5 = vmin.f32 %v3285_v29, %v3483_v48  ;;  %v3289_v7 = vsel %vm2840_vm1, %v6664_v61, 896.0  ;;  %v9691_v48 = vld [vmem:[#allocation89_spill] sm:$0xff] }
 0x2db   : > { %9688 = vst [vmem:[#allocation81_spill] sm:$0xff] %v6672_v56  ;;  %vm2844_vm9 = vcmp.le.f32.partialorder %v9691_v48, %v6483_v23  ;;  %v6689_v29 = vadd.s32 280, %v6472_v49  ;;  %v6703_v48 = vadd.s32 304, %v6472_v49  ;;  %v6706_v39 = vadd.s32 312, %v6472_v49 }
 0x2dc   : > { %v2785_v4 = vmin.f32 %v2783_v40, %v2784_v30  ;;  %v3485_v15 = vmin.f32 %v3287_v2, %v3484_v5  ;;  %v6681_v40 = vadd.s32 272, %v6472_v49  ;;  %v6683_v30 = vcvt.s32.f32 %v3043_v24 }
 0x2dd   : > { %v6695_v5 = vadd.s32 296, %v6472_v49  ;;  %v6697_v2 = vcvt.s32.f32 %v3044_v37  ;;  %v3291_v24 = vsel %vm2842_vm2, %v6672_v56, 896.0  ;;  %v6714_v37 = vcvt.s32.f32 %v3045_v20 }
 0x2de   : > { %9690 = vst [vmem:[#allocation85_spill] sm:$0xff] %v6683_v30  ;;  %v3486_v47 = vmin.f32 %v3289_v7, %v3485_v15  ;;  %v2786_v57 = vrot.slane %v2785_v4, 4  ;;  %v6709_v7 = vadd.s32 320, %v6472_v49  ;;  %v3293_v18 = vsel %vm2844_vm9, %v6683_v30, 896.0 }
 0x2df   : > { %9692 = vst [vmem:[#allocation89_spill] sm:$0xff] %v6697_v2  ;;  %9694 = vst [vmem:[#allocation93_spill] sm:$0xff] %v6714_v37  ;;  %v6728_v28 = vcvt.s32.f32 %v3046_v17  ;;  %v3295_v20 = vsel %vm2846_vm10, %v6697_v2, 896.0  ;;  %v6745_v17 = vcvt.s32.f32 %v3047_v43  ;;  %v6751_v60 = vadd.s32 392, %v6472_v49  ;;  %v9703_v2 = vld [vmem:[#allocation113_spill] sm:$0xff] }
 0x2e0   : > { %v3487_v15 = vmin.f32 %v3291_v24, %v3486_v47  ;;  %v2787_v45 = vmin.f32 %v2785_v4, %v2786_v57  ;;  %v6723_v47 = vadd.s32 344, %v6472_v49  ;;  %v6726_v24 = vadd.s32 352, %v6472_v49 }
 0x2e1   : > { %9696 = vst [vmem:[#allocation97_spill] sm:$0xff] %v6728_v28  ;;  %v6740_v57 = vadd.s32 376, %v6472_v49  ;;  %9698 = vst [vmem:[#allocation101_spill] sm:$0xff] %v6745_v17  ;;  %v3299_v43 = vsel %vm2850_vm12, %v6728_v28, 896.0  ;;  %vm2854_vm14 = vcmp.le.f32.partialorder %v9701_v55, %v6483_v23  ;;  %v6765_v35 = vadd.s32 416, %v6472_v49 }
 0x2e2   : > { %v3488_v0 = vmin.f32 %v3293_v18, %v3487_v15  ;;  %v6743_v18 = vadd.s32 384, %v6472_v49  ;;  %v3297_v15 = vsel %vm2848_vm11, %v6714_v37, 896.0  ;;  %v2788_v50 = vrot.slane %v2787_v45, 2 }
 0x2e3   : > { %v6768_v37 = vadd.s32 424, %v6472_v49  ;;  %v6776_v58 = vcvt.s32.f32 %v3049_v46  ;;  %v3301_v28 = vsel %vm2852_vm13, %v6745_v17, 896.0  ;;  %vm2856_vm15 = vcmp.le.f32.partialorder %v9703_v2, %v6483_v23  ;;  %v9705_v17 = vld [vmem:[#allocation117_spill] sm:$0xff] }
 0x2e4   : > { %v3489_v4 = vmin.f32 %v3295_v20, %v3488_v0  ;;  %v6754_v0 = vadd.s32 400, %v6472_v49  ;;  %v6757_v20 = vadd.s32 408, %v6472_v49  ;;  %v6782_v55 = vadd.s32 448, %v6472_v49 }
 0x2e5   : > { %9702 = vst [vmem:[#allocation109_spill] sm:$0xff] %v6776_v58  ;;  %v2789_v30 = vmin.f32 %v2787_v45, %v2788_v50  ;;  %v6790_v56 = vcvt.s32.f32 %v3050_v59  ;;  %v3303_v46 = vsel %vm2854_vm14, %v6759_v6, 896.0  ;;  %vm2858_vm0 = vcmp.le.f32.partialorder %v9705_v17, %v6483_v23  ;;  %v9707_v17 = vld [vmem:[#allocation121_spill] sm:$0xff] }
 0x2e6   : > { %v3490_v14 = vmin.f32 %v3297_v15, %v3489_v4  ;;  %v6771_v15 = vadd.s32 432, %v6472_v49  ;;  %v6796_v2 = vadd.s32 472, %v6472_v49  ;;  %v6802_v45 = vadd.s32 488, %v6472_v49 }
 0x2e7   : > { %9704 = vst [vmem:[#allocation113_spill] sm:$0xff] %v6790_v56  ;;  %v6808_v59 = vcvt.s32.f32 %v6681_v40  ;;  %vm2860_vm1 = vcmp.le.f32.partialorder %v9707_v17, %v6483_v23  ;;  %v6814_v6 = vadd.s32 504, %v6472_v49  ;;  %v2790_v22 = vrot.slane %v2789_v30, 1 }
 0x2e8   : > { %v3491_v4 = vmin.f32 %v3299_v43, %v3490_v14  ;;  %v6785_v14 = vadd.s32 456, %v6472_v49  ;;  %v6788_v43 = vadd.s32 464, %v6472_v49  ;;  %v6823_v53 = vcvt.s32.f32 %v6689_v29 }
 0x2e9   : > { %9706 = vst [vmem:[#allocation117_spill] sm:$0xff] %v6808_v59  ;;  %v3307_v40 = vsel %vm2858_vm0, %v6790_v56, 896.0  ;;  %v6829_v17 = vadd.s32 528, %v6472_v49  ;;  %v6835_v63 = vadd.s32 544, %v6472_v49  ;;  %v6841_v29 = vcvt.s32.f32 %v6692_v8 }
 0x2ea   : > { %v3492_v34 = vmin.f32 %v3301_v28, %v3491_v4  ;;  %v6805_v28 = vadd.s32 496, %v6472_v49  ;;  %v3305_v4 = vsel %vm2856_vm15, %v6776_v58, 896.0  ;;  %v9710_v58 = vld [vmem:[#allocation125_spill] sm:$0xff]  ;;  %v3309_v56 = vsel %vm2860_vm1, %v6808_v59, 896.0 }
 0x2eb   : > { %vm2862_vm2 = vcmp.le.f32.partialorder %v9710_v58, %v6483_v23  ;;  %9711 = vst [vmem:[#allocation125_spill] sm:$0xff] %v6829_v17  ;;  %9714 = vst [vmem:[#allocation344_spill] sm:$0xff] %v6841_v29  ;;  %v9715_v58 = vld [vmem:[#allocation129_spill] sm:$0xff]  ;;  %v6847_v17 = vadd.s32 560, %v6472_v49  ;;  %v6858_v8 = vcvt.s32.f32 %v6695_v5  ;;  %v6876_v5 = vcvt.s32.f32 %v6703_v48 }
 0x2ec   : > { %v3493_v50 = vmin.f32 %v3303_v46, %v3492_v34  ;;  %v6817_v34 = vadd.s32 512, %v6472_v49  ;;  %v6820_v46 = vadd.s32 520, %v6472_v49  ;;  %vm2864_vm9 = vcmp.le.f32.partialorder %v9715_v58, %v6483_v23 }
 0x2ed   : > { %9718 = vst [vmem:[#allocation346_spill] sm:$0xff] %v6858_v8  ;;  %v3311_v59 = vsel %vm2862_vm2, %v6823_v53, 896.0  ;;  %v6864_v58 = vadd.s32 584, %v6472_v49  ;;  %9724 = vst [vmem:[#allocation350_spill] sm:$0xff] %v6876_v5  ;;  %v6892_v48 = vcvt.s32.f32 %v6706_v39 }
 0x2ee   : > { %v3494_v61 = vmin.f32 %v3305_v4, %v3493_v50  ;;  %9708 = vst [vmem:[#allocation121_spill] sm:$0xff] %v6817_v34  ;;  %9709 = vst [vmem:[#allocation341_spill] sm:$0xff] %v6820_v46  ;;  %v6832_v50 = vadd.s32 536, %v6472_v49  ;;  %v6838_v46 = vadd.s32 552, %v6472_v49 }
 0x2f0   : > { %9712 = vst [vmem:[#allocation342_spill] sm:$0xff] %v6832_v50  ;;  %v3495_v4 = vmin.f32 %v3307_v40, %v3494_v61  ;;  %9713 = vst [vmem:[#allocation343_spill] sm:$0xff] %v6838_v46  ;;  %v6849_v50 = vmin.f32 %v2789_v30, %v2790_v22  ;;  %v6852_v61 = vadd.s32 568, %v6472_v49  ;;  %v6855_v40 = vadd.s32 576, %v6472_v49  ;;  %v9719_v46 = vld [vmem:[#allocation133_spill] sm:$0xff] }
 0x2f1   : > { %vm2866_vm10 = vcmp.le.f32.partialorder %v9719_v46, %v6483_v23  ;;  %9720 = vst [vmem:[#allocation133_spill] sm:$0xff] %v6864_v58  ;;  %v6867_v22 = vadd.s32 592, %v6472_v49  ;;  %v6870_v30 = vadd.s32 600, %v6472_v49  ;;  %v9725_v46 = vld [vmem:[#allocation137_spill] sm:$0xff]  ;;  %v9726_v58 = vld [vmem:[#allocation12_spill] sm:$0xff] }
 0x2f2   : > { %v3496_v34 = vmin.f32 %v3309_v56, %v3495_v4  ;;  %9716 = vst [vmem:[#allocation129_spill] sm:$0xff] %v6852_v61  ;;  %9717 = vst [vmem:[#allocation345_spill] sm:$0xff] %v6855_v40  ;;  %v6873_v4 = vadd.s32 608, %v6472_v49  ;;  %v3313_v40 = vsel %vm2864_vm9, %v6841_v29, 896.0  ;;  %vm2868_vm11 = vcmp.le.f32.partialorder %v9725_v46, %v6483_v23  ;;  %v9731_v46 = vld [vmem:[#allocation141_spill] sm:$0xff] }
 0x2f3   : > { %9721 = vst [vmem:[#allocation347_spill] sm:$0xff] %v6867_v22  ;;  %9722 = vst [vmem:[#allocation348_spill] sm:$0xff] %v6870_v30  ;;  %vm2801_vm12 = vcmp.le.f32.partialorder %v9726_v58, %v6849_v50  ;;  %v3315_v30 = vsel %vm2866_vm10, %v6858_v8, 896.0  ;;  %vm2870_vm14 = vcmp.le.f32.partialorder %v9731_v46, %v6483_v23  ;;  %v9735_v22 = vld [vmem:[#allocation145_spill] sm:$0xff]  ;;  %v9736_v8 = vld [vmem:[#allocation22_spill] sm:$0xff] }
 0x2f4   : > { %v3497_v56 = vmin.f32 %v3311_v59, %v3496_v34  ;;  %9723 = vst [vmem:[#allocation349_spill] sm:$0xff] %v6873_v4  ;;  %v9727_v59 = vld [vmem:[#allocation15_spill] sm:$0xff]  ;;  %v6886_v34 = vadd.s32 616, %v6472_v49  ;;  %v6889_v4 = vadd.s32 624, %v6472_v49  ;;  %v3250_v39 = vsel %vm2801_vm12, %v6489_v41, 896.0 }
 0x2f5   : > { %vm2803_vm13 = vcmp.le.f32.partialorder %v9727_v59, %v6849_v50  ;;  %9730 = vst [vmem:[#allocation15_spill] sm:$0xff] %v6892_v48  ;;  %v6903_v59 = vcvt.s32.f32 %v6709_v7  ;;  %vm2872_vm0 = vcmp.le.f32.partialorder %v9735_v22, %v6483_v23  ;;  %vm2807_vm1 = vcmp.le.f32.partialorder %v9736_v8, %v6849_v50  ;;  %v9739_v22 = vld [vmem:[#allocation25_spill] sm:$0xff] }
 0x2f6   : > { %v3498_v61 = vmin.f32 %v3313_v40, %v3497_v56  ;;  %9728 = vst [vmem:[#allocation137_spill] sm:$0xff] %v6886_v34  ;;  %9729 = vst [vmem:[#allocation12_spill] sm:$0xff] %v6889_v4  ;;  %v6898_v40 = vadd.s32 632, %v6472_v49  ;;  %v9733_v56 = vld [vmem:[#allocation18_spill] sm:$0xff]  ;;  %v3317_v4 = vsel %vm2868_vm11, %v6876_v5, 896.0  ;;  %v3252_v34 = vsel %vm2803_vm13, %v6491_v42, 896.0 }
 0x2f7   : > { %vm2805_vm15 = vcmp.le.f32.partialorder %v9733_v56, %v6849_v50  ;;  %9734 = vst [vmem:[#allocation18_spill] sm:$0xff] %v6903_v59  ;;  %v6916_v7 = vcvt.s32.f32 %v6712_v16  ;;  %v3319_v56 = vsel %vm2870_vm14, %v6892_v48, 896.0  ;;  %v9738_v42 = vld [vmem:[#allocation149_spill] sm:$0xff]  ;;  %vm2809_vm9 = vcmp.le.f32.partialorder %v9739_v22, %v6849_v50 }
 0x2f8   : > { %9732 = vst [vmem:[#allocation141_spill] sm:$0xff] %v6898_v40  ;;  %v3499_v58 = vmin.f32 %v3315_v30, %v3498_v61  ;;  %v3584_v61 = vmin.f32 %v3252_v34, %v3250_v39  ;;  %v6913_v30 = vadd.s32 640, %v6472_v49  ;;  %v3254_v41 = vsel %vm2805_vm15, %v6493_v32, 896.0  ;;  %v9741_v39 = vld [vmem:[#allocation153_spill] sm:$0xff] }
 0x2f9   : > { %9737 = vst [vmem:[#allocation145_spill] sm:$0xff] %v6916_v7  ;;  %vm2874_vm2 = vcmp.le.f32.partialorder %v9738_v42, %v6483_v23  ;;  %v6925_v8 = vadd.s32 648, %v6472_v49  ;;  %v6928_v34 = vcvt.s32.f32 %v6720_v51  ;;  %v3321_v16 = vsel %vm2872_vm0, %v6903_v59, 896.0  ;;  %v9742_v42 = vld [vmem:[#allocation28_spill] sm:$0xff]  ;;  %v9743_v22 = vld [vmem:[#allocation157_spill] sm:$0xff] }
 0x2fa   : > { %v3500_v46 = vmin.f32 %v3317_v4, %v3499_v58  ;;  %v3585_v4 = vmin.f32 %v3254_v41, %v3584_v61  ;;  %v3256_v58 = vsel %vm2807_vm1, %v6516_v3, 896.0  ;;  %vm2876_vm10 = vcmp.le.f32.partialorder %v9741_v39, %v6483_v23 }
 0x2fb   : > { %9740 = vst [vmem:[#allocation22_spill] sm:$0xff] %v6928_v34  ;;  %vm2811_vm11 = vcmp.le.f32.partialorder %v9742_v42, %v6849_v50  ;;  %v6937_v41 = vadd.s32 656, %v6472_v49  ;;  %v6940_v61 = vcvt.s32.f32 %v6723_v47  ;;  %v3323_v51 = vsel %vm2874_vm2, %v6916_v7, 896.0  ;;  %v9746_v42 = vld [vmem:[#allocation161_spill] sm:$0xff] }
 0x2fc   : > { %v3501_v40 = vmin.f32 %v3319_v56, %v3500_v46  ;;  %v3586_v46 = vmin.f32 %v3256_v58, %v3585_v4  ;;  %v3258_v56 = vsel %vm2809_vm9, %v6525_v1, 896.0  ;;  %vm2878_vm12 = vcmp.le.f32.partialorder %v9743_v22, %v6483_v23 }
 0x2fd   : > { %v6949_v4 = vadd.s32 664, %v6472_v49  ;;  %v6952_v58 = vcvt.s32.f32 %v6726_v24  ;;  %v3325_v47 = vsel %vm2876_vm10, %v6928_v34, 896.0  ;;  %v3260_v39 = vsel %vm2811_vm11, %v6533_v54, 896.0 }
 0x2fe   : > { %v3502_v32 = vmin.f32 %v3321_v16, %v3501_v40  ;;  %v9744_v40 = vld [vmem:[#allocation31_spill] sm:$0xff]  ;;  %v3587_v16 = vmin.f32 %v3258_v56, %v3586_v46  ;;  %vm2880_vm14 = vcmp.le.f32.partialorder %v9746_v42, %v6483_v23  ;;  %v6961_v46 = vadd.s32 672, %v6472_v49 }
 0x2ff   : > { %vm2813_vm13 = vcmp.le.f32.partialorder %v9744_v40, %v6849_v50  ;;  %9745 = vst [vmem:[#allocation149_spill] sm:$0xff] %v6952_v58  ;;  %v6964_v56 = vcvt.s32.f32 %v6734_v9  ;;  %v3327_v24 = vsel %vm2878_vm12, %v6940_v61, 896.0  ;;  %v9749_v40 = vld [vmem:[#allocation165_spill] sm:$0xff]  ;;  %v3329_v9 = vsel %vm2880_vm14, %v6952_v58, 896.0 }
 0x300   : > { %v3503_v3 = vmin.f32 %v3323_v51, %v3502_v32  ;;  %v9747_v32 = vld [vmem:[#allocation35_spill] sm:$0xff]  ;;  %v3588_v51 = vmin.f32 %v3260_v39, %v3587_v16  ;;  %v3262_v22 = vsel %vm2813_vm13, %v6541_v21, 896.0  ;;  %vm2882_vm0 = vcmp.le.f32.partialorder %v9749_v40, %v6483_v23 }
 0x301   : > { %vm2815_vm15 = vcmp.le.f32.partialorder %v9747_v32, %v6849_v50  ;;  %9748 = vst [vmem:[#allocation25_spill] sm:$0xff] %v6964_v56  ;;  %v6973_v16 = vadd.s32 680, %v6472_v49  ;;  %v6976_v39 = vcvt.s32.f32 %v6737_v11  ;;  %v9752_v32 = vld [vmem:[#allocation169_spill] sm:$0xff]  ;;  %v3331_v11 = vsel %vm2882_vm0, %v6964_v56, 896.0 }
 0x302   : > { %v3504_v1 = vmin.f32 %v3325_v47, %v3503_v3  ;;  %v9750_v3 = vld [vmem:[#allocation38_spill] sm:$0xff]  ;;  %v3589_v47 = vmin.f32 %v3262_v22, %v3588_v51  ;;  %v3264_v42 = vsel %vm2815_vm15, %v6549_v27, 896.0  ;;  %vm2884_vm2 = vcmp.le.f32.partialorder %v9752_v32, %v6483_v23 }
 0x303   : > { %vm2817_vm1 = vcmp.le.f32.partialorder %v9750_v3, %v6849_v50  ;;  %9751 = vst [vmem:[#allocation153_spill] sm:$0xff] %v6976_v39  ;;  %v6985_v51 = vadd.s32 688, %v6472_v49  ;;  %v6988_v22 = vcvt.s32.f32 %v6740_v57  ;;  %v9755_v3 = vld [vmem:[#allocation173_spill] sm:$0xff]  ;;  %v3333_v57 = vsel %vm2884_vm2, %v6976_v39, 896.0 }
 0x304   : > { %v3505_v54 = vmin.f32 %v3327_v24, %v3504_v1  ;;  %v9753_v1 = vld [vmem:[#allocation42_spill] sm:$0xff]  ;;  %v3590_v24 = vmin.f32 %v3264_v42, %v3589_v47  ;;  %v3266_v40 = vsel %vm2817_vm1, %v6557_v62, 896.0  ;;  %vm2886_vm10 = vcmp.le.f32.partialorder %v9755_v3, %v6483_v23 }
 0x305   : > { %vm2819_vm9 = vcmp.le.f32.partialorder %v9753_v1, %v6849_v50  ;;  %9754 = vst [vmem:[#allocation28_spill] sm:$0xff] %v6988_v22  ;;  %v6997_v47 = vadd.s32 696, %v6472_v49  ;;  %v7000_v42 = vcvt.s32.f32 %v6743_v18  ;;  %v9758_v1 = vld [vmem:[#allocation177_spill] sm:$0xff]  ;;  %v3335_v18 = vsel %vm2886_vm10, %v6988_v22, 896.0 }
 0x306   : > { %v3506_v21 = vmin.f32 %v3329_v9, %v3505_v54  ;;  %v9756_v54 = vld [vmem:[#allocation45_spill] sm:$0xff]  ;;  %v3591_v9 = vmin.f32 %v3266_v40, %v3590_v24  ;;  %v3268_v32 = vsel %vm2819_vm9, %v6565_v36, 896.0  ;;  %vm2888_vm12 = vcmp.le.f32.partialorder %v9758_v1, %v6483_v23 }
 0x307   : > { %vm2821_vm11 = vcmp.le.f32.partialorder %v9756_v54, %v6849_v50  ;;  %9757 = vst [vmem:[#allocation157_spill] sm:$0xff] %v7000_v42  ;;  %v7009_v24 = vadd.s32 704, %v6472_v49  ;;  %v7012_v40 = vcvt.s32.f32 %v6751_v60  ;;  %v9761_v54 = vld [vmem:[#allocation181_spill] sm:$0xff]  ;;  %v3337_v60 = vsel %vm2888_vm12, %v7000_v42, 896.0 }
 0x308   : > { %v3507_v27 = vmin.f32 %v3331_v11, %v3506_v21  ;;  %v9759_v21 = vld [vmem:[#allocation49_spill] sm:$0xff]  ;;  %v3592_v11 = vmin.f32 %v3268_v32, %v3591_v9  ;;  %v3270_v3 = vsel %vm2821_vm11, %v6573_v52, 896.0  ;;  %vm2890_vm14 = vcmp.le.f32.partialorder %v9761_v54, %v6483_v23 }
 0x309   : > { %vm2823_vm13 = vcmp.le.f32.partialorder %v9759_v21, %v6849_v50  ;;  %9760 = vst [vmem:[#allocation31_spill] sm:$0xff] %v7012_v40  ;;  %v7021_v9 = vcvt.s32.f32 %v6754_v0  ;;  %v7024_v32 = vcvt.s32.f32 %v6757_v20  ;;  %v9765_v21 = vld [vmem:[#allocation185_spill] sm:$0xff]  ;;  %v7036_v0 = vcvt.s32.f32 %v6768_v37 }
 0x30a   : > { %v3508_v62 = vmin.f32 %v3333_v57, %v3507_v27  ;;  %v9762_v27 = vld [vmem:[#allocation52_spill] sm:$0xff]  ;;  %v3593_v57 = vmin.f32 %v3270_v3, %v3592_v11  ;;  %v3272_v1 = vsel %vm2823_vm13, %v6581_v13, 896.0  ;;  %vm2892_vm0 = vcmp.le.f32.partialorder %v9765_v21, %v6483_v23  ;;  %v9769_v54 = vld [vmem:[#allocation189_spill] sm:$0xff] }
 0x30b   : > { %vm2825_vm15 = vcmp.le.f32.partialorder %v9762_v27, %v6849_v50  ;;  %9763 = vst [vmem:[#allocation161_spill] sm:$0xff] %v7021_v9  ;;  %9764 = vst [vmem:[#allocation35_spill] sm:$0xff] %v7024_v32  ;;  %v7033_v11 = vcvt.s32.f32 %v6765_v35  ;;  %v3339_v20 = vsel %vm2890_vm14, %v7012_v40, 896.0  ;;  %vm2894_vm2 = vcmp.le.f32.partialorder %v9769_v54, %v6483_v23  ;;  %v9773_v21 = vld [vmem:[#allocation193_spill] sm:$0xff]  ;;  %v9777_v54 = vld [vmem:[#allocation196_spill] sm:$0xff] }
 0x30c   : > { %v3509_v36 = vmin.f32 %v3335_v18, %v3508_v62  ;;  %v9766_v62 = vld [vmem:[#allocation56_spill] sm:$0xff]  ;;  %v3594_v18 = vmin.f32 %v3272_v1, %v3593_v57  ;;  %9768 = vst [vmem:[#allocation38_spill] sm:$0xff] %v7036_v0  ;;  %v3274_v3 = vsel %vm2825_vm15, %v6589_v31, 896.0  ;;  %v7045_v57 = vcvt.s32.f32 %v6771_v15 }
 0x30d   : > { %vm2827_vm1 = vcmp.le.f32.partialorder %v9766_v62, %v6849_v50  ;;  %9767 = vst [vmem:[#allocation165_spill] sm:$0xff] %v7033_v11  ;;  %v7048_v35 = vcvt.s32.f32 %v6774_v10  ;;  %v3341_v37 = vsel %vm2892_vm0, %v7021_v9, 896.0  ;;  %vm2896_vm10 = vcmp.le.f32.partialorder %v9773_v21, %v6483_v23  ;;  %v9781_v21 = vld [vmem:[#allocation199_spill] sm:$0xff] }
 0x30e   : > { %v3510_v52 = vmin.f32 %v3337_v60, %v3509_v36  ;;  %v9770_v36 = vld [vmem:[#allocation60_spill] sm:$0xff]  ;;  %v3595_v60 = vmin.f32 %v3274_v3, %v3594_v18  ;;  %9771 = vst [vmem:[#allocation169_spill] sm:$0xff] %v7045_v57  ;;  %v3276_v1 = vsel %vm2827_vm1, %v6597_v19, 896.0  ;;  %v7057_v18 = vcvt.s32.f32 %v6782_v55 }
 0x30f   : > { %vm2829_vm9 = vcmp.le.f32.partialorder %v9770_v36, %v6849_v50  ;;  %9772 = vst [vmem:[#allocation42_spill] sm:$0xff] %v7048_v35  ;;  %v7060_v15 = vcvt.s32.f32 %v6785_v14  ;;  %v3343_v10 = vsel %vm2894_vm2, %v7024_v32, 896.0  ;;  %vm2898_vm12 = vcmp.le.f32.partialorder %v9777_v54, %v6483_v23  ;;  %v9785_v54 = vld [vmem:[#allocation202_spill] sm:$0xff] }
 0x310   : > { %v3511_v27 = vmin.f32 %v3339_v20, %v3510_v52  ;;  %v9774_v52 = vld [vmem:[#allocation63_spill] sm:$0xff]  ;;  %v3596_v20 = vmin.f32 %v3276_v1, %v3595_v60  ;;  %9775 = vst [vmem:[#allocation173_spill] sm:$0xff] %v7057_v18  ;;  %v3278_v3 = vsel %vm2829_vm9, %v6605_v33, 896.0  ;;  %v7069_v60 = vcvt.s32.f32 %v6788_v43  ;;  %v9809_v33 = vld [vmem:[#allocation342_spill] sm:$0xff] }
 0x311   : > { %vm2831_vm11 = vcmp.le.f32.partialorder %v9774_v52, %v6849_v50  ;;  %9776 = vst [vmem:[#allocation45_spill] sm:$0xff] %v7060_v15  ;;  %v7072_v55 = vcvt.s32.f32 %v6796_v2  ;;  %v3345_v14 = vsel %vm2896_vm10, %v7033_v11, 896.0  ;;  %vm2900_vm14 = vcmp.le.f32.partialorder %v9781_v21, %v6483_v23 }
 0x312   : > { %v3512_v62 = vmin.f32 %v3341_v37, %v3511_v27  ;;  %v9778_v27 = vld [vmem:[#allocation67_spill] sm:$0xff]  ;;  %v3597_v37 = vmin.f32 %v3278_v3, %v3596_v20  ;;  %9779 = vst [vmem:[#allocation177_spill] sm:$0xff] %v7069_v60  ;;  %v3280_v1 = vsel %vm2831_vm11, %v6613_v44, 896.0  ;;  %v7081_v20 = vcvt.s32.f32 %v6799_v38 }
 0x313   : > { %vm2833_vm13 = vcmp.le.f32.partialorder %v9778_v27, %v6849_v50  ;;  %9780 = vst [vmem:[#allocation49_spill] sm:$0xff] %v7072_v55  ;;  %v7084_v43 = vcvt.s32.f32 %v6802_v45  ;;  %v3347_v2 = vsel %vm2898_vm12, %v7036_v0, 896.0  ;;  %vm2902_vm0 = vcmp.le.f32.partialorder %v9785_v54, %v6483_v23 }
 0x314   : > { %v3513_v36 = vmin.f32 %v3343_v10, %v3512_v62  ;;  %v9782_v62 = vld [vmem:[#allocation71_spill] sm:$0xff]  ;;  %v3598_v10 = vmin.f32 %v3280_v1, %v3597_v37  ;;  %9783 = vst [vmem:[#allocation181_spill] sm:$0xff] %v7081_v20  ;;  %v3282_v3 = vsel %vm2833_vm13, %v6621_v12, 896.0  ;;  %vm2837_vm1 = vcmp.le.f32.partialorder %v9572_v26, %v6849_v50  ;;  %v9788_v1 = vld [vmem:[#allocation205_spill] sm:$0xff]  ;;  %v9795_v12 = vld [vmem:[#allocation208_spill] sm:$0xff] }
 0x315   : > { %vm2835_vm15 = vcmp.le.f32.partialorder %v9782_v62, %v6849_v50  ;;  %9784 = vst [vmem:[#allocation52_spill] sm:$0xff] %v7084_v43  ;;  %v7093_v37 = vcvt.s32.f32 %v6805_v28  ;;  %v3349_v38 = vsel %vm2900_vm14, %v7045_v57, 896.0  ;;  %vm2904_vm2 = vcmp.le.f32.partialorder %v9788_v1, %v6483_v23  ;;  %v9791_v28 = vld [vmem:[#allocation121_spill] sm:$0xff]  ;;  %v9798_v1 = vld [vmem:[#allocation339_spill] sm:$0xff] }
 0x316   : > { %v3514_v52 = vmin.f32 %v3345_v14, %v3513_v36  ;;  %v3599_v36 = vmin.f32 %v3282_v3, %v3598_v10  ;;  %v3284_v45 = vsel %vm2835_vm15, %v6629_v25, 896.0  ;;  %v7098_v14 = vmax.f32 %v6483_v23, 0.0  ;;  %v9793_v3 = vld [vmem:[#allocation338_spill] sm:$0xff]  ;;  %v7112_v25 = vpop.f32.mrf.mxu1 }
 0x317   : > { %9786 = vst [vmem:[#allocation185_spill] sm:$0xff] %v7093_v37  ;;  %v7105_v26 = vcvt.s32.f32 %v6814_v6  ;;  %v7108_v10 = vcvt.s32.f32 %v9791_v28  ;;  %v3286_v54 = vsel %vm2837_vm1, %v9793_v3, 896.0  ;;  %9794 = vst [vmem:[#allocation193_spill] sm:$0xff] %v7112_v25  ;;  %vm2906_vm10 = vcmp.le.f32.partialorder %v9795_v12, %v6483_v23  ;;  %v9797_v6 = vld [vmem:[#allocation211_spill] sm:$0xff] }
 0x318   : > { %v3515_v27 = vmin.f32 %v3347_v2, %v3514_v52  ;;  %9787 = vst [vmem:[#allocation56_spill] sm:$0xff] %v7098_v14  ;;  %v9789_v52 = vld [vmem:[#allocation79_spill] sm:$0xff]  ;;  %v3600_v62 = vmin.f32 %v3284_v45, %v3599_v36  ;;  %v3351_v2 = vsel %vm2902_vm0, %v7048_v35, 896.0  ;;  %vm2908_vm12 = vcmp.le.f32.partialorder %v9797_v6, %v6483_v23  ;;  %v7135_v44 = vpop.f32.mrf.mxu1 }
 0x319   : > { %vm2839_vm9 = vcmp.le.f32.partialorder %v9789_v52, %v6849_v50  ;;  %9790 = vst [vmem:[#allocation189_spill] sm:$0xff] %v7105_v26  ;;  %9792 = vst [vmem:[#allocation60_spill] sm:$0xff] %v7108_v10  ;;  %v3353_v45 = vsel %vm2904_vm2, %v7057_v18, 896.0  ;;  %4860 = vrsqrt.f32 %v7098_v14  ;;  %v9799_v25 = vld [vmem:[#allocation87_spill] sm:$0xff]  ;;  %v7126_v12 = vmax.f32 %v6849_v50, 0.0 }
 0x31a   : > { %v3516_v21 = vmin.f32 %v3349_v38, %v3515_v27  ;;  %v9796_v38 = vld [vmem:[#allocation83_spill] sm:$0xff]  ;;  %v3601_v36 = vmin.f32 %v3286_v54, %v3600_v62  ;;  %v3288_v52 = vsel %vm2839_vm9, %v9798_v1, 896.0  ;;  %vm2843_vm13 = vcmp.le.f32.partialorder %v9799_v25, %v6849_v50  ;;  %v9802_v62 = vld [vmem:[#allocation341_spill] sm:$0xff]  ;;  %9805 = vst [vmem:[#allocation67_spill] sm:$0xff] %v7135_v44  ;;  %v7166_v13 = vpop.f32.mrf.mxu1 }
 0x31b   : > { %vm2841_vm11 = vcmp.le.f32.partialorder %v9796_v38, %v6849_v50  ;;  %9800 = vst [vmem:[#allocation63_spill] sm:$0xff] %v7126_v12  ;;  %v3355_v54 = vsel %vm2906_vm10, %v7060_v15, 896.0  ;;  %v9804_v38 = vld [vmem:[#allocation340_spill] sm:$0xff]  ;;  %4862 = vrsqrt.f32 %v7126_v12  ;;  %v7144_v19 = vcvt.s32.f32 %v9809_v33  ;;  %v9815_v33 = vld [vmem:[#allocation343_spill] sm:$0xff]  ;;  %9818 = vst [vmem:[#allocation79_spill] sm:$0xff] %v7166_v13 }
 0x31c   : > { %v3517_v27 = vmin.f32 %v3351_v2, %v3516_v21  ;;  %v3602_v3 = vmin.f32 %v3288_v52, %v3601_v36  ;;  %v9801_v21 = vld [vmem:[#allocation214_spill] sm:$0xff]  ;;  %v7131_v2 = vcvt.s32.f32 %v9802_v62  ;;  %v3290_v1 = vsel %vm2841_vm11, %v9804_v38, 896.0  ;;  %v9807_v36 = vld [vmem:[#allocation125_spill] sm:$0xff] }
 0x31d   : > { %vm2910_vm14 = vcmp.le.f32.partialorder %v9801_v21, %v6483_v23  ;;  %v7141_v52 = vcvt.s32.f32 %v9807_v36  ;;  %9810 = vst [vmem:[#allocation71_spill] sm:$0xff] %v7144_v19  ;;  %v3357_v62 = vsel %vm2908_vm12, %v7069_v60, 896.0  ;;  %v9811_v38 = vld [vmem:[#allocation81_spill] sm:$0xff]  ;;  %v7159_v36 = vcvt.s32.f32 %v9815_v33 }
 0x31e   : > { %v3518_v28 = vmin.f32 %v3353_v45, %v3517_v27  ;;  %9803 = vst [vmem:[#allocation196_spill] sm:$0xff] %v7131_v2  ;;  %v9806_v45 = vld [vmem:[#allocation91_spill] sm:$0xff]  ;;  %v3603_v25 = vmin.f32 %v3290_v1, %v3602_v3  ;;  %v3292_v44 = vsel %vm2843_vm13, %v9811_v38, 896.0  ;;  %v3359_v6 = vsel %vm2910_vm14, %v7072_v55, 896.0  ;;  %v9817_v38 = vld [vmem:[#allocation85_spill] sm:$0xff]  ;;  %v7188_v55 = vpop.f32.mrf.mxu1 }
 0x31f   : > { %vm2845_vm15 = vcmp.le.f32.partialorder %v9806_v45, %v6849_v50  ;;  %9808 = vst [vmem:[#allocation199_spill] sm:$0xff] %v7141_v52  ;;  %v9813_v3 = vld [vmem:[#allocation95_spill] sm:$0xff]  ;;  %v7156_v45 = vcvt.s32.f32 %v6835_v63  ;;  %9816 = vst [vmem:[#allocation205_spill] sm:$0xff] %v7159_v36  ;;  %v9824_v13 = vld [vmem:[#allocation229_spill] sm:$0xff] }
 0x320   : > { %v3519_v27 = vmin.f32 %v3355_v54, %v3518_v28  ;;  %v9812_v28 = vld [vmem:[#allocation217_spill] sm:$0xff]  ;;  %vm2847_vm1 = vcmp.le.f32.partialorder %v9813_v3, %v6849_v50  ;;  %v3604_v1 = vmin.f32 %v3292_v44, %v3603_v25  ;;  %v3294_v31 = vsel %vm2845_vm15, %v9817_v38, 896.0  ;;  %v9820_v44 = vld [vmem:[#allocation99_spill] sm:$0xff]  ;;  %9829 = vst [vmem:[#allocation121_spill] sm:$0xff] %v7188_v55 }
 0x321   : > { %vm2912_vm0 = vcmp.le.f32.partialorder %v9812_v28, %v6483_v23  ;;  %9814 = vst [vmem:[#allocation202_spill] sm:$0xff] %v7156_v45  ;;  %vm2849_vm9 = vcmp.le.f32.partialorder %v9820_v44, %v6849_v50  ;;  %v9821_v25 = vld [vmem:[#allocation223_spill] sm:$0xff]  ;;  %v9822_v28 = vld [vmem:[#allocation226_spill] sm:$0xff]  ;;  %v9823_v3 = vld [vmem:[#allocation89_spill] sm:$0xff]  ;;  %vm2920_vm12 = vcmp.le.f32.partialorder %v9824_v13, %v6483_v23 }
 0x322   : > { %v3520_v54 = vmin.f32 %v3357_v62, %v3519_v27  ;;  %v9819_v27 = vld [vmem:[#allocation220_spill] sm:$0xff]  ;;  %v3605_v63 = vmin.f32 %v3294_v31, %v3604_v1  ;;  %vm2916_vm10 = vcmp.le.f32.partialorder %v9821_v25, %v6483_v23  ;;  %vm2918_vm11 = vcmp.le.f32.partialorder %v9822_v28, %v6483_v23  ;;  %v9827_v1 = vld [vmem:[#allocation235_spill] sm:$0xff]  ;;  %v9828_v44 = vld [vmem:[#allocation93_spill] sm:$0xff] }
 0x323   : > { %vm2914_vm2 = vcmp.le.f32.partialorder %v9819_v27, %v6483_v23  ;;  %v3361_v21 = vsel %vm2912_vm0, %v7081_v20, 896.0  ;;  %v3296_v33 = vsel %vm2847_vm1, %v9823_v3, 896.0  ;;  %v9826_v31 = vld [vmem:[#allocation232_spill] sm:$0xff]  ;;  %vm2924_vm15 = vcmp.le.f32.partialorder %v9827_v1, %v6483_v23  ;;  %v9830_v3 = vld [vmem:[#allocation238_spill] sm:$0xff]  ;;  %v9832_v55 = vld [vmem:[#allocation97_spill] sm:$0xff] }
 0x324   : > { %v3521_v62 = vmin.f32 %v3359_v6, %v3520_v54  ;;  %v9825_v54 = vld [vmem:[#allocation103_spill] sm:$0xff]  ;;  %v3606_v6 = vmin.f32 %v3296_v33, %v3605_v63  ;;  %vm2922_vm14 = vcmp.le.f32.partialorder %v9826_v31, %v6483_v23  ;;  %v3363_v27 = vsel %vm2914_vm2, %v7084_v43, 896.0 }
 0x325   : > { %vm2851_vm13 = vcmp.le.f32.partialorder %v9825_v54, %v6849_v50  ;;  %v3298_v20 = vsel %vm2849_vm9, %v9828_v44, 896.0  ;;  %vm2926_vm0 = vcmp.le.f32.partialorder %v9830_v3, %v6483_v23  ;;  %v3367_v33 = vsel %vm2918_vm11, %v7105_v26, 896.0  ;;  %v9834_v25 = vld [vmem:[#allocation111_spill] sm:$0xff] }
 0x326   : > { %v3522_v38 = vmin.f32 %v3361_v21, %v3521_v62  ;;  %v9831_v62 = vld [vmem:[#allocation107_spill] sm:$0xff]  ;;  %v3607_v63 = vmin.f32 %v3298_v20, %v3606_v6  ;;  %v3365_v21 = vsel %vm2916_vm10, %v7093_v37, 896.0  ;;  %v3369_v54 = vsel %vm2920_vm12, %v7108_v10, 896.0  ;;  %v4861_v43 = vpop.eup %4860 }
 0x327   : > { %vm2853_vm1 = vcmp.le.f32.partialorder %v9831_v62, %v6849_v50  ;;  %v3300_v44 = vsel %vm2851_vm13, %v9832_v55, 896.0  ;;  %v3371_v20 = vsel %vm2922_vm14, %v7131_v2, 896.0  ;;  %vm2855_vm9 = vcmp.le.f32.partialorder %v9834_v25, %v6849_v50  ;;  %v9835_v28 = vld [vmem:[#allocation115_spill] sm:$0xff]  ;;  %v9837_v55 = vld [vmem:[#allocation101_spill] sm:$0xff] }
 0x328   : > { %v3523_v13 = vmin.f32 %v3363_v27, %v3522_v38  ;;  %v9833_v38 = vld [vmem:[#allocation241_spill] sm:$0xff]  ;;  %v3608_v6 = vmin.f32 %v3300_v44, %v3607_v63  ;;  %vm2857_vm10 = vcmp.le.f32.partialorder %v9835_v28, %v6849_v50  ;;  %v9836_v62 = vld [vmem:[#allocation119_spill] sm:$0xff]  ;;  %v3302_v10 = vsel %vm2853_vm1, %v9837_v55, 896.0  ;;  %v4863_v25 = vpop.eup %4862 }
 0x329   : > { %vm2928_vm2 = vcmp.le.f32.partialorder %v9833_v38, %v6483_v23  ;;  %vm2859_vm11 = vcmp.le.f32.partialorder %v9836_v62, %v6849_v50  ;;  %v4384_v26 = vmul.f32 %v4861_v43, %v7098_v14  ;;  %vm4385_vm12 = vcmp.eq.f32.partialorder %v7098_v14, inf  ;;  %v9839_v44 = vld [vmem:[#allocation123_spill] sm:$0xff]  ;;  %v9840_v63 = vld [vmem:[#allocation105_spill] sm:$0xff] }
 0x32a   : > { %v3524_v27 = vmin.f32 %v3365_v21, %v3523_v13  ;;  %v7218_v13 = vpop.f32.mrf.mxu1  ;;  %v3609_v37 = vmin.f32 %v3302_v10, %v3608_v6  ;;  %v4388_v31 = vand.u32 2147483648, %v7098_v14  ;;  %vm2861_vm13 = vcmp.le.f32.partialorder %v9839_v44, %v6849_v50  ;;  %v9841_v10 = vld [vmem:[#allocation109_spill] sm:$0xff] }
 0x32b   : > { %9838 = vst [vmem:[#allocation208_spill] sm:$0xff] %v7218_v13  ;;  %v3304_v2 = vsel %vm2855_vm9, %v9840_v63, 896.0  ;;  %v4386_v60 = vsel %vm4385_vm12, %v7098_v14, %v4384_v26  ;;  %vm4387_vm14 = vcmp.eq.f32.partialorder %v7098_v14, 0.0  ;;  %vm4392_vm1 = vcmp.eq.f32.partialorder %v7126_v12, inf  ;;  %v9867_v14 = vld [vmem:[#allocation251_spill] sm:$0xff] }
 0x32c   : > { %v3525_v21 = vmin.f32 %v3367_v33, %v3524_v27  ;;  %v3610_v43 = vmin.f32 %v3304_v2, %v3609_v37  ;;  %v4389_v15 = vsel %vm4387_vm14, %v4388_v31, %v4386_v60  ;;  %v4391_v33 = vmul.f32 %v4863_v25, %v7126_v12  ;;  %v7234_v63 = vpop.f32.mrf.mxu1  ;;  %v9843_v37 = vld [vmem:[#allocation113_spill] sm:$0xff]  ;;  %v9845_v25 = vld [vmem:[#allocation243_spill] sm:$0xff] }
 0x32d   : > { %v3306_v27 = vsel %vm2857_vm10, %v9841_v10, 896.0  ;;  %v4395_v6 = vand.u32 2147483648, %v7126_v12  ;;  %v4397_v13 = vmul.f32 -100.0, %v4389_v15  ;;  %9842 = vst [vmem:[#allocation83_spill] sm:$0xff] %v7234_v63  ;;  %vm4394_vm9 = vcmp.eq.f32.partialorder %v7126_v12, 0.0  ;;  %v9873_v63 = vld [vmem:[#allocation253_spill] sm:$0xff] }
 0x32e   : > { %v3526_v55 = vmin.f32 %v3369_v54, %v3525_v21  ;;  %v3611_v18 = vmin.f32 %v3306_v27, %v3610_v43  ;;  %v4393_v54 = vsel %vm4392_vm1, %v7126_v12, %v4391_v33  ;;  %v3373_v60 = vsel %vm2924_vm15, %v7141_v52, 896.0  ;;  %v9846_v43 = vld [vmem:[#allocation117_spill] sm:$0xff] }
 0x32f   : > { %v3308_v2 = vsel %vm2859_vm11, %v9843_v37, 896.0  ;;  %v4396_v28 = vsel %vm4394_vm9, %v4395_v6, %v4393_v54  ;;  %v4399_v15 = vmul.f32 1.442695, %v4397_v13  ;;  %vm2930_vm12 = vcmp.le.f32.partialorder %v9845_v25, %v6483_v23  ;;  %v7258_v13 = vpop.f32.mrf.mxu1 }
 0x330   : > { %v3527_v26 = vmin.f32 %v3371_v20, %v3526_v55  ;;  %v9844_v55 = vld [vmem:[#allocation127_spill] sm:$0xff]  ;;  %v3612_v20 = vmin.f32 %v3308_v2, %v3611_v18  ;;  %v4398_v31 = vmul.f32 -100.0, %v4396_v28  ;;  %v3375_v1 = vsel %vm2926_vm0, %v7144_v19, 896.0  ;;  %9847 = vst [vmem:[#allocation211_spill] sm:$0xff] %v7258_v13 }
 0x331   : > { %vm2863_vm10 = vcmp.le.f32.partialorder %v9844_v55, %v6849_v50  ;;  %v3310_v62 = vsel %vm2861_vm13, %v9846_v43, 896.0  ;;  %4864 = vpow2.f32 %v4399_v15  ;;  %v9848_v18 = vld [vmem:[#allocation131_spill] sm:$0xff]  ;;  %v7265_v3 = vcvt.s32.f32 %v6847_v17 }
 0x332   : > { %v3528_v21 = vmin.f32 %v3373_v60, %v3527_v26  ;;  %vm2865_vm15 = vcmp.le.f32.partialorder %v9848_v18, %v6849_v50  ;;  %v3613_v27 = vmin.f32 %v3310_v62, %v3612_v20  ;;  %v4401_v6 = vmul.f32 1.442695, %v4398_v31  ;;  %v9849_v26 = vld [vmem:[#allocation245_spill] sm:$0xff]  ;;  %v9851_v2 = vld [vmem:[#allocation135_spill] sm:$0xff]  ;;  %v7285_v20 = vpop.f32.mrf.mxu1 }
 0x333   : > { %vm2932_vm11 = vcmp.le.f32.partialorder %v9849_v26, %v6483_v23  ;;  %9850 = vst [vmem:[#allocation87_spill] sm:$0xff] %v7265_v3  ;;  %v3377_v44 = vsel %vm2928_vm2, %v7156_v45, 896.0  ;;  %v3312_v54 = vsel %vm2863_vm10, %v6823_v53, 896.0  ;;  %vm2867_vm0 = vcmp.le.f32.partialorder %v9851_v2, %v6849_v50  ;;  %9854 = vst [vmem:[#allocation341_spill] sm:$0xff] %v7285_v20  ;;  %v9855_v31 = vld [vmem:[#allocation247_spill] sm:$0xff]  ;;  %v9860_v2 = vld [vmem:[#allocation249_spill] sm:$0xff] }
 0x334   : > { %v3529_v33 = vmin.f32 %v3375_v1, %v3528_v21  ;;  %v3614_v28 = vmin.f32 %v3312_v54, %v3613_v27  ;;  %4866 = vpow2.f32 %v4401_v6  ;;  %v7275_v15 = vadd.s32 712, %v6472_v49  ;;  %v9852_v21 = vld [vmem:[#allocation129_spill] sm:$0xff]  ;;  %v9856_v62 = vld [vmem:[#allocation139_spill] sm:$0xff]  ;;  %v7314_v12 = vpop.f32.mrf.mxu1 }
 0x335   : > { %v7278_v55 = vcvt.s32.f32 %v9852_v21  ;;  %v3379_v17 = vsel %vm2930_vm12, %v7159_v36, 896.0  ;;  %v3314_v38 = vsel %vm2865_vm15, %v6841_v29, 896.0  ;;  %vm2934_vm2 = vcmp.le.f32.partialorder %v9855_v31, %v6483_v23  ;;  %v9857_v27 = vld [vmem:[#allocation345_spill] sm:$0xff]  ;;  %v9861_v21 = vld [vmem:[#allocation143_spill] sm:$0xff]  ;;  %9866 = vst [vmem:[#allocation217_spill] sm:$0xff] %v7314_v12 }
 0x336   : > { %v3530_v60 = vmin.f32 %v3377_v44, %v3529_v33  ;;  %vm2869_vm13 = vcmp.le.f32.partialorder %v9856_v62, %v6849_v50  ;;  %v3615_v33 = vmin.f32 %v3314_v38, %v3614_v28  ;;  %v7292_v18 = vadd.s32 720, %v6472_v49  ;;  %v9859_v44 = vld [vmem:[#allocation346_spill] sm:$0xff]  ;;  %v9864_v31 = vld [vmem:[#allocation347_spill] sm:$0xff] }
 0x337   : > { %9853 = vst [vmem:[#allocation214_spill] sm:$0xff] %v7278_v55  ;;  %v7295_v6 = vcvt.s32.f32 %v9857_v27  ;;  %v3381_v25 = vsel %vm2932_vm11, %v7265_v3, 896.0  ;;  %v3316_v54 = vsel %vm2867_vm0, %v9859_v44, 896.0  ;;  %vm2936_vm14 = vcmp.le.f32.partialorder %v9860_v2, %v6483_v23 }
 0x338   : > { %v3531_v1 = vmin.f32 %v3379_v17, %v3530_v60  ;;  %vm2871_vm1 = vcmp.le.f32.partialorder %v9861_v21, %v6849_v50  ;;  %v3616_v28 = vmin.f32 %v3316_v54, %v3615_v33  ;;  %v9862_v17 = vld [vmem:[#allocation133_spill] sm:$0xff]  ;;  %v7310_v62 = vcvt.s32.f32 %v9864_v31  ;;  %v9869_v54 = vld [vmem:[#allocation348_spill] sm:$0xff] }
 0x339   : > { %9858 = vst [vmem:[#allocation91_spill] sm:$0xff] %v7295_v6  ;;  %v7307_v38 = vcvt.s32.f32 %v9862_v17  ;;  %v3383_v27 = vsel %vm2934_vm2, %v7278_v55, 896.0  ;;  %v3318_v26 = vsel %vm2869_vm13, %v6876_v5, 896.0  ;;  %vm2938_vm9 = vcmp.le.f32.partialorder %v9867_v14, %v6483_v23  ;;  %v9871_v21 = vld [vmem:[#allocation349_spill] sm:$0xff]  ;;  %v9874_v14 = vld [vmem:[#allocation151_spill] sm:$0xff] }
 0x33a   : > { %v3532_v60 = vmin.f32 %v3381_v25, %v3531_v1  ;;  %9865 = vst [vmem:[#allocation342_spill] sm:$0xff] %v7310_v62  ;;  %v9868_v25 = vld [vmem:[#allocation147_spill] sm:$0xff]  ;;  %v3617_v33 = vmin.f32 %v3318_v26, %v3616_v28  ;;  %v7321_v2 = vcvt.s32.f32 %v9869_v54  ;;  %v7324_v17 = vcvt.s32.f32 %v9871_v21  ;;  %v9877_v26 = vld [vmem:[#allocation12_spill] sm:$0xff]  ;;  %v9883_v5 = vld [vmem:[#allocation257_spill] sm:$0xff] }
 0x33b   : > { %9863 = vst [vmem:[#allocation125_spill] sm:$0xff] %v7307_v38  ;;  %vm2873_vm10 = vcmp.le.f32.partialorder %v9868_v25, %v6849_v50  ;;  %v3385_v31 = vsel %vm2936_vm14, %v7295_v6, 896.0  ;;  %v3320_v20 = vsel %vm2871_vm1, %v6892_v48, 896.0  ;;  %vm2940_vm12 = vcmp.le.f32.partialorder %v9873_v63, %v6483_v23  ;;  %v7342_v48 = vpop.f32.mrf.mxu1  ;;  %v9880_v63 = vld [vmem:[#allocation255_spill] sm:$0xff] }
 0x33c   : > { %v3533_v1 = vmin.f32 %v3383_v27, %v3532_v60  ;;  %9870 = vst [vmem:[#allocation95_spill] sm:$0xff] %v7321_v2  ;;  %9872 = vst [vmem:[#allocation343_spill] sm:$0xff] %v7324_v17  ;;  %vm2875_vm15 = vcmp.le.f32.partialorder %v9874_v14, %v6849_v50  ;;  %v3618_v60 = vmin.f32 %v3320_v20, %v3617_v33  ;;  %v9875_v27 = vld [vmem:[#allocation137_spill] sm:$0xff]  ;;  %v7336_v25 = vcvt.s32.f32 %v9877_v26  ;;  %v9881_v20 = vld [vmem:[#allocation155_spill] sm:$0xff] }
 0x33d   : > { %v7333_v28 = vcvt.s32.f32 %v9875_v27  ;;  %v3387_v54 = vsel %vm2938_vm9, %v7307_v38, 896.0  ;;  %v3322_v21 = vsel %vm2873_vm10, %v6903_v59, 896.0  ;;  %9879 = vst [vmem:[#allocation223_spill] sm:$0xff] %v7342_v48  ;;  %vm2942_vm11 = vcmp.le.f32.partialorder %v9880_v63, %v6483_v23  ;;  %v9884_v63 = vld [vmem:[#allocation159_spill] sm:$0xff] }
 0x33e   : > { %v3534_v12 = vmin.f32 %v3385_v31, %v3533_v1  ;;  %9878 = vst [vmem:[#allocation99_spill] sm:$0xff] %v7336_v25  ;;  %v7340_v13 = vpop.eup %4864  ;;  %vm2877_vm0 = vcmp.le.f32.partialorder %v9881_v20, %v6849_v50  ;;  %v3619_v33 = vmin.f32 %v3322_v21, %v3618_v60  ;;  %v9882_v31 = vld [vmem:[#allocation141_spill] sm:$0xff]  ;;  %v3389_v27 = vsel %vm2940_vm12, %v7310_v62, 896.0  ;;  %v9885_v60 = vld [vmem:[#allocation259_spill] sm:$0xff] }
 0x33f   : > { %9876 = vst [vmem:[#allocation220_spill] sm:$0xff] %v7333_v28  ;;  %v7349_v14 = vcvt.s32.f32 %v9882_v31  ;;  %v3324_v26 = vsel %vm2875_vm15, %v6916_v7, 896.0  ;;  %v4405_v59 = vadd.f32 1.0, %v7340_v13  ;;  %vm2944_vm2 = vcmp.le.f32.partialorder %v9883_v5, %v6483_v23  ;;  %v9886_v20 = vld [vmem:[#allocation163_spill] sm:$0xff]  ;;  %v7366_v7 = vpop.f32.mrf.mxu1 }
 0x340   : > { %v3535_v1 = vmin.f32 %v3387_v54, %v3534_v12  ;;  %vm2879_vm13 = vcmp.le.f32.partialorder %v9884_v63, %v6849_v50  ;;  %v3620_v12 = vmin.f32 %v3324_v26, %v3619_v33  ;;  %vm2946_vm14 = vcmp.le.f32.partialorder %v9885_v60, %v6483_v23  ;;  %9887 = vst [vmem:[#allocation226_spill] sm:$0xff] %v7366_v7  ;;  %v9888_v33 = vld [vmem:[#allocation261_spill] sm:$0xff] }
 0x341   : > { %v7358_v54 = vpop.eup %4866  ;;  %v3391_v21 = vsel %vm2942_vm11, %v7321_v2, 896.0  ;;  %vm2881_vm1 = vcmp.le.f32.partialorder %v9886_v20, %v6849_v50  ;;  %v3326_v31 = vsel %vm2877_vm0, %v6928_v34, 896.0  ;;  %4868 = vrcp.f32 %v4405_v59  ;;  %v9890_v59 = vld [vmem:[#allocation263_spill] sm:$0xff] }
 0x342   : > { %v3536_v48 = vmin.f32 %v3389_v27, %v3535_v1  ;;  %v3621_v1 = vmin.f32 %v3326_v31, %v3620_v12  ;;  %v4406_v27 = vadd.f32 1.0, %v7358_v54  ;;  %vm2948_vm9 = vcmp.le.f32.partialorder %v9888_v33, %v6483_v23  ;;  %v9893_v31 = vld [vmem:[#allocation171_spill] sm:$0xff] }
 0x343   : > { %v7372_v26 = vcvt.s32.f32 %v6913_v30  ;;  %v3393_v63 = vsel %vm2944_vm2, %v7324_v17, 896.0  ;;  %v3328_v34 = vsel %vm2879_vm13, %v6940_v61, 896.0  ;;  %vm2950_vm12 = vcmp.le.f32.partialorder %v9890_v59, %v6483_v23 }
 0x344   : > { %v3537_v44 = vmin.f32 %v3391_v21, %v3536_v48  ;;  %v9889_v48 = vld [vmem:[#allocation167_spill] sm:$0xff]  ;;  %v3622_v12 = vmin.f32 %v3328_v34, %v3621_v1  ;;  %4870 = vrcp.f32 %v4406_v27  ;;  %v7384_v21 = vcvt.s32.f32 %v6925_v8 }
 0x345   : > { %vm2883_vm10 = vcmp.le.f32.partialorder %v9889_v48, %v6849_v50  ;;  %v3395_v5 = vsel %vm2946_vm14, %v7333_v28, 896.0  ;;  %v3330_v30 = vsel %vm2881_vm1, %v6952_v58, 896.0  ;;  %vm2885_vm15 = vcmp.le.f32.partialorder %v9893_v31, %v6849_v50  ;;  %v9897_v48 = vld [vmem:[#allocation175_spill] sm:$0xff] }
 0x346   : > { %v3538_v29 = vmin.f32 %v3393_v63, %v3537_v44  ;;  %9891 = vst [vmem:[#allocation229_spill] sm:$0xff] %v7384_v21  ;;  %v7394_v44 = vpop.f32.mrf.mxu1  ;;  %v3623_v1 = vmin.f32 %v3330_v30, %v3622_v12  ;;  %v7399_v8 = vcvt.s32.f32 %v6937_v41  ;;  %v7402_v27 = vcvt.s32.f32 %v6949_v4  ;;  %v9896_v63 = vld [vmem:[#allocation265_spill] sm:$0xff] }
 0x347   : > { %9892 = vst [vmem:[#allocation103_spill] sm:$0xff] %v7394_v44  ;;  %v3397_v60 = vsel %vm2948_vm9, %v7336_v25, 896.0  ;;  %v3332_v20 = vsel %vm2883_vm10, %v6964_v56, 896.0  ;;  %vm2952_vm11 = vcmp.le.f32.partialorder %v9896_v63, %v6483_v23  ;;  %vm2887_vm0 = vcmp.le.f32.partialorder %v9897_v48, %v6849_v50  ;;  %v9908_v44 = vld [vmem:[#allocation273_spill] sm:$0xff]  ;;  %v10028_v56 = vld [vmem:[#allocation268_spill] sm:$0xff] }
 0x348   : > { %v3539_v34 = vmin.f32 %v3395_v5, %v3538_v29  ;;  %9894 = vst [vmem:[#allocation232_spill] sm:$0xff] %v7399_v8  ;;  %9895 = vst [vmem:[#allocation235_spill] sm:$0xff] %v7402_v27  ;;  %v3624_v12 = vmin.f32 %v3332_v20, %v3623_v1  ;;  %v7414_v41 = vcvt.s32.f32 %v6961_v46  ;;  %v3399_v4 = vsel %vm2950_vm12, %v7349_v14, 896.0  ;;  %v7421_v31 = vpop.f32.mrf.mxu1  ;;  %v9901_v1 = vld [vmem:[#allocation179_spill] sm:$0xff] }
 0x349   : > { %v3334_v33 = vsel %vm2885_vm15, %v6976_v39, 896.0  ;;  %v4897_v5 = vmov 1966171168   ;;  %9899 = vst [vmem:[#allocation107_spill] sm:$0xff] %v7421_v31  ;;  %vm2889_vm13 = vcmp.le.f32.partialorder %v9901_v1, %v6849_v50  ;;  %v7428_v20 = vcvt.s32.f32 %v6973_v16  ;;  %v9906_v16 = vld [vmem:[#allocation271_spill] sm:$0xff] }
 0x34a   : > { %v3540_v29 = vmin.f32 %v3397_v60, %v3539_v34  ;;  %9898 = vst [vmem:[#allocation238_spill] sm:$0xff] %v7414_v41  ;;  %v4415_v30 = vunpack.c.l.s4 %v4897_v5  ;;  %v9900_v34 = vld [vmem:[#allocation267_spill] sm:$0xff]  ;;  %v3625_v46 = vmin.f32 %v3334_v33, %v3624_v12  ;;  %v7431_v59 = vcvt.s32.f32 %v6985_v51  ;;  %v7446_v63 = vpop.f32.mrf.mxu1 }
 0x34b   : > { %vm2954_vm2 = vcmp.le.f32.partialorder %v9900_v34, %v6483_v23  ;;  %9902 = vst [vmem:[#allocation241_spill] sm:$0xff] %v7428_v20  ;;  %v3401_v48 = vsel %vm2952_vm11, %v7372_v26, 896.0  ;;  %v3336_v5 = vsel %vm2887_vm0, %v6988_v22, 896.0  ;;  %v9904_v34 = vld [vmem:[#allocation269_spill] sm:$0xff]  ;;  %vm2958_vm9 = vcmp.le.f32.partialorder %v9906_v16, %v6483_v23  ;;  %9907 = vst [vmem:[#allocation115_spill] sm:$0xff] %v7446_v63  ;;  %v10002_v22 = vld [vmem:[#allocation254_spill] sm:$0xff] }
 0x34c   : > { %v3541_v60 = vmin.f32 %v3399_v4, %v3540_v29  ;;  %9903 = vst [vmem:[#allocation111_spill] sm:$0xff] %v7431_v59  ;;  %vm2956_vm14 = vcmp.le.f32.partialorder %v9904_v34, %v6483_v23  ;;  %v9905_v4 = vld [vmem:[#allocation183_spill] sm:$0xff]  ;;  %v3626_v12 = vmin.f32 %v3336_v5, %v3625_v46  ;;  %v3403_v51 = vsel %vm2954_vm2, %v7384_v21, 896.0 }
 0x34d   : > { %vm2891_vm1 = vcmp.le.f32.partialorder %v9905_v4, %v6849_v50  ;;  %v3338_v33 = vsel %vm2889_vm13, %v7000_v42, 896.0  ;;  %v4416_v1 = vunpack.c.0.s8 %v4415_v30  ;;  %vm2960_vm10 = vcmp.le.f32.partialorder %v9908_v44, %v6483_v23  ;;  %v9910_v46 = vld [vmem:[#allocation275_spill] sm:$0xff] }
 0x34e   : > { %v3542_v29 = vmin.f32 %v3401_v48, %v3541_v60  ;;  %v9909_v60 = vld [vmem:[#allocation187_spill] sm:$0xff]  ;;  %v3627_v48 = vmin.f32 %v3338_v33, %v3626_v12  ;;  %v4869_v34 = vpop.eup %4868  ;;  %vm2962_vm15 = vcmp.le.f32.partialorder %v9910_v46, %v6483_v23  ;;  %v3405_v5 = vsel %vm2956_vm14, %v7399_v8, 896.0  ;;  %v9922_v46 = vld [vmem:[#allocation281_spill] sm:$0xff] }
 0x34f   : > { %vm2893_vm12 = vcmp.le.f32.partialorder %v9909_v60, %v6849_v50  ;;  %v9911_v4 = vld [vmem:[#allocation191_spill] sm:$0xff]  ;;  %v3340_v30 = vsel %vm2891_vm1, %v7012_v40, 896.0  ;;  %v4403_v42 = vmul.f32 2.0, %v7340_v13  ;;  %v3407_v12 = vsel %vm2958_vm9, %v7402_v27, 896.0 }
 0x350   : > { %v3543_v31 = vmin.f32 %v3403_v51, %v3542_v29  ;;  %vm2895_vm11 = vcmp.le.f32.partialorder %v9911_v4, %v6849_v50  ;;  %v3628_v7 = vmin.f32 %v3340_v30, %v3627_v48  ;;  %v4404_v29 = vmul.f32 2.0, %v7358_v54  ;;  %v9912_v33 = vld [vmem:[#allocation195_spill] sm:$0xff]  ;;  %v9915_v30 = vld [vmem:[#allocation277_spill] sm:$0xff] }
 0x351   : > { %v4871_v51 = vpop.eup %4870  ;;  %vm2897_vm0 = vcmp.le.f32.partialorder %v9912_v33, %v6849_v50  ;;  %v3342_v60 = vsel %vm2893_vm12, %v7021_v9, 896.0  ;;  %v7468_v40 = vsub.s32 %v4416_v1, %v6472_v49  ;;  %vm2964_vm2 = vcmp.le.f32.partialorder %v9915_v30, %v6483_v23 }
 0x352   : > { %v3544_v63 = vmin.f32 %v3405_v5, %v3543_v31  ;;  %v7470_v31 = vpop.f32.mrf.mxu1  ;;  %v3629_v48 = vmin.f32 %v3342_v60, %v3628_v7  ;;  %v4409_v5 = vmul.f32 %v4869_v34, %v4403_v42  ;;  %v4410_v54 = vmul.f32 %v4871_v51, %v4404_v29  ;;  %v9917_v42 = vld [vmem:[#allocation198_spill] sm:$0xff] }
 0x353   : > { %9913 = vst [vmem:[#allocation119_spill] sm:$0xff] %v7468_v40  ;;  %9914 = vst [vmem:[#allocation123_spill] sm:$0xff] %v7470_v31  ;;  %v7475_v16 = vcvt.s32.f32 %v6997_v47  ;;  %v3409_v9 = vsel %vm2960_vm10, %v7414_v41, 896.0  ;;  %v3344_v1 = vsel %vm2895_vm11, %v7024_v32, 896.0  ;;  %vm2899_vm13 = vcmp.le.f32.partialorder %v9917_v42, %v6849_v50  ;;  %v9918_v47 = vld [vmem:[#allocation279_spill] sm:$0xff]  ;;  %v9979_v32 = vld [vmem:[#allocation240_spill] sm:$0xff] }
 0x354   : > { %v3545_v13 = vmin.f32 %v3407_v12, %v3544_v63  ;;  %v3630_v63 = vmin.f32 %v3344_v1, %v3629_v48  ;;  %v4413_v34 = vcombine.low %v4409_v5, %v4410_v54  ;;  %vm2966_vm14 = vcmp.le.f32.partialorder %v9918_v47, %v6483_v23  ;;  %v7501_v4 = vpop.f32.mrf.mxu1  ;;  %v9921_v12 = vld [vmem:[#allocation201_spill] sm:$0xff]  ;;  %v9927_v1 = vld [vmem:[#allocation204_spill] sm:$0xff] }
 0x355   : > { %9916 = vst [vmem:[#allocation109_spill] sm:$0xff] %v7475_v16  ;;  %v7491_v29 = vcvt.s32.f32 %v7009_v24  ;;  %v3411_v44 = vsel %vm2962_vm15, %v7428_v20, 896.0  ;;  %9920 = vst [vmem:[#allocation127_spill] sm:$0xff] %v7501_v4  ;;  %vm2901_vm1 = vcmp.le.f32.partialorder %v9921_v12, %v6849_v50  ;;  %vm2968_vm9 = vcmp.le.f32.partialorder %v9922_v46, %v6483_v23  ;;  %v9943_v4 = vld [vmem:[#allocation216_spill] sm:$0xff] }
 0x356   : > { %v3546_v7 = vmin.f32 %v3409_v9, %v3545_v13  ;;  %v3346_v9 = vsel %vm2897_vm0, %v7033_v11, 896.0  ;;  %v4420_v24 = vrot.slane %v4413_v34, %v7468_v40  ;;  %v3413_v33 = vsel %vm2964_vm2, %v7431_v59, 896.0 }
 0x357   : > { %9919 = vst [vmem:[#allocation113_spill] sm:$0xff] %v7491_v29  ;;  %v3631_v60 = vmin.f32 %v3346_v9, %v3630_v63  ;;  %v3348_v13 = vsel %vm2899_vm13, %v7036_v0, 896.0  ;;  %v9923_v48 = vlaneseq  ;;  %v9924_v5 = vmov 0  ;;  %v7535_v9 = vpop.f32.mrf.mxu1  ;;  %v9970_v0 = vld [vmem:[#allocation234_spill] sm:$0xff] }
 0x358   : > { %v3547_v51 = vmin.f32 %v3411_v44, %v3546_v7  ;;  %vm2903_vm12 = vcmp.le.f32.partialorder %v9927_v1, %v6849_v50  ;;  %v4427_v42 = vrot.slane %v4420_v24, %v7468_v40  ;;  %v3108_v63 = vadd.s32 728, %v6472_v49  ;;  %9929 = vst [vmem:[#allocation131_spill] sm:$0xff] %v7535_v9  ;;  %v9938_v1 = vld [vmem:[#allocation287_spill] sm:$0xff]  ;;  %v9942_v40 = vld [vmem:[#allocation289_spill] sm:$0xff] }
 0x359   : > { %vm7519_vm10 = vcmp.lt.s32.totalorder %v9923_v48, 256  ;;  %v3632_v7 = vmin.f32 %v3348_v13, %v3631_v60  ;;  %v7528_v34 = vcvt.s32.f32 %v7275_v15  ;;  %v3415_v30 = vsel %vm2966_vm14, %v7475_v16, 896.0  ;;  %v9931_v60 = vld [vmem:[#allocation207_spill] sm:$0xff]  ;;  %v9933_v48 = vld [vmem:[#allocation285_spill] sm:$0xff] }
 0x35a   : > { %v9925_v5 = vsel %vm7519_vm10, 4294967295, %v9924_v5  ;;  %v3548_v54 = vmin.f32 %v3413_v33, %v3547_v51  ;;  %v3350_v44 = vsel %vm2901_vm1, %v7045_v57, 896.0  ;;  %v9930_v51 = vld [vmem:[#allocation283_spill] sm:$0xff]  ;;  %vm2905_vm11 = vcmp.le.f32.partialorder %v9931_v60, %v6849_v50  ;;  %4433 = vst.msk [vmem:[%s239_s27] sm:$0x3] %vm7519_vm10, %v4427_v42  ;;  %v7564_v60 = vpop.f32.mrf.mxu1 }
 0x35b   : > { %9926 = vst [vmem:[#allocation243_spill] sm:$0xff] %v9925_v5  ;;  %9928 = vst [vmem:[#allocation117_spill] sm:$0xff] %v7528_v34  ;;  %vm2970_vm15 = vcmp.le.f32.partialorder %v9930_v51, %v6483_v23  ;;  %v3633_v24 = vmin.f32 %v3350_v44, %v3632_v7  ;;  %v3109_v15 = vadd.s32 736, %v6472_v49  ;;  %v7545_v47 = vcvt.s32.f32 %v7292_v18  ;;  %v9934_v7 = vld [vmem:[#allocation210_spill] sm:$0xff]  ;;  %v9936_v44 = vld [vmem:[#allocation173_spill] sm:$0xff] }
 0x35c   : > { %v3549_v12 = vmin.f32 %v3415_v30, %v3548_v54  ;;  %v3417_v33 = vsel %vm2968_vm9, %v7491_v29, 896.0  ;;  %v3352_v13 = vsel %vm2903_vm12, %v7048_v35, 896.0  ;;  %vm2972_vm0 = vcmp.le.f32.partialorder %v9933_v48, %v6483_v23  ;;  %9937 = vst [vmem:[#allocation129_spill] sm:$0xff] %v7564_v60  ;;  %v9941_v48 = vld [vmem:[#allocation45_spill] sm:$0xff]  ;;  %v9947_v9 = vld [vmem:[#allocation291_spill] sm:$0xff]  ;;  %v9961_v35 = vld [vmem:[#allocation228_spill] sm:$0xff] }
 0x35d   : > { %9932 = vst [vmem:[#allocation245_spill] sm:$0xff] %v7545_v47  ;;  %vm2907_vm2 = vcmp.le.f32.partialorder %v9934_v7, %v6849_v50  ;;  %v3634_v42 = vmin.f32 %v3352_v13, %v3633_v24  ;;  %v3110_v18 = vadd.s32 744, %v6472_v49  ;;  %v7560_v30 = vcvt.s32.f32 %v3108_v63 }
 0x35e   : > { %v3550_v54 = vmin.f32 %v3417_v33, %v3549_v12  ;;  %v3419_v46 = vsel %vm2970_vm15, %v7528_v34, 896.0  ;;  %v3354_v51 = vsel %vm2905_vm11, %v9936_v44, 896.0  ;;  %vm2974_vm13 = vcmp.le.f32.partialorder %v9938_v1, %v6483_v23  ;;  %v9939_v12 = vld [vmem:[#allocation213_spill] sm:$0xff] }
 0x35f   : > { %9935 = vst [vmem:[#allocation135_spill] sm:$0xff] %v7560_v30  ;;  %vm2909_vm14 = vcmp.le.f32.partialorder %v9939_v12, %v6849_v50  ;;  %v3635_v33 = vmin.f32 %v3354_v51, %v3634_v42  ;;  %v3111_v24 = vadd.s32 752, %v6472_v49  ;;  %v7571_v13 = vcvt.s32.f32 %v3109_v15  ;;  %v9945_v15 = vld [vmem:[#allocation177_spill] sm:$0xff]  ;;  %v7584_v12 = vpop.f32.mrf.mxu1 }
 0x360   : > { %v3551_v5 = vmin.f32 %v3419_v46, %v3550_v54  ;;  %v3421_v63 = vsel %vm2972_vm0, %v7545_v47, 896.0  ;;  %v3356_v7 = vsel %vm2907_vm2, %v9941_v48, 896.0  ;;  %vm2976_vm1 = vcmp.le.f32.partialorder %v9942_v40, %v6483_v23  ;;  %9946 = vst [vmem:[#allocation345_spill] sm:$0xff] %v7584_v12  ;;  %v9948_v40 = vld [vmem:[#allocation219_spill] sm:$0xff]  ;;  %v9952_v48 = vld [vmem:[#allocation222_spill] sm:$0xff] }
 0x361   : > { %9940 = vst [vmem:[#allocation247_spill] sm:$0xff] %v7571_v13  ;;  %vm2911_vm9 = vcmp.le.f32.partialorder %v9943_v4, %v6849_v50  ;;  %v3636_v54 = vmin.f32 %v3356_v7, %v3635_v33  ;;  %v3112_v46 = vadd.s32 760, %v6472_v49  ;;  %v7580_v1 = vcvt.s32.f32 %v3110_v18 }
 0x362   : > { %v3552_v60 = vmin.f32 %v3421_v63, %v3551_v5  ;;  %v3423_v42 = vsel %vm2974_vm13, %v7560_v30, 896.0  ;;  %v3358_v51 = vsel %vm2909_vm14, %v9945_v15, 896.0  ;;  %vm2978_vm12 = vcmp.le.f32.partialorder %v9947_v9, %v6483_v23  ;;  %v9950_v63 = vld [vmem:[#allocation49_spill] sm:$0xff] }
 0x363   : > { %9944 = vst [vmem:[#allocation139_spill] sm:$0xff] %v7580_v1  ;;  %vm2913_vm15 = vcmp.le.f32.partialorder %v9948_v40, %v6849_v50  ;;  %v3637_v5 = vmin.f32 %v3358_v51, %v3636_v54  ;;  %v3113_v4 = vadd.s32 768, %v6472_v49  ;;  %v7591_v33 = vcvt.s32.f32 %v3111_v24  ;;  %v9951_v15 = vld [vmem:[#allocation293_spill] sm:$0xff]  ;;  %v7604_v40 = vpop.f32.mrf.mxu1 }
 0x364   : > { %v3553_v31 = vmin.f32 %v3423_v42, %v3552_v60  ;;  %v3425_v18 = vsel %vm2976_vm1, %v7571_v13, 896.0  ;;  %v3360_v7 = vsel %vm2911_vm9, %v9950_v63, 896.0  ;;  %vm2980_vm11 = vcmp.le.f32.partialorder %v9951_v15, %v6483_v23  ;;  %v9954_v24 = vld [vmem:[#allocation181_spill] sm:$0xff]  ;;  %9955 = vst [vmem:[#allocation133_spill] sm:$0xff] %v7604_v40  ;;  %v9956_v63 = vld [vmem:[#allocation295_spill] sm:$0xff] }
 0x365   : > { %9949 = vst [vmem:[#allocation249_spill] sm:$0xff] %v7591_v33  ;;  %vm2915_vm0 = vcmp.le.f32.partialorder %v9952_v48, %v6849_v50  ;;  %v3638_v9 = vmin.f32 %v3360_v7, %v3637_v5  ;;  %v3114_v60 = vadd.s32 776, %v6472_v49  ;;  %v7600_v42 = vcvt.s32.f32 %v3112_v46 }
 0x366   : > { %v3554_v12 = vmin.f32 %v3425_v18, %v3553_v31  ;;  %v3427_v54 = vsel %vm2978_vm12, %v7580_v1, 896.0  ;;  %v3362_v51 = vsel %vm2913_vm15, %v9954_v24, 896.0  ;;  %vm2982_vm2 = vcmp.le.f32.partialorder %v9956_v63, %v6483_v23  ;;  %v9957_v31 = vld [vmem:[#allocation225_spill] sm:$0xff]  ;;  %v9959_v18 = vld [vmem:[#allocation52_spill] sm:$0xff] }
 0x367   : > { %9953 = vst [vmem:[#allocation143_spill] sm:$0xff] %v7600_v42  ;;  %vm2917_vm13 = vcmp.le.f32.partialorder %v9957_v31, %v6849_v50  ;;  %v3639_v15 = vmin.f32 %v3362_v51, %v3638_v9  ;;  %v3115_v48 = vadd.s32 784, %v6472_v49  ;;  %v7611_v5 = vcvt.s32.f32 %v3113_v4  ;;  %v9960_v24 = vld [vmem:[#allocation297_spill] sm:$0xff]  ;;  %v7624_v31 = vpop.f32.mrf.mxu1 }
 0x368   : > { %v3555_v44 = vmin.f32 %v3427_v54, %v3554_v12  ;;  %v3429_v46 = vsel %vm2980_vm11, %v7591_v33, 896.0  ;;  %v3364_v7 = vsel %vm2915_vm0, %v9959_v18, 896.0  ;;  %vm2984_vm14 = vcmp.le.f32.partialorder %v9960_v24, %v6483_v23  ;;  %v9963_v4 = vld [vmem:[#allocation185_spill] sm:$0xff]  ;;  %9964 = vst [vmem:[#allocation147_spill] sm:$0xff] %v7624_v31  ;;  %v9965_v18 = vld [vmem:[#allocation299_spill] sm:$0xff] }
 0x369   : > { %9958 = vst [vmem:[#allocation347_spill] sm:$0xff] %v7611_v5  ;;  %vm2919_vm1 = vcmp.le.f32.partialorder %v9961_v35, %v6849_v50  ;;  %v3640_v12 = vmin.f32 %v3364_v7, %v3639_v15  ;;  %v3116_v63 = vadd.s32 792, %v6472_v49  ;;  %v7620_v54 = vcvt.s32.f32 %v3114_v60 }
 0x36a   : > { %v3556_v40 = vmin.f32 %v3429_v46, %v3555_v44  ;;  %v3431_v9 = vsel %vm2982_vm2, %v7600_v42, 896.0  ;;  %v3366_v51 = vsel %vm2917_vm13, %v9963_v4, 896.0  ;;  %vm2986_vm9 = vcmp.le.f32.partialorder %v9965_v18, %v6483_v23  ;;  %v9966_v44 = vld [vmem:[#allocation231_spill] sm:$0xff]  ;;  %v9968_v46 = vld [vmem:[#allocation189_spill] sm:$0xff] }
 0x36b   : > { %9962 = vst [vmem:[#allocation251_spill] sm:$0xff] %v7620_v54  ;;  %vm2921_vm12 = vcmp.le.f32.partialorder %v9966_v44, %v6849_v50  ;;  %v3641_v24 = vmin.f32 %v3366_v51, %v3640_v12  ;;  %v3117_v35 = vadd.s32 800, %v6472_v49  ;;  %v7631_v15 = vcvt.s32.f32 %v3115_v48  ;;  %v9969_v4 = vld [vmem:[#allocation301_spill] sm:$0xff]  ;;  %v9972_v48 = vld [vmem:[#allocation60_spill] sm:$0xff]  ;;  %v7644_v44 = vpop.f32.mrf.mxu1 }
 0x36c   : > { %v3557_v57 = vmin.f32 %v3431_v9, %v3556_v40  ;;  %v3433_v60 = vsel %vm2984_vm14, %v7611_v5, 896.0  ;;  %v3368_v7 = vsel %vm2919_vm1, %v9968_v46, 896.0  ;;  %vm2988_vm15 = vcmp.le.f32.partialorder %v9969_v4, %v6483_v23  ;;  %9973 = vst [vmem:[#allocation253_spill] sm:$0xff] %v7644_v44  ;;  %v9974_v46 = vld [vmem:[#allocation303_spill] sm:$0xff] }
 0x36d   : > { %9967 = vst [vmem:[#allocation348_spill] sm:$0xff] %v7631_v15  ;;  %vm2923_vm11 = vcmp.le.f32.partialorder %v9970_v0, %v6849_v50  ;;  %v3642_v40 = vmin.f32 %v3368_v7, %v3641_v24  ;;  %v3118_v18 = vadd.s32 808, %v6472_v49  ;;  %v7640_v9 = vcvt.s32.f32 %v3116_v63 }
 0x36e   : > { %v3558_v31 = vmin.f32 %v3433_v60, %v3557_v57  ;;  %v3435_v12 = vsel %vm2986_vm9, %v7620_v54, 896.0  ;;  %v3370_v51 = vsel %vm2921_vm12, %v9972_v48, 896.0  ;;  %vm2990_vm0 = vcmp.le.f32.partialorder %v9974_v46, %v6483_v23  ;;  %v9975_v57 = vld [vmem:[#allocation237_spill] sm:$0xff]  ;;  %v9977_v60 = vld [vmem:[#allocation196_spill] sm:$0xff] }
 0x36f   : > { %9971 = vst [vmem:[#allocation349_spill] sm:$0xff] %v7640_v9  ;;  %vm2925_vm2 = vcmp.le.f32.partialorder %v9975_v57, %v6849_v50  ;;  %v3643_v4 = vmin.f32 %v3370_v51, %v3642_v40  ;;  %v3119_v0 = vadd.s32 816, %v6472_v49  ;;  %v7651_v24 = vcvt.s32.f32 %v3117_v35  ;;  %v9978_v48 = vld [vmem:[#allocation305_spill] sm:$0xff]  ;;  %v7664_v51 = vpop.f32.mrf.mxu1  ;;  %v9982_v57 = vld [vmem:[#allocation307_spill] sm:$0xff] }
 0x370   : > { %v3559_v11 = vmin.f32 %v3435_v12, %v3558_v31  ;;  %v3437_v63 = vsel %vm2988_vm15, %v7631_v15, 896.0  ;;  %v3372_v7 = vsel %vm2923_vm11, %v9977_v60, 896.0  ;;  %vm2992_vm13 = vcmp.le.f32.partialorder %v9978_v48, %v6483_v23  ;;  %9981 = vst [vmem:[#allocation12_spill] sm:$0xff] %v7664_v51 }
 0x371   : > { %9976 = vst [vmem:[#allocation151_spill] sm:$0xff] %v7651_v24  ;;  %vm2927_vm14 = vcmp.le.f32.partialorder %v9979_v32, %v6849_v50  ;;  %v3644_v31 = vmin.f32 %v3372_v7, %v3643_v4  ;;  %v3120_v46 = vadd.s32 824, %v6472_v49  ;;  %v7660_v12 = vcvt.s32.f32 %v3118_v18  ;;  %v9985_v7 = vld [vmem:[#allocation309_spill] sm:$0xff] }
 0x372   : > { %v3560_v44 = vmin.f32 %v3437_v63, %v3559_v11  ;;  %v3439_v40 = vsel %vm2990_vm0, %v7640_v9, 896.0  ;;  %v3374_v35 = vsel %vm2925_vm2, %v7141_v52, 896.0  ;;  %vm2994_vm1 = vcmp.le.f32.partialorder %v9982_v57, %v6483_v23  ;;  %v9983_v11 = vld [vmem:[#allocation242_spill] sm:$0xff]  ;;  %v9986_v52 = vld [vmem:[#allocation244_spill] sm:$0xff] }
 0x373   : > { %9980 = vst [vmem:[#allocation137_spill] sm:$0xff] %v7660_v12  ;;  %vm2929_vm9 = vcmp.le.f32.partialorder %v9983_v11, %v6849_v50  ;;  %v3645_v48 = vmin.f32 %v3374_v35, %v3644_v31  ;;  %v3121_v32 = vadd.s32 832, %v6472_v49  ;;  %v7671_v4 = vcvt.s32.f32 %v3119_v0  ;;  %v7684_v35 = vpop.f32.mrf.mxu1  ;;  %v9989_v11 = vld [vmem:[#allocation311_spill] sm:$0xff] }
 0x374   : > { %v3561_v60 = vmin.f32 %v3439_v40, %v3560_v44  ;;  %v3441_v18 = vsel %vm2992_vm13, %v7651_v24, 896.0  ;;  %v3376_v63 = vsel %vm2927_vm14, %v7144_v19, 896.0  ;;  %vm2996_vm12 = vcmp.le.f32.partialorder %v9985_v7, %v6483_v23  ;;  %9988 = vst [vmem:[#allocation141_spill] sm:$0xff] %v7684_v35  ;;  %v9992_v7 = vld [vmem:[#allocation313_spill] sm:$0xff] }
 0x375   : > { %9984 = vst [vmem:[#allocation255_spill] sm:$0xff] %v7671_v4  ;;  %vm2931_vm15 = vcmp.le.f32.partialorder %v9986_v52, %v6849_v50  ;;  %v3646_v44 = vmin.f32 %v3376_v63, %v3645_v48  ;;  %v3122_v40 = vadd.s32 840, %v6472_v49  ;;  %v7680_v57 = vcvt.s32.f32 %v3120_v46 }
 0x376   : > { %v3562_v51 = vmin.f32 %v3441_v18, %v3561_v60  ;;  %v3443_v31 = vsel %vm2994_vm1, %v7660_v12, 896.0  ;;  %v3378_v0 = vsel %vm2929_vm9, %v7156_v45, 896.0  ;;  %vm2998_vm11 = vcmp.le.f32.partialorder %v9989_v11, %v6483_v23  ;;  %v9990_v60 = vld [vmem:[#allocation246_spill] sm:$0xff]  ;;  %v9993_v45 = vld [vmem:[#allocation248_spill] sm:$0xff] }
 0x377   : > { %9987 = vst [vmem:[#allocation155_spill] sm:$0xff] %v7680_v57  ;;  %vm2933_vm0 = vcmp.le.f32.partialorder %v9990_v60, %v6849_v50  ;;  %v3647_v18 = vmin.f32 %v3378_v0, %v3646_v44  ;;  %v3123_v52 = vadd.s32 848, %v6472_v49  ;;  %v7691_v48 = vcvt.s32.f32 %v3121_v32  ;;  %v7704_v0 = vpop.f32.mrf.mxu1  ;;  %v9996_v60 = vld [vmem:[#allocation315_spill] sm:$0xff] }
 0x378   : > { %v3563_v19 = vmin.f32 %v3443_v31, %v3562_v51  ;;  %v3445_v46 = vsel %vm2996_vm12, %v7671_v4, 896.0  ;;  %v3380_v63 = vsel %vm2931_vm15, %v7159_v36, 896.0  ;;  %vm3000_vm2 = vcmp.le.f32.partialorder %v9992_v7, %v6483_v23  ;;  %9995 = vst [vmem:[#allocation259_spill] sm:$0xff] %v7704_v0  ;;  %v9999_v0 = vld [vmem:[#allocation252_spill] sm:$0xff] }
 0x379   : > { %9991 = vst [vmem:[#allocation257_spill] sm:$0xff] %v7691_v48  ;;  %vm2935_vm13 = vcmp.le.f32.partialorder %v9993_v45, %v6849_v50  ;;  %v3648_v51 = vmin.f32 %v3380_v63, %v3647_v18  ;;  %v3124_v31 = vadd.s32 856, %v6472_v49  ;;  %v7700_v11 = vcvt.s32.f32 %v3122_v40 }
 0x37a   : > { %v3564_v35 = vmin.f32 %v3445_v46, %v3563_v19  ;;  %v3447_v44 = vsel %vm2998_vm11, %v7680_v57, 896.0  ;;  %v3382_v32 = vsel %vm2933_vm0, %v7265_v3, 896.0  ;;  %vm3002_vm14 = vcmp.le.f32.partialorder %v9996_v60, %v6483_v23  ;;  %v9997_v19 = vld [vmem:[#allocation250_spill] sm:$0xff] }
 0x37b   : > { %9994 = vst [vmem:[#allocation159_spill] sm:$0xff] %v7700_v11  ;;  %vm2937_vm1 = vcmp.le.f32.partialorder %v9997_v19, %v6849_v50  ;;  %v3649_v46 = vmin.f32 %v3382_v32, %v3648_v51  ;;  %v3125_v45 = vadd.s32 864, %v6472_v49  ;;  %v7711_v18 = vcvt.s32.f32 %v3123_v52  ;;  %v7723_v32 = vpop.f32.mrf.mxu1 }
 0x37c   : > { %v3565_v36 = vmin.f32 %v3447_v44, %v3564_v35  ;;  %v3449_v40 = vsel %vm3000_vm2, %v7691_v48, 896.0  ;;  %v3384_v63 = vsel %vm2935_vm13, %v7278_v55, 896.0  ;;  %v3126_v7 = vadd.s32 872, %v6472_v49  ;;  %10001 = vst [vmem:[#allocation167_spill] sm:$0xff] %v7723_v32  ;;  %v10005_v32 = vld [vmem:[#allocation69_spill] sm:$0xff] }
 0x37d   : > { %9998 = vst [vmem:[#allocation163_spill] sm:$0xff] %v7711_v18  ;;  %vm2939_vm9 = vcmp.le.f32.partialorder %v9999_v0, %v6849_v50  ;;  %v3650_v60 = vmin.f32 %v3384_v63, %v3649_v46  ;;  %v3127_v35 = vadd.s32 880, %v6472_v49  ;;  %v7719_v44 = vcvt.s32.f32 %v3124_v31  ;;  %v7753_v39 = vpop.f32.mrf.mxu1 }
 0x37e   : > { %v3566_v3 = vmin.f32 %v3449_v40, %v3565_v36  ;;  %v3451_v51 = vsel %vm3002_vm14, %v7700_v11, 896.0  ;;  %v3386_v52 = vsel %vm2937_vm1, %v7295_v6, 896.0  ;;  %v3128_v19 = vadd.s32 888, %v6472_v49  ;;  %10010 = vst [vmem:[#allocation265_spill] sm:$0xff] %v7753_v39 }
 0x37f   : > { %10000 = vst [vmem:[#allocation261_spill] sm:$0xff] %v7719_v44  ;;  %vm2941_vm12 = vcmp.le.f32.partialorder %v10002_v22, %v6849_v50  ;;  %v3651_v36 = vmin.f32 %v3386_v52, %v3650_v60  ;;  %v7729_v0 = vcvt.s32.f32 %v6472_v49  ;;  %v7731_v46 = vcvt.s32.f32 %v3125_v45  ;;  %v10007_v60 = vld [vmem:[#allocation73_spill] sm:$0xff]  ;;  %v7782_v39 = vpop.f32.mrf.mxu1 }
 0x380   : > { %v3567_v55 = vmin.f32 %v3451_v51, %v3566_v3  ;;  %v3453_v40 = vsel %vm3004_vm3, %v7711_v18, 896.0  ;;  %v3388_v63 = vsel %vm2939_vm9, %v7307_v38, 896.0  ;;  %v7739_v6 = vcvt.s32.f32 %v10005_v32  ;;  %v10006_v51 = vld [vmem:[#allocation256_spill] sm:$0xff]  ;;  %v10011_v32 = vld [vmem:[#allocation77_spill] sm:$0xff]  ;;  %10021 = vst [vmem:[#allocation179_spill] sm:$0xff] %v7782_v39 }
 0x381   : > { %10003 = vst [vmem:[#allocation263_spill] sm:$0xff] %v7731_v46  ;;  %vm2943_vm15 = vcmp.le.f32.partialorder %v10006_v51, %v6849_v50  ;;  %v3652_v22 = vmin.f32 %v3388_v63, %v3651_v36  ;;  %v7744_v49 = vcvt.s32.f32 %v10007_v60  ;;  %v7746_v45 = vcvt.s32.f32 %v3126_v7  ;;  %v10012_v36 = vld [vmem:[#allocation258_spill] sm:$0xff] }
 0x382   : > { %v3568_v3 = vmin.f32 %v3453_v40, %v3567_v55  ;;  %v3455_v31 = vsel %vm3006_vm4, %v7719_v44, 896.0  ;;  %v3390_v38 = vsel %vm2941_vm12, %v7310_v62, 896.0  ;;  %v7756_v55 = vcvt.s32.f32 %v10011_v32  ;;  %v10013_v7 = vld [vmem:[#allocation2_spill] sm:$0xff] }
 0x383   : > { %10008 = vst [vmem:[#allocation171_spill] sm:$0xff] %v7746_v45  ;;  %vm2945_vm3 = vcmp.le.f32.partialorder %v10012_v36, %v6849_v50  ;;  %v3653_v63 = vmin.f32 %v3390_v38, %v3652_v22  ;;  %vm2792_vm11 = vcmp.le.f32.partialorder %v10013_v7, %v6483_v23  ;;  %v7762_v51 = vcvt.s32.f32 %v3127_v35  ;;  %v10016_v32 = vld [vmem:[#allocation6_spill] sm:$0xff]  ;;  %v10018_v22 = vld [vmem:[#allocation4_spill] sm:$0xff] }
 0x384   : > { %v3569_v40 = vmin.f32 %v3455_v31, %v3568_v3  ;;  %v3457_v52 = vsel %vm3008_vm5, %v7731_v46, 896.0  ;;  %v3392_v62 = vsel %vm2943_vm15, %v7321_v2, 896.0  ;;  %vm2796_vm4 = vcmp.le.f32.partialorder %v10016_v32, %v6483_v23  ;;  %v10017_v31 = vld [vmem:[#allocation260_spill] sm:$0xff] }
 0x385   : > { %10014 = vst [vmem:[#allocation175_spill] sm:$0xff] %v7762_v51  ;;  %vm2947_vm0 = vcmp.le.f32.partialorder %v10017_v31, %v6849_v50  ;;  %v3654_v38 = vmin.f32 %v3392_v62, %v3653_v63  ;;  %vm2794_vm2 = vcmp.le.f32.partialorder %v10018_v22, %v6483_v23  ;;  %v7775_v35 = vcvt.s32.f32 %v3128_v19  ;;  %v10023_v62 = vld [vmem:[#allocation262_spill] sm:$0xff] }
 0x386   : > { %v3570_v3 = vmin.f32 %v3457_v52, %v3569_v40  ;;  %v3459_v60 = vsel %vm3010_vm6, %v7746_v45, 896.0  ;;  %v3394_v2 = vsel %vm2945_vm3, %v7324_v17, 896.0  ;;  %v10022_v40 = vld [vmem:[#allocation8_spill] sm:$0xff]  ;;  %vm2949_vm13 = vcmp.le.f32.partialorder %v10023_v62, %v6849_v50 }
 0x387   : > { %10019 = vst [vmem:[#allocation267_spill] sm:$0xff] %v7775_v35  ;;  %vm2798_vm5 = vcmp.le.f32.partialorder %v10022_v40, %v6483_v23  ;;  %v3655_v63 = vmin.f32 %v3394_v2, %v3654_v38  ;;  %v3241_v19 = vsel %vm2792_vm11, %v7729_v0, 896.0  ;;  %v3245_v32 = vsel %vm2796_vm4, %v7744_v49, 896.0 }
 0x388   : > { %v3571_v52 = vmin.f32 %v3459_v60, %v3570_v3  ;;  %v3461_v36 = vsel %vm3012_vm7, %v7762_v51, 896.0  ;;  %v3396_v39 = vsel %vm2947_vm0, %v7333_v28, 896.0  ;;  %v10025_v3 = vld [vmem:[#allocation264_spill] sm:$0xff]  ;;  %v3243_v2 = vsel %vm2794_vm2, %v7739_v6, 896.0  ;;  %v7810_v28 = vpop.f32.mrf.mxu1 }
 0x389   : > { %vm2951_vm6 = vcmp.le.f32.partialorder %v10025_v3, %v6849_v50  ;;  %v3656_v60 = vmin.f32 %v3396_v39, %v3655_v63  ;;  %v3247_v7 = vsel %vm2798_vm5, %v7756_v55, 896.0  ;;  %v3463_v62 = vsel %vm3014_vm8, %v7775_v35, 896.0  ;;  %v10027_v39 = vld [vmem:[#allocation266_spill] sm:$0xff] }
 0x38a   : > { %v3572_v40 = vmin.f32 %v3461_v36, %v3571_v52  ;;  %v3398_v31 = vsel %vm2949_vm13, %v7336_v25, 896.0  ;;  %v3465_v36 = vmin.f32 %v3241_v19, %v3245_v32  ;;  %vm2953_vm7 = vcmp.le.f32.partialorder %v10027_v39, %v6849_v50  ;;  %v7818_v38 = vpop.f32.mrf.mxu1 }
 0x38b   : > { %v3657_v63 = vmin.f32 %v3398_v31, %v3656_v60  ;;  %v3400_v22 = vsel %vm2951_vm6, %v7349_v14, 896.0  ;;  %v3466_v17 = vmin.f32 %v3243_v2, %v3247_v7  ;;  %vm2955_vm14 = vcmp.le.f32.partialorder %v10028_v56, %v6849_v50  ;;  %10029 = vst [vmem:[#allocation269_spill] sm:$0xff] %v7818_v38  ;;  %v10031_v60 = vld [vmem:[#allocation272_spill] sm:$0xff]  ;;  %v10032_v56 = vld [vmem:[#allocation274_spill] sm:$0xff] }
 0x38c   : > { %v3573_v52 = vmin.f32 %v3463_v62, %v3572_v40  ;;  %v3402_v23 = vsel %vm2953_vm7, %v7372_v26, 896.0  ;;  %v10030_v40 = vld [vmem:[#allocation270_spill] sm:$0xff]  ;;  %v3404_v32 = vsel %vm2955_vm14, %v7384_v21, 896.0  ;;  %vm2959_vm1 = vcmp.le.f32.partialorder %v10031_v60, %v6849_v50  ;;  %v7826_v7 = vpop.f32.mrf.mxu1 }
 0x38d   : > { %v3658_v58 = vmin.f32 %v3400_v22, %v3657_v63  ;;  %vm2957_vm8 = vcmp.le.f32.partialorder %v10030_v40, %v6849_v50  ;;  %vm2961_vm9 = vcmp.le.f32.partialorder %v10032_v56, %v6849_v50  ;;  %v10035_v63 = vld [vmem:[#allocation278_spill] sm:$0xff]  ;;  %v10038_v56 = vld [vmem:[#allocation284_spill] sm:$0xff] }
 0x38e   : > { %v3574_v3 = vmin.f32 %v3465_v36, %v3573_v52  ;;  %v3406_v2 = vsel %vm2957_vm8, %v7399_v8, 896.0  ;;  %v10033_v52 = vld [vmem:[#allocation276_spill] sm:$0xff]  ;;  %v3410_v36 = vsel %vm2961_vm9, %v7414_v41, 896.0  ;;  %v7834_v39 = vpop.f32.mrf.mxu1  ;;  %vm2965_vm15 = vcmp.le.f32.partialorder %v10035_v63, %v6849_v50  ;;  %v10037_v60 = vld [vmem:[#allocation282_spill] sm:$0xff]  ;;  %v10133_v8 = vld [vmem:[#allocation93_spill] sm:$0xff] }
 0x38f   : > { %v3659_v19 = vmin.f32 %v3402_v23, %v3658_v58  ;;  %vm2963_vm12 = vcmp.le.f32.partialorder %v10033_v52, %v6849_v50  ;;  %10034 = vst [vmem:[#allocation183_spill] sm:$0xff] %v7834_v39  ;;  %v10036_v23 = vld [vmem:[#allocation280_spill] sm:$0xff]  ;;  %vm2969_vm11 = vcmp.le.f32.partialorder %v10037_v60, %v6849_v50  ;;  %vm2971_vm4 = vcmp.le.f32.partialorder %v10038_v56, %v6849_v50 }
 0x390   : > { %v3575_v25 = vmin.f32 %v3466_v17, %v3574_v3  ;;  %v3408_v17 = vsel %vm2959_vm1, %v7402_v27, 896.0  ;;  %v3412_v3 = vsel %vm2963_vm12, %v7428_v20, 896.0  ;;  %vm2967_vm3 = vcmp.le.f32.partialorder %v10036_v23, %v6849_v50  ;;  %v10123_v41 = vld [vmem:[#allocation340_spill] sm:$0xff] }
 0x391   : > { %v3660_v62 = vmin.f32 %v3404_v32, %v3659_v19  ;;  %v3414_v19 = vsel %vm2965_vm15, %v7431_v59, 896.0  ;;  %v7842_v32 = vpop.f32.mrf.mxu1  ;;  %v3420_v63 = vsel %vm2971_vm4, %v7528_v34, 896.0  ;;  %v10122_v59 = vld [vmem:[#allocation90_spill] sm:$0xff] }
 0x393   : > { %v3661_v31 = vmin.f32 %v3406_v2, %v3660_v62  ;;  %v3416_v2 = vsel %vm2967_vm3, %v7475_v16, 896.0  ;;  %v7850_v52 = vpop.f32.mrf.mxu1 }
 0x394   : > { %10039 = vst [vmem:[#allocation271_spill] sm:$0xff] %v7850_v52 }
 0x395   : > { %v3662_v58 = vmin.f32 %v3408_v17, %v3661_v31  ;;  %v3418_v17 = vsel %vm2969_vm11, %v7491_v29, 896.0  ;;  %v10111_v29 = vld [vmem:[#allocation58_spill] sm:$0xff] }
 0x397   : > { %v3663_v22 = vmin.f32 %v3410_v36, %v3662_v58  ;;  %v10040_v58 = vld [vmem:[#allocation286_spill] sm:$0xff] }
 0x398   : > { %vm2973_vm0 = vcmp.le.f32.partialorder %v10040_v58, %v6849_v50  ;;  %v10045_v58 = vld [vmem:[#allocation294_spill] sm:$0xff] }
 0x399   : > { %v3664_v40 = vmin.f32 %v3412_v3, %v3663_v22  ;;  %v10041_v22 = vld [vmem:[#allocation288_spill] sm:$0xff]  ;;  %v3422_v23 = vsel %vm2973_vm0, %v7545_v47, 896.0  ;;  %vm2981_vm6 = vcmp.le.f32.partialorder %v10045_v58, %v6849_v50 }
 0x39a   : > { %vm2975_vm2 = vcmp.le.f32.partialorder %v10041_v22, %v6849_v50  ;;  %v10046_v22 = vld [vmem:[#allocation296_spill] sm:$0xff] }
 0x39b   : > { %v3665_v62 = vmin.f32 %v3414_v19, %v3664_v40  ;;  %v7858_v40 = vpop.f32.mrf.mxu1  ;;  %v10042_v19 = vld [vmem:[#allocation290_spill] sm:$0xff]  ;;  %vm2983_vm7 = vcmp.le.f32.partialorder %v10046_v22, %v6849_v50  ;;  %v10048_v58 = vld [vmem:[#allocation300_spill] sm:$0xff] }
 0x39c   : > { %vm2977_vm5 = vcmp.le.f32.partialorder %v10042_v19, %v6849_v50  ;;  %vm2987_vm8 = vcmp.le.f32.partialorder %v10048_v58, %v6849_v50 }
 0x39d   : > { %v3666_v31 = vmin.f32 %v3416_v2, %v3665_v62  ;;  %v3424_v62 = vsel %vm2975_vm2, %v7560_v30, 896.0  ;;  %v10043_v2 = vld [vmem:[#allocation292_spill] sm:$0xff]  ;;  %v3436_v39 = vsel %vm2987_vm8, %v7620_v54, 896.0  ;;  %v10085_v54 = vld [vmem:[#allocation325_spill] sm:$0xff] }
 0x39e   : > { %vm2979_vm13 = vcmp.le.f32.partialorder %v10043_v2, %v6849_v50  ;;  %v3576_v2 = vrot.slane %v3575_v25, 4 }
 0x39f   : > { %v3667_v36 = vmin.f32 %v3418_v17, %v3666_v31  ;;  %v3426_v31 = vsel %vm2977_vm5, %v7571_v13, 896.0  ;;  %v7866_v17 = vpop.f32.mrf.mxu1 }
 0x3a0   : > { %10044 = vst [vmem:[#allocation273_spill] sm:$0xff] %v7866_v17  ;;  %v3432_v17 = vsel %vm2983_vm7, %v7600_v42, 896.0 }
 0x3a1   : > { %v3668_v3 = vmin.f32 %v3420_v63, %v3667_v36  ;;  %v3428_v63 = vsel %vm2979_vm13, %v7580_v1, 896.0  ;;  %v7874_v19 = vpop.f32.mrf.mxu1  ;;  %v10102_v1 = vld [vmem:[#allocation57_spill] sm:$0xff] }
 0x3a3   : > { %v3669_v60 = vmin.f32 %v3422_v23, %v3668_v3  ;;  %v3430_v23 = vsel %vm2981_vm6, %v7591_v33, 896.0  ;;  %v7882_v52 = vpop.f32.mrf.mxu1 }
 0x3a4   : > { %10049 = vst [vmem:[#allocation187_spill] sm:$0xff] %v7882_v52 }
 0x3a5   : > { %v3670_v56 = vmin.f32 %v3424_v62, %v3669_v60  ;;  %v10047_v60 = vld [vmem:[#allocation298_spill] sm:$0xff]  ;;  %v7890_v38 = vpop.f32.mrf.mxu1 }
 0x3a6   : > { %vm2985_vm14 = vcmp.le.f32.partialorder %v10047_v60, %v6849_v50  ;;  %v10051_v60 = vld [vmem:[#allocation304_spill] sm:$0xff] }
 0x3a7   : > { %v3671_v36 = vmin.f32 %v3426_v31, %v3670_v56  ;;  %v3434_v31 = vsel %vm2985_vm14, %v7611_v5, 896.0  ;;  %vm2991_vm9 = vcmp.le.f32.partialorder %v10051_v60, %v6849_v50  ;;  %v7898_v60 = vpop.f32.mrf.mxu1  ;;  %v10096_v5 = vld [vmem:[#allocation5_spill] sm:$0xff] }
 0x3a8   : > { %10054 = vst [vmem:[#allocation275_spill] sm:$0xff] %v7898_v60  ;;  %v10084_v60 = vld [vmem:[#allocation39_spill] sm:$0xff] }
 0x3a9   : > { %v3672_v3 = vmin.f32 %v3428_v63, %v3671_v36  ;;  %v3577_v36 = vmin.f32 %v3575_v25, %v3576_v2  ;;  %v10050_v63 = vld [vmem:[#allocation302_spill] sm:$0xff]  ;;  %v3440_v25 = vsel %vm2991_vm9, %v7640_v9, 896.0  ;;  %v10053_v2 = vld [vmem:[#allocation308_spill] sm:$0xff] }
 0x3aa   : > { %vm2989_vm1 = vcmp.le.f32.partialorder %v10050_v63, %v6849_v50  ;;  %vm2995_vm15 = vcmp.le.f32.partialorder %v10053_v2, %v6849_v50  ;;  %v10056_v2 = vld [vmem:[#allocation312_spill] sm:$0xff]  ;;  %v10072_v9 = vld [vmem:[#allocation26_spill] sm:$0xff] }
 0x3ab   : > { %v3673_v62 = vmin.f32 %v3430_v23, %v3672_v3  ;;  %v3438_v23 = vsel %vm2989_vm1, %v7631_v15, 896.0  ;;  %v10055_v15 = vld [vmem:[#allocation310_spill] sm:$0xff]  ;;  %vm2999_vm11 = vcmp.le.f32.partialorder %v10056_v2, %v6849_v50 }
 0x3ac   : > { %vm2997_vm3 = vcmp.le.f32.partialorder %v10055_v15, %v6849_v50 }
 0x3ad   : > { %v3674_v56 = vmin.f32 %v3432_v17, %v3673_v62  ;;  %v3578_v17 = vrot.slane %v3577_v36, 2  ;;  %v10052_v62 = vld [vmem:[#allocation306_spill] sm:$0xff] }
 0x3ae   : > { %vm2993_vm12 = vcmp.le.f32.partialorder %v10052_v62, %v6849_v50 }
 0x3af   : > { %v3675_v22 = vmin.f32 %v3434_v31, %v3674_v56  ;;  %v3442_v31 = vsel %vm2993_vm12, %v7651_v24, 896.0  ;;  %v3579_v63 = vmin.f32 %v3577_v36, %v3578_v17  ;;  %v3448_v17 = vsel %vm2999_vm11, %v7680_v57, 896.0  ;;  %v10067_v24 = vld [vmem:[#allocation320_spill] sm:$0xff] }
 0x3b0   : > { %vm3007_vm8 = vcmp.le.f32.partialorder %v10067_v24, %v6849_v50 }
 0x3b1   : > { %v3676_v3 = vmin.f32 %v3436_v39, %v3675_v22  ;;  %v3444_v22 = vsel %vm2995_vm15, %v7660_v12, 896.0  ;;  %v3580_v62 = vrot.slane %v3579_v63, 1  ;;  %v10066_v12 = vld [vmem:[#allocation19_spill] sm:$0xff] }
 0x3b3   : > { %v3677_v58 = vmin.f32 %v3438_v23, %v3676_v3  ;;  %v7903_v3 = vpop.f32.mrf.mxu1  ;;  %v3446_v23 = vsel %vm2997_vm3, %v7671_v4, 896.0 }
 0x3b5   : > { %v3678_v56 = vmin.f32 %v3440_v25, %v3677_v58  ;;  %v7908_v25 = vmin.f32 %v3579_v63, %v3580_v62  ;;  %v7910_v36 = vpop.f32.mrf.mxu1  ;;  %v10059_v63 = vld [vmem:[#allocation316_spill] sm:$0xff] }
 0x3b6   : > { %10057 = vst [vmem:[#allocation191_spill] sm:$0xff] %v7910_v36  ;;  %vm3003_vm5 = vcmp.le.f32.partialorder %v10059_v63, %v6849_v50  ;;  %v10079_v36 = vld [vmem:[#allocation323_spill] sm:$0xff] }
 0x3b7   : > { %v3679_v39 = vmin.f32 %v3442_v31, %v3678_v56  ;;  %v10058_v56 = vld [vmem:[#allocation314_spill] sm:$0xff]  ;;  %vm3699_vm0 = vcmp.eq.f32.partialorder %v7729_v0, %v7908_v25  ;;  %vm3701_vm2 = vcmp.eq.f32.partialorder %v7739_v6, %v7908_v25  ;;  %v7919_v31 = vpop.f32.mrf.mxu1  ;;  %vm3703_vm13 = vcmp.eq.f32.partialorder %v7744_v49, %v7908_v25 }
 0x3b8   : > { %vm3001_vm4 = vcmp.le.f32.partialorder %v10058_v56, %v6849_v50  ;;  %v10063_v56 = vld [vmem:[#allocation318_spill] sm:$0xff]  ;;  %vm3705_vm7 = vcmp.eq.f32.partialorder %v7756_v55, %v7908_v25  ;;  %vm3011_vm11 = vcmp.le.f32.partialorder %v10079_v36, %v6849_v50  ;;  %v10086_v36 = vld [vmem:[#allocation333_spill] sm:$0xff] }
 0x3b9   : > { %v3680_v52 = vmin.f32 %v3444_v22, %v3679_v39  ;;  %v10060_v22 = vld [vmem:[#allocation10_spill] sm:$0xff]  ;;  %vm3005_vm6 = vcmp.le.f32.partialorder %v10063_v56, %v6849_v50 }
 0x3ba   : > { %v3923_v62 = vsel %vm3699_vm0, %v10060_v22, 0.0  ;;  %v10065_v22 = vld [vmem:[#allocation327_spill] sm:$0xff]  ;;  %v3454_v4 = vsel %vm3005_vm6, %v7711_v18, 896.0  ;;  %v3456_v18 = vsel %vm3007_vm8, %v7719_v44, 896.0 }
 0x3bb   : > { %v3681_v58 = vmin.f32 %v3446_v23, %v3680_v52  ;;  %v3450_v52 = vsel %vm3001_vm4, %v7691_v48, 896.0  ;;  %v10061_v23 = vld [vmem:[#allocation13_spill] sm:$0xff]  ;;  %vm3707_vm14 = vcmp.eq.f32.partialorder %v10065_v22, %v7908_v25 }
 0x3bc   : > { %v3925_v2 = vsel %vm3701_vm2, %v10061_v23, 0.0  ;;  %vm3013_vm2 = vcmp.le.f32.partialorder %v10085_v54, %v6849_v50 }
 0x3bd   : > { %v3682_v15 = vmin.f32 %v3448_v17, %v3681_v58  ;;  %v7928_v58 = vpop.f32.mrf.mxu1  ;;  %v3452_v17 = vsel %vm3003_vm5, %v7700_v11, 896.0  ;;  %v4147_v63 = vadd.f32 %v3925_v2, %v3923_v62  ;;  %v3929_v11 = vsel %vm3705_vm7, %v10066_v12, 0.0  ;;  %v10069_v2 = vld [vmem:[#allocation23_spill] sm:$0xff] }
 0x3be   : > { %10062 = vst [vmem:[#allocation195_spill] sm:$0xff] %v7928_v58  ;;  %v3931_v56 = vsel %vm3707_vm14, %v10069_v2, 0.0  ;;  %v10073_v58 = vld [vmem:[#allocation75_spill] sm:$0xff]  ;;  %v10076_v2 = vld [vmem:[#allocation20_spill] sm:$0xff]  ;;  %vm3721_vm5 = vcmp.eq.f32.partialorder %v10086_v36, %v7908_v25  ;;  %v3462_v54 = vsel %vm3013_vm2, %v7762_v51, 896.0 }
 0x3bf   : > { %v3683_v39 = vmin.f32 %v3450_v52, %v3682_v15  ;;  %v10064_v15 = vld [vmem:[#allocation16_spill] sm:$0xff]  ;;  %v7938_v48 = vpop.f32.mrf.mxu1  ;;  %vm3009_vm12 = vcmp.le.f32.partialorder %v10073_v58, %v6849_v50  ;;  %vm3715_vm3 = vcmp.eq.f32.partialorder %v10076_v2, %v7908_v25  ;;  %v10080_v58 = vld [vmem:[#allocation331_spill] sm:$0xff] }
 0x3c0   : > { %v3927_v52 = vsel %vm3703_vm13, %v10064_v15, 0.0  ;;  %v10070_v15 = vld [vmem:[#allocation329_spill] sm:$0xff]  ;;  %v3458_v44 = vsel %vm3009_vm12, %v7731_v46, 896.0  ;;  %vm3717_vm4 = vcmp.eq.f32.partialorder %v10080_v58, %v7908_v25  ;;  %v3460_v46 = vsel %vm3011_vm11, %v7746_v45, 896.0  ;;  %v10090_v45 = vld [vmem:[#allocation3_spill] sm:$0xff] }
 0x3c1   : > { %v3684_v57 = vmin.f32 %v3452_v17, %v3683_v39  ;;  %v4148_v23 = vadd.f32 %v4147_v63, %v3927_v52  ;;  %v10068_v17 = vld [vmem:[#allocation328_spill] sm:$0xff]  ;;  %vm3711_vm9 = vcmp.eq.f32.partialorder %v10070_v15, %v7908_v25  ;;  %v7949_v52 = vpop.f32.mrf.mxu1  ;;  %vm2793_vm6 = vcmp.le.f32.partialorder %v10090_v45, %v6849_v50 }
 0x3c2   : > { %vm3709_vm1 = vcmp.eq.f32.partialorder %v10068_v17, %v7908_v25  ;;  %10071 = vst [vmem:[#allocation277_spill] sm:$0xff] %v7949_v52  ;;  %v10078_v52 = vld [vmem:[#allocation32_spill] sm:$0xff] }
 0x3c3   : > { %v3685_v39 = vmin.f32 %v3454_v4, %v3684_v57  ;;  %v4149_v62 = vadd.f32 %v4148_v23, %v3929_v11  ;;  %v3933_v12 = vsel %vm3709_vm1, %v10072_v9, 0.0  ;;  %v10074_v4 = vld [vmem:[#allocation330_spill] sm:$0xff]  ;;  %v10075_v11 = vld [vmem:[#allocation29_spill] sm:$0xff]  ;;  %vm2795_vm1 = vcmp.le.f32.partialorder %v10096_v5, %v6849_v50  ;;  %v10097_v45 = vld [vmem:[#allocation40_spill] sm:$0xff] }
 0x3c4   : > { %vm3713_vm15 = vcmp.eq.f32.partialorder %v10074_v4, %v7908_v25  ;;  %v3935_v23 = vsel %vm3711_vm9, %v10075_v11, 0.0  ;;  %v10082_v11 = vld [vmem:[#allocation332_spill] sm:$0xff]  ;;  %vm3727_vm9 = vcmp.eq.f32.partialorder %v10097_v45, %v7908_v25 }
 0x3c5   : > { %v4150_v63 = vadd.f32 %v4149_v62, %v3931_v56  ;;  %v3686_v24 = vmin.f32 %v3456_v18, %v3685_v39  ;;  %v7960_v56 = vpop.f32.mrf.mxu1  ;;  %v3937_v9 = vsel %vm3713_vm15, %v10078_v52, 0.0  ;;  %vm3719_vm0 = vcmp.eq.f32.partialorder %v10082_v11, %v7908_v25 }
 0x3c6   : > { %10077 = vst [vmem:[#allocation198_spill] sm:$0xff] %v7960_v56  ;;  %v3941_v52 = vsel %vm3717_vm4, %v10084_v60, 0.0  ;;  %v10091_v60 = vld [vmem:[#allocation7_spill] sm:$0xff] }
 0x3c7   : > { %v4151_v57 = vadd.f32 %v4150_v63, %v3933_v12  ;;  %v3687_v18 = vmin.f32 %v3458_v44, %v3686_v24  ;;  %v10081_v63 = vld [vmem:[#allocation36_spill] sm:$0xff]  ;;  %vm2797_vm7 = vcmp.le.f32.partialorder %v10091_v60, %v6849_v50 }
 0x3c8   : > { %v3939_v12 = vsel %vm3715_vm3, %v10081_v63, 0.0  ;;  %v10088_v63 = vld [vmem:[#allocation33_spill] sm:$0xff] }
 0x3c9   : > { %v4152_v62 = vadd.f32 %v4151_v57, %v3935_v23  ;;  %v7971_v23 = vpop.f32.mrf.mxu1  ;;  %v3688_v44 = vmin.f32 %v3460_v46, %v3687_v18  ;;  %vm3723_vm13 = vcmp.eq.f32.partialorder %v10088_v63, %v7908_v25  ;;  %v10092_v46 = vld [vmem:[#allocation46_spill] sm:$0xff] }
 0x3ca   : > { %10083 = vst [vmem:[#allocation279_spill] sm:$0xff] %v7971_v23  ;;  %v3945_v18 = vsel %vm3721_vm5, %v10092_v46, 0.0  ;;  %v3242_v46 = vsel %vm2793_vm6, %v7729_v0, 896.0 }
 0x3cb   : > { %v4153_v39 = vadd.f32 %v4152_v62, %v3937_v9  ;;  %v10087_v62 = vld [vmem:[#allocation43_spill] sm:$0xff] }
 0x3cc   : > { %v3943_v9 = vsel %vm3719_vm0, %v10087_v62, 0.0  ;;  %v10094_v62 = vld [vmem:[#allocation334_spill] sm:$0xff]  ;;  %vm3737_vm0 = vcmp.eq.f32.partialorder %v10111_v29, %v7908_v25 }
 0x3cd   : > { %v4154_v57 = vadd.f32 %v4153_v39, %v3939_v12  ;;  %v7982_v12 = vpop.f32.mrf.mxu1  ;;  %vm3725_vm8 = vcmp.eq.f32.partialorder %v10094_v62, %v7908_v25 }
 0x3ce   : > { %10089 = vst [vmem:[#allocation201_spill] sm:$0xff] %v7982_v12 }
 0x3cf   : > { %v4155_v24 = vadd.f32 %v4154_v57, %v3941_v52  ;;  %v10093_v57 = vld [vmem:[#allocation337_spill] sm:$0xff]  ;;  %v3689_v52 = vmin.f32 %v3462_v54, %v3688_v44  ;;  %v7999_v51 = vpop.f32.mrf.mxu1 }
 0x3d0   : > { %vm3015_vm14 = vcmp.le.f32.partialorder %v10093_v57, %v6849_v50  ;;  %10098 = vst [vmem:[#allocation281_spill] sm:$0xff] %v7999_v51  ;;  %v3246_v57 = vsel %vm2797_vm7, %v7744_v49, 896.0  ;;  %v10099_v54 = vld [vmem:[#allocation53_spill] sm:$0xff]  ;;  %v10103_v51 = vld [vmem:[#allocation47_spill] sm:$0xff]  ;;  %vm3747_vm7 = vcmp.eq.f32.partialorder %v10123_v41, %v7908_v25 }
 0x3d1   : > { %v4156_v39 = vadd.f32 %v4155_v24, %v3943_v9  ;;  %v10095_v9 = vld [vmem:[#allocation50_spill] sm:$0xff]  ;;  %v3464_v44 = vsel %vm3015_vm14, %v7775_v35, 896.0  ;;  %v3949_v42 = vsel %vm3725_vm8, %v10099_v54, 0.0  ;;  %vm3731_vm3 = vcmp.eq.f32.partialorder %v10103_v51, %v7908_v25  ;;  %v8012_v30 = vpop.f32.mrf.mxu1 }
 0x3d2   : > { %v3947_v23 = vsel %vm3723_vm13, %v10095_v9, 0.0  ;;  %v10101_v9 = vld [vmem:[#allocation335_spill] sm:$0xff]  ;;  %10104 = vst [vmem:[#allocation204_spill] sm:$0xff] %v8012_v30  ;;  %v3244_v54 = vsel %vm2795_vm1, %v7739_v6, 896.0 }
 0x3d3   : > { %v4157_v24 = vadd.f32 %v4156_v39, %v3945_v18  ;;  %v10100_v39 = vld [vmem:[#allocation9_spill] sm:$0xff]  ;;  %v3690_v18 = vmin.f32 %v3464_v44, %v3689_v52  ;;  %vm3729_vm15 = vcmp.eq.f32.partialorder %v10101_v9, %v7908_v25  ;;  %v10105_v44 = vld [vmem:[#allocation62_spill] sm:$0xff]  ;;  %v8025_v47 = vpop.f32.mrf.mxu1 }
 0x3d4   : > { %vm2799_vm12 = vcmp.le.f32.partialorder %v10100_v39, %v6849_v50  ;;  %v3953_v39 = vsel %vm3729_vm15, %v10105_v44, 0.0  ;;  %10109 = vst [vmem:[#allocation283_spill] sm:$0xff] %v8025_v47  ;;  %v10110_v50 = vld [vmem:[#allocation70_spill] sm:$0xff] }
 0x3d5   : > { %v4158_v60 = vadd.f32 %v4157_v24, %v3947_v23  ;;  %v3951_v23 = vsel %vm3727_vm9, %v10102_v1, 0.0  ;;  %v3582_v24 = vmin.f32 %v3242_v46, %v3246_v57  ;;  %v3248_v52 = vsel %vm2799_vm12, %v7756_v55, 896.0  ;;  %v10118_v47 = vld [vmem:[#allocation338_spill] sm:$0xff] }
 0x3d6   : > { %v3583_v57 = vmin.f32 %v3244_v54, %v3248_v52  ;;  %v8033_v54 = vpop.f32.mrf.mxu1  ;;  %v10115_v52 = vld [vmem:[#allocation78_spill] sm:$0xff]  ;;  %vm3743_vm13 = vcmp.eq.f32.partialorder %v10118_v47, %v7908_v25  ;;  %vm3755_vm9 = vcmp.eq.f32.partialorder %v10133_v8, %v7908_v25 }
 0x3d7   : > { %v4159_v33 = vadd.f32 %v4158_v60, %v3949_v42  ;;  %v3691_v35 = vmin.f32 %v3582_v24, %v3690_v18  ;;  %v10106_v42 = vld [vmem:[#allocation336_spill] sm:$0xff]  ;;  %v10107_v60 = vld [vmem:[#allocation66_spill] sm:$0xff]  ;;  %10114 = vst [vmem:[#allocation207_spill] sm:$0xff] %v8033_v54  ;;  %v3967_v20 = vsel %vm3743_vm13, %v10122_v59, 0.0  ;;  %vm3769_vm13 = vcmp.eq.f32.partialorder %v6823_v53, %v7908_v25 }
 0x3d8   : > { %vm3733_vm11 = vcmp.eq.f32.partialorder %v10106_v42, %v7908_v25  ;;  %v3955_v46 = vsel %vm3731_vm3, %v10107_v60, 0.0  ;;  %v10112_v24 = vld [vmem:[#allocation74_spill] sm:$0xff]  ;;  %v3961_v60 = vsel %vm3737_vm0, %v10115_v52, 0.0 }
 0x3d9   : > { %v4160_v13 = vadd.f32 %v4159_v33, %v3951_v23  ;;  %v10108_v33 = vld [vmem:[#allocation54_spill] sm:$0xff]  ;;  %v3957_v5 = vsel %vm3733_vm11, %v10110_v50, 0.0  ;;  %v3692_v34 = vmin.f32 %v3583_v57, %v3691_v35  ;;  %vm3763_vm11 = vcmp.eq.f32.partialorder %v9841_v10, %v7908_v25 }
 0x3da   : > { %vm3735_vm4 = vcmp.eq.f32.partialorder %v10108_v33, %v7908_v25  ;;  %v10117_v35 = vld [vmem:[#allocation82_spill] sm:$0xff] }
 0x3db   : > { %v4161_v1 = vadd.f32 %v4160_v13, %v3953_v39  ;;  %v3959_v44 = vsel %vm3735_vm4, %v10112_v24, 0.0  ;;  %v10113_v13 = vld [vmem:[#allocation61_spill] sm:$0xff]  ;;  %v10120_v24 = vld [vmem:[#allocation86_spill] sm:$0xff]  ;;  %vm3765_vm4 = vcmp.eq.f32.partialorder %v9843_v37, %v7908_v25 }
 0x3dc   : > { %vm3739_vm2 = vcmp.eq.f32.partialorder %v10113_v13, %v7908_v25 }
 0x3dd   : > { %v4162_v23 = vadd.f32 %v4161_v1, %v3955_v46  ;;  %v3693_v1 = vrot.slane %v3692_v34, 4  ;;  %v10116_v46 = vld [vmem:[#allocation65_spill] sm:$0xff]  ;;  %v3963_v57 = vsel %vm3739_vm2, %v10117_v35, 0.0  ;;  %v10125_v35 = vld [vmem:[#allocation94_spill] sm:$0xff] }
 0x3de   : > { %vm3741_vm5 = vcmp.eq.f32.partialorder %v10116_v46, %v7908_v25 }
 0x3df   : > { %v4163_v18 = vadd.f32 %v4162_v23, %v3957_v5  ;;  %v8041_v5 = vpop.f32.mrf.mxu1  ;;  %v3965_v16 = vsel %vm3741_vm5, %v10120_v24, 0.0  ;;  %vm3767_vm5 = vcmp.eq.f32.partialorder %v9846_v43, %v7908_v25 }
 0x3e0   : > { %10119 = vst [vmem:[#allocation285_spill] sm:$0xff] %v8041_v5  ;;  %v10128_v5 = vld [vmem:[#allocation85_spill] sm:$0xff] }
 0x3e1   : > { %v4164_v39 = vadd.f32 %v4163_v18, %v3959_v44  ;;  %v3694_v18 = vmin.f32 %v3692_v34, %v3693_v1  ;;  %v10121_v44 = vld [vmem:[#allocation339_spill] sm:$0xff]  ;;  %v10127_v34 = vld [vmem:[#allocation98_spill] sm:$0xff]  ;;  %vm3751_vm8 = vcmp.eq.f32.partialorder %v10128_v5, %v7908_v25 }
 0x3e2   : > { %vm3745_vm6 = vcmp.eq.f32.partialorder %v10121_v44, %v7908_v25  ;;  %v3971_v1 = vsel %vm3747_vm7, %v10127_v34, 0.0  ;;  %v10135_v34 = vld [vmem:[#allocation110_spill] sm:$0xff] }
 0x3e3   : > { %v4165_v50 = vadd.f32 %v4164_v39, %v3961_v60  ;;  %v8049_v60 = vpop.f32.mrf.mxu1  ;;  %v3969_v54 = vsel %vm3745_vm6, %v10125_v35, 0.0 }
 0x3e4   : > { %10124 = vst [vmem:[#allocation210_spill] sm:$0xff] %v8049_v60  ;;  %v10132_v60 = vld [vmem:[#allocation106_spill] sm:$0xff] }
 0x3e5   : > { %v4166_v23 = vadd.f32 %v4165_v50, %v3963_v57  ;;  %v3695_v50 = vrot.slane %v3694_v18, 2  ;;  %v10126_v57 = vld [vmem:[#allocation81_spill] sm:$0xff]  ;;  %v8057_v59 = vpop.f32.mrf.mxu1  ;;  %v3975_v30 = vsel %vm3751_vm8, %v10132_v60, 0.0 }
 0x3e6   : > { %vm3749_vm14 = vcmp.eq.f32.partialorder %v10126_v57, %v7908_v25  ;;  %10129 = vst [vmem:[#allocation287_spill] sm:$0xff] %v8057_v59  ;;  %v10138_v59 = vld [vmem:[#allocation101_spill] sm:$0xff] }
 0x3e7   : > { %v4167_v52 = vadd.f32 %v4166_v23, %v3965_v16  ;;  %v10130_v23 = vld [vmem:[#allocation102_spill] sm:$0xff]  ;;  %vm3759_vm15 = vcmp.eq.f32.partialorder %v10138_v59, %v7908_v25 }
 0x3e8   : > { %v3973_v27 = vsel %vm3749_vm14, %v10130_v23, 0.0 }
 0x3e9   : > { %v4168_v39 = vadd.f32 %v4167_v52, %v3967_v20  ;;  %v3696_v20 = vmin.f32 %v3694_v18, %v3695_v50  ;;  %v10131_v52 = vld [vmem:[#allocation89_spill] sm:$0xff]  ;;  %v10137_v18 = vld [vmem:[#allocation114_spill] sm:$0xff] }
 0x3ea   : > { %vm3753_vm1 = vcmp.eq.f32.partialorder %v10131_v52, %v7908_v25  ;;  %v3979_v50 = vsel %vm3755_vm9, %v10137_v18, 0.0  ;;  %v10144_v18 = vld [vmem:[#allocation126_spill] sm:$0xff] }
 0x3eb   : > { %v4169_v24 = vadd.f32 %v4168_v39, %v3969_v54  ;;  %v8065_v39 = vpop.f32.mrf.mxu1  ;;  %v3977_v12 = vsel %vm3753_vm1, %v10135_v34, 0.0 }
 0x3ec   : > { %10134 = vst [vmem:[#allocation213_spill] sm:$0xff] %v8065_v39  ;;  %v10142_v39 = vld [vmem:[#allocation122_spill] sm:$0xff] }
 0x3ed   : > { %v4170_v16 = vadd.f32 %v4169_v24, %v3971_v1  ;;  %v3697_v24 = vrot.slane %v3696_v20, 1  ;;  %v10136_v1 = vld [vmem:[#allocation97_spill] sm:$0xff]  ;;  %v8073_v60 = vpop.f32.mrf.mxu1  ;;  %v3983_v56 = vsel %vm3759_vm15, %v10142_v39, 0.0 }
 0x3ee   : > { %vm3757_vm12 = vcmp.eq.f32.partialorder %v10136_v1, %v7908_v25  ;;  %10139 = vst [vmem:[#allocation289_spill] sm:$0xff] %v8073_v60 }
 0x3ef   : > { %v4171_v35 = vadd.f32 %v4170_v16, %v3973_v27  ;;  %v10140_v16 = vld [vmem:[#allocation118_spill] sm:$0xff] }
 0x3f0   : > { %v3981_v21 = vsel %vm3757_vm12, %v10140_v16, 0.0  ;;  %v10148_v16 = vld [vmem:[#allocation11_spill] sm:$0xff] }
 0x3f1   : > { %v4172_v54 = vadd.f32 %v4171_v35, %v3975_v30  ;;  %v8076_v30 = vmin.f32 %v3696_v20, %v3697_v24  ;;  %v10141_v35 = vld [vmem:[#allocation105_spill] sm:$0xff]  ;;  %v10147_v24 = vld [vmem:[#allocation134_spill] sm:$0xff] }
 0x3f2   : > { %vm3761_vm3 = vcmp.eq.f32.partialorder %v10141_v35, %v7908_v25 }
 0x3f3   : > { %v4173_v23 = vadd.f32 %v4172_v54, %v3977_v12  ;;  %v8083_v54 = vpop.f32.mrf.mxu1  ;;  %vm3700_vm0 = vcmp.eq.f32.partialorder %v7729_v0, %v8076_v30  ;;  %vm3702_vm2 = vcmp.eq.f32.partialorder %v7739_v6, %v8076_v30  ;;  %vm3704_vm6 = vcmp.eq.f32.partialorder %v7744_v49, %v8076_v30  ;;  %v10150_v6 = vld [vmem:[#allocation138_spill] sm:$0xff] }
 0x3f4   : > { %10143 = vst [vmem:[#allocation216_spill] sm:$0xff] %v8083_v54  ;;  %vm3706_vm14 = vcmp.eq.f32.partialorder %v7756_v55, %v8076_v30  ;;  %vm3708_vm1 = vcmp.eq.f32.partialorder %v10065_v22, %v8076_v30  ;;  %v10158_v55 = vld [vmem:[#allocation350_spill] sm:$0xff]  ;;  %vm3710_vm12 = vcmp.eq.f32.partialorder %v10068_v17, %v8076_v30  ;;  %v10162_v22 = vld [vmem:[#allocation15_spill] sm:$0xff] }
 0x3f5   : > { %v4174_v27 = vadd.f32 %v4173_v23, %v3979_v50  ;;  %v3985_v23 = vsel %vm3761_vm3, %v10144_v18, 0.0  ;;  %v8095_v39 = vpop.f32.mrf.mxu1  ;;  %v10149_v18 = vld [vmem:[#allocation14_spill] sm:$0xff]  ;;  %vm3775_vm9 = vcmp.eq.f32.partialorder %v10158_v55, %v7908_v25  ;;  %vm3777_vm15 = vcmp.eq.f32.partialorder %v10162_v22, %v7908_v25 }
 0x3f6   : > { %10146 = vst [vmem:[#allocation291_spill] sm:$0xff] %v8095_v39  ;;  %v10154_v39 = vld [vmem:[#allocation17_spill] sm:$0xff]  ;;  %vm3712_vm3 = vcmp.eq.f32.partialorder %v10070_v15, %v8076_v30  ;;  %v10165_v17 = vld [vmem:[#allocation18_spill] sm:$0xff] }
 0x3f7   : > { %v4175_v34 = vadd.f32 %v4174_v27, %v3981_v21  ;;  %v10145_v21 = vld [vmem:[#allocation130_spill] sm:$0xff]  ;;  %v3989_v27 = vsel %vm3765_vm4, %v10147_v24, 0.0  ;;  %v8109_v24 = vpop.f32.mrf.mxu1  ;;  %v3928_v60 = vsel %vm3704_vm6, %v10154_v39, 0.0  ;;  %vm3714_vm4 = vcmp.eq.f32.partialorder %v10074_v4, %v8076_v30  ;;  %v10169_v15 = vld [vmem:[#allocation145_spill] sm:$0xff] }
 0x3f8   : > { %v3987_v20 = vsel %vm3763_vm11, %v10145_v21, 0.0  ;;  %v10151_v21 = vld [vmem:[#allocation344_spill] sm:$0xff]  ;;  %10152 = vst [vmem:[#allocation219_spill] sm:$0xff] %v8109_v24  ;;  %vm3779_vm11 = vcmp.eq.f32.partialorder %v10165_v17, %v7908_v25  ;;  %v10172_v4 = vld [vmem:[#allocation22_spill] sm:$0xff]  ;;  %vm3785_vm6 = vcmp.eq.f32.partialorder %v6940_v61, %v7908_v25 }
 0x3f9   : > { %v4176_v12 = vadd.f32 %v4175_v34, %v3983_v56  ;;  %v3924_v34 = vsel %vm3700_vm0, %v10148_v16, 0.0  ;;  %vm3771_vm7 = vcmp.eq.f32.partialorder %v10151_v21, %v7908_v25  ;;  %v10153_v16 = vld [vmem:[#allocation142_spill] sm:$0xff]  ;;  %vm3781_vm0 = vcmp.eq.f32.partialorder %v10169_v15, %v7908_v25 }
 0x3fb   : > { %v4177_v50 = vadd.f32 %v4176_v12, %v3985_v23  ;;  %v3926_v12 = vsel %vm3702_vm2, %v10149_v18, 0.0  ;;  %v3991_v23 = vsel %vm3767_vm5, %v10150_v6, 0.0  ;;  %v3993_v18 = vsel %vm3769_vm13, %v10153_v16, 0.0  ;;  %v10156_v6 = vld [vmem:[#allocation146_spill] sm:$0xff] }
 0x3fc   : > { %v10160_v16 = vld [vmem:[#allocation150_spill] sm:$0xff]  ;;  %vm3716_vm2 = vcmp.eq.f32.partialorder %v10076_v2, %v8076_v30  ;;  %vm3783_vm5 = vcmp.eq.f32.partialorder %v10172_v4, %v7908_v25  ;;  %vm3718_vm13 = vcmp.eq.f32.partialorder %v10080_v58, %v8076_v30  ;;  %v10178_v58 = vld [vmem:[#allocation149_spill] sm:$0xff] }
 0x3fd   : > { %v4178_v56 = vadd.f32 %v4177_v50, %v3987_v20  ;;  %v4264_v20 = vadd.f32 %v3926_v12, %v3924_v34  ;;  %v8123_v12 = vpop.f32.mrf.mxu1 }
 0x3fe   : > { %10159 = vst [vmem:[#allocation293_spill] sm:$0xff] %v8123_v12 }
 0x3ff   : > { %v4179_v0 = vadd.f32 %v4178_v56, %v3989_v27  ;;  %v10155_v56 = vld [vmem:[#allocation346_spill] sm:$0xff]  ;;  %v4265_v27 = vadd.f32 %v4264_v20, %v3928_v60 }
 0x400   : > { %vm3773_vm8 = vcmp.eq.f32.partialorder %v10155_v56, %v7908_v25 }
 0x401   : > { %v4180_v50 = vadd.f32 %v4179_v0, %v3991_v23  ;;  %v3995_v0 = vsel %vm3771_vm7, %v10156_v6, 0.0  ;;  %v10157_v23 = vld [vmem:[#allocation21_spill] sm:$0xff]  ;;  %v10163_v6 = vld [vmem:[#allocation154_spill] sm:$0xff]  ;;  %vm3720_vm7 = vcmp.eq.f32.partialorder %v10082_v11, %v8076_v30 }
 0x402   : > { %v3930_v54 = vsel %vm3706_vm14, %v10157_v23, 0.0  ;;  %vm3787_vm14 = vcmp.eq.f32.partialorder %v10178_v58, %v7908_v25  ;;  %v10181_v11 = vld [vmem:[#allocation25_spill] sm:$0xff] }
 0x403   : > { %v4181_v49 = vadd.f32 %v4180_v50, %v3993_v18  ;;  %v4266_v39 = vadd.f32 %v4265_v27, %v3930_v54  ;;  %v3997_v50 = vsel %vm3773_vm8, %v10160_v16, 0.0  ;;  %v10161_v18 = vld [vmem:[#allocation24_spill] sm:$0xff]  ;;  %v8137_v16 = vpop.f32.mrf.mxu1  ;;  %vm3722_vm8 = vcmp.eq.f32.partialorder %v10086_v36, %v8076_v30  ;;  %v10184_v36 = vld [vmem:[#allocation153_spill] sm:$0xff] }
 0x404   : > { %v3932_v24 = vsel %vm3708_vm1, %v10161_v18, 0.0  ;;  %10166 = vst [vmem:[#allocation222_spill] sm:$0xff] %v8137_v16  ;;  %v10167_v18 = vld [vmem:[#allocation158_spill] sm:$0xff]  ;;  %vm3789_vm1 = vcmp.eq.f32.partialorder %v10181_v11, %v7908_v25 }
 0x405   : > { %v4182_v34 = vadd.f32 %v4181_v49, %v3995_v0  ;;  %v4267_v20 = vadd.f32 %v4266_v39, %v3932_v24  ;;  %v3999_v49 = vsel %vm3775_vm9, %v10163_v6, 0.0  ;;  %v10164_v0 = vld [vmem:[#allocation27_spill] sm:$0xff]  ;;  %v10170_v6 = vld [vmem:[#allocation162_spill] sm:$0xff]  ;;  %vm3724_vm9 = vcmp.eq.f32.partialorder %v10088_v63, %v8076_v30  ;;  %v10188_v63 = vld [vmem:[#allocation28_spill] sm:$0xff] }
 0x406   : > { %v3934_v23 = vsel %vm3710_vm12, %v10164_v0, 0.0  ;;  %vm3791_vm12 = vcmp.eq.f32.partialorder %v10184_v36, %v7908_v25 }
 0x407   : > { %v4183_v60 = vadd.f32 %v4182_v34, %v3997_v50  ;;  %v4268_v27 = vadd.f32 %v4267_v20, %v3934_v23  ;;  %v4001_v34 = vsel %vm3777_vm15, %v10167_v18, 0.0  ;;  %v10168_v50 = vld [vmem:[#allocation30_spill] sm:$0xff]  ;;  %v8151_v18 = vpop.f32.mrf.mxu1  ;;  %vm3726_vm15 = vcmp.eq.f32.partialorder %v10094_v62, %v8076_v30  ;;  %v10191_v62 = vld [vmem:[#allocation157_spill] sm:$0xff] }
 0x408   : > { %v3936_v12 = vsel %vm3712_vm3, %v10168_v50, 0.0  ;;  %10173 = vst [vmem:[#allocation295_spill] sm:$0xff] %v8151_v18  ;;  %v10174_v50 = vld [vmem:[#allocation166_spill] sm:$0xff]  ;;  %vm3793_vm3 = vcmp.eq.f32.partialorder %v10188_v63, %v7908_v25 }
 0x409   : > { %v4184_v54 = vadd.f32 %v4183_v60, %v3999_v49  ;;  %v4269_v39 = vadd.f32 %v4268_v27, %v3936_v12  ;;  %v4003_v60 = vsel %vm3779_vm11, %v10170_v6, 0.0  ;;  %v10171_v49 = vld [vmem:[#allocation34_spill] sm:$0xff]  ;;  %v10177_v6 = vld [vmem:[#allocation41_spill] sm:$0xff]  ;;  %vm3728_vm11 = vcmp.eq.f32.partialorder %v10097_v45, %v8076_v30  ;;  %v10195_v45 = vld [vmem:[#allocation31_spill] sm:$0xff] }
 0x40a   : > { %v3938_v0 = vsel %vm3714_vm4, %v10171_v49, 0.0  ;;  %v10176_v27 = vld [vmem:[#allocation170_spill] sm:$0xff]  ;;  %vm3795_vm4 = vcmp.eq.f32.partialorder %v10191_v62, %v7908_v25 }
 0x40b   : > { %v4185_v24 = vadd.f32 %v4184_v54, %v4001_v34  ;;  %v4270_v23 = vadd.f32 %v4269_v39, %v3938_v0  ;;  %v4005_v54 = vsel %vm3781_vm0, %v10174_v50, 0.0  ;;  %v10175_v34 = vld [vmem:[#allocation37_spill] sm:$0xff]  ;;  %v8165_v0 = vpop.f32.mrf.mxu1  ;;  %v10179_v50 = vld [vmem:[#allocation174_spill] sm:$0xff]  ;;  %vm3730_vm0 = vcmp.eq.f32.partialorder %v10101_v9, %v8076_v30 }
 0x40c   : > { %v3940_v16 = vsel %vm3716_vm2, %v10175_v34, 0.0  ;;  %vm3797_vm2 = vcmp.eq.f32.partialorder %v10195_v45, %v7908_v25  ;;  %v10198_v9 = vld [vmem:[#allocation161_spill] sm:$0xff] }
 0x40d   : > { %v4186_v20 = vadd.f32 %v4185_v24, %v4003_v60  ;;  %v4271_v12 = vadd.f32 %v4270_v23, %v3940_v16  ;;  %v4007_v24 = vsel %vm3783_vm5, %v10176_v27, 0.0  ;;  %v3942_v60 = vsel %vm3718_vm13, %v10177_v6, 0.0  ;;  %v10182_v27 = vld [vmem:[#allocation178_spill] sm:$0xff] }
 0x40e   : > { %vm3732_vm5 = vcmp.eq.f32.partialorder %v10103_v51, %v8076_v30  ;;  %vm3799_vm13 = vcmp.eq.f32.partialorder %v10198_v9, %v7908_v25  ;;  %v10202_v51 = vld [vmem:[#allocation35_spill] sm:$0xff] }
 0x40f   : > { %v4187_v2 = vadd.f32 %v4186_v20, %v4005_v54  ;;  %v4272_v49 = vadd.f32 %v4271_v12, %v3942_v60  ;;  %v4009_v20 = vsel %vm3785_vm6, %v10179_v50, 0.0  ;;  %v10180_v54 = vld [vmem:[#allocation44_spill] sm:$0xff]  ;;  %v8179_v50 = vpop.f32.mrf.mxu1  ;;  %vm3734_vm6 = vcmp.eq.f32.partialorder %v10106_v42, %v8076_v30  ;;  %v10205_v42 = vld [vmem:[#allocation165_spill] sm:$0xff] }
 0x410   : > { %v3944_v34 = vsel %vm3720_vm7, %v10180_v54, 0.0  ;;  %10185 = vst [vmem:[#allocation225_spill] sm:$0xff] %v8179_v50  ;;  %v10186_v54 = vld [vmem:[#allocation182_spill] sm:$0xff]  ;;  %vm3801_vm7 = vcmp.eq.f32.partialorder %v10202_v51, %v7908_v25 }
 0x411   : > { %v4188_v39 = vadd.f32 %v4187_v2, %v4007_v24  ;;  %v4273_v23 = vadd.f32 %v4272_v49, %v3944_v34  ;;  %v4011_v2 = vsel %vm3787_vm14, %v10182_v27, 0.0  ;;  %v10183_v24 = vld [vmem:[#allocation48_spill] sm:$0xff]  ;;  %v10189_v27 = vld [vmem:[#allocation186_spill] sm:$0xff]  ;;  %vm3736_vm14 = vcmp.eq.f32.partialorder %v10108_v33, %v8076_v30 }
 0x412   : > { %v3946_v6 = vsel %vm3722_vm8, %v10183_v24, 0.0  ;;  %vm3803_vm8 = vcmp.eq.f32.partialorder %v10205_v42, %v7908_v25  ;;  %v10209_v33 = vld [vmem:[#allocation38_spill] sm:$0xff] }
 0x413   : > { %v4189_v16 = vadd.f32 %v4188_v39, %v4009_v20  ;;  %v4274_v60 = vadd.f32 %v4273_v23, %v3946_v6  ;;  %v4013_v39 = vsel %vm3789_vm1, %v10186_v54, 0.0  ;;  %v10187_v20 = vld [vmem:[#allocation51_spill] sm:$0xff]  ;;  %v8193_v54 = vpop.f32.mrf.mxu1  ;;  %vm3738_vm1 = vcmp.eq.f32.partialorder %v10111_v29, %v8076_v30  ;;  %v10212_v29 = vld [vmem:[#allocation169_spill] sm:$0xff] }
 0x414   : > { %v3948_v18 = vsel %vm3724_vm9, %v10187_v20, 0.0  ;;  %10192 = vst [vmem:[#allocation297_spill] sm:$0xff] %v8193_v54  ;;  %v10193_v20 = vld [vmem:[#allocation190_spill] sm:$0xff]  ;;  %vm3805_vm9 = vcmp.eq.f32.partialorder %v10209_v33, %v7908_v25 }
 0x415   : > { %v4190_v12 = vadd.f32 %v4189_v16, %v4011_v2  ;;  %v4275_v34 = vadd.f32 %v4274_v60, %v3948_v18  ;;  %v4015_v16 = vsel %vm3791_vm12, %v10189_v27, 0.0  ;;  %v10190_v2 = vld [vmem:[#allocation55_spill] sm:$0xff]  ;;  %v10196_v27 = vld [vmem:[#allocation194_spill] sm:$0xff]  ;;  %vm3740_vm12 = vcmp.eq.f32.partialorder %v10113_v13, %v8076_v30 }
 0x416   : > { %v3950_v24 = vsel %vm3726_vm15, %v10190_v2, 0.0  ;;  %vm3807_vm15 = vcmp.eq.f32.partialorder %v10212_v29, %v7908_v25  ;;  %v10216_v13 = vld [vmem:[#allocation42_spill] sm:$0xff] }
 0x417   : > { %v4191_v49 = vadd.f32 %v4190_v12, %v4013_v39  ;;  %v4276_v6 = vadd.f32 %v4275_v34, %v3950_v24  ;;  %v4017_v12 = vsel %vm3793_vm3, %v10193_v20, 0.0  ;;  %v10194_v39 = vld [vmem:[#allocation59_spill] sm:$0xff]  ;;  %v8207_v20 = vpop.f32.mrf.mxu1  ;;  %vm3742_vm3 = vcmp.eq.f32.partialorder %v10116_v46, %v8076_v30  ;;  %v10219_v46 = vld [vmem:[#allocation173_spill] sm:$0xff] }
 0x418   : > { %v3952_v50 = vsel %vm3728_vm11, %v10194_v39, 0.0  ;;  %10199 = vst [vmem:[#allocation228_spill] sm:$0xff] %v8207_v20  ;;  %v10200_v39 = vld [vmem:[#allocation200_spill] sm:$0xff]  ;;  %vm3809_vm11 = vcmp.eq.f32.partialorder %v10216_v13, %v7908_v25 }
 0x419   : > { %v4192_v23 = vadd.f32 %v4191_v49, %v4015_v16  ;;  %v4277_v60 = vadd.f32 %v4276_v6, %v3952_v50  ;;  %v4019_v49 = vsel %vm3795_vm4, %v10196_v27, 0.0  ;;  %v10197_v16 = vld [vmem:[#allocation64_spill] sm:$0xff]  ;;  %v10203_v27 = vld [vmem:[#allocation206_spill] sm:$0xff]  ;;  %vm3744_vm4 = vcmp.eq.f32.partialorder %v10118_v47, %v8076_v30  ;;  %v10223_v47 = vld [vmem:[#allocation45_spill] sm:$0xff] }
 0x41a   : > { %v3954_v2 = vsel %vm3730_vm0, %v10197_v16, 0.0  ;;  %vm3811_vm0 = vcmp.eq.f32.partialorder %v10219_v46, %v7908_v25 }
 0x41b   : > { %v4193_v18 = vadd.f32 %v4192_v23, %v4017_v12  ;;  %v4278_v24 = vadd.f32 %v4277_v60, %v3954_v2  ;;  %v4021_v23 = vsel %vm3797_vm2, %v10200_v39, 0.0  ;;  %v10201_v12 = vld [vmem:[#allocation68_spill] sm:$0xff]  ;;  %v8221_v39 = vpop.f32.mrf.mxu1  ;;  %vm3746_vm2 = vcmp.eq.f32.partialorder %v10121_v44, %v8076_v30  ;;  %v10226_v44 = vld [vmem:[#allocation177_spill] sm:$0xff] }
 0x41c   : > { %v3956_v54 = vsel %vm3732_vm5, %v10201_v12, 0.0  ;;  %10206 = vst [vmem:[#allocation299_spill] sm:$0xff] %v8221_v39  ;;  %v10207_v12 = vld [vmem:[#allocation212_spill] sm:$0xff]  ;;  %vm3813_vm5 = vcmp.eq.f32.partialorder %v10223_v47, %v7908_v25 }
 0x41d   : > { %v4194_v34 = vadd.f32 %v4193_v18, %v4019_v49  ;;  %v4279_v6 = vadd.f32 %v4278_v24, %v3956_v54  ;;  %v4023_v18 = vsel %vm3799_vm13, %v10203_v27, 0.0  ;;  %v10204_v49 = vld [vmem:[#allocation72_spill] sm:$0xff]  ;;  %v10210_v27 = vld [vmem:[#allocation218_spill] sm:$0xff]  ;;  %vm3748_vm13 = vcmp.eq.f32.partialorder %v10123_v41, %v8076_v30  ;;  %v10230_v41 = vld [vmem:[#allocation49_spill] sm:$0xff] }
 0x41e   : > { %v3958_v16 = vsel %vm3734_vm6, %v10204_v49, 0.0  ;;  %vm3815_vm6 = vcmp.eq.f32.partialorder %v10226_v44, %v7908_v25 }
 0x41f   : > { %v4195_v50 = vadd.f32 %v4194_v34, %v4021_v23  ;;  %v4280_v2 = vadd.f32 %v4279_v6, %v3958_v16  ;;  %v4025_v34 = vsel %vm3801_vm7, %v10207_v12, 0.0  ;;  %v10208_v23 = vld [vmem:[#allocation76_spill] sm:$0xff]  ;;  %v8235_v12 = vpop.f32.mrf.mxu1  ;;  %vm3750_vm7 = vcmp.eq.f32.partialorder %v10126_v57, %v8076_v30  ;;  %v10233_v57 = vld [vmem:[#allocation181_spill] sm:$0xff] }
 0x420   : > { %v3960_v20 = vsel %vm3736_vm14, %v10208_v23, 0.0  ;;  %10213 = vst [vmem:[#allocation231_spill] sm:$0xff] %v8235_v12  ;;  %v10214_v23 = vld [vmem:[#allocation224_spill] sm:$0xff]  ;;  %vm3817_vm14 = vcmp.eq.f32.partialorder %v10230_v41, %v7908_v25 }
 0x421   : > { %v4196_v60 = vadd.f32 %v4195_v50, %v4023_v18  ;;  %v4281_v24 = vadd.f32 %v4280_v2, %v3960_v20  ;;  %v4027_v50 = vsel %vm3803_vm8, %v10210_v27, 0.0  ;;  %v10211_v18 = vld [vmem:[#allocation80_spill] sm:$0xff]  ;;  %v10217_v27 = vld [vmem:[#allocation230_spill] sm:$0xff]  ;;  %vm3752_vm8 = vcmp.eq.f32.partialorder %v10128_v5, %v8076_v30 }
 0x422   : > { %v3962_v49 = vsel %vm3738_vm1, %v10211_v18, 0.0  ;;  %vm3819_vm1 = vcmp.eq.f32.partialorder %v10233_v57, %v7908_v25  ;;  %v10237_v5 = vld [vmem:[#allocation52_spill] sm:$0xff] }
 0x423   : > { %v4197_v54 = vadd.f32 %v4196_v60, %v4025_v34  ;;  %v4282_v16 = vadd.f32 %v4281_v24, %v3962_v49  ;;  %v4029_v60 = vsel %vm3805_vm9, %v10214_v23, 0.0  ;;  %v10215_v34 = vld [vmem:[#allocation84_spill] sm:$0xff]  ;;  %v8249_v23 = vpop.f32.mrf.mxu1  ;;  %vm3754_vm9 = vcmp.eq.f32.partialorder %v10131_v52, %v8076_v30  ;;  %v10240_v52 = vld [vmem:[#allocation185_spill] sm:$0xff] }
 0x424   : > { %v3964_v39 = vsel %vm3740_vm12, %v10215_v34, 0.0  ;;  %10220 = vst [vmem:[#allocation301_spill] sm:$0xff] %v8249_v23  ;;  %v10221_v34 = vld [vmem:[#allocation236_spill] sm:$0xff]  ;;  %vm3821_vm12 = vcmp.eq.f32.partialorder %v10237_v5, %v7908_v25 }
 0x425   : > { %v4198_v6 = vadd.f32 %v4197_v54, %v4027_v50  ;;  %v4283_v2 = vadd.f32 %v4282_v16, %v3964_v39  ;;  %v4031_v54 = vsel %vm3807_vm15, %v10217_v27, 0.0  ;;  %v10218_v50 = vld [vmem:[#allocation88_spill] sm:$0xff]  ;;  %v10224_v27 = vld [vmem:[#allocation193_spill] sm:$0xff]  ;;  %vm3756_vm15 = vcmp.eq.f32.partialorder %v10133_v8, %v8076_v30 }
 0x426   : > { %v3966_v18 = vsel %vm3742_vm3, %v10218_v50, 0.0  ;;  %vm3823_vm3 = vcmp.eq.f32.partialorder %v10240_v52, %v7908_v25  ;;  %v10244_v8 = vld [vmem:[#allocation189_spill] sm:$0xff] }
 0x427   : > { %v4199_v20 = vadd.f32 %v4198_v6, %v4029_v60  ;;  %v4284_v49 = vadd.f32 %v4283_v2, %v3966_v18  ;;  %v4033_v6 = vsel %vm3809_vm11, %v10221_v34, 0.0  ;;  %v10222_v60 = vld [vmem:[#allocation92_spill] sm:$0xff]  ;;  %v8263_v34 = vpop.f32.mrf.mxu1  ;;  %vm3758_vm11 = vcmp.eq.f32.partialorder %v10136_v1, %v8076_v30 }
 0x428   : > { %v3968_v12 = vsel %vm3744_vm4, %v10222_v60, 0.0  ;;  %10227 = vst [vmem:[#allocation234_spill] sm:$0xff] %v8263_v34  ;;  %v10228_v60 = vld [vmem:[#allocation79_spill] sm:$0xff]  ;;  %vm3825_vm4 = vcmp.eq.f32.partialorder %v10244_v8, %v7908_v25  ;;  %v10247_v1 = vld [vmem:[#allocation60_spill] sm:$0xff] }
 0x429   : > { %v4200_v24 = vadd.f32 %v4199_v20, %v4031_v54  ;;  %v4285_v16 = vadd.f32 %v4284_v49, %v3968_v12  ;;  %v4035_v20 = vsel %vm3811_vm0, %v10224_v27, 0.0  ;;  %v10225_v54 = vld [vmem:[#allocation96_spill] sm:$0xff]  ;;  %vm3760_vm0 = vcmp.eq.f32.partialorder %v10138_v59, %v8076_v30 }
 0x42a   : > { %v3970_v50 = vsel %vm3746_vm2, %v10225_v54, 0.0  ;;  %v10231_v27 = vld [vmem:[#allocation208_spill] sm:$0xff]  ;;  %vm3827_vm2 = vcmp.eq.f32.partialorder %v10247_v1, %v7908_v25 }
 0x42b   : > { %v4201_v39 = vadd.f32 %v4200_v24, %v4033_v6  ;;  %v4286_v18 = vadd.f32 %v4285_v16, %v3970_v50  ;;  %v4037_v24 = vsel %vm3813_vm5, %v10228_v60, 0.0  ;;  %v10229_v6 = vld [vmem:[#allocation100_spill] sm:$0xff]  ;;  %v8277_v60 = vpop.f32.mrf.mxu1  ;;  %vm3762_vm5 = vcmp.eq.f32.partialorder %v10141_v35, %v8076_v30  ;;  %v10254_v35 = vld [vmem:[#allocation199_spill] sm:$0xff] }
 0x42c   : > { %v3972_v23 = vsel %vm3748_vm13, %v10229_v6, 0.0  ;;  %10234 = vst [vmem:[#allocation303_spill] sm:$0xff] %v8277_v60  ;;  %v10235_v6 = vld [vmem:[#allocation211_spill] sm:$0xff]  ;;  %v10251_v59 = vld [vmem:[#allocation196_spill] sm:$0xff] }
 0x42d   : > { %v4202_v2 = vadd.f32 %v4201_v39, %v4035_v20  ;;  %v4287_v49 = vadd.f32 %v4286_v18, %v3972_v23  ;;  %v4039_v39 = vsel %vm3815_vm6, %v10231_v27, 0.0  ;;  %v10232_v20 = vld [vmem:[#allocation104_spill] sm:$0xff]  ;;  %v10238_v27 = vld [vmem:[#allocation217_spill] sm:$0xff]  ;;  %vm3829_vm13 = vcmp.eq.f32.partialorder %v10251_v59, %v7908_v25 }
 0x42e   : > { %v3974_v54 = vsel %vm3750_vm7, %v10232_v20, 0.0  ;;  %vm3764_vm6 = vcmp.eq.f32.partialorder %v9841_v10, %v8076_v30  ;;  %vm3831_vm7 = vcmp.eq.f32.partialorder %v10254_v35, %v7908_v25  ;;  %v10258_v10 = vld [vmem:[#allocation71_spill] sm:$0xff] }
 0x42f   : > { %v4203_v12 = vadd.f32 %v4202_v2, %v4037_v24  ;;  %v4288_v50 = vadd.f32 %v4287_v49, %v3974_v54  ;;  %v4041_v2 = vsel %vm3817_vm14, %v10235_v6, 0.0  ;;  %v10236_v24 = vld [vmem:[#allocation108_spill] sm:$0xff]  ;;  %v8291_v6 = vpop.f32.mrf.mxu1  ;;  %vm3766_vm14 = vcmp.eq.f32.partialorder %v9843_v37, %v8076_v30  ;;  %v10261_v37 = vld [vmem:[#allocation202_spill] sm:$0xff] }
 0x430   : > { %v3976_v34 = vsel %vm3752_vm8, %v10236_v24, 0.0  ;;  %10241 = vst [vmem:[#allocation237_spill] sm:$0xff] %v8291_v6  ;;  %v10242_v24 = vld [vmem:[#allocation226_spill] sm:$0xff]  ;;  %vm3833_vm8 = vcmp.eq.f32.partialorder %v10258_v10, %v7908_v25 }
 0x431   : > { %v4204_v16 = vadd.f32 %v4203_v12, %v4039_v39  ;;  %v4289_v18 = vadd.f32 %v4288_v50, %v3976_v34  ;;  %v4043_v12 = vsel %vm3819_vm1, %v10238_v27, 0.0  ;;  %v10239_v39 = vld [vmem:[#allocation112_spill] sm:$0xff]  ;;  %v10245_v27 = vld [vmem:[#allocation107_spill] sm:$0xff]  ;;  %vm3768_vm1 = vcmp.eq.f32.partialorder %v9846_v43, %v8076_v30  ;;  %v10265_v43 = vld [vmem:[#allocation205_spill] sm:$0xff] }
 0x432   : > { %v3978_v20 = vsel %vm3754_vm9, %v10239_v39, 0.0  ;;  %vm3835_vm9 = vcmp.eq.f32.partialorder %v10261_v37, %v7908_v25 }
 0x433   : > { %v4205_v23 = vadd.f32 %v4204_v16, %v4041_v2  ;;  %v4290_v54 = vadd.f32 %v4289_v18, %v3978_v20  ;;  %v4045_v16 = vsel %vm3821_vm12, %v10242_v24, 0.0  ;;  %v10243_v2 = vld [vmem:[#allocation116_spill] sm:$0xff]  ;;  %v8305_v24 = vpop.f32.mrf.mxu1  ;;  %vm3770_vm12 = vcmp.eq.f32.partialorder %v6823_v53, %v8076_v30  ;;  %v10268_v53 = vld [vmem:[#allocation87_spill] sm:$0xff] }
 0x434   : > { %v3980_v60 = vsel %vm3756_vm15, %v10243_v2, 0.0  ;;  %10248 = vst [vmem:[#allocation305_spill] sm:$0xff] %v8305_v24  ;;  %v10249_v2 = vld [vmem:[#allocation123_spill] sm:$0xff]  ;;  %vm3837_vm15 = vcmp.eq.f32.partialorder %v10265_v43, %v7908_v25 }
 0x435   : > { %v4206_v49 = vadd.f32 %v4205_v23, %v4043_v12  ;;  %v4291_v50 = vadd.f32 %v4290_v54, %v3980_v60  ;;  %v4047_v23 = vsel %vm3823_vm3, %v10245_v27, 0.0  ;;  %v10246_v12 = vld [vmem:[#allocation120_spill] sm:$0xff]  ;;  %v10252_v27 = vld [vmem:[#allocation131_spill] sm:$0xff]  ;;  %vm3772_vm3 = vcmp.eq.f32.partialorder %v10151_v21, %v8076_v30  ;;  %v10271_v21 = vld [vmem:[#allocation214_spill] sm:$0xff] }
 0x436   : > { %v3982_v39 = vsel %vm3758_vm11, %v10246_v12, 0.0  ;;  %vm3839_vm11 = vcmp.eq.f32.partialorder %v10268_v53, %v7908_v25 }
 0x437   : > { %v4207_v34 = vadd.f32 %v4206_v49, %v4045_v16  ;;  %v4292_v20 = vadd.f32 %v4291_v50, %v3982_v39  ;;  %v4049_v49 = vsel %vm3825_vm4, %v10249_v2, 0.0  ;;  %v10250_v16 = vld [vmem:[#allocation124_spill] sm:$0xff]  ;;  %v8319_v2 = vpop.f32.mrf.mxu1  ;;  %vm3774_vm4 = vcmp.eq.f32.partialorder %v10155_v56, %v8076_v30  ;;  %v10273_v56 = vld [vmem:[#allocation91_spill] sm:$0xff] }
 0x438   : > { %v3984_v6 = vsel %vm3760_vm0, %v10250_v16, 0.0  ;;  %10255 = vst [vmem:[#allocation240_spill] sm:$0xff] %v8319_v2  ;;  %v10256_v16 = vld [vmem:[#allocation345_spill] sm:$0xff]  ;;  %vm3841_vm0 = vcmp.eq.f32.partialorder %v10271_v21, %v7908_v25 }
 0x439   : > { %v4208_v18 = vadd.f32 %v4207_v34, %v4047_v23  ;;  %v4293_v54 = vadd.f32 %v4292_v20, %v3984_v6  ;;  %v4051_v34 = vsel %vm3827_vm2, %v10252_v27, 0.0  ;;  %v10253_v23 = vld [vmem:[#allocation128_spill] sm:$0xff]  ;;  %v10259_v27 = vld [vmem:[#allocation147_spill] sm:$0xff]  ;;  %vm3776_vm2 = vcmp.eq.f32.partialorder %v10158_v55, %v8076_v30  ;;  %v10275_v55 = vld [vmem:[#allocation125_spill] sm:$0xff] }
 0x43a   : > { %v3986_v12 = vsel %vm3762_vm5, %v10253_v23, 0.0  ;;  %vm3843_vm5 = vcmp.eq.f32.partialorder %v10273_v56, %v7908_v25 }
 0x43b   : > { %v4209_v60 = vadd.f32 %v4208_v18, %v4049_v49  ;;  %v4294_v39 = vadd.f32 %v4293_v54, %v3986_v12  ;;  %v4053_v18 = vsel %vm3829_vm13, %v10256_v16, 0.0  ;;  %v10257_v49 = vld [vmem:[#allocation132_spill] sm:$0xff]  ;;  %v8333_v16 = vpop.f32.mrf.mxu1  ;;  %vm3778_vm13 = vcmp.eq.f32.partialorder %v10162_v22, %v8076_v30  ;;  %v10277_v22 = vld [vmem:[#allocation342_spill] sm:$0xff] }
 0x43c   : > { %v3988_v24 = vsel %vm3764_vm6, %v10257_v49, 0.0  ;;  %10262 = vst [vmem:[#allocation307_spill] sm:$0xff] %v8333_v16  ;;  %v10263_v49 = vld [vmem:[#allocation12_spill] sm:$0xff]  ;;  %vm3845_vm6 = vcmp.eq.f32.partialorder %v10275_v55, %v7908_v25 }
 0x43d   : > { %v4210_v50 = vadd.f32 %v4209_v60, %v4051_v34  ;;  %v4295_v20 = vadd.f32 %v4294_v39, %v3988_v24  ;;  %v4055_v60 = vsel %vm3831_vm7, %v10259_v27, 0.0  ;;  %v10260_v34 = vld [vmem:[#allocation136_spill] sm:$0xff]  ;;  %v10266_v27 = vld [vmem:[#allocation259_spill] sm:$0xff]  ;;  %vm3780_vm7 = vcmp.eq.f32.partialorder %v10165_v17, %v8076_v30 }
 0x43e   : > { %v3990_v23 = vsel %vm3766_vm14, %v10260_v34, 0.0  ;;  %vm3847_vm14 = vcmp.eq.f32.partialorder %v10277_v22, %v7908_v25  ;;  %v10279_v17 = vld [vmem:[#allocation95_spill] sm:$0xff] }
 0x43f   : > { %v4211_v6 = vadd.f32 %v4210_v50, %v4053_v18  ;;  %v4296_v12 = vadd.f32 %v4295_v20, %v3990_v23  ;;  %v4057_v50 = vsel %vm3833_vm8, %v10263_v49, 0.0  ;;  %v10264_v18 = vld [vmem:[#allocation140_spill] sm:$0xff]  ;;  %v8347_v49 = vpop.f32.mrf.mxu1  ;;  %vm3782_vm8 = vcmp.eq.f32.partialorder %v10169_v15, %v8076_v30  ;;  %v10281_v15 = vld [vmem:[#allocation343_spill] sm:$0xff] }
 0x440   : > { %v3992_v2 = vsel %vm3768_vm1, %v10264_v18, 0.0  ;;  %v10269_v18 = vld [vmem:[#allocation265_spill] sm:$0xff]  ;;  %vm3849_vm1 = vcmp.eq.f32.partialorder %v10279_v17, %v7908_v25 }
 0x441   : > { %v4212_v54 = vadd.f32 %v4211_v6, %v4055_v60  ;;  %v4297_v39 = vadd.f32 %v4296_v12, %v3992_v2  ;;  %v4059_v6 = vsel %vm3835_vm9, %v10266_v27, 0.0  ;;  %v10267_v60 = vld [vmem:[#allocation144_spill] sm:$0xff]  ;;  %vm3784_vm9 = vcmp.eq.f32.partialorder %v10172_v4, %v8076_v30 }
 0x442   : > { %v3994_v34 = vsel %vm3770_vm12, %v10267_v60, 0.0  ;;  %v10272_v27 = vld [vmem:[#allocation152_spill] sm:$0xff]  ;;  %vm3851_vm12 = vcmp.eq.f32.partialorder %v10281_v15, %v7908_v25 }
 0x443   : > { %v4213_v24 = vadd.f32 %v4212_v54, %v4057_v50  ;;  %v4298_v23 = vadd.f32 %v4297_v39, %v3994_v34  ;;  %v4061_v54 = vsel %vm3837_vm15, %v10269_v18, 0.0  ;;  %v10270_v50 = vld [vmem:[#allocation148_spill] sm:$0xff]  ;;  %v8361_v34 = vpop.f32.mrf.mxu1  ;;  %vm3786_vm15 = vcmp.eq.f32.partialorder %v6940_v61, %v8076_v30 }
 0x444   : > { %v3996_v16 = vsel %vm3772_vm3, %v10270_v50, 0.0  ;;  %v10274_v18 = vld [vmem:[#allocation156_spill] sm:$0xff]  ;;  %vm3788_vm3 = vcmp.eq.f32.partialorder %v10178_v58, %v8076_v30 }
 0x445   : > { %v4214_v20 = vadd.f32 %v4213_v24, %v4059_v6  ;;  %v4299_v12 = vadd.f32 %v4298_v23, %v3996_v16  ;;  %v4063_v24 = vsel %vm3839_vm11, %v7810_v28, 0.0  ;;  %v3998_v6 = vsel %vm3774_vm4, %v10272_v27, 0.0  ;;  %v10276_v50 = vld [vmem:[#allocation160_spill] sm:$0xff] }
 0x446   : > { %v4067_v23 = vsel %vm3843_vm5, %v7842_v32, 0.0  ;;  %v4069_v27 = vsel %vm3845_vm6, %v7858_v40, 0.0  ;;  %vm3790_vm4 = vcmp.eq.f32.partialorder %v10181_v11, %v8076_v30  ;;  %vm3857_vm5 = vcmp.eq.f32.partialorder %v7349_v14, %v7908_v25 }
 0x447   : > { %v4215_v2 = vadd.f32 %v4214_v20, %v4061_v54  ;;  %v4300_v60 = vadd.f32 %v4299_v12, %v3998_v6  ;;  %v4065_v20 = vsel %vm3841_vm0, %v7826_v7, 0.0  ;;  %v4000_v54 = vsel %vm3776_vm2, %v10274_v18, 0.0  ;;  %v10278_v6 = vld [vmem:[#allocation164_spill] sm:$0xff] }
 0x448   : > { %v10280_v18 = vld [vmem:[#allocation168_spill] sm:$0xff]  ;;  %vm3792_vm2 = vcmp.eq.f32.partialorder %v10184_v36, %v8076_v30  ;;  %vm3859_vm6 = vcmp.eq.f32.partialorder %v7372_v26, %v7908_v25 }
 0x449   : > { %v4216_v39 = vadd.f32 %v4215_v2, %v4063_v24  ;;  %v4301_v16 = vadd.f32 %v4300_v60, %v4000_v54  ;;  %v4002_v2 = vsel %vm3778_vm13, %v10276_v50, 0.0  ;;  %v8375_v24 = vpop.f32.mrf.mxu1  ;;  %v4006_v54 = vsel %vm3782_vm8, %v10280_v18, 0.0  ;;  %v10282_v50 = vld [vmem:[#allocation172_spill] sm:$0xff] }
 0x44a   : > { %vm3794_vm13 = vcmp.eq.f32.partialorder %v10188_v63, %v8076_v30  ;;  %v10288_v36 = vld [vmem:[#allocation188_spill] sm:$0xff]  ;;  %vm3798_vm8 = vcmp.eq.f32.partialorder %v10195_v45, %v8076_v30  ;;  %v10297_v45 = vld [vmem:[#allocation203_spill] sm:$0xff] }
 0x44b   : > { %v4217_v28 = vadd.f32 %v4216_v39, %v4065_v20  ;;  %v4302_v7 = vadd.f32 %v4301_v16, %v4002_v2  ;;  %v4004_v39 = vsel %vm3780_vm7, %v10278_v6, 0.0  ;;  %v4071_v20 = vsel %vm3847_vm14, %v7874_v19, 0.0  ;;  %v8389_v16 = vpop.f32.mrf.mxu1  ;;  %v10291_v63 = vld [vmem:[#allocation192_spill] sm:$0xff] }
 0x44c   : > { %v4008_v2 = vsel %vm3784_vm9, %v10282_v50, 0.0  ;;  %v4016_v50 = vsel %vm3792_vm2, %v10288_v36, 0.0  ;;  %vm3796_vm7 = vcmp.eq.f32.partialorder %v10191_v62, %v8076_v30  ;;  %v10294_v62 = vld [vmem:[#allocation197_spill] sm:$0xff]  ;;  %vm3800_vm9 = vcmp.eq.f32.partialorder %v10198_v9, %v8076_v30  ;;  %v10298_v36 = vld [vmem:[#allocation207_spill] sm:$0xff] }
 0x44d   : > { %v4218_v12 = vadd.f32 %v4217_v28, %v4067_v23  ;;  %v4303_v60 = vadd.f32 %v4302_v7, %v4004_v39  ;;  %v4073_v23 = vsel %vm3849_vm1, %v7890_v38, 0.0  ;;  %v4075_v7 = vsel %vm3851_vm12, %v7903_v3, 0.0  ;;  %v10285_v38 = vld [vmem:[#allocation99_spill] sm:$0xff]  ;;  %v10300_v9 = vld [vmem:[#allocation209_spill] sm:$0xff] }
 0x44e   : > { %vm3855_vm0 = vcmp.eq.f32.partialorder %v10285_v38, %v7908_v25 }
 0x44f   : > { %v4219_v32 = vadd.f32 %v4218_v12, %v4069_v27  ;;  %v4304_v40 = vadd.f32 %v4303_v60, %v4006_v54  ;;  %v10283_v12 = vld [vmem:[#allocation220_spill] sm:$0xff] }
 0x450   : > { %vm3853_vm11 = vcmp.eq.f32.partialorder %v10283_v12, %v7908_v25  ;;  %v10284_v27 = vld [vmem:[#allocation176_spill] sm:$0xff] }
 0x451   : > { %v4220_v28 = vadd.f32 %v4219_v32, %v4071_v20  ;;  %v4305_v19 = vadd.f32 %v4304_v40, %v4008_v2  ;;  %v4010_v6 = vsel %vm3786_vm15, %v10284_v27, 0.0  ;;  %v8403_v32 = vpop.f32.mrf.mxu1  ;;  %v10286_v60 = vld [vmem:[#allocation180_spill] sm:$0xff]  ;;  %v4077_v20 = vsel %vm3853_vm11, %v7919_v31, 0.0  ;;  %v10289_v2 = vld [vmem:[#allocation198_spill] sm:$0xff] }
 0x452   : > { %v4012_v58 = vsel %vm3788_vm3, %v10286_v60, 0.0  ;;  %v10287_v54 = vld [vmem:[#allocation184_spill] sm:$0xff]  ;;  %v4018_v27 = vsel %vm3794_vm13, %v10291_v63, 0.0  ;;  %vm3802_vm15 = vcmp.eq.f32.partialorder %v10202_v51, %v8076_v30  ;;  %v4024_v63 = vsel %vm3800_vm9, %v10300_v9, 0.0  ;;  %v10303_v51 = vld [vmem:[#allocation215_spill] sm:$0xff] }
 0x453   : > { %v4221_v4 = vadd.f32 %v4220_v28, %v4073_v23  ;;  %v4306_v39 = vadd.f32 %v4305_v19, %v4010_v6  ;;  %v4014_v11 = vsel %vm3790_vm4, %v10287_v54, 0.0  ;;  %v4079_v28 = vsel %vm3855_vm0, %v7938_v48, 0.0  ;;  %v8417_v31 = vpop.f32.mrf.mxu1  ;;  %v10290_v48 = vld [vmem:[#allocation229_spill] sm:$0xff]  ;;  %v10308_v9 = vld [vmem:[#allocation227_spill] sm:$0xff] }
 0x454   : > { %vm3861_vm14 = vcmp.eq.f32.partialorder %v10290_v48, %v7908_v25  ;;  %v10292_v6 = vld [vmem:[#allocation201_spill] sm:$0xff]  ;;  %vm3804_vm11 = vcmp.eq.f32.partialorder %v10205_v42, %v8076_v30  ;;  %vm3806_vm0 = vcmp.eq.f32.partialorder %v10209_v33, %v8076_v30  ;;  %vm3810_vm13 = vcmp.eq.f32.partialorder %v10216_v13, %v8076_v30 }
 0x455   : > { %v4222_v61 = vadd.f32 %v4221_v4, %v4075_v7  ;;  %v4307_v3 = vadd.f32 %v4306_v39, %v4012_v58  ;;  %v4081_v4 = vsel %vm3857_vm5, %v10289_v2, 0.0  ;;  %v10293_v58 = vld [vmem:[#allocation232_spill] sm:$0xff]  ;;  %v10306_v42 = vld [vmem:[#allocation221_spill] sm:$0xff]  ;;  %vm3808_vm5 = vcmp.eq.f32.partialorder %v10212_v29, %v8076_v30 }
 0x456   : > { %vm3863_vm1 = vcmp.eq.f32.partialorder %v10293_v58, %v7908_v25  ;;  %vm3818_vm9 = vcmp.eq.f32.partialorder %v10230_v41, %v8076_v30 }
 0x457   : > { %v4223_v18 = vadd.f32 %v4222_v61, %v4077_v20  ;;  %v4308_v40 = vadd.f32 %v4307_v3, %v4014_v11  ;;  %v4083_v61 = vsel %vm3859_vm6, %v10292_v6, 0.0  ;;  %v8431_v20 = vpop.f32.mrf.mxu1  ;;  %v4020_v3 = vsel %vm3796_vm7, %v10294_v62, 0.0 }
 0x458   : > { %v4026_v62 = vsel %vm3802_vm15, %v10303_v51, 0.0  ;;  %vm3812_vm7 = vcmp.eq.f32.partialorder %v10219_v46, %v8076_v30  ;;  %vm3820_vm15 = vcmp.eq.f32.partialorder %v10233_v57, %v8076_v30 }
 0x459   : > { %v4224_v23 = vadd.f32 %v4223_v18, %v4079_v28  ;;  %v4309_v19 = vadd.f32 %v4308_v40, %v4016_v50  ;;  %v10295_v18 = vld [vmem:[#allocation204_spill] sm:$0xff]  ;;  %v10296_v40 = vld [vmem:[#allocation235_spill] sm:$0xff]  ;;  %v4087_v50 = vsel %vm3863_vm1, %v10298_v36, 0.0  ;;  %vm3816_vm1 = vcmp.eq.f32.partialorder %v10226_v44, %v8076_v30 }
 0x45a   : > { %v4085_v54 = vsel %vm3861_vm14, %v10295_v18, 0.0  ;;  %vm3865_vm12 = vcmp.eq.f32.partialorder %v10296_v40, %v7908_v25  ;;  %v10307_v36 = vld [vmem:[#allocation216_spill] sm:$0xff]  ;;  %vm3814_vm14 = vcmp.eq.f32.partialorder %v10223_v47, %v8076_v30 }
 0x45b   : > { %v4225_v7 = vadd.f32 %v4224_v23, %v4081_v4  ;;  %v4310_v39 = vadd.f32 %v4309_v19, %v4018_v27  ;;  %v4022_v23 = vsel %vm3798_vm8, %v10297_v45, 0.0  ;;  %v10299_v19 = vld [vmem:[#allocation238_spill] sm:$0xff] }
 0x45c   : > { %vm3867_vm3 = vcmp.eq.f32.partialorder %v10299_v19, %v7908_v25  ;;  %v10301_v27 = vld [vmem:[#allocation210_spill] sm:$0xff] }
 0x45d   : > { %v4226_v60 = vadd.f32 %v4225_v7, %v4083_v61  ;;  %v4311_v11 = vadd.f32 %v4310_v39, %v4020_v3  ;;  %v8445_v7 = vpop.f32.mrf.mxu1  ;;  %v4089_v6 = vsel %vm3865_vm12, %v10301_v27, 0.0  ;;  %v10304_v3 = vld [vmem:[#allocation213_spill] sm:$0xff]  ;;  %v10309_v27 = vld [vmem:[#allocation219_spill] sm:$0xff] }
 0x45e   : > { %v4091_v18 = vsel %vm3867_vm3, %v10304_v3, 0.0  ;;  %vm3822_vm3 = vcmp.eq.f32.partialorder %v10237_v5, %v8076_v30 }
 0x45f   : > { %v4227_v28 = vadd.f32 %v4226_v60, %v4085_v54  ;;  %v4312_v2 = vadd.f32 %v4311_v11, %v4022_v23  ;;  %v10302_v60 = vld [vmem:[#allocation241_spill] sm:$0xff]  ;;  %v8459_v45 = vpop.f32.mrf.mxu1  ;;  %v4028_v23 = vsel %vm3804_vm11, %v10306_v42, 0.0 }
 0x460   : > { %vm3869_vm4 = vcmp.eq.f32.partialorder %v10302_v60, %v7908_v25 }
 0x461   : > { %v4228_v4 = vadd.f32 %v4227_v28, %v4087_v50  ;;  %v4313_v61 = vadd.f32 %v4312_v2, %v4024_v63  ;;  %v10305_v28 = vld [vmem:[#allocation111_spill] sm:$0xff]  ;;  %v4093_v50 = vsel %vm3869_vm4, %v10307_v36, 0.0  ;;  %v4030_v63 = vsel %vm3806_vm0, %v10308_v9, 0.0  ;;  %v8471_v51 = vpop.f32.mrf.mxu1  ;;  %v10314_v36 = vld [vmem:[#allocation113_spill] sm:$0xff] }
 0x462   : > { %vm3871_vm2 = vcmp.eq.f32.partialorder %v10305_v28, %v7908_v25  ;;  %vm3875_vm8 = vcmp.eq.f32.partialorder %v10314_v36, %v7908_v25  ;;  %v10316_v9 = vld [vmem:[#allocation121_spill] sm:$0xff]  ;;  %vm3824_vm4 = vcmp.eq.f32.partialorder %v10240_v52, %v8076_v30  ;;  %vm3826_vm0 = vcmp.eq.f32.partialorder %v10244_v8, %v8076_v30 }
 0x463   : > { %v4229_v39 = vadd.f32 %v4228_v4, %v4089_v6  ;;  %v4314_v54 = vadd.f32 %v4313_v61, %v4026_v62  ;;  %v4095_v33 = vsel %vm3871_vm2, %v10309_v27, 0.0  ;;  %v10311_v62 = vld [vmem:[#allocation233_spill] sm:$0xff]  ;;  %v4099_v27 = vsel %vm3875_vm8, %v8165_v0, 0.0 }
 0x464   : > { %v4032_v3 = vsel %vm3808_vm5, %v10311_v62, 0.0  ;;  %v10318_v62 = vld [vmem:[#allocation83_spill] sm:$0xff]  ;;  %vm3828_vm5 = vcmp.eq.f32.partialorder %v10247_v1, %v8076_v30 }
 0x465   : > { %v4230_v11 = vadd.f32 %v4229_v39, %v4091_v18  ;;  %v4315_v2 = vadd.f32 %v4314_v54, %v4028_v23  ;;  %v10310_v39 = vld [vmem:[#allocation109_spill] sm:$0xff]  ;;  %v10312_v18 = vld [vmem:[#allocation239_spill] sm:$0xff] }
 0x466   : > { %vm3873_vm6 = vcmp.eq.f32.partialorder %v10310_v39, %v7908_v25  ;;  %v4034_v54 = vsel %vm3810_vm13, %v10312_v18, 0.0  ;;  %vm3830_vm13 = vcmp.eq.f32.partialorder %v10251_v59, %v8076_v30 }
 0x467   : > { %v4231_v4 = vadd.f32 %v4230_v11, %v4093_v50  ;;  %v4316_v6 = vadd.f32 %v4315_v2, %v4030_v63  ;;  %v10313_v11 = vld [vmem:[#allocation222_spill] sm:$0xff]  ;;  %v8482_v50 = vpop.f32.mrf.mxu1  ;;  %v10315_v2 = vld [vmem:[#allocation67_spill] sm:$0xff]  ;;  %v4038_v63 = vsel %vm3814_vm14, %v10316_v9, 0.0  ;;  %vm3834_vm14 = vcmp.eq.f32.partialorder %v10258_v10, %v8076_v30 }
 0x468   : > { %v4097_v42 = vsel %vm3873_vm6, %v10313_v11, 0.0  ;;  %v10324_v9 = vld [vmem:[#allocation299_spill] sm:$0xff] }
 0x469   : > { %v4232_v61 = vadd.f32 %v4231_v4, %v4095_v33  ;;  %v4317_v29 = vadd.f32 %v4316_v6, %v4032_v3  ;;  %v4036_v4 = vsel %vm3812_vm7, %v10315_v2, 0.0  ;;  %v10317_v6 = vld [vmem:[#allocation117_spill] sm:$0xff]  ;;  %v4040_v3 = vsel %vm3816_vm1, %v10318_v62, 0.0  ;;  %v10326_v62 = vld [vmem:[#allocation115_spill] sm:$0xff] }
 0x46a   : > { %vm3877_vm12 = vcmp.eq.f32.partialorder %v10317_v6, %v7908_v25  ;;  %vm3832_vm7 = vcmp.eq.f32.partialorder %v10254_v35, %v8076_v30  ;;  %vm3836_vm1 = vcmp.eq.f32.partialorder %v10261_v37, %v8076_v30 }
 0x46b   : > { %v4318_v13 = vadd.f32 %v4317_v29, %v4034_v54  ;;  %v4233_v23 = vadd.f32 %v4232_v61, %v4097_v42  ;;  %v8493_v61 = vpop.f32.mrf.mxu1  ;;  %v10319_v29 = vld [vmem:[#allocation341_spill] sm:$0xff] }
 0x46c   : > { %v4042_v18 = vsel %vm3818_vm9, %v10319_v29, 0.0  ;;  %v10320_v54 = vld [vmem:[#allocation297_spill] sm:$0xff]  ;;  %vm3838_vm9 = vcmp.eq.f32.partialorder %v10265_v43, %v8076_v30 }
 0x46d   : > { %v4319_v46 = vadd.f32 %v4318_v13, %v4036_v4  ;;  %v4234_v33 = vadd.f32 %v4233_v23, %v4099_v27  ;;  %v4101_v0 = vsel %vm3877_vm12, %v10320_v54, 0.0  ;;  %v10321_v42 = vld [vmem:[#allocation245_spill] sm:$0xff]  ;;  %v8504_v13 = vpop.f32.mrf.mxu1  ;;  %v10322_v23 = vld [vmem:[#allocation223_spill] sm:$0xff] }
 0x46e   : > { %vm3879_vm11 = vcmp.eq.f32.partialorder %v10321_v42, %v7908_v25  ;;  %v4044_v2 = vsel %vm3820_vm15, %v10322_v23, 0.0  ;;  %v10323_v4 = vld [vmem:[#allocation103_spill] sm:$0xff]  ;;  %v10330_v23 = vld [vmem:[#allocation129_spill] sm:$0xff]  ;;  %vm3840_vm15 = vcmp.eq.f32.partialorder %v10268_v53, %v8076_v30 }
 0x46f   : > { %v4320_v47 = vadd.f32 %v4319_v46, %v4038_v63  ;;  %v4235_v11 = vadd.f32 %v4234_v33, %v4101_v0  ;;  %v4046_v46 = vsel %vm3822_vm3, %v10323_v4, 0.0  ;;  %v4103_v63 = vsel %vm3879_vm11, %v10324_v9, 0.0  ;;  %v8515_v33 = vpop.f32.mrf.mxu1 }
 0x470   : > { %vm3842_vm3 = vcmp.eq.f32.partialorder %v10271_v21, %v8076_v30 }
 0x471   : > { %v4321_v44 = vadd.f32 %v4320_v47, %v4040_v3  ;;  %v4236_v27 = vadd.f32 %v4235_v11, %v4103_v63  ;;  %v10325_v47 = vld [vmem:[#allocation135_spill] sm:$0xff]  ;;  %v4048_v3 = vsel %vm3824_vm4, %v10326_v62, 0.0  ;;  %v8526_v11 = vpop.f32.mrf.mxu1  ;;  %v10334_v62 = vld [vmem:[#allocation253_spill] sm:$0xff]  ;;  %vm3844_vm4 = vcmp.eq.f32.partialorder %v10273_v56, %v8076_v30 }
 0x472   : > { %vm3881_vm2 = vcmp.eq.f32.partialorder %v10325_v47, %v7908_v25 }
 0x473   : > { %v4322_v41 = vadd.f32 %v4321_v44, %v4042_v18  ;;  %v10327_v44 = vld [vmem:[#allocation127_spill] sm:$0xff]  ;;  %v10328_v18 = vld [vmem:[#allocation301_spill] sm:$0xff] }
 0x474   : > { %v4050_v29 = vsel %vm3826_vm0, %v10327_v44, 0.0  ;;  %v4105_v54 = vsel %vm3881_vm2, %v10328_v18, 0.0  ;;  %vm3846_vm0 = vcmp.eq.f32.partialorder %v10275_v55, %v8076_v30 }
 0x475   : > { %v4323_v57 = vadd.f32 %v4322_v41, %v4044_v2  ;;  %v4237_v0 = vadd.f32 %v4236_v27, %v4105_v54  ;;  %v10329_v41 = vld [vmem:[#allocation247_spill] sm:$0xff]  ;;  %v4052_v2 = vsel %vm3828_vm5, %v10330_v23, 0.0  ;;  %v8537_v27 = vpop.f32.mrf.mxu1  ;;  %vm3848_vm5 = vcmp.eq.f32.partialorder %v10277_v22, %v8076_v30 }
 0x476   : > { %vm3883_vm6 = vcmp.eq.f32.partialorder %v10329_v41, %v7908_v25  ;;  %v10338_v23 = vld [vmem:[#allocation167_spill] sm:$0xff] }
 0x477   : > { %v4324_v5 = vadd.f32 %v4323_v57, %v4046_v46  ;;  %v10331_v57 = vld [vmem:[#allocation133_spill] sm:$0xff]  ;;  %v10332_v46 = vld [vmem:[#allocation303_spill] sm:$0xff] }
 0x478   : > { %v4054_v4 = vsel %vm3830_vm13, %v10331_v57, 0.0  ;;  %v4107_v9 = vsel %vm3883_vm6, %v10332_v46, 0.0  ;;  %vm3850_vm13 = vcmp.eq.f32.partialorder %v10279_v17, %v8076_v30 }
 0x479   : > { %v4325_v52 = vadd.f32 %v4324_v5, %v4048_v3  ;;  %v4238_v63 = vadd.f32 %v4237_v0, %v4107_v9  ;;  %v10333_v5 = vld [vmem:[#allocation139_spill] sm:$0xff]  ;;  %v4056_v3 = vsel %vm3832_vm7, %v10334_v62, 0.0  ;;  %v8548_v0 = vpop.f32.mrf.mxu1  ;;  %v10342_v62 = vld [vmem:[#allocation269_spill] sm:$0xff]  ;;  %vm3852_vm7 = vcmp.eq.f32.partialorder %v10281_v15, %v8076_v30 }
 0x47a   : > { %vm3885_vm8 = vcmp.eq.f32.partialorder %v10333_v5, %v7908_v25  ;;  %v10352_v15 = vld [vmem:[#allocation195_spill] sm:$0xff] }
 0x47b   : > { %v4326_v8 = vadd.f32 %v4325_v52, %v4050_v29  ;;  %v10335_v52 = vld [vmem:[#allocation141_spill] sm:$0xff] }
 0x47c   : > { %v4058_v44 = vsel %vm3834_vm14, %v10335_v52, 0.0  ;;  %v10336_v29 = vld [vmem:[#allocation305_spill] sm:$0xff]  ;;  %vm3854_vm14 = vcmp.eq.f32.partialorder %v10283_v12, %v8076_v30 }
 0x47d   : > { %v4327_v1 = vadd.f32 %v4326_v8, %v4052_v2  ;;  %v4109_v18 = vsel %vm3885_vm8, %v10336_v29, 0.0  ;;  %v10337_v8 = vld [vmem:[#allocation249_spill] sm:$0xff]  ;;  %v4060_v2 = vsel %vm3836_vm1, %v10338_v23, 0.0  ;;  %vm3856_vm1 = vcmp.eq.f32.partialorder %v10285_v38, %v8076_v30  ;;  %v10355_v38 = vld [vmem:[#allocation279_spill] sm:$0xff] }
 0x47e   : > { %v4239_v54 = vadd.f32 %v4238_v63, %v4109_v18  ;;  %vm3887_vm12 = vcmp.eq.f32.partialorder %v10337_v8, %v7908_v25  ;;  %v8559_v63 = vpop.f32.mrf.mxu1  ;;  %v10344_v18 = vld [vmem:[#allocation347_spill] sm:$0xff] }
 0x47f   : > { %v4328_v59 = vadd.f32 %v4327_v1, %v4054_v4  ;;  %v10339_v1 = vld [vmem:[#allocation179_spill] sm:$0xff]  ;;  %vm3891_vm2 = vcmp.eq.f32.partialorder %v10344_v18, %v7908_v25 }
 0x480   : > { %v4062_v57 = vsel %vm3838_vm9, %v10339_v1, 0.0  ;;  %v10340_v4 = vld [vmem:[#allocation307_spill] sm:$0xff]  ;;  %vm3858_vm9 = vcmp.eq.f32.partialorder %v7349_v14, %v8076_v30 }
 0x481   : > { %v4329_v35 = vadd.f32 %v4328_v59, %v4056_v3  ;;  %v4111_v46 = vsel %vm3887_vm12, %v10340_v4, 0.0  ;;  %v10341_v59 = vld [vmem:[#allocation143_spill] sm:$0xff]  ;;  %v4064_v3 = vsel %vm3840_vm15, %v10342_v62, 0.0  ;;  %vm3860_vm15 = vcmp.eq.f32.partialorder %v7372_v26, %v8076_v30 }
 0x482   : > { %v4240_v9 = vadd.f32 %v4239_v54, %v4111_v46  ;;  %vm3889_vm11 = vcmp.eq.f32.partialorder %v10341_v59, %v7908_v25  ;;  %v10345_v54 = vld [vmem:[#allocation271_spill] sm:$0xff] }
 0x483   : > { %v4330_v10 = vadd.f32 %v4329_v35, %v4058_v44  ;;  %v10343_v35 = vld [vmem:[#allocation183_spill] sm:$0xff]  ;;  %v4113_v44 = vsel %vm3889_vm11, %v8361_v34, 0.0  ;;  %v4068_v23 = vsel %vm3844_vm4, %v10345_v54, 0.0  ;;  %v4115_v34 = vsel %vm3891_vm2, %v8389_v16, 0.0 }
 0x484   : > { %v4066_v52 = vsel %vm3842_vm3, %v10343_v35, 0.0  ;;  %v4241_v29 = vadd.f32 %v4240_v9, %v4113_v44  ;;  %v10348_v46 = vld [vmem:[#allocation187_spill] sm:$0xff]  ;;  %vm3862_vm3 = vcmp.eq.f32.partialorder %v10290_v48, %v8076_v30  ;;  %vm3864_vm4 = vcmp.eq.f32.partialorder %v10293_v58, %v8076_v30 }
 0x485   : > { %v4331_v37 = vadd.f32 %v4330_v10, %v4060_v2  ;;  %v8570_v10 = vpop.f32.mrf.mxu1  ;;  %v10346_v2 = vld [vmem:[#allocation273_spill] sm:$0xff]  ;;  %v10349_v9 = vld [vmem:[#allocation275_spill] sm:$0xff] }
 0x486   : > { %v4242_v1 = vadd.f32 %v4241_v29, %v4115_v34  ;;  %v4074_v62 = vsel %vm3850_vm13, %v10349_v9, 0.0  ;;  %v4078_v29 = vsel %vm3854_vm14, %v10352_v15, 0.0  ;;  %v10358_v26 = vld [vmem:[#allocation283_spill] sm:$0xff]  ;;  %vm3870_vm13 = vcmp.eq.f32.partialorder %v10302_v60, %v8076_v30 }
 0x487   : > { %v4332_v43 = vadd.f32 %v4331_v37, %v4062_v57  ;;  %v4070_v37 = vsel %vm3846_vm0, %v10346_v2, 0.0  ;;  %v10347_v57 = vld [vmem:[#allocation251_spill] sm:$0xff]  ;;  %v8581_v4 = vpop.f32.mrf.mxu1  ;;  %v10354_v2 = vld [vmem:[#allocation277_spill] sm:$0xff]  ;;  %vm3866_vm0 = vcmp.eq.f32.partialorder %v10296_v40, %v8076_v30  ;;  %vm3874_vm14 = vcmp.eq.f32.partialorder %v10310_v39, %v8076_v30 }
 0x488   : > { %vm3893_vm6 = vcmp.eq.f32.partialorder %v10347_v57, %v7908_v25  ;;  %v10361_v58 = vld [vmem:[#allocation287_spill] sm:$0xff] }
 0x489   : > { %v4333_v53 = vadd.f32 %v4332_v43, %v4064_v3  ;;  %v4072_v43 = vsel %vm3848_vm5, %v10348_v46, 0.0  ;;  %v4117_v16 = vsel %vm3893_vm6, %v8417_v31, 0.0  ;;  %v8592_v35 = vpop.f32.mrf.mxu1  ;;  %v10356_v46 = vld [vmem:[#allocation151_spill] sm:$0xff]  ;;  %vm3868_vm5 = vcmp.eq.f32.partialorder %v10299_v19, %v8076_v30 }
 0x48a   : > { %v4243_v17 = vadd.f32 %v4242_v1, %v4117_v16  ;;  %vm3899_vm11 = vcmp.eq.f32.partialorder %v10356_v46, %v7908_v25  ;;  %v4086_v16 = vsel %vm3862_vm3, %v10358_v26, 0.0  ;;  %v10364_v19 = vld [vmem:[#allocation291_spill] sm:$0xff]  ;;  %vm3882_vm3 = vcmp.eq.f32.partialorder %v10325_v47, %v8076_v30 }
 0x48b   : > { %v4334_v21 = vadd.f32 %v4333_v53, %v4066_v52  ;;  %v10350_v53 = vld [vmem:[#allocation348_spill] sm:$0xff]  ;;  %v10351_v52 = vld [vmem:[#allocation191_spill] sm:$0xff] }
 0x48c   : > { %vm3895_vm8 = vcmp.eq.f32.partialorder %v10350_v53, %v7908_v25  ;;  %v4076_v44 = vsel %vm3852_vm7, %v10351_v52, 0.0  ;;  %vm3872_vm7 = vcmp.eq.f32.partialorder %v10305_v28, %v8076_v30  ;;  %v10367_v28 = vld [vmem:[#allocation295_spill] sm:$0xff] }
 0x48d   : > { %v4335_v56 = vadd.f32 %v4334_v21, %v4068_v23  ;;  %v4119_v31 = vsel %vm3895_vm8, %v8445_v7, 0.0  ;;  %v10353_v23 = vld [vmem:[#allocation349_spill] sm:$0xff] }
 0x48e   : > { %v4244_v12 = vadd.f32 %v4243_v17, %v4119_v31  ;;  %vm3897_vm12 = vcmp.eq.f32.partialorder %v10353_v23, %v7908_v25  ;;  %v10359_v17 = vld [vmem:[#allocation137_spill] sm:$0xff] }
 0x48f   : > { %v4336_v55 = vadd.f32 %v4335_v56, %v4070_v37  ;;  %v8603_v56 = vpop.f32.mrf.mxu1  ;;  %v4080_v37 = vsel %vm3856_vm1, %v10354_v2, 0.0  ;;  %v4121_v7 = vsel %vm3897_vm12, %v8471_v51, 0.0  ;;  %v4123_v51 = vsel %vm3899_vm11, %v8493_v61, 0.0  ;;  %v10363_v2 = vld [vmem:[#allocation289_spill] sm:$0xff] }
 0x490   : > { %v4245_v14 = vadd.f32 %v4244_v12, %v4121_v7  ;;  %vm3901_vm2 = vcmp.eq.f32.partialorder %v10359_v17, %v7908_v25  ;;  %v10365_v7 = vld [vmem:[#allocation155_spill] sm:$0xff]  ;;  %vm3876_vm1 = vcmp.eq.f32.partialorder %v10314_v36, %v8076_v30  ;;  %v10370_v36 = vld [vmem:[#allocation228_spill] sm:$0xff] }
 0x491   : > { %v4337_v22 = vadd.f32 %v4336_v55, %v4072_v43  ;;  %v4082_v55 = vsel %vm3858_vm9, %v10355_v38, 0.0  ;;  %v8614_v43 = vpop.f32.mrf.mxu1  ;;  %v4125_v31 = vsel %vm3901_vm2, %v8515_v33, 0.0  ;;  %v4094_v38 = vsel %vm3870_vm13, %v10364_v19, 0.0 }
 0x492   : > { %v4246_v48 = vadd.f32 %v4245_v14, %v4123_v51  ;;  %vm3905_vm8 = vcmp.eq.f32.partialorder %v10365_v7, %v7908_v25  ;;  %v10366_v14 = vld [vmem:[#allocation293_spill] sm:$0xff]  ;;  %vm3878_vm9 = vcmp.eq.f32.partialorder %v10317_v6, %v8076_v30  ;;  %vm3890_vm13 = vcmp.eq.f32.partialorder %v10341_v59, %v8076_v30  ;;  %v10378_v59 = vld [vmem:[#allocation263_spill] sm:$0xff] }
 0x493   : > { %v4338_v3 = vadd.f32 %v4337_v22, %v4074_v62  ;;  %v10357_v22 = vld [vmem:[#allocation281_spill] sm:$0xff]  ;;  %v2523_v52 = vpop.f32.mrf.mxu1  ;;  %v4129_v26 = vsel %vm3905_vm8, %v8559_v63, 0.0  ;;  %vm3915_vm8 = vcmp.eq.f32.partialorder %v10378_v59, %v7908_v25 }
 0x494   : > { %v4084_v9 = vsel %vm3860_vm15, %v10357_v22, 0.0  ;;  %v4247_v40 = vadd.f32 %v4246_v48, %v4125_v31  ;;  %v4096_v22 = vsel %vm3872_vm7, %v10366_v14, 0.0  ;;  %vm3880_vm15 = vcmp.eq.f32.partialorder %v10321_v42, %v8076_v30  ;;  %v10372_v31 = vld [vmem:[#allocation231_spill] sm:$0xff]  ;;  %v10373_v42 = vld [vmem:[#allocation234_spill] sm:$0xff] }
 0x495   : > { %v4339_v21 = vadd.f32 %v4338_v3, %v4076_v44  ;;  %v10360_v44 = vld [vmem:[#allocation285_spill] sm:$0xff]  ;;  %v8634_v12 = vpop.f32.mrf.mxu1  ;;  %vm3892_vm7 = vcmp.eq.f32.partialorder %v10344_v18, %v8076_v30 }
 0x497   : > { %v4340_v54 = vadd.f32 %v4339_v21, %v4078_v29  ;;  %v4088_v21 = vsel %vm3864_vm4, %v10360_v44, 0.0  ;;  %v4090_v29 = vsel %vm3866_vm0, %v10361_v58, 0.0  ;;  %v10371_v58 = vld [vmem:[#allocation159_spill] sm:$0xff]  ;;  %vm3884_vm4 = vcmp.eq.f32.partialorder %v10329_v41, %v8076_v30  ;;  %v10376_v41 = vld [vmem:[#allocation240_spill] sm:$0xff] }
 0x498   : > { %vm3909_vm11 = vcmp.eq.f32.partialorder %v10371_v58, %v7908_v25  ;;  %vm3886_vm0 = vcmp.eq.f32.partialorder %v10333_v5, %v8076_v30 }
 0x499   : > { %v4341_v34 = vadd.f32 %v4340_v54, %v4080_v37  ;;  %v10362_v54 = vld [vmem:[#allocation255_spill] sm:$0xff]  ;;  %v4092_v37 = vsel %vm3868_vm5, %v10363_v2, 0.0  ;;  %v4106_v2 = vsel %vm3882_vm3, %v10373_v42, 0.0  ;;  %vm3888_vm5 = vcmp.eq.f32.partialorder %v10337_v8, %v8076_v30 }
 0x49a   : > { %vm3903_vm6 = vcmp.eq.f32.partialorder %v10362_v54, %v7908_v25  ;;  %v4114_v8 = vsel %vm3890_vm13, %v8375_v24, 0.0  ;;  %vm3902_vm3 = vcmp.eq.f32.partialorder %v10359_v17, %v8076_v30  ;;  %vm3910_vm13 = vcmp.eq.f32.partialorder %v10371_v58, %v8076_v30 }
 0x49b   : > { %v4342_v1 = vadd.f32 %v4341_v34, %v4082_v55  ;;  %v4127_v33 = vsel %vm3903_vm6, %v8537_v27, 0.0 }
 0x49c   : > { %v4248_v60 = vadd.f32 %v4247_v40, %v4127_v33 }
 0x49d   : > { %v4343_v62 = vadd.f32 %v4342_v1, %v4084_v9  ;;  %v2529_v1 = vpop.f32.mrf.mxu1 }
 0x49e   : > { %v4249_v39 = vadd.f32 %v4248_v60, %v4129_v26  ;;  %v4110_v60 = vsel %vm3886_vm0, %v10376_v41, 0.0  ;;  %vm3906_vm0 = vcmp.eq.f32.partialorder %v10365_v7, %v8076_v30 }
 0x49f   : > { %v4344_v3 = vadd.f32 %v4343_v62, %v4086_v16  ;;  %v4098_v62 = vsel %vm3874_vm14, %v10367_v28, 0.0  ;;  %v10368_v16 = vld [vmem:[#allocation257_spill] sm:$0xff]  ;;  %v8654_v51 = vpop.f32.mrf.mxu1  ;;  %v4112_v28 = vsel %vm3888_vm5, %v8347_v49, 0.0  ;;  %vm3894_vm14 = vcmp.eq.f32.partialorder %v10347_v57, %v8076_v30  ;;  %v10379_v57 = vld [vmem:[#allocation171_spill] sm:$0xff] }
 0x4a0   : > { %vm3907_vm12 = vcmp.eq.f32.partialorder %v10368_v16, %v7908_v25  ;;  %v4118_v49 = vsel %vm3894_vm14, %v8431_v20, 0.0  ;;  %vm3908_vm5 = vcmp.eq.f32.partialorder %v10368_v16, %v8076_v30  ;;  %vm3916_vm14 = vcmp.eq.f32.partialorder %v10378_v59, %v8076_v30  ;;  %v10383_v59 = vld [vmem:[#allocation63_spill] sm:$0xff] }
 0x4a1   : > { %v4345_v15 = vadd.f32 %v4344_v3, %v4088_v21  ;;  %v10369_v3 = vld [vmem:[#allocation225_spill] sm:$0xff]  ;;  %v4102_v21 = vsel %vm3878_vm9, %v10370_v36, 0.0  ;;  %v4131_v63 = vsel %vm3907_vm12, %v8581_v4, 0.0  ;;  %vm3898_vm9 = vcmp.eq.f32.partialorder %v10353_v23, %v8076_v30  ;;  %v10380_v23 = vld [vmem:[#allocation175_spill] sm:$0xff] }
 0x4a2   : > { %v4100_v48 = vsel %vm3876_vm1, %v10369_v3, 0.0  ;;  %v4250_v6 = vadd.f32 %v4249_v39, %v4131_v63  ;;  %v4116_v3 = vsel %vm3892_vm7, %v8403_v32, 0.0  ;;  %vm3896_vm1 = vcmp.eq.f32.partialorder %v10350_v53, %v8076_v30 }
 0x4a3   : > { %v4346_v61 = vadd.f32 %v4345_v15, %v4090_v29  ;;  %v2535_v29 = vpop.f32.mrf.mxu1  ;;  %vm3917_vm12 = vcmp.eq.f32.partialorder %v10379_v57, %v7908_v25  ;;  %v4120_v36 = vsel %vm3896_vm1, %v8459_v45, 0.0  ;;  %v4122_v32 = vsel %vm3898_vm9, %v8482_v50, 0.0 }
 0x4a4   : > { %v4139_v18 = vsel %vm3915_vm8, %v2535_v29, 0.0  ;;  %v4126_v45 = vsel %vm3902_vm3, %v8526_v11, 0.0  ;;  %v4132_v7 = vsel %vm3908_vm5, %v8592_v35, 0.0  ;;  %vm3918_vm8 = vcmp.eq.f32.partialorder %v10379_v57, %v8076_v30 }
 0x4a5   : > { %v4347_v34 = vadd.f32 %v4346_v61, %v4092_v37  ;;  %v4104_v61 = vsel %vm3880_vm15, %v10372_v31, 0.0  ;;  %v4133_v37 = vsel %vm3909_vm11, %v8603_v56, 0.0  ;;  %v8674_v19 = vpop.f32.mrf.mxu1  ;;  %vm3900_vm15 = vcmp.eq.f32.partialorder %v10356_v46, %v8076_v30 }
 0x4a6   : > { %v4251_v47 = vadd.f32 %v4250_v6, %v4133_v37  ;;  %vm3919_vm11 = vcmp.eq.f32.partialorder %v10380_v23, %v7908_v25  ;;  %v4124_v6 = vsel %vm3900_vm15, %v8504_v13, 0.0  ;;  %v4130_v13 = vsel %vm3906_vm0, %v8570_v10, 0.0 }
 0x4a7   : > { %v4348_v55 = vadd.f32 %v4347_v34, %v4094_v38  ;;  %v10374_v34 = vld [vmem:[#allocation163_spill] sm:$0xff]  ;;  %v10375_v38 = vld [vmem:[#allocation237_spill] sm:$0xff]  ;;  %vm3920_vm1 = vcmp.eq.f32.partialorder %v10380_v23, %v8076_v30 }
 0x4a8   : > { %vm3911_vm2 = vcmp.eq.f32.partialorder %v10374_v34, %v7908_v25  ;;  %v4108_v33 = vsel %vm3884_vm4, %v10375_v38, 0.0  ;;  %vm3904_vm4 = vcmp.eq.f32.partialorder %v10362_v54, %v8076_v30 }
 0x4a9   : > { %v4349_v9 = vadd.f32 %v4348_v55, %v4096_v22  ;;  %v4135_v14 = vsel %vm3911_vm2, %v2523_v52, 0.0  ;;  %v10377_v22 = vld [vmem:[#allocation261_spill] sm:$0xff] }
 0x4aa   : > { %v4252_v5 = vadd.f32 %v4251_v47, %v4135_v14  ;;  %vm3913_vm6 = vcmp.eq.f32.partialorder %v10377_v22, %v7908_v25  ;;  %vm3914_vm7 = vcmp.eq.f32.partialorder %v10377_v22, %v8076_v30 }
 0x4ab   : > { %v4350_v27 = vadd.f32 %v4349_v9, %v4098_v62  ;;  %v2541_v9 = vpop.f32.mrf.mxu1  ;;  %v4137_v26 = vsel %vm3913_vm6, %v2529_v1, 0.0  ;;  %vm3912_vm6 = vcmp.eq.f32.partialorder %v10374_v34, %v8076_v30  ;;  %v4138_v58 = vsel %vm3914_vm7, %v8654_v51, 0.0 }
 0x4ac   : > { %v4253_v52 = vadd.f32 %v4252_v5, %v4137_v26  ;;  %v4141_v53 = vsel %vm3917_vm12, %v2541_v9, 0.0  ;;  %v4136_v10 = vsel %vm3912_vm6, %v8634_v12, 0.0 }
 0x4ad   : > { %v4351_v44 = vadd.f32 %v4350_v27, %v4100_v48  ;;  %v2543_v39 = vpop.f32.mrf.mxu1 }
 0x4ae   : > { %v4254_v1 = vadd.f32 %v4253_v52, %v4139_v18  ;;  %v4142_v38 = vsel %vm3918_vm8, %v2543_v39, 0.0 }
 0x4af   : > { %v4352_v15 = vadd.f32 %v4351_v44, %v4102_v21  ;;  %v2547_v44 = vpop.f32.mrf.mxu1 }
 0x4b0   : > { %v4255_v63 = vadd.f32 %v4254_v1, %v4141_v53  ;;  %v4143_v46 = vsel %vm3919_vm11, %v2547_v44, 0.0 }
 0x4b1   : > { %v4353_v40 = vadd.f32 %v4352_v15, %v4104_v61  ;;  %v2549_v15 = vpop.f32.mrf.mxu1  ;;  %v10381_v61 = vld [vmem:[#allocation267_spill] sm:$0xff] }
 0x4b2   : > { %v4256_v31 = vadd.f32 %v4255_v63, %v4143_v46  ;;  %vm3921_vm2 = vcmp.eq.f32.partialorder %v10381_v61, %v7908_v25  ;;  %v4134_v25 = vsel %vm3910_vm13, %v8614_v43, 0.0  ;;  %v4140_v43 = vsel %vm3916_vm14, %v8674_v19, 0.0 }
 0x4b3   : > { %v4354_v4 = vadd.f32 %v4353_v40, %v4106_v2  ;;  %v2553_v17 = vpop.f32.mrf.mxu1  ;;  %v4128_v40 = vsel %vm3904_vm4, %v8548_v0, 0.0  ;;  %vm3922_vm9 = vcmp.eq.f32.partialorder %v10381_v61, %v8076_v30  ;;  %v4144_v41 = vsel %vm3920_vm1, %v2549_v15, 0.0 }
 0x4b4   : > { %v4145_v54 = vsel %vm3921_vm2, %v2553_v17, 0.0 }
 0x4b5   : > { %v4355_v55 = vadd.f32 %v4354_v4, %v4108_v33  ;;  %v4257_v2 = vadd.f32 %v4256_v31, %v4145_v54 }
 0x4b7   : > { %v4356_v56 = vadd.f32 %v4355_v55, %v4110_v60  ;;  %v4258_v16 = vrot.slane %v4257_v2, 4  ;;  %v2555_v55 = vpop.f32.mrf.mxu1 }
 0x4b8   : > { %v4146_v60 = vsel %vm3922_vm9, %v2555_v55, 0.0 }
 0x4b9   : > { %v4357_v62 = vadd.f32 %v4356_v56, %v4112_v28  ;;  %v4259_v47 = vadd.f32 %v4258_v16, %v4257_v2 }
 0x4bb   : > { %v4358_v27 = vadd.f32 %v4357_v62, %v4114_v8  ;;  %v4260_v12 = vrot.slane %v4259_v47, 2 }
 0x4bd   : > { %v4359_v48 = vadd.f32 %v4358_v27, %v4116_v3  ;;  %v4261_v14 = vadd.f32 %v4260_v12, %v4259_v47  ;;  %v10382_v27 = vld [vmem:[#allocation56_spill] sm:$0xff]  ;;  %v10384_v3 = vld [vmem:[#allocation119_spill] sm:$0xff] }
 0x4bf   : > { %v4360_v24 = vadd.f32 %v4359_v48, %v4118_v49  ;;  %v4262_v22 = vrot.slane %v4261_v14, 1 }
 0x4c1   : > { %v4361_v21 = vadd.f32 %v4360_v24, %v4120_v36  ;;  %v4263_v28 = vadd.f32 %v4262_v22, %v4261_v14 }
 0x4c3   : > { %v4362_v20 = vadd.f32 %v4361_v21, %v4122_v32  ;;  %vm4434_vm12 = vcmp.lt.f32.partialorder %v4263_v28, 0.0 }
 0x4c4   : > { %v4436_v52 = vsel %vm4434_vm12, %v10382_v27, 0.0 }
 0x4c5   : > { %v4363_v29 = vadd.f32 %v4362_v20, %v4124_v6 }
 0x4c7   : > { %v4364_v50 = vadd.f32 %v4363_v29, %v4126_v45 }
 0x4c9   : > { %v4365_v42 = vadd.f32 %v4364_v50, %v4128_v40 }
 0x4cb   : > { %v4366_v11 = vadd.f32 %v4365_v42, %v4130_v13 }
 0x4cd   : > { %v4367_v37 = vadd.f32 %v4366_v11, %v4132_v7 }
 0x4cf   : > { %v4368_v0 = vadd.f32 %v4367_v37, %v4134_v25 }
 0x4d1   : > { %v4369_v4 = vadd.f32 %v4368_v0, %v4136_v10 }
 0x4d3   : > { %v4370_v35 = vadd.f32 %v4369_v4, %v4138_v58 }
 0x4d5   : > { %v4371_v34 = vadd.f32 %v4370_v35, %v4140_v43 }
 0x4d7   : > { %v4372_v33 = vadd.f32 %v4371_v34, %v4142_v38 }
 0x4d9   : > { %v4373_v51 = vadd.f32 %v4372_v33, %v4144_v41 }
 0x4db   : > { %v4374_v56 = vadd.f32 %v4373_v51, %v4146_v60 }
 0x4dd   : > { %v4375_v5 = vrot.slane %v4374_v56, 4 }
 0x4df   : > { %v4376_v19 = vadd.f32 %v4375_v5, %v4374_v56 }
 0x4e1   : > { %v4377_v9 = vrot.slane %v4376_v19, 2 }
 0x4e3   : > { %v4378_v62 = vadd.f32 %v4377_v9, %v4376_v19 }
 0x4e5   : > { %v4379_v8 = vrot.slane %v4378_v62, 1 }
 0x4e7   : > { %v4380_v26 = vadd.f32 %v4379_v8, %v4378_v62 }
 0x4e9   : > { %vm4435_vm15 = vcmp.lt.f32.partialorder %v4380_v26, 0.0 }
 0x4ea   : > { %v4437_v30 = vsel %vm4435_vm15, %v10383_v59, 0.0 }
 0x4eb   : > { %v4440_v39 = vcombine.low %v4436_v52, %v4437_v30 }
 0x4ed   : > { %v4447_v48 = vrot.slane %v4440_v39, %v10384_v3 }
 0x4ef   : > { %v4454_v49 = vrot.slane %v4447_v48, %v10384_v3 }
 0x4f1   : > { %4456 = vst.msk [vmem:[%s248_s30] sm:$0x3] %vm7519_vm10, %v4454_v49 }
 0x4f2 PF: > { %s14_s14 = sadd.s32 1, %s4894_s14   ;;  %s10386_s12 = smov %s4890_s13 }
 0x4f3   : > { %p11_p5 = scmp.ge.s32.totalorder %s14_s14, 4   ;;  %s10387_s13 = smov %s10389_s15 }
 0x4f5   :  { %13 = sbr.rel (!%p11_p5) target bundleno = 2 (0x2), region = 73 }

</bundles_post_ra>
